<compile_context>
chip_gen: v7x
topology: tpu7x:2x2x1
jax: 0.10.0
libtpu: 0.0.40
codegen_flags: <defaults>
</compile_context>

<pallas_src>
import functools

import jax
import jax.numpy as jnp
from jax import lax
from jax.experimental import pallas as pl
from jax.experimental.pallas import tpu as pltpu

_NUM_GIN = 6
_K = 8                     # conv kernel size
_L_IN = 128                # embed_dim  -> conv "length" axis
_C_IN = 1200               # target len -> conv "channel" axis
_C1 = 32                   # conv1 out channels
_C2 = 64                   # conv2 out channels
_L1 = _L_IN - _K + 1       # 121
_L2 = _L1 - _K + 1         # 114
_VOCAB = 26                # num_features_xt + 1


# ---------------------------------------------------------------------------
# Kernel 1: protein Conv1d(1200->32,k=8)+ReLU + Conv1d(32->64,k=8)+ReLU
#   grid=(batch,) parallel; taps folded into single N=256 / K=256 MXU matmuls.
# ---------------------------------------------------------------------------
def _protein_conv_kernel(x_ref, w1_ref, b1_ref, w2_ref, b2_ref, o_ref, lhs2_ref):
    # x_ref: (128, 1200) bf16  position-major slice of the embedded target.
    # conv1 folded: ONE [128,1200]@[1200,256] MXU call, 8 shifted adds after.
    y = jnp.dot(x_ref[...], w1_ref[...], preferred_element_type=jnp.float32)  # (128,256)
    acc1 = y[0:_L1, 0:_C1]
    for k in range(1, _K):
        acc1 = acc1 + y[k:k + _L1, k * _C1:(k + 1) * _C1]
    h1 = jnp.maximum(acc1 + b1_ref[...], 0.0)                                  # (121,32) f32

    # conv2 folded along K: pack the 8 shifted windows into a [114,256] lhs
    # (VMEM scratch, static masked stores), then ONE [114,256]@[256,64] matmul.
    for k in range(_K):
        lhs2_ref[:, k * _C1:(k + 1) * _C1] = h1[k:k + _L2, :]
    acc2 = jnp.dot(lhs2_ref[...].astype(jnp.bfloat16), w2_ref[...],
                   preferred_element_type=jnp.float32)                         # (114,64)
    o_ref[...] = jnp.maximum(acc2 + b2_ref[...], 0.0).astype(o_ref.dtype)


def protein_conv(emb_nlc, w1_all, b1, w2_all, b2):
    batch = emb_nlc.shape[0]
    flops = 2 * batch * (_L_IN * _C_IN * _K * _C1 + _L2 * _K * _C1 * _C2)
    bytes_acc = (emb_nlc.size * emb_nlc.dtype.itemsize
                 + w1_all.size * w1_all.dtype.itemsize
                 + w2_all.size * w2_all.dtype.itemsize
                 + b1.size * 4 + b2.size * 4
                 + batch * _L2 * _C2 * 2)
    grid_spec = pltpu.PrefetchScalarGridSpec(
        num_scalar_prefetch=0,
        grid=(batch,),
        in_specs=[
            pl.BlockSpec((None, _L_IN, _C_IN), lambda b: (b, 0, 0)),   # per-batch slice
            pl.BlockSpec((_C_IN, _K * _C1), lambda b: (0, 0)),         # resident weights
            pl.BlockSpec((1, _C1), lambda b: (0, 0)),
            pl.BlockSpec((_K * _C1, _C2), lambda b: (0, 0)),
            pl.BlockSpec((1, _C2), lambda b: (0, 0)),
        ],
        out_specs=pl.BlockSpec((None, _L2, _C2), lambda b: (b, 0, 0)),
        scratch_shapes=[pltpu.VMEM((_L2, _K * _C1), jnp.float32)],
    )
    return pl.pallas_call(
        _protein_conv_kernel,
        out_shape=jax.ShapeDtypeStruct((batch, _L2, _C2), jnp.bfloat16),
        grid_spec=grid_spec,
        compiler_params=pltpu.CompilerParams(
            dimension_semantics=("parallel",),
            vmem_limit_bytes=32 * 1024 * 1024),
        cost_estimate=pl.CostEstimate(flops=int(flops), transcendentals=0,
                                      bytes_accessed=int(bytes_acc)),
    )(emb_nlc, w1_all, b1, w2_all, b2)


# ---------------------------------------------------------------------------
# Kernel 2 (grid-less, fully fused):
#   6 x (GINConv eps=0 + ReLU + BatchNorm1d batch stats) + global_add_pool
#   + flatten MLP (32->256->128) + prot_fc (7296->128)
#   + implicit concat (split weights) + Linear(256,1024)+ReLU
#   + Linear(1024,256)+ReLU + Linear(256,1)
# ---------------------------------------------------------------------------
def _drug_head_kernel(*refs):
    n = _NUM_GIN
    a_ref, x_ref = refs[0], refs[1]
    gin_refs = refs[2:2 + 3 * n]
    (pool_ref, fw1_ref, fb1_ref, fw2_ref, fb2_ref,
     flat_ref, wf_ref, bf_ref,
     ow1d_ref, ow1t_ref, ob1_ref, ow2_ref, ob2_ref,
     ow3_ref, ob3_ref, o_ref) = refs[2 + 3 * n:]

    # ---- drug branch (all nodes stay resident in VMEM across the 6 layers) --
    a = a_ref[...]                         # dense (A + I), [N, N]
    h = x_ref[...]                         # node features, [N, 18]
    for i in range(n):
        w1 = gin_refs[3 * i][...]
        w2 = gin_refs[3 * i + 1][...]
        vec = gin_refs[3 * i + 2][...]     # rows: b1, b2, gamma, beta
        agg = jnp.dot(a, h, preferred_element_type=jnp.float32)
        t = jnp.dot(agg, w1, preferred_element_type=jnp.float32) + vec[0:1, :]
        t = jnp.maximum(t, 0.0)
        t = jnp.dot(t, w2, preferred_element_type=jnp.float32) + vec[1:2, :]
        t = jnp.maximum(t, 0.0)            # F.relu(conv(x, edge_index))
        # one-pass batch statistics: var = E[t^2] - mean^2
        mean = jnp.mean(t, axis=0, keepdims=True)
        var = jnp.maximum(jnp.mean(t * t, axis=0, keepdims=True) - mean * mean, 0.0)
        h = vec[2:3, :] * (t - mean) * lax.rsqrt(var + 1e-5) + vec[3:4, :]

    d = jnp.dot(pool_ref[...], h, preferred_element_type=jnp.float32)      # add-pool [B,32]
    d = jnp.maximum(jnp.dot(d, fw1_ref[...],
                            preferred_element_type=jnp.float32) + fb1_ref[...], 0.0)
    d = jnp.dot(d, fw2_ref[...], preferred_element_type=jnp.float32) + fb2_ref[...]  # [B,128]

    # ---- protein fc + joint head (concat done as a split-weight sum) -------
    t_p = jnp.dot(flat_ref[...], wf_ref[...],
                  preferred_element_type=jnp.float32) + bf_ref[...]          # [B,128]
    z = (jnp.dot(d.astype(jnp.bfloat16), ow1d_ref[...],
                 preferred_element_type=jnp.float32)
         + jnp.dot(t_p.astype(jnp.bfloat16), ow1t_ref[...],
                   preferred_element_type=jnp.float32)
         + ob1_ref[...])
    z = jnp.maximum(z, 0.0)
    z = jnp.dot(z.astype(jnp.bfloat16), ow2_ref[...],
                preferred_element_type=jnp.float32) + ob2_ref[...]
    z = jnp.maximum(z, 0.0)
    # final Linear(256, 1) as multiply + lane reduction (avoids a 1-wide matmul)
    o_ref[...] = (jnp.sum(z * ow3_ref[...], axis=1, keepdims=True)
                  + ob3_ref[...]).astype(o_ref.dtype)


def drug_head(a_plus_i, x_nodes, pool, gin_params, flat_params, flat_prot, head):
    b = pool.shape[0]
    n = a_plus_i.shape[0]
    args = [a_plus_i, x_nodes]
    for p in gin_params:
        args += [p["w1"], p["w2"], p["vecs"]]
    args += [pool, flat_params["w1"], flat_params["b1"],
             flat_params["w2"], flat_params["b2"],
             flat_prot, head["prot_fc_w"], head["prot_fc_b"],
             head["out1_wd"], head["out1_wt"], head["out1_b"],
             head["out2_w"], head["out2_b"],
             head["out3_w_row"], head["out3_b"]]

    flops = 0
    cin = x_nodes.shape[1]
    for p in gin_params:
        cout = p["w1"].shape[1]
        flops += 2 * n * (n * cin + cin * cout + cout * cout)
        cin = cout
    hid1 = flat_params["w1"].shape[1]
    out_d = flat_params["w2"].shape[1]
    flops += 2 * b * (n * cin + cin * hid1 + hid1 * out_d)
    flops += 2 * b * (head["prot_fc_w"].shape[0] * head["prot_fc_w"].shape[1]
                      + 256 * 1024 + 1024 * 256 + 256)
    bytes_acc = sum(int(a.size) * a.dtype.itemsize for a in args) + b * 4

    vmem = pl.BlockSpec(memory_space=pltpu.MemorySpace.VMEM)
    return pl.pallas_call(
        _drug_head_kernel,
        out_shape=jax.ShapeDtypeStruct((b, 1), jnp.float32),
        in_specs=[vmem] * len(args),
        out_specs=vmem,
        compiler_params=pltpu.CompilerParams(vmem_limit_bytes=32 * 1024 * 1024),
        cost_estimate=pl.CostEstimate(flops=int(flops), transcendentals=512,
                                      bytes_accessed=int(bytes_acc)),
    )(*args)


# ---------------------------------------------------------------------------
# Parameters (deterministic fresh init; all layout transforms done ONCE here)
# ---------------------------------------------------------------------------
def _linear_params(key, fan_in, fan_out):
    k1, k2 = jax.random.split(key)
    bound = fan_in ** -0.5
    w = jax.random.uniform(k1, (fan_in, fan_out), jnp.float32, -bound, bound)
    b = jax.random.uniform(k2, (1, fan_out), jnp.float32, -bound, bound)
    return w, b


def init_params(key):
    keys = iter(jax.random.split(key, 48))
    params = {}
    # GraphIsoBn stack: (18,78) then (78,32) then 4 x (32,32)
    gin_dims = [(18, 78), (78, 32), (32, 32), (32, 32), (32, 32), (32, 32)]
    gin = []
    for cin, cout in gin_dims:
        w1, b1 = _linear_params(next(keys), cin, cout)
        w2, b2 = _linear_params(next(keys), cout, cout)
        vecs = jnp.concatenate([b1, b2,
                                jnp.ones((1, cout), jnp.float32),     # BN gamma
                                jnp.zeros((1, cout), jnp.float32)],   # BN beta
                               axis=0)                                # [4, cout]
        gin.append(dict(w1=w1, w2=w2, vecs=vecs))
    params["gin"] = gin

    fw1, fb1 = _linear_params(next(keys), 32, 256)
    fw2, fb2 = _linear_params(next(keys), 256, 128)
    params["flat"] = dict(w1=fw1, b1=fb1, w2=fw2, b2=fb2)

    # Embedding(26, 128) stored transposed [embed_dim, vocab] (bf16) so the
    # one-hot contraction emits the conv's position-major layout directly.
    embed = jax.random.normal(next(keys), (_VOCAB, 128), jnp.float32)
    params["embed_t"] = embed.T.astype(jnp.bfloat16)                  # [128, 26]

    # Conv1d(1200->32, k=8): tap panels concatenated along N -> [1200, 8*32]
    # (W_all[c, k*32+o] = torch_w[o, c, k]) so conv1 is ONE N=256 matmul.
    bc1 = (_C_IN * _K) ** -0.5
    c1w = jax.random.uniform(next(keys), (_C1, _C_IN, _K), jnp.float32, -bc1, bc1)
    params["conv1_w_all"] = (jnp.transpose(c1w, (1, 2, 0))
                             .reshape(_C_IN, _K * _C1).astype(jnp.bfloat16))
    params["conv1_b"] = jax.random.uniform(next(keys), (1, _C1), jnp.float32, -bc1, bc1)
    # Conv1d(32->64, k=8): taps folded along K -> [8*32, 64]
    # (W_all[k*32+c, o] = torch_w[o, c, k]) so conv2 is ONE K=256 matmul.
    bc2 = (_C1 * _K) ** -0.5
    c2w = jax.random.uniform(next(keys), (_C2, _C1, _K), jnp.float32, -bc2, bc2)
    params["conv2_w_all"] = (jnp.transpose(c2w, (2, 1, 0))
                             .reshape(_K * _C1, _C2).astype(jnp.bfloat16))
    params["conv2_b"] = jax.random.uniform(next(keys), (1, _C2), jnp.float32, -bc2, bc2)

    head = {}
    # prot_fc: PyTorch flattens [B,64,114] channel-major (c*114+l); our conv
    # kernel emits position-major (l*64+c) -> permute weight rows once here.
    wf, bf = _linear_params(next(keys), _C2 * _L2, 128)
    head["prot_fc_w"] = (wf.reshape(_C2, _L2, 128).transpose(1, 0, 2)
                           .reshape(_L2 * _C2, 128)).astype(jnp.bfloat16)
    head["prot_fc_b"] = bf
    # out1 split so the concat(drug, target) becomes a sum of two matmuls
    w1, b1 = _linear_params(next(keys), 256, 1024)
    head["out1_wd"] = w1[:128].astype(jnp.bfloat16)
    head["out1_wt"] = w1[128:].astype(jnp.bfloat16)
    head["out1_b"] = b1
    w2, b2 = _linear_params(next(keys), 1024, 256)
    head["out2_w"] = w2.astype(jnp.bfloat16)
    head["out2_b"] = b2
    w3, b3 = _linear_params(next(keys), 256, 1)
    head["out3_w_row"] = w3.T            # [1, 256]
    head["out3_b"] = b3                  # [1, 1]
    params["head"] = head
    return params


# ---------------------------------------------------------------------------
# Full forward
# ---------------------------------------------------------------------------
@functools.partial(jax.jit, static_argnums=(5,))
def graphdta_gin_forward(params, x_nodes, edge_index, batch_vec, target, num_graphs):
    n_nodes = x_nodes.shape[0]
    # dense (A + I): A[t, s] += 1 for each edge s -> t (PyG convention), eps = 0
    a_plus_i = (jnp.zeros((n_nodes, n_nodes), jnp.float32)
                .at[edge_index[1], edge_index[0]].add(1.0)
                + jnp.eye(n_nodes, dtype=jnp.float32))
    # global_add_pool as pooling matmul: pool[g, n] = (batch[n] == g)
    pool = jax.nn.one_hot(batch_vec, num_graphs, dtype=jnp.float32).T

    # protein embedding emitted directly in position-major [B, 128, 1200] bf16
    # via a one-hot batched matmul (no XLA gather + transpose round trip).
    b = target.shape[0]
    onehot = jax.nn.one_hot(target, _VOCAB, dtype=jnp.bfloat16)        # [B,1200,26]
    embed_b = jnp.broadcast_to(params["embed_t"][None], (b, _L_IN, _VOCAB))
    emb_nlc = lax.dot_general(embed_b, onehot,
                              (((2,), (2,)), ((0,), (0,))),
                              preferred_element_type=jnp.bfloat16)     # [B,128,1200]

    conv_out = protein_conv(emb_nlc, params["conv1_w_all"], params["conv1_b"],
                            params["conv2_w_all"], params["conv2_b"])  # [B,114,64] bf16
    flat = conv_out.reshape(b, -1)                                     # [B,7296] (free)

    return drug_head(a_plus_i, x_nodes.astype(jnp.float32), pool,
                     params["gin"], params["flat"], flat, params["head"])  # [B, 1]


if __name__ == "__main__":
    key = jax.random.PRNGKey(0)
    kp, kx, kt = jax.random.split(key, 3)
    params = init_params(kp)

    num_graphs = 2
    n_nodes = 8                                    # 4 nodes per graph
    x_nodes = jax.random.normal(kx, (n_nodes, 18), jnp.float32)
    # bidirectional ring inside each graph
    src = jnp.array([0, 1, 1, 2, 2, 3, 3, 0, 4, 5, 5, 6, 6, 7, 7, 4], jnp.int32)
    dst = jnp.array([1, 0, 2, 1, 3, 2, 0, 3, 5, 4, 6, 5, 7, 6, 4, 7], jnp.int32)
    edge_index = jnp.stack([src, dst])
    batch_vec = jnp.array([0, 0, 0, 0, 1, 1, 1, 1], jnp.int32)
    target = jax.random.randint(kt, (num_graphs, 1200), 0, _VOCAB, jnp.int32)

    out = graphdta_gin_forward(params, x_nodes, edge_index, batch_vec, target, num_graphs)
    out = jax.block_until_ready(out)
    assert out.shape == (num_graphs, 1) and out.dtype == jnp.float32
    print("KERNEL_OK")
</pallas_src>

<mosaic_0001>
module attributes {stable_mosaic.version = 11 : i64} {
  func.func private @main(%arg0: i32) attributes {dimension_semantics = [#tpu.dimension_semantics<core_parallel>], iteration_bounds = array<i64: 2>, tpu.core_type = #tpu.core_type<sc_scalar_subcore>, window_params = []} {
    return
  }
}

module attributes {stable_mosaic.version = 11 : i64} {
  func.func private @main(%arg0: i32) attributes {dimension_semantics = [#tpu.dimension_semantics<core_parallel>], iteration_bounds = array<i64: 2>, tpu.core_type = #tpu.core_type<sc_scalar_subcore>, window_params = []} {
    return
  }
}

module attributes {stable_mosaic.version = 11 : i64} {
  func.func @_protein_conv_kernel(%arg0: i32, %arg1: memref<1x128x1200xbf16, #tpu.memory_space<vmem>>, %arg2: memref<1200x256xbf16, #tpu.memory_space<vmem>>, %arg3: memref<1x32xf32, #tpu.memory_space<vmem>>, %arg4: memref<256x64xbf16, #tpu.memory_space<vmem>>, %arg5: memref<1x64xf32, #tpu.memory_space<vmem>>, %arg6: memref<1x114x64xbf16, #tpu.memory_space<vmem>>, %arg7: memref<114x256xf32, #tpu.memory_space<vmem>>) attributes {dimension_semantics = [#tpu.dimension_semantics<parallel>], iteration_bounds = array<i64: 2>, scalar_prefetch = 0 : i64, scratch_operands = 1 : i64, tpu.core_type = #tpu.core_type<tc>, window_params = [{transform_indices = @transform_0, window_bounds = array<i64: 1, 128, 1200>}, {pipeline_mode = #tpu.pipeline_mode<synchronous>, transform_indices = @transform_1, window_bounds = array<i64: 1200, 256>}, {pipeline_mode = #tpu.pipeline_mode<synchronous>, transform_indices = @transform_2, window_bounds = array<i64: 1, 32>}, {pipeline_mode = #tpu.pipeline_mode<synchronous>, transform_indices = @transform_3, window_bounds = array<i64: 256, 64>}, {pipeline_mode = #tpu.pipeline_mode<synchronous>, transform_indices = @transform_4, window_bounds = array<i64: 1, 64>}, {transform_indices = @transform_5, window_bounds = array<i64: 1, 114, 64>}]} {
    %c0 = arith.constant 0 : index
    %c0_0 = arith.constant 0 : index
    %c0_1 = arith.constant 0 : index
    %0 = vector.load %arg1[%c0, %c0_0, %c0_1] : memref<1x128x1200xbf16, #tpu.memory_space<vmem>>, vector<1x128x1200xbf16>
    %1 = vector.shape_cast %0 : vector<1x128x1200xbf16> to vector<128x1200xbf16>
    %c0_2 = arith.constant 0 : index
    %c0_3 = arith.constant 0 : index
    %2 = vector.load %arg2[%c0_2, %c0_3] : memref<1200x256xbf16, #tpu.memory_space<vmem>>, vector<1200x256xbf16>
    %cst = arith.constant dense<0.000000e+00> : vector<128x256xf32>
    %3 = tpu.matmul %1, %2, %cst {dimension_numbers = #tpu.dot_dimension_numbers<[1], [0], [0], [1], [0, 0, 1, 1], [], []>} : vector<128x1200xbf16>, vector<1200x256xbf16>, vector<128x256xf32> -> vector<128x256xf32>
    %4 = vector.extract_strided_slice %3 {offsets = [0, 0], sizes = [121, 32], strides = [1, 1]} : vector<128x256xf32> to vector<121x32xf32>
    %5 = vector.extract_strided_slice %3 {offsets = [1, 32], sizes = [121, 32], strides = [1, 1]} : vector<128x256xf32> to vector<121x32xf32>
    %6 = arith.addf %4, %5 : vector<121x32xf32>
    %7 = vector.extract_strided_slice %3 {offsets = [2, 64], sizes = [121, 32], strides = [1, 1]} : vector<128x256xf32> to vector<121x32xf32>
    %8 = arith.addf %6, %7 : vector<121x32xf32>
    %9 = vector.extract_strided_slice %3 {offsets = [3, 96], sizes = [121, 32], strides = [1, 1]} : vector<128x256xf32> to vector<121x32xf32>
    %10 = arith.addf %8, %9 : vector<121x32xf32>
    %11 = vector.extract_strided_slice %3 {offsets = [4, 128], sizes = [121, 32], strides = [1, 1]} : vector<128x256xf32> to vector<121x32xf32>
    %12 = arith.addf %10, %11 : vector<121x32xf32>
    %13 = vector.extract_strided_slice %3 {offsets = [5, 160], sizes = [121, 32], strides = [1, 1]} : vector<128x256xf32> to vector<121x32xf32>
    %14 = arith.addf %12, %13 : vector<121x32xf32>
    %15 = vector.extract_strided_slice %3 {offsets = [6, 192], sizes = [121, 32], strides = [1, 1]} : vector<128x256xf32> to vector<121x32xf32>
    %16 = arith.addf %14, %15 : vector<121x32xf32>
    %17 = vector.extract_strided_slice %3 {offsets = [7, 224], sizes = [121, 32], strides = [1, 1]} : vector<128x256xf32> to vector<121x32xf32>
    %18 = arith.addf %16, %17 : vector<121x32xf32>
    %c0_4 = arith.constant 0 : index
    %c0_5 = arith.constant 0 : index
    %19 = vector.load %arg3[%c0_4, %c0_5] : memref<1x32xf32, #tpu.memory_space<vmem>>, vector<1x32xf32>
    %20 = vector.broadcast %19 : vector<1x32xf32> to vector<121x32xf32>
    %21 = arith.addf %18, %20 : vector<121x32xf32>
    %cst_6 = arith.constant 0.000000e+00 : f32
    %22 = vector.broadcast %cst_6 : f32 to vector<121x32xf32>
    %23 = arith.maximumf %21, %22 : vector<121x32xf32>
    %24 = vector.extract_strided_slice %23 {offsets = [0, 0], sizes = [114, 32], strides = [1, 1]} : vector<121x32xf32> to vector<114x32xf32>
    %c0_7 = arith.constant 0 : index
    %c0_8 = arith.constant 0 : index
    %25 = vector.load %arg7[%c0_7, %c0_8] : memref<114x256xf32, #tpu.memory_space<vmem>>, vector<114x32xf32>
    tpu.vector_store %arg7[%c0_7, %c0_8], %24 {strides = array<i32>} : memref<114x256xf32, #tpu.memory_space<vmem>>, vector<114x32xf32>,
    %26 = vector.extract_strided_slice %23 {offsets = [1, 0], sizes = [114, 32], strides = [1, 1]} : vector<121x32xf32> to vector<114x32xf32>
    %c0_9 = arith.constant 0 : index
    %c32 = arith.constant 32 : index
    %27 = vector.load %arg7[%c0_9, %c32] : memref<114x256xf32, #tpu.memory_space<vmem>>, vector<114x32xf32>
    tpu.vector_store %arg7[%c0_9, %c32], %26 {strides = array<i32>} : memref<114x256xf32, #tpu.memory_space<vmem>>, vector<114x32xf32>,
    %28 = vector.extract_strided_slice %23 {offsets = [2, 0], sizes = [114, 32], strides = [1, 1]} : vector<121x32xf32> to vector<114x32xf32>
    %c0_10 = arith.constant 0 : index
    %c64 = arith.constant 64 : index
    %29 = vector.load %arg7[%c0_10, %c64] : memref<114x256xf32, #tpu.memory_space<vmem>>, vector<114x32xf32>
    tpu.vector_store %arg7[%c0_10, %c64], %28 {strides = array<i32>} : memref<114x256xf32, #tpu.memory_space<vmem>>, vector<114x32xf32>,
    %30 = vector.extract_strided_slice %23 {offsets = [3, 0], sizes = [114, 32], strides = [1, 1]} : vector<121x32xf32> to vector<114x32xf32>
    %c0_11 = arith.constant 0 : index
    %c96 = arith.constant 96 : index
    %31 = vector.load %arg7[%c0_11, %c96] : memref<114x256xf32, #tpu.memory_space<vmem>>, vector<114x32xf32>
    tpu.vector_store %arg7[%c0_11, %c96], %30 {strides = array<i32>} : memref<114x256xf32, #tpu.memory_space<vmem>>, vector<114x32xf32>,
    %32 = vector.extract_strided_slice %23 {offsets = [4, 0], sizes = [114, 32], strides = [1, 1]} : vector<121x32xf32> to vector<114x32xf32>
    %c0_12 = arith.constant 0 : index
    %c128 = arith.constant 128 : index
    %33 = vector.load %arg7[%c0_12, %c128] : memref<114x256xf32, #tpu.memory_space<vmem>>, vector<114x32xf32>
    tpu.vector_store %arg7[%c0_12, %c128], %32 {strides = array<i32>} : memref<114x256xf32, #tpu.memory_space<vmem>>, vector<114x32xf32>,
    %34 = vector.extract_strided_slice %23 {offsets = [5, 0], sizes = [114, 32], strides = [1, 1]} : vector<121x32xf32> to vector<114x32xf32>
    %c0_13 = arith.constant 0 : index
    %c160 = arith.constant 160 : index
    %35 = vector.load %arg7[%c0_13, %c160] : memref<114x256xf32, #tpu.memory_space<vmem>>, vector<114x32xf32>
    tpu.vector_store %arg7[%c0_13, %c160], %34 {strides = array<i32>} : memref<114x256xf32, #tpu.memory_space<vmem>>, vector<114x32xf32>,
    %36 = vector.extract_strided_slice %23 {offsets = [6, 0], sizes = [114, 32], strides = [1, 1]} : vector<121x32xf32> to vector<114x32xf32>
    %c0_14 = arith.constant 0 : index
    %c192 = arith.constant 192 : index
    %37 = vector.load %arg7[%c0_14, %c192] : memref<114x256xf32, #tpu.memory_space<vmem>>, vector<114x32xf32>
    tpu.vector_store %arg7[%c0_14, %c192], %36 {strides = array<i32>} : memref<114x256xf32, #tpu.memory_space<vmem>>, vector<114x32xf32>,
    %38 = vector.extract_strided_slice %23 {offsets = [7, 0], sizes = [114, 32], strides = [1, 1]} : vector<121x32xf32> to vector<114x32xf32>
    %c0_15 = arith.constant 0 : index
    %c224 = arith.constant 224 : index
    %39 = vector.load %arg7[%c0_15, %c224] : memref<114x256xf32, #tpu.memory_space<vmem>>, vector<114x32xf32>
    tpu.vector_store %arg7[%c0_15, %c224], %38 {strides = array<i32>} : memref<114x256xf32, #tpu.memory_space<vmem>>, vector<114x32xf32>,
    %c0_16 = arith.constant 0 : index
    %c0_17 = arith.constant 0 : index
    %40 = vector.load %arg7[%c0_16, %c0_17] : memref<114x256xf32, #tpu.memory_space<vmem>>, vector<114x256xf32>
    %41 = arith.truncf %40 : vector<114x256xf32> to vector<114x256xbf16>
    %c0_18 = arith.constant 0 : index
    %c0_19 = arith.constant 0 : index
    %42 = vector.load %arg4[%c0_18, %c0_19] : memref<256x64xbf16, #tpu.memory_space<vmem>>, vector<256x64xbf16>
    %cst_20 = arith.constant dense<0.000000e+00> : vector<114x64xf32>
    %43 = tpu.matmul %41, %42, %cst_20 {dimension_numbers = #tpu.dot_dimension_numbers<[1], [0], [0], [1], [0, 0, 1, 1], [], []>} : vector<114x256xbf16>, vector<256x64xbf16>, vector<114x64xf32> -> vector<114x64xf32>
    %c0_21 = arith.constant 0 : index
    %c0_22 = arith.constant 0 : index
    %44 = vector.load %arg5[%c0_21, %c0_22] : memref<1x64xf32, #tpu.memory_space<vmem>>, vector<1x64xf32>
    %45 = vector.broadcast %44 : vector<1x64xf32> to vector<114x64xf32>
    %46 = arith.addf %43, %45 : vector<114x64xf32>
    %cst_23 = arith.constant 0.000000e+00 : f32
    %47 = vector.broadcast %cst_23 : f32 to vector<114x64xf32>
    %48 = arith.maximumf %46, %47 : vector<114x64xf32>
    %49 = arith.truncf %48 : vector<114x64xf32> to vector<114x64xbf16>
    %c0_24 = arith.constant 0 : index
    %c0_25 = arith.constant 0 : index
    %c0_26 = arith.constant 0 : index
    %50 = vector.load %arg6[%c0_24, %c0_25, %c0_26] : memref<1x114x64xbf16, #tpu.memory_space<vmem>>, vector<1x114x64xbf16>
    %51 = vector.shape_cast %50 : vector<1x114x64xbf16> to vector<114x64xbf16>
    %52 = vector.shape_cast %49 : vector<114x64xbf16> to vector<1x114x64xbf16>
    tpu.vector_store %arg6[%c0_24, %c0_25, %c0_26], %52 {strides = array<i32>} : memref<1x114x64xbf16, #tpu.memory_space<vmem>>, vector<1x114x64xbf16>,
    return
  }
  func.func @transform_0(%arg0: i32) -> (i32, i32, i32) {
    %c0_i32 = arith.constant 0 : i32
    %c0_i32_0 = arith.constant 0 : i32
    %c0_i32_1 = arith.constant 0 : i32
    return %arg0, %c0_i32, %c0_i32_0 : i32, i32, i32
  }
  func.func @transform_1(%arg0: i32) -> (i32, i32) {
    %c0_i32 = arith.constant 0 : i32
    %c0_i32_0 = arith.constant 0 : i32
    %c0_i32_1 = arith.constant 0 : i32
    return %c0_i32, %c0_i32_0 : i32, i32
  }
  func.func @transform_2(%arg0: i32) -> (i32, i32) {
    %c0_i32 = arith.constant 0 : i32
    %c0_i32_0 = arith.constant 0 : i32
    %c0_i32_1 = arith.constant 0 : i32
    return %c0_i32, %c0_i32_0 : i32, i32
  }
  func.func @transform_3(%arg0: i32) -> (i32, i32) {
    %c0_i32 = arith.constant 0 : i32
    %c0_i32_0 = arith.constant 0 : i32
    %c0_i32_1 = arith.constant 0 : i32
    return %c0_i32, %c0_i32_0 : i32, i32
  }
  func.func @transform_4(%arg0: i32) -> (i32, i32) {
    %c0_i32 = arith.constant 0 : i32
    %c0_i32_0 = arith.constant 0 : i32
    %c0_i32_1 = arith.constant 0 : i32
    return %c0_i32, %c0_i32_0 : i32, i32
  }
  func.func @transform_5(%arg0: i32) -> (i32, i32, i32) {
    %c0_i32 = arith.constant 0 : i32
    %c0_i32_0 = arith.constant 0 : i32
    %c0_i32_1 = arith.constant 0 : i32
    return %arg0, %c0_i32, %c0_i32_0 : i32, i32, i32
  }
}

module attributes {stable_mosaic.version = 11 : i64} {
  func.func @_drug_head_kernel(%arg0: memref<8x8xf32, #tpu.memory_space<vmem>>, %arg1: memref<8x18xf32, #tpu.memory_space<vmem>>, %arg2: memref<18x78xf32, #tpu.memory_space<vmem>>, %arg3: memref<78x78xf32, #tpu.memory_space<vmem>>, %arg4: memref<4x78xf32, #tpu.memory_space<vmem>>, %arg5: memref<78x32xf32, #tpu.memory_space<vmem>>, %arg6: memref<32x32xf32, #tpu.memory_space<vmem>>, %arg7: memref<4x32xf32, #tpu.memory_space<vmem>>, %arg8: memref<32x32xf32, #tpu.memory_space<vmem>>, %arg9: memref<32x32xf32, #tpu.memory_space<vmem>>, %arg10: memref<4x32xf32, #tpu.memory_space<vmem>>, %arg11: memref<32x32xf32, #tpu.memory_space<vmem>>, %arg12: memref<32x32xf32, #tpu.memory_space<vmem>>, %arg13: memref<4x32xf32, #tpu.memory_space<vmem>>, %arg14: memref<32x32xf32, #tpu.memory_space<vmem>>, %arg15: memref<32x32xf32, #tpu.memory_space<vmem>>, %arg16: memref<4x32xf32, #tpu.memory_space<vmem>>, %arg17: memref<32x32xf32, #tpu.memory_space<vmem>>, %arg18: memref<32x32xf32, #tpu.memory_space<vmem>>, %arg19: memref<4x32xf32, #tpu.memory_space<vmem>>, %arg20: memref<2x8xf32, #tpu.memory_space<vmem>>, %arg21: memref<32x256xf32, #tpu.memory_space<vmem>>, %arg22: memref<1x256xf32, #tpu.memory_space<vmem>>, %arg23: memref<256x128xf32, #tpu.memory_space<vmem>>, %arg24: memref<1x128xf32, #tpu.memory_space<vmem>>, %arg25: memref<2x7296xbf16, #tpu.memory_space<vmem>>, %arg26: memref<7296x128xbf16, #tpu.memory_space<vmem>>, %arg27: memref<1x128xf32, #tpu.memory_space<vmem>>, %arg28: memref<128x1024xbf16, #tpu.memory_space<vmem>>, %arg29: memref<128x1024xbf16, #tpu.memory_space<vmem>>, %arg30: memref<1x1024xf32, #tpu.memory_space<vmem>>, %arg31: memref<1024x256xbf16, #tpu.memory_space<vmem>>, %arg32: memref<1x256xf32, #tpu.memory_space<vmem>>, %arg33: memref<1x256xf32, #tpu.memory_space<vmem>>, %arg34: memref<1x1xf32, #tpu.memory_space<vmem>>, %arg35: memref<2x1xf32, #tpu.memory_space<vmem>>) attributes {dimension_semantics = [], scalar_prefetch = 0 : i64, scratch_operands = 0 : i64, tpu.core_type = #tpu.core_type<tc>} {
    %c0 = arith.constant 0 : index
    %c0_0 = arith.constant 0 : index
    %0 = vector.load %arg0[%c0, %c0_0] : memref<8x8xf32, #tpu.memory_space<vmem>>, vector<8x8xf32>
    %c0_1 = arith.constant 0 : index
    %c0_2 = arith.constant 0 : index
    %1 = vector.load %arg1[%c0_1, %c0_2] : memref<8x18xf32, #tpu.memory_space<vmem>>, vector<8x18xf32>
    %c0_3 = arith.constant 0 : index
    %c0_4 = arith.constant 0 : index
    %2 = vector.load %arg2[%c0_3, %c0_4] : memref<18x78xf32, #tpu.memory_space<vmem>>, vector<18x78xf32>
    %c0_5 = arith.constant 0 : index
    %c0_6 = arith.constant 0 : index
    %3 = vector.load %arg3[%c0_5, %c0_6] : memref<78x78xf32, #tpu.memory_space<vmem>>, vector<78x78xf32>
    %c0_7 = arith.constant 0 : index
    %c0_8 = arith.constant 0 : index
    %4 = vector.load %arg4[%c0_7, %c0_8] : memref<4x78xf32, #tpu.memory_space<vmem>>, vector<4x78xf32>
    %cst = arith.constant dense<0.000000e+00> : vector<8x18xf32>
    %5 = tpu.matmul %0, %1, %cst {dimension_numbers = #tpu.dot_dimension_numbers<[1], [0], [0], [1], [0, 0, 1, 1], [], []>} : vector<8x8xf32>, vector<8x18xf32>, vector<8x18xf32> -> vector<8x18xf32>
    %cst_9 = arith.constant dense<0.000000e+00> : vector<8x78xf32>
    %6 = tpu.matmul %5, %2, %cst_9 {dimension_numbers = #tpu.dot_dimension_numbers<[1], [0], [0], [1], [0, 0, 1, 1], [], []>} : vector<8x18xf32>, vector<18x78xf32>, vector<8x78xf32> -> vector<8x78xf32>
    %7 = vector.extract_strided_slice %4 {offsets = [0, 0], sizes = [1, 78], strides = [1, 1]} : vector<4x78xf32> to vector<1x78xf32>
    %8 = vector.broadcast %7 : vector<1x78xf32> to vector<8x78xf32>
    %9 = arith.addf %6, %8 : vector<8x78xf32>
    %cst_10 = arith.constant 0.000000e+00 : f32
    %10 = vector.broadcast %cst_10 : f32 to vector<8x78xf32>
    %11 = arith.maximumf %9, %10 : vector<8x78xf32>
    %cst_11 = arith.constant dense<0.000000e+00> : vector<8x78xf32>
    %12 = tpu.matmul %11, %3, %cst_11 {dimension_numbers = #tpu.dot_dimension_numbers<[1], [0], [0], [1], [0, 0, 1, 1], [], []>} : vector<8x78xf32>, vector<78x78xf32>, vector<8x78xf32> -> vector<8x78xf32>
    %13 = vector.extract_strided_slice %4 {offsets = [1, 0], sizes = [1, 78], strides = [1, 1]} : vector<4x78xf32> to vector<1x78xf32>
    %14 = vector.broadcast %13 : vector<1x78xf32> to vector<8x78xf32>
    %15 = arith.addf %12, %14 : vector<8x78xf32>
    %cst_12 = arith.constant 0.000000e+00 : f32
    %16 = vector.broadcast %cst_12 : f32 to vector<8x78xf32>
    %17 = arith.maximumf %15, %16 : vector<8x78xf32>
    %cst_13 = arith.constant dense<0.000000e+00> : vector<78xf32>
    %18 = vector.multi_reduction <add>, %17, %cst_13 [0] : vector<8x78xf32> to vector<78xf32>
    %19 = vector.shape_cast %18 : vector<78xf32> to vector<1x78xf32>
    %cst_14 = arith.constant 8.000000e+00 : f32
    %20 = vector.broadcast %cst_14 : f32 to vector<1x78xf32>
    %21 = arith.divf %19, %20 : vector<1x78xf32>
    %22 = arith.mulf %17, %17 : vector<8x78xf32>
    %cst_15 = arith.constant dense<0.000000e+00> : vector<78xf32>
    %23 = vector.multi_reduction <add>, %22, %cst_15 [0] : vector<8x78xf32> to vector<78xf32>
    %24 = vector.shape_cast %23 : vector<78xf32> to vector<1x78xf32>
    %cst_16 = arith.constant 8.000000e+00 : f32
    %25 = vector.broadcast %cst_16 : f32 to vector<1x78xf32>
    %26 = arith.divf %24, %25 : vector<1x78xf32>
    %27 = arith.mulf %21, %21 : vector<1x78xf32>
    %28 = arith.subf %26, %27 : vector<1x78xf32>
    %cst_17 = arith.constant 0.000000e+00 : f32
    %29 = vector.broadcast %cst_17 : f32 to vector<1x78xf32>
    %30 = arith.maximumf %28, %29 : vector<1x78xf32>
    %31 = vector.extract_strided_slice %4 {offsets = [2, 0], sizes = [1, 78], strides = [1, 1]} : vector<4x78xf32> to vector<1x78xf32>
    %32 = vector.broadcast %21 : vector<1x78xf32> to vector<8x78xf32>
    %33 = arith.subf %17, %32 : vector<8x78xf32>
    %34 = vector.broadcast %31 : vector<1x78xf32> to vector<8x78xf32>
    %35 = arith.mulf %34, %33 : vector<8x78xf32>
    %cst_18 = arith.constant 9.99999974E-6 : f32
    %36 = vector.broadcast %cst_18 : f32 to vector<1x78xf32>
    %37 = arith.addf %30, %36 : vector<1x78xf32>
    %38 = math.rsqrt %37 : vector<1x78xf32>
    %39 = vector.broadcast %38 : vector<1x78xf32> to vector<8x78xf32>
    %40 = arith.mulf %35, %39 : vector<8x78xf32>
    %41 = vector.extract_strided_slice %4 {offsets = [3, 0], sizes = [1, 78], strides = [1, 1]} : vector<4x78xf32> to vector<1x78xf32>
    %42 = vector.broadcast %41 : vector<1x78xf32> to vector<8x78xf32>
    %43 = arith.addf %40, %42 : vector<8x78xf32>
    %c0_19 = arith.constant 0 : index
    %c0_20 = arith.constant 0 : index
    %44 = vector.load %arg5[%c0_19, %c0_20] : memref<78x32xf32, #tpu.memory_space<vmem>>, vector<78x32xf32>
    %c0_21 = arith.constant 0 : index
    %c0_22 = arith.constant 0 : index
    %45 = vector.load %arg6[%c0_21, %c0_22] : memref<32x32xf32, #tpu.memory_space<vmem>>, vector<32x32xf32>
    %c0_23 = arith.constant 0 : index
    %c0_24 = arith.constant 0 : index
    %46 = vector.load %arg7[%c0_23, %c0_24] : memref<4x32xf32, #tpu.memory_space<vmem>>, vector<4x32xf32>
    %cst_25 = arith.constant dense<0.000000e+00> : vector<8x78xf32>
    %47 = tpu.matmul %0, %43, %cst_25 {dimension_numbers = #tpu.dot_dimension_numbers<[1], [0], [0], [1], [0, 0, 1, 1], [], []>} : vector<8x8xf32>, vector<8x78xf32>, vector<8x78xf32> -> vector<8x78xf32>
    %cst_26 = arith.constant dense<0.000000e+00> : vector<8x32xf32>
    %48 = tpu.matmul %47, %44, %cst_26 {dimension_numbers = #tpu.dot_dimension_numbers<[1], [0], [0], [1], [0, 0, 1, 1], [], []>} : vector<8x78xf32>, vector<78x32xf32>, vector<8x32xf32> -> vector<8x32xf32>
    %49 = vector.extract_strided_slice %46 {offsets = [0, 0], sizes = [1, 32], strides = [1, 1]} : vector<4x32xf32> to vector<1x32xf32>
    %50 = vector.broadcast %49 : vector<1x32xf32> to vector<8x32xf32>
    %51 = arith.addf %48, %50 : vector<8x32xf32>
    %cst_27 = arith.constant 0.000000e+00 : f32
    %52 = vector.broadcast %cst_27 : f32 to vector<8x32xf32>
    %53 = arith.maximumf %51, %52 : vector<8x32xf32>
    %cst_28 = arith.constant dense<0.000000e+00> : vector<8x32xf32>
    %54 = tpu.matmul %53, %45, %cst_28 {dimension_numbers = #tpu.dot_dimension_numbers<[1], [0], [0], [1], [0, 0, 1, 1], [], []>} : vector<8x32xf32>, vector<32x32xf32>, vector<8x32xf32> -> vector<8x32xf32>
    %55 = vector.extract_strided_slice %46 {offsets = [1, 0], sizes = [1, 32], strides = [1, 1]} : vector<4x32xf32> to vector<1x32xf32>
    %56 = vector.broadcast %55 : vector<1x32xf32> to vector<8x32xf32>
    %57 = arith.addf %54, %56 : vector<8x32xf32>
    %cst_29 = arith.constant 0.000000e+00 : f32
    %58 = vector.broadcast %cst_29 : f32 to vector<8x32xf32>
    %59 = arith.maximumf %57, %58 : vector<8x32xf32>
    %cst_30 = arith.constant dense<0.000000e+00> : vector<32xf32>
    %60 = vector.multi_reduction <add>, %59, %cst_30 [0] : vector<8x32xf32> to vector<32xf32>
    %61 = vector.shape_cast %60 : vector<32xf32> to vector<1x32xf32>
    %cst_31 = arith.constant 8.000000e+00 : f32
    %62 = vector.broadcast %cst_31 : f32 to vector<1x32xf32>
    %63 = arith.divf %61, %62 : vector<1x32xf32>
    %64 = arith.mulf %59, %59 : vector<8x32xf32>
    %cst_32 = arith.constant dense<0.000000e+00> : vector<32xf32>
    %65 = vector.multi_reduction <add>, %64, %cst_32 [0] : vector<8x32xf32> to vector<32xf32>
    %66 = vector.shape_cast %65 : vector<32xf32> to vector<1x32xf32>
    %cst_33 = arith.constant 8.000000e+00 : f32
    %67 = vector.broadcast %cst_33 : f32 to vector<1x32xf32>
    %68 = arith.divf %66, %67 : vector<1x32xf32>
    %69 = arith.mulf %63, %63 : vector<1x32xf32>
    %70 = arith.subf %68, %69 : vector<1x32xf32>
    %cst_34 = arith.constant 0.000000e+00 : f32
    %71 = vector.broadcast %cst_34 : f32 to vector<1x32xf32>
    %72 = arith.maximumf %70, %71 : vector<1x32xf32>
    %73 = vector.extract_strided_slice %46 {offsets = [2, 0], sizes = [1, 32], strides = [1, 1]} : vector<4x32xf32> to vector<1x32xf32>
    %74 = vector.broadcast %63 : vector<1x32xf32> to vector<8x32xf32>
    %75 = arith.subf %59, %74 : vector<8x32xf32>
    %76 = vector.broadcast %73 : vector<1x32xf32> to vector<8x32xf32>
    %77 = arith.mulf %76, %75 : vector<8x32xf32>
    %cst_35 = arith.constant 9.99999974E-6 : f32
    %78 = vector.broadcast %cst_35 : f32 to vector<1x32xf32>
    %79 = arith.addf %72, %78 : vector<1x32xf32>
    %80 = math.rsqrt %79 : vector<1x32xf32>
    %81 = vector.broadcast %80 : vector<1x32xf32> to vector<8x32xf32>
    %82 = arith.mulf %77, %81 : vector<8x32xf32>
    %83 = vector.extract_strided_slice %46 {offsets = [3, 0], sizes = [1, 32], strides = [1, 1]} : vector<4x32xf32> to vector<1x32xf32>
    %84 = vector.broadcast %83 : vector<1x32xf32> to vector<8x32xf32>
    %85 = arith.addf %82, %84 : vector<8x32xf32>
    %c0_36 = arith.constant 0 : index
    %c0_37 = arith.constant 0 : index
    %86 = vector.load %arg8[%c0_36, %c0_37] : memref<32x32xf32, #tpu.memory_space<vmem>>, vector<32x32xf32>
    %c0_38 = arith.constant 0 : index
    %c0_39 = arith.constant 0 : index
    %87 = vector.load %arg9[%c0_38, %c0_39] : memref<32x32xf32, #tpu.memory_space<vmem>>, vector<32x32xf32>
    %c0_40 = arith.constant 0 : index
    %c0_41 = arith.constant 0 : index
    %88 = vector.load %arg10[%c0_40, %c0_41] : memref<4x32xf32, #tpu.memory_space<vmem>>, vector<4x32xf32>
    %cst_42 = arith.constant dense<0.000000e+00> : vector<8x32xf32>
    %89 = tpu.matmul %0, %85, %cst_42 {dimension_numbers = #tpu.dot_dimension_numbers<[1], [0], [0], [1], [0, 0, 1, 1], [], []>} : vector<8x8xf32>, vector<8x32xf32>, vector<8x32xf32> -> vector<8x32xf32>
    %cst_43 = arith.constant dense<0.000000e+00> : vector<8x32xf32>
    %90 = tpu.matmul %89, %86, %cst_43 {dimension_numbers = #tpu.dot_dimension_numbers<[1], [0], [0], [1], [0, 0, 1, 1], [], []>} : vector<8x32xf32>, vector<32x32xf32>, vector<8x32xf32> -> vector<8x32xf32>
    %91 = vector.extract_strided_slice %88 {offsets = [0, 0], sizes = [1, 32], strides = [1, 1]} : vector<4x32xf32> to vector<1x32xf32>
    %92 = vector.broadcast %91 : vector<1x32xf32> to vector<8x32xf32>
    %93 = arith.addf %90, %92 : vector<8x32xf32>
    %cst_44 = arith.constant 0.000000e+00 : f32
    %94 = vector.broadcast %cst_44 : f32 to vector<8x32xf32>
    %95 = arith.maximumf %93, %94 : vector<8x32xf32>
    %cst_45 = arith.constant dense<0.000000e+00> : vector<8x32xf32>
    %96 = tpu.matmul %95, %87, %cst_45 {dimension_numbers = #tpu.dot_dimension_numbers<[1], [0], [0], [1], [0, 0, 1, 1], [], []>} : vector<8x32xf32>, vector<32x32xf32>, vector<8x32xf32> -> vector<8x32xf32>
    %97 = vector.extract_strided_slice %88 {offsets = [1, 0], sizes = [1, 32], strides = [1, 1]} : vector<4x32xf32> to vector<1x32xf32>
    %98 = vector.broadcast %97 : vector<1x32xf32> to vector<8x32xf32>
    %99 = arith.addf %96, %98 : vector<8x32xf32>
    %cst_46 = arith.constant 0.000000e+00 : f32
    %100 = vector.broadcast %cst_46 : f32 to vector<8x32xf32>
    %101 = arith.maximumf %99, %100 : vector<8x32xf32>
    %cst_47 = arith.constant dense<0.000000e+00> : vector<32xf32>
    %102 = vector.multi_reduction <add>, %101, %cst_47 [0] : vector<8x32xf32> to vector<32xf32>
    %103 = vector.shape_cast %102 : vector<32xf32> to vector<1x32xf32>
    %cst_48 = arith.constant 8.000000e+00 : f32
    %104 = vector.broadcast %cst_48 : f32 to vector<1x32xf32>
    %105 = arith.divf %103, %104 : vector<1x32xf32>
    %106 = arith.mulf %101, %101 : vector<8x32xf32>
    %cst_49 = arith.constant dense<0.000000e+00> : vector<32xf32>
    %107 = vector.multi_reduction <add>, %106, %cst_49 [0] : vector<8x32xf32> to vector<32xf32>
    %108 = vector.shape_cast %107 : vector<32xf32> to vector<1x32xf32>
    %cst_50 = arith.constant 8.000000e+00 : f32
    %109 = vector.broadcast %cst_50 : f32 to vector<1x32xf32>
    %110 = arith.divf %108, %109 : vector<1x32xf32>
    %111 = arith.mulf %105, %105 : vector<1x32xf32>
    %112 = arith.subf %110, %111 : vector<1x32xf32>
    %cst_51 = arith.constant 0.000000e+00 : f32
    %113 = vector.broadcast %cst_51 : f32 to vector<1x32xf32>
    %114 = arith.maximumf %112, %113 : vector<1x32xf32>
    %115 = vector.extract_strided_slice %88 {offsets = [2, 0], sizes = [1, 32], strides = [1, 1]} : vector<4x32xf32> to vector<1x32xf32>
    %116 = vector.broadcast %105 : vector<1x32xf32> to vector<8x32xf32>
    %117 = arith.subf %101, %116 : vector<8x32xf32>
    %118 = vector.broadcast %115 : vector<1x32xf32> to vector<8x32xf32>
    %119 = arith.mulf %118, %117 : vector<8x32xf32>
    %cst_52 = arith.constant 9.99999974E-6 : f32
    %120 = vector.broadcast %cst_52 : f32 to vector<1x32xf32>
    %121 = arith.addf %114, %120 : vector<1x32xf32>
    %122 = math.rsqrt %121 : vector<1x32xf32>
    %123 = vector.broadcast %122 : vector<1x32xf32> to vector<8x32xf32>
    %124 = arith.mulf %119, %123 : vector<8x32xf32>
    %125 = vector.extract_strided_slice %88 {offsets = [3, 0], sizes = [1, 32], strides = [1, 1]} : vector<4x32xf32> to vector<1x32xf32>
    %126 = vector.broadcast %125 : vector<1x32xf32> to vector<8x32xf32>
    %127 = arith.addf %124, %126 : vector<8x32xf32>
    %c0_53 = arith.constant 0 : index
    %c0_54 = arith.constant 0 : index
    %128 = vector.load %arg11[%c0_53, %c0_54] : memref<32x32xf32, #tpu.memory_space<vmem>>, vector<32x32xf32>
    %c0_55 = arith.constant 0 : index
    %c0_56 = arith.constant 0 : index
    %129 = vector.load %arg12[%c0_55, %c0_56] : memref<32x32xf32, #tpu.memory_space<vmem>>, vector<32x32xf32>
    %c0_57 = arith.constant 0 : index
    %c0_58 = arith.constant 0 : index
    %130 = vector.load %arg13[%c0_57, %c0_58] : memref<4x32xf32, #tpu.memory_space<vmem>>, vector<4x32xf32>
    %cst_59 = arith.constant dense<0.000000e+00> : vector<8x32xf32>
    %131 = tpu.matmul %0, %127, %cst_59 {dimension_numbers = #tpu.dot_dimension_numbers<[1], [0], [0], [1], [0, 0, 1, 1], [], []>} : vector<8x8xf32>, vector<8x32xf32>, vector<8x32xf32> -> vector<8x32xf32>
    %cst_60 = arith.constant dense<0.000000e+00> : vector<8x32xf32>
    %132 = tpu.matmul %131, %128, %cst_60 {dimension_numbers = #tpu.dot_dimension_numbers<[1], [0], [0], [1], [0, 0, 1, 1], [], []>} : vector<8x32xf32>, vector<32x32xf32>, vector<8x32xf32> -> vector<8x32xf32>
    %133 = vector.extract_strided_slice %130 {offsets = [0, 0], sizes = [1, 32], strides = [1, 1]} : vector<4x32xf32> to vector<1x32xf32>
    %134 = vector.broadcast %133 : vector<1x32xf32> to vector<8x32xf32>
    %135 = arith.addf %132, %134 : vector<8x32xf32>
    %cst_61 = arith.constant 0.000000e+00 : f32
    %136 = vector.broadcast %cst_61 : f32 to vector<8x32xf32>
    %137 = arith.maximumf %135, %136 : vector<8x32xf32>
    %cst_62 = arith.constant dense<0.000000e+00> : vector<8x32xf32>
    %138 = tpu.matmul %137, %129, %cst_62 {dimension_numbers = #tpu.dot_dimension_numbers<[1], [0], [0], [1], [0, 0, 1, 1], [], []>} : vector<8x32xf32>, vector<32x32xf32>, vector<8x32xf32> -> vector<8x32xf32>
    %139 = vector.extract_strided_slice %130 {offsets = [1, 0], sizes = [1, 32], strides = [1, 1]} : vector<4x32xf32> to vector<1x32xf32>
    %140 = vector.broadcast %139 : vector<1x32xf32> to vector<8x32xf32>
    %141 = arith.addf %138, %140 : vector<8x32xf32>
    %cst_63 = arith.constant 0.000000e+00 : f32
    %142 = vector.broadcast %cst_63 : f32 to vector<8x32xf32>
    %143 = arith.maximumf %141, %142 : vector<8x32xf32>
    %cst_64 = arith.constant dense<0.000000e+00> : vector<32xf32>
    %144 = vector.multi_reduction <add>, %143, %cst_64 [0] : vector<8x32xf32> to vector<32xf32>
    %145 = vector.shape_cast %144 : vector<32xf32> to vector<1x32xf32>
    %cst_65 = arith.constant 8.000000e+00 : f32
    %146 = vector.broadcast %cst_65 : f32 to vector<1x32xf32>
    %147 = arith.divf %145, %146 : vector<1x32xf32>
    %148 = arith.mulf %143, %143 : vector<8x32xf32>
    %cst_66 = arith.constant dense<0.000000e+00> : vector<32xf32>
    %149 = vector.multi_reduction <add>, %148, %cst_66 [0] : vector<8x32xf32> to vector<32xf32>
    %150 = vector.shape_cast %149 : vector<32xf32> to vector<1x32xf32>
    %cst_67 = arith.constant 8.000000e+00 : f32
    %151 = vector.broadcast %cst_67 : f32 to vector<1x32xf32>
    %152 = arith.divf %150, %151 : vector<1x32xf32>
    %153 = arith.mulf %147, %147 : vector<1x32xf32>
    %154 = arith.subf %152, %153 : vector<1x32xf32>
    %cst_68 = arith.constant 0.000000e+00 : f32
    %155 = vector.broadcast %cst_68 : f32 to vector<1x32xf32>
    %156 = arith.maximumf %154, %155 : vector<1x32xf32>
    %157 = vector.extract_strided_slice %130 {offsets = [2, 0], sizes = [1, 32], strides = [1, 1]} : vector<4x32xf32> to vector<1x32xf32>
    %158 = vector.broadcast %147 : vector<1x32xf32> to vector<8x32xf32>
    %159 = arith.subf %143, %158 : vector<8x32xf32>
    %160 = vector.broadcast %157 : vector<1x32xf32> to vector<8x32xf32>
    %161 = arith.mulf %160, %159 : vector<8x32xf32>
    %cst_69 = arith.constant 9.99999974E-6 : f32
    %162 = vector.broadcast %cst_69 : f32 to vector<1x32xf32>
    %163 = arith.addf %156, %162 : vector<1x32xf32>
    %164 = math.rsqrt %163 : vector<1x32xf32>
    %165 = vector.broadcast %164 : vector<1x32xf32> to vector<8x32xf32>
    %166 = arith.mulf %161, %165 : vector<8x32xf32>
    %167 = vector.extract_strided_slice %130 {offsets = [3, 0], sizes = [1, 32], strides = [1, 1]} : vector<4x32xf32> to vector<1x32xf32>
    %168 = vector.broadcast %167 : vector<1x32xf32> to vector<8x32xf32>
    %169 = arith.addf %166, %168 : vector<8x32xf32>
    %c0_70 = arith.constant 0 : index
    %c0_71 = arith.constant 0 : index
    %170 = vector.load %arg14[%c0_70, %c0_71] : memref<32x32xf32, #tpu.memory_space<vmem>>, vector<32x32xf32>
    %c0_72 = arith.constant 0 : index
    %c0_73 = arith.constant 0 : index
    %171 = vector.load %arg15[%c0_72, %c0_73] : memref<32x32xf32, #tpu.memory_space<vmem>>, vector<32x32xf32>
    %c0_74 = arith.constant 0 : index
    %c0_75 = arith.constant 0 : index
    %172 = vector.load %arg16[%c0_74, %c0_75] : memref<4x32xf32, #tpu.memory_space<vmem>>, vector<4x32xf32>
    %cst_76 = arith.constant dense<0.000000e+00> : vector<8x32xf32>
    %173 = tpu.matmul %0, %169, %cst_76 {dimension_numbers = #tpu.dot_dimension_numbers<[1], [0], [0], [1], [0, 0, 1, 1], [], []>} : vector<8x8xf32>, vector<8x32xf32>, vector<8x32xf32> -> vector<8x32xf32>
    %cst_77 = arith.constant dense<0.000000e+00> : vector<8x32xf32>
    %174 = tpu.matmul %173, %170, %cst_77 {dimension_numbers = #tpu.dot_dimension_numbers<[1], [0], [0], [1], [0, 0, 1, 1], [], []>} : vector<8x32xf32>, vector<32x32xf32>, vector<8x32xf32> -> vector<8x32xf32>
    %175 = vector.extract_strided_slice %172 {offsets = [0, 0], sizes = [1, 32], strides = [1, 1]} : vector<4x32xf32> to vector<1x32xf32>
    %176 = vector.broadcast %175 : vector<1x32xf32> to vector<8x32xf32>
    %177 = arith.addf %174, %176 : vector<8x32xf32>
    %cst_78 = arith.constant 0.000000e+00 : f32
    %178 = vector.broadcast %cst_78 : f32 to vector<8x32xf32>
    %179 = arith.maximumf %177, %178 : vector<8x32xf32>
    %cst_79 = arith.constant dense<0.000000e+00> : vector<8x32xf32>
    %180 = tpu.matmul %179, %171, %cst_79 {dimension_numbers = #tpu.dot_dimension_numbers<[1], [0], [0], [1], [0, 0, 1, 1], [], []>} : vector<8x32xf32>, vector<32x32xf32>, vector<8x32xf32> -> vector<8x32xf32>
    %181 = vector.extract_strided_slice %172 {offsets = [1, 0], sizes = [1, 32], strides = [1, 1]} : vector<4x32xf32> to vector<1x32xf32>
    %182 = vector.broadcast %181 : vector<1x32xf32> to vector<8x32xf32>
    %183 = arith.addf %180, %182 : vector<8x32xf32>
    %cst_80 = arith.constant 0.000000e+00 : f32
    %184 = vector.broadcast %cst_80 : f32 to vector<8x32xf32>
    %185 = arith.maximumf %183, %184 : vector<8x32xf32>
    %cst_81 = arith.constant dense<0.000000e+00> : vector<32xf32>
    %186 = vector.multi_reduction <add>, %185, %cst_81 [0] : vector<8x32xf32> to vector<32xf32>
    %187 = vector.shape_cast %186 : vector<32xf32> to vector<1x32xf32>
    %cst_82 = arith.constant 8.000000e+00 : f32
    %188 = vector.broadcast %cst_82 : f32 to vector<1x32xf32>
    %189 = arith.divf %187, %188 : vector<1x32xf32>
    %190 = arith.mulf %185, %185 : vector<8x32xf32>
    %cst_83 = arith.constant dense<0.000000e+00> : vector<32xf32>
    %191 = vector.multi_reduction <add>, %190, %cst_83 [0] : vector<8x32xf32> to vector<32xf32>
    %192 = vector.shape_cast %191 : vector<32xf32> to vector<1x32xf32>
    %cst_84 = arith.constant 8.000000e+00 : f32
    %193 = vector.broadcast %cst_84 : f32 to vector<1x32xf32>
    %194 = arith.divf %192, %193 : vector<1x32xf32>
    %195 = arith.mulf %189, %189 : vector<1x32xf32>
    %196 = arith.subf %194, %195 : vector<1x32xf32>
    %cst_85 = arith.constant 0.000000e+00 : f32
    %197 = vector.broadcast %cst_85 : f32 to vector<1x32xf32>
    %198 = arith.maximumf %196, %197 : vector<1x32xf32>
    %199 = vector.extract_strided_slice %172 {offsets = [2, 0], sizes = [1, 32], strides = [1, 1]} : vector<4x32xf32> to vector<1x32xf32>
    %200 = vector.broadcast %189 : vector<1x32xf32> to vector<8x32xf32>
    %201 = arith.subf %185, %200 : vector<8x32xf32>
    %202 = vector.broadcast %199 : vector<1x32xf32> to vector<8x32xf32>
    %203 = arith.mulf %202, %201 : vector<8x32xf32>
    %cst_86 = arith.constant 9.99999974E-6 : f32
    %204 = vector.broadcast %cst_86 : f32 to vector<1x32xf32>
    %205 = arith.addf %198, %204 : vector<1x32xf32>
    %206 = math.rsqrt %205 : vector<1x32xf32>
    %207 = vector.broadcast %206 : vector<1x32xf32> to vector<8x32xf32>
    %208 = arith.mulf %203, %207 : vector<8x32xf32>
    %209 = vector.extract_strided_slice %172 {offsets = [3, 0], sizes = [1, 32], strides = [1, 1]} : vector<4x32xf32> to vector<1x32xf32>
    %210 = vector.broadcast %209 : vector<1x32xf32> to vector<8x32xf32>
    %211 = arith.addf %208, %210 : vector<8x32xf32>
    %c0_87 = arith.constant 0 : index
    %c0_88 = arith.constant 0 : index
    %212 = vector.load %arg17[%c0_87, %c0_88] : memref<32x32xf32, #tpu.memory_space<vmem>>, vector<32x32xf32>
    %c0_89 = arith.constant 0 : index
    %c0_90 = arith.constant 0 : index
    %213 = vector.load %arg18[%c0_89, %c0_90] : memref<32x32xf32, #tpu.memory_space<vmem>>, vector<32x32xf32>
    %c0_91 = arith.constant 0 : index
    %c0_92 = arith.constant 0 : index
    %214 = vector.load %arg19[%c0_91, %c0_92] : memref<4x32xf32, #tpu.memory_space<vmem>>, vector<4x32xf32>
    %cst_93 = arith.constant dense<0.000000e+00> : vector<8x32xf32>
    %215 = tpu.matmul %0, %211, %cst_93 {dimension_numbers = #tpu.dot_dimension_numbers<[1], [0], [0], [1], [0, 0, 1, 1], [], []>} : vector<8x8xf32>, vector<8x32xf32>, vector<8x32xf32> -> vector<8x32xf32>
    %cst_94 = arith.constant dense<0.000000e+00> : vector<8x32xf32>
    %216 = tpu.matmul %215, %212, %cst_94 {dimension_numbers = #tpu.dot_dimension_numbers<[1], [0], [0], [1], [0, 0, 1, 1], [], []>} : vector<8x32xf32>, vector<32x32xf32>, vector<8x32xf32> -> vector<8x32xf32>
    %217 = vector.extract_strided_slice %214 {offsets = [0, 0], sizes = [1, 32], strides = [1, 1]} : vector<4x32xf32> to vector<1x32xf32>
    %218 = vector.broadcast %217 : vector<1x32xf32> to vector<8x32xf32>
    %219 = arith.addf %216, %218 : vector<8x32xf32>
    %cst_95 = arith.constant 0.000000e+00 : f32
    %220 = vector.broadcast %cst_95 : f32 to vector<8x32xf32>
    %221 = arith.maximumf %219, %220 : vector<8x32xf32>
    %cst_96 = arith.constant dense<0.000000e+00> : vector<8x32xf32>
    %222 = tpu.matmul %221, %213, %cst_96 {dimension_numbers = #tpu.dot_dimension_numbers<[1], [0], [0], [1], [0, 0, 1, 1], [], []>} : vector<8x32xf32>, vector<32x32xf32>, vector<8x32xf32> -> vector<8x32xf32>
    %223 = vector.extract_strided_slice %214 {offsets = [1, 0], sizes = [1, 32], strides = [1, 1]} : vector<4x32xf32> to vector<1x32xf32>
    %224 = vector.broadcast %223 : vector<1x32xf32> to vector<8x32xf32>
    %225 = arith.addf %222, %224 : vector<8x32xf32>
    %cst_97 = arith.constant 0.000000e+00 : f32
    %226 = vector.broadcast %cst_97 : f32 to vector<8x32xf32>
    %227 = arith.maximumf %225, %226 : vector<8x32xf32>
    %cst_98 = arith.constant dense<0.000000e+00> : vector<32xf32>
    %228 = vector.multi_reduction <add>, %227, %cst_98 [0] : vector<8x32xf32> to vector<32xf32>
    %229 = vector.shape_cast %228 : vector<32xf32> to vector<1x32xf32>
    %cst_99 = arith.constant 8.000000e+00 : f32
    %230 = vector.broadcast %cst_99 : f32 to vector<1x32xf32>
    %231 = arith.divf %229, %230 : vector<1x32xf32>
    %232 = arith.mulf %227, %227 : vector<8x32xf32>
    %cst_100 = arith.constant dense<0.000000e+00> : vector<32xf32>
    %233 = vector.multi_reduction <add>, %232, %cst_100 [0] : vector<8x32xf32> to vector<32xf32>
    %234 = vector.shape_cast %233 : vector<32xf32> to vector<1x32xf32>
    %cst_101 = arith.constant 8.000000e+00 : f32
    %235 = vector.broadcast %cst_101 : f32 to vector<1x32xf32>
    %236 = arith.divf %234, %235 : vector<1x32xf32>
    %237 = arith.mulf %231, %231 : vector<1x32xf32>
    %238 = arith.subf %236, %237 : vector<1x32xf32>
    %cst_102 = arith.constant 0.000000e+00 : f32
    %239 = vector.broadcast %cst_102 : f32 to vector<1x32xf32>
    %240 = arith.maximumf %238, %239 : vector<1x32xf32>
    %241 = vector.extract_strided_slice %214 {offsets = [2, 0], sizes = [1, 32], strides = [1, 1]} : vector<4x32xf32> to vector<1x32xf32>
    %242 = vector.broadcast %231 : vector<1x32xf32> to vector<8x32xf32>
    %243 = arith.subf %227, %242 : vector<8x32xf32>
    %244 = vector.broadcast %241 : vector<1x32xf32> to vector<8x32xf32>
    %245 = arith.mulf %244, %243 : vector<8x32xf32>
    %cst_103 = arith.constant 9.99999974E-6 : f32
    %246 = vector.broadcast %cst_103 : f32 to vector<1x32xf32>
    %247 = arith.addf %240, %246 : vector<1x32xf32>
    %248 = math.rsqrt %247 : vector<1x32xf32>
    %249 = vector.broadcast %248 : vector<1x32xf32> to vector<8x32xf32>
    %250 = arith.mulf %245, %249 : vector<8x32xf32>
    %251 = vector.extract_strided_slice %214 {offsets = [3, 0], sizes = [1, 32], strides = [1, 1]} : vector<4x32xf32> to vector<1x32xf32>
    %252 = vector.broadcast %251 : vector<1x32xf32> to vector<8x32xf32>
    %253 = arith.addf %250, %252 : vector<8x32xf32>
    %c0_104 = arith.constant 0 : index
    %c0_105 = arith.constant 0 : index
    %254 = vector.load %arg20[%c0_104, %c0_105] : memref<2x8xf32, #tpu.memory_space<vmem>>, vector<2x8xf32>
    %cst_106 = arith.constant dense<0.000000e+00> : vector<2x32xf32>
    %255 = tpu.matmul %254, %253, %cst_106 {dimension_numbers = #tpu.dot_dimension_numbers<[1], [0], [0], [1], [0, 0, 1, 1], [], []>} : vector<2x8xf32>, vector<8x32xf32>, vector<2x32xf32> -> vector<2x32xf32>
    %c0_107 = arith.constant 0 : index
    %c0_108 = arith.constant 0 : index
    %256 = vector.load %arg21[%c0_107, %c0_108] : memref<32x256xf32, #tpu.memory_space<vmem>>, vector<32x256xf32>
    %cst_109 = arith.constant dense<0.000000e+00> : vector<2x256xf32>
    %257 = tpu.matmul %255, %256, %cst_109 {dimension_numbers = #tpu.dot_dimension_numbers<[1], [0], [0], [1], [0, 0, 1, 1], [], []>} : vector<2x32xf32>, vector<32x256xf32>, vector<2x256xf32> -> vector<2x256xf32>
    %c0_110 = arith.constant 0 : index
    %c0_111 = arith.constant 0 : index
    %258 = vector.load %arg22[%c0_110, %c0_111] : memref<1x256xf32, #tpu.memory_space<vmem>>, vector<1x256xf32>
    %259 = vector.broadcast %258 : vector<1x256xf32> to vector<2x256xf32>
    %260 = arith.addf %257, %259 : vector<2x256xf32>
    %cst_112 = arith.constant 0.000000e+00 : f32
    %261 = vector.broadcast %cst_112 : f32 to vector<2x256xf32>
    %262 = arith.maximumf %260, %261 : vector<2x256xf32>
    %c0_113 = arith.constant 0 : index
    %c0_114 = arith.constant 0 : index
    %263 = vector.load %arg23[%c0_113, %c0_114] : memref<256x128xf32, #tpu.memory_space<vmem>>, vector<256x128xf32>
    %cst_115 = arith.constant dense<0.000000e+00> : vector<2x128xf32>
    %264 = tpu.matmul %262, %263, %cst_115 {dimension_numbers = #tpu.dot_dimension_numbers<[1], [0], [0], [1], [0, 0, 1, 1], [], []>} : vector<2x256xf32>, vector<256x128xf32>, vector<2x128xf32> -> vector<2x128xf32>
    %c0_116 = arith.constant 0 : index
    %c0_117 = arith.constant 0 : index
    %265 = vector.load %arg24[%c0_116, %c0_117] : memref<1x128xf32, #tpu.memory_space<vmem>>, vector<1x128xf32>
    %266 = vector.broadcast %265 : vector<1x128xf32> to vector<2x128xf32>
    %267 = arith.addf %264, %266 : vector<2x128xf32>
    %c0_118 = arith.constant 0 : index
    %c0_119 = arith.constant 0 : index
    %268 = vector.load %arg25[%c0_118, %c0_119] : memref<2x7296xbf16, #tpu.memory_space<vmem>>, vector<2x7296xbf16>
    %c0_120 = arith.constant 0 : index
    %c0_121 = arith.constant 0 : index
    %269 = vector.load %arg26[%c0_120, %c0_121] : memref<7296x128xbf16, #tpu.memory_space<vmem>>, vector<7296x128xbf16>
    %cst_122 = arith.constant dense<0.000000e+00> : vector<2x128xf32>
    %270 = tpu.matmul %268, %269, %cst_122 {dimension_numbers = #tpu.dot_dimension_numbers<[1], [0], [0], [1], [0, 0, 1, 1], [], []>} : vector<2x7296xbf16>, vector<7296x128xbf16>, vector<2x128xf32> -> vector<2x128xf32>
    %c0_123 = arith.constant 0 : index
    %c0_124 = arith.constant 0 : index
    %271 = vector.load %arg27[%c0_123, %c0_124] : memref<1x128xf32, #tpu.memory_space<vmem>>, vector<1x128xf32>
    %272 = vector.broadcast %271 : vector<1x128xf32> to vector<2x128xf32>
    %273 = arith.addf %270, %272 : vector<2x128xf32>
    %274 = arith.truncf %267 : vector<2x128xf32> to vector<2x128xbf16>
    %c0_125 = arith.constant 0 : index
    %c0_126 = arith.constant 0 : index
    %275 = vector.load %arg28[%c0_125, %c0_126] : memref<128x1024xbf16, #tpu.memory_space<vmem>>, vector<128x1024xbf16>
    %cst_127 = arith.constant dense<0.000000e+00> : vector<2x1024xf32>
    %276 = tpu.matmul %274, %275, %cst_127 {dimension_numbers = #tpu.dot_dimension_numbers<[1], [0], [0], [1], [0, 0, 1, 1], [], []>} : vector<2x128xbf16>, vector<128x1024xbf16>, vector<2x1024xf32> -> vector<2x1024xf32>
    %277 = arith.truncf %273 : vector<2x128xf32> to vector<2x128xbf16>
    %c0_128 = arith.constant 0 : index
    %c0_129 = arith.constant 0 : index
    %278 = vector.load %arg29[%c0_128, %c0_129] : memref<128x1024xbf16, #tpu.memory_space<vmem>>, vector<128x1024xbf16>
    %cst_130 = arith.constant dense<0.000000e+00> : vector<2x1024xf32>
    %279 = tpu.matmul %277, %278, %cst_130 {dimension_numbers = #tpu.dot_dimension_numbers<[1], [0], [0], [1], [0, 0, 1, 1], [], []>} : vector<2x128xbf16>, vector<128x1024xbf16>, vector<2x1024xf32> -> vector<2x1024xf32>
    %280 = arith.addf %276, %279 : vector<2x1024xf32>
    %c0_131 = arith.constant 0 : index
    %c0_132 = arith.constant 0 : index
    %281 = vector.load %arg30[%c0_131, %c0_132] : memref<1x1024xf32, #tpu.memory_space<vmem>>, vector<1x1024xf32>
    %282 = vector.broadcast %281 : vector<1x1024xf32> to vector<2x1024xf32>
    %283 = arith.addf %280, %282 : vector<2x1024xf32>
    %cst_133 = arith.constant 0.000000e+00 : f32
    %284 = vector.broadcast %cst_133 : f32 to vector<2x1024xf32>
    %285 = arith.maximumf %283, %284 : vector<2x1024xf32>
    %286 = arith.truncf %285 : vector<2x1024xf32> to vector<2x1024xbf16>
    %c0_134 = arith.constant 0 : index
    %c0_135 = arith.constant 0 : index
    %287 = vector.load %arg31[%c0_134, %c0_135] : memref<1024x256xbf16, #tpu.memory_space<vmem>>, vector<1024x256xbf16>
    %cst_136 = arith.constant dense<0.000000e+00> : vector<2x256xf32>
    %288 = tpu.matmul %286, %287, %cst_136 {dimension_numbers = #tpu.dot_dimension_numbers<[1], [0], [0], [1], [0, 0, 1, 1], [], []>} : vector<2x1024xbf16>, vector<1024x256xbf16>, vector<2x256xf32> -> vector<2x256xf32>
    %c0_137 = arith.constant 0 : index
    %c0_138 = arith.constant 0 : index
    %289 = vector.load %arg32[%c0_137, %c0_138] : memref<1x256xf32, #tpu.memory_space<vmem>>, vector<1x256xf32>
    %290 = vector.broadcast %289 : vector<1x256xf32> to vector<2x256xf32>
    %291 = arith.addf %288, %290 : vector<2x256xf32>
    %cst_139 = arith.constant 0.000000e+00 : f32
    %292 = vector.broadcast %cst_139 : f32 to vector<2x256xf32>
    %293 = arith.maximumf %291, %292 : vector<2x256xf32>
    %c0_140 = arith.constant 0 : index
    %c0_141 = arith.constant 0 : index
    %294 = vector.load %arg33[%c0_140, %c0_141] : memref<1x256xf32, #tpu.memory_space<vmem>>, vector<1x256xf32>
    %295 = vector.broadcast %294 : vector<1x256xf32> to vector<2x256xf32>
    %296 = arith.mulf %293, %295 : vector<2x256xf32>
    %cst_142 = arith.constant dense<0.000000e+00> : vector<2xf32>
    %297 = vector.multi_reduction <add>, %296, %cst_142 [1] : vector<2x256xf32> to vector<2xf32>
    %298 = vector.shape_cast %297 : vector<2xf32> to vector<2x1xf32>
    %c0_143 = arith.constant 0 : index
    %c0_144 = arith.constant 0 : index
    %299 = vector.load %arg34[%c0_143, %c0_144] : memref<1x1xf32, #tpu.memory_space<vmem>>, vector<1x1xf32>
    %300 = vector.broadcast %299 : vector<1x1xf32> to vector<2x1xf32>
    %301 = arith.addf %298, %300 : vector<2x1xf32>
    %c0_145 = arith.constant 0 : index
    %c0_146 = arith.constant 0 : index
    %302 = vector.load %arg35[%c0_145, %c0_146] : memref<2x1xf32, #tpu.memory_space<vmem>>, vector<2x1xf32>
    tpu.vector_store %arg35[%c0_145, %c0_146], %301 {strides = array<i32>} : memref<2x1xf32, #tpu.memory_space<vmem>>, vector<2x1xf32>,
    return
  }
}

</mosaic_0001>

<bundles_post_ra>
// kernel: graphdta_gin_forward.2
= control target key start
LH: loop header
LB: loop body
LE: loop exit
PB: predicated region body
PF: predicated region fallthrough
CT: control target
= control target key end

     0   :  { %10 = vsyncpa [#allocation4], 0  ;;  %s6856_s0 = inlined_call_operand.vmem [shape: bf16[2,128,1200], index: 0, kind: input, shape index: {}]   ;;  %s6857_s1 = inlined_call_operand.hbm [shape: bf16[1200,256], index: 1, kind: input, shape index: {}]   ;;  %s6858_s2 = inlined_call_operand.hbm [shape: f32[1,32], index: 2, kind: input, shape index: {}]   ;;  %s6859_s3 = inlined_call_operand.vmem [shape: bf16[256,64], index: 3, kind: input, shape index: {}]   ;;  %s6860_s4 = inlined_call_operand.hbm [shape: f32[1,64], index: 4, kind: input, shape index: {}]   ;;  %s6861_s5 = inlined_call_operand.vmem [shape: bf16[2,114,64], index: 5, kind: output, shape index: {}]  }
   0x1   :  { %11 = vsyncpa [#allocation6], 0  ;;  %s5068_s18 = smov 0  }
   0x2 LB: > { %s5030_s19 = smov [#allocation5]   ;;  %s5074_s21 = sadd.s32 4294967295, %s5028_s18   ;;  %s5028_s18 = sphi %s5068_s18, %s17_s18  }
   0x3   : > { %s184_s20 = sshll.u32 %s5030_s19, 4  ;;  %p4031_p0 = scmp.ge.s32.totalorder %s5028_s18, 1  ;;  %s185_s20 = int_to_ptr.vmem [resolvable:$true] %s184_s20 }
   0x4   : > { %p158_p1 = scmp.lt.s32.totalorder %s5028_s18, 3  ;;  %p6862_p2 = scmp.eq.s32.totalorder %s5074_s21, 0 }
   0x5   : > { %s5031_s23 = smov [#allocation3]   ;;  %s5032_s26 = smov [#allocation7]  }
   0x6   : > { %p5079_p3 = pnand %p4031_p0, %p158_p1  ;;  %s170_s24 = sshll.u32 %s5031_s23, 4  ;;  %s5091_s24 = int_to_ptr.vmem [resolvable:$true] %s170_s24 }
   0x7   : > { %s198_s27 = sshll.u32 %s5032_s26, 4  ;;  %s4930_s30 = scalar_lea.hbm %s6858_s2, 16  ;;  %s5093_s27 = int_to_ptr.vmem [resolvable:$true] %s198_s27 }
   0x8   : > { %s6870_s22 = scalar_select %p5079_p3, 1, 0 }
   0x9   : > { %p4536_p4 = pneg %p5079_p3  ;;  %p4931_p6 = scmp.ne.s32.totalorder %s6858_s2, %s4930_s30 }
   0xa   : > { %p4937_p10 = scmp.lt.u32.totalorder %s4930_s30, %s6858_s2 }
   0xb   : > { %p5087_p5 = pnand %p6862_p2, %p4536_p4 }
   0xd   : > { %p5103_p7 = pneg %p5087_p5 }
   0xf   : > { %p4933_p8 = pnand %p5103_p7, %p4931_p6 }
  0x11   : > { %p4934_p9 = pneg %p4933_p8 }
  0x13   : > { %p4939_p11 = pnand %p4937_p10, %p4934_p9 }
  0x15   : > { %4942 = shalt.err (!%p4939_p11)
}
  0x16   : > { %s4943_s11 = scalar_lea.vmem %s185_s20, 16  ;;  %s4950_s12 = scalar_lea.vmem %s185_s20, 32 }
  0x17   : > { %p4944_p12 = scmp.ne.s32.totalorder %s185_s20, %s4943_s11  ;;  %p4951_p1 = scmp.lt.s32.totalorder %s185_s20, %s185_s20 }
  0x18   : > { %p4952_p4 = scmp.lt.s32.totalorder %s4950_s12, %s4943_s11 }
  0x19   : > { %p4946_p13 = pnand %p4944_p12, %p5103_p7 }
  0x1a   : > { %p4953_p2 = por %p4952_p4, %p4951_p1 }
  0x1b   : > { %p4947_p0 = pneg %p4946_p13 }
  0x1d   : > { %p4954_p3 = pnand %p4953_p2, %p4947_p0 }
  0x1f   : > { %4957 = shalt.err (!%p4954_p3)
}
  0x20   : > { %4542 = dma.hbm_to_vmem [thread:$0]  (!%p5087_p5), %s6858_s2, 16, %s185_s20, [#allocation6]  }
  0x21   : > { %s4958_s17 = scalar_lea.hbm %s6857_s1, 19200 }
  0x22   : > { %p4959_p6 = scmp.ne.s32.totalorder %s6857_s1, %s4958_s17  ;;  %p4965_p2 = scmp.lt.u32.totalorder %s4958_s17, %s6857_s1 }
  0x24   : > { %p4961_p8 = pnand %p4959_p6, %p5103_p7 }
  0x26   : > { %p4962_p9 = pneg %p4961_p8 }
  0x28   : > { %p4967_p3 = pnand %p4965_p2, %p4962_p9 }
  0x2a   : > { %4970 = shalt.err (!%p4967_p3)
}
  0x2b   : > { %s4971_s20 = scalar_lea.vmem %s5091_s24, 19200  ;;  %p4979_p13 = scmp.lt.s32.totalorder %s5091_s24, %s5091_s24 }
  0x2c   : > { %p4972_p10 = scmp.ne.s32.totalorder %s5091_s24, %s4971_s20  ;;  %p4980_p0 = scmp.lt.s32.totalorder %s4971_s20, %s4971_s20 }
  0x2e   : > { %p4974_p11 = pnand %p4972_p10, %p5103_p7  ;;  %p4981_p1 = por %p4980_p0, %p4979_p13 }
  0x30   : > { %p4975_p12 = pneg %p4974_p11 }
  0x32   : > { %p4982_p4 = pnand %p4981_p1, %p4975_p12 }
  0x34   : > { %4985 = shalt.err (!%p4982_p4)
}
  0x35   : > { %s5033_s29 = smov 128   ;;  %s5034_s30 = smov 8  }
  0x36   : > { %4539 = dma.hbm_to_vmem [thread:$0]  (!%p5087_p5), %s6857_s1, 19200, %s5091_s24, [#allocation4], %s5033_s29, %s5033_s29, %s5034_s30  }
  0x37   : > { %s4986_s11 = scalar_lea.hbm %s6860_s4, 16 }
  0x38   : > { %p4987_p6 = scmp.ne.s32.totalorder %s6860_s4, %s4986_s11  ;;  %p4993_p2 = scmp.lt.u32.totalorder %s4986_s11, %s6860_s4 }
  0x3a   : > { %p4989_p8 = pnand %p4987_p6, %p5103_p7 }
  0x3c   : > { %p4990_p9 = pneg %p4989_p8 }
  0x3e   : > { %p4995_p3 = pnand %p4993_p2, %p4990_p9 }
  0x40   : > { %4998 = shalt.err (!%p4995_p3)
}
  0x41   : > { %s4999_s24 = scalar_lea.vmem %s5093_s27, 16  ;;  %s5006_s16 = scalar_lea.vmem %s5093_s27, 32 }
  0x42   : > { %p5000_p10 = scmp.ne.s32.totalorder %s5093_s27, %s4999_s24  ;;  %p5007_p13 = scmp.lt.s32.totalorder %s5093_s27, %s5093_s27 }
  0x43   : > { %p5008_p0 = scmp.lt.s32.totalorder %s5006_s16, %s4999_s24 }
  0x44   : > { %p5002_p11 = pnand %p5000_p10, %p5103_p7 }
  0x45   : > { %p5009_p1 = por %p5008_p0, %p5007_p13 }
  0x46   : > { %p5003_p12 = pneg %p5002_p11 }
  0x48   : > { %p5010_p4 = pnand %p5009_p1, %p5003_p12 }
  0x4a   : > { %5013 = shalt.err (!%p5010_p4)
}
  0x4b   : > { %4545 = dma.hbm_to_vmem [thread:$0]  (!%p5087_p5), %s6860_s4, 16, %s5093_s27, [#allocation6]  }
  0x4c   : > { %p6873_p6 = scmp.ne.s32.totalorder %s6870_s22, 0 }
  0x4e   : > { %219 = sbr.rel (%p6873_p6) target bundleno = 1220 (0x4c4), region = 40 }
  0x55   : > { %p6874_p7 = scmp.eq.s32.totalorder %s5074_s21, 0 }
  0x57   : > { %5019 = dma.done.wait (%p6874_p7), [#allocation4], 19200   ;;  %p6875_p8 = pmov %p6874_p7 }
  0x58   : > { %p6876_p9 = pmov %p6874_p7 }
  0x59   : > { %5021 = vsyncadd (%p6875_p8), [#allocation4], 4294948096 }
  0x5a   : > { %5023 = dma.done.wait (%p6876_p9), [#allocation6], 32   ;;  %p6877_p2 = pmov %p6874_p7 }
  0x5b   : > { %v4568_v0 = vld [vmem:[#allocation3 + $0x4] ss:$8 sps:$4 sm:$0xff]   ;;  %v4572_v2 = vld [vmem:[#allocation3] ss:$8 sps:$4 sm:$0xff]   ;;  %v4574_v4 = vld [vmem:[#allocation3 + $0x14] ss:$8 sps:$4 sm:$0xff]  }
  0x5c   : > { %5025 = vsyncadd (%p6877_p2), [#allocation6], 4294967264  ;;  %v4570_v1 = vld [vmem:[#allocation3 + $0x204] ss:$8 sps:$4 sm:$0xff]   ;;  %1663 = vmatprep.subr.bf16.mxu1 %v4568_v0  ;;  %v4573_v3 = vld [vmem:[#allocation3 + $0x200] ss:$8 sps:$4 sm:$0xff]  }
  0x5d   : > { %1889 = vmatprep.subr.bf16.mxu0 %v4570_v1  ;;  %1664 = vmatpush1.bf16.msra.mxu1 %v4572_v2  ;;  %v4576_v5 = vld [vmem:[#allocation3 + $0x214] ss:$8 sps:$4 sm:$0xff]   ;;  %v4578_v6 = vld [vmem:[#allocation3 + $0x10] ss:$8 sps:$4 sm:$0xff]   ;;  %v4580_v8 = vld [vmem:[#allocation3 + $0x24] ss:$8 sps:$4 sm:$0xff]  }
  0x5e   : > { %1890 = vmatpush1.bf16.msra.mxu0 %v4573_v3  ;;  %1665 = vmatprep.subr.bf16.mxu1 %v4574_v4  ;;  %v4579_v7 = vld [vmem:[#allocation3 + $0x210] ss:$8 sps:$4 sm:$0xff]   ;;  %v4582_v9 = vld [vmem:[#allocation3 + $0x224] ss:$8 sps:$4 sm:$0xff]   ;;  %v4584_v10 = vld [vmem:[#allocation3 + $0x20] ss:$8 sps:$4 sm:$0xff]  }
  0x5f   : > { %1891 = vmatprep.subr.bf16.mxu0 %v4576_v5  ;;  %v4585_v11 = vld [vmem:[#allocation3 + $0x220] ss:$8 sps:$4 sm:$0xff]   ;;  %v4586_v12 = vld [vmem:[#allocation3 + $0x34] ss:$8 sps:$4 sm:$0xff]   ;;  %v4590_v14 = vld [vmem:[#allocation3 + $0x30] ss:$8 sps:$4 sm:$0xff]  }
  0x60   : > { %v4588_v13 = vld [vmem:[#allocation3 + $0x234] ss:$8 sps:$4 sm:$0xff]   ;;  %v4591_v15 = vld [vmem:[#allocation3 + $0x230] ss:$8 sps:$4 sm:$0xff]   ;;  %v4592_v16 = vld [vmem:[#allocation3 + $0x44] ss:$8 sps:$4 sm:$0xff]  }
  0x61   : > { %1666 = vmatpush1.bf16.msra.mxu1 %v4578_v6  ;;  %v4594_v17 = vld [vmem:[#allocation3 + $0x244] ss:$8 sps:$4 sm:$0xff]   ;;  %v4596_v18 = vld [vmem:[#allocation3 + $0x40] ss:$8 sps:$4 sm:$0xff]   ;;  %v4598_v20 = vld [vmem:[#allocation3 + $0x54] ss:$8 sps:$4 sm:$0xff]  }
  0x62   : > { %1892 = vmatpush1.bf16.msra.mxu0 %v4579_v7  ;;  %1667 = vmatprep.subr.bf16.mxu1 %v4580_v8  ;;  %v4597_v19 = vld [vmem:[#allocation3 + $0x240] ss:$8 sps:$4 sm:$0xff]   ;;  %v4600_v21 = vld [vmem:[#allocation3 + $0x254] ss:$8 sps:$4 sm:$0xff]   ;;  %v4602_v22 = vld [vmem:[#allocation3 + $0x50] ss:$8 sps:$4 sm:$0xff]  }
  0x63   : > { %1893 = vmatprep.subr.bf16.mxu0 %v4582_v9  ;;  %v4603_v23 = vld [vmem:[#allocation3 + $0x250] ss:$8 sps:$4 sm:$0xff]   ;;  %v4604_v24 = vld [vmem:[#allocation3 + $0x64] ss:$8 sps:$4 sm:$0xff]   ;;  %v4608_v26 = vld [vmem:[#allocation3 + $0x60] ss:$8 sps:$4 sm:$0xff]  }
  0x64   : > { %v4606_v25 = vld [vmem:[#allocation3 + $0x264] ss:$8 sps:$4 sm:$0xff]   ;;  %v4609_v27 = vld [vmem:[#allocation3 + $0x260] ss:$8 sps:$4 sm:$0xff]   ;;  %v4610_v28 = vld [vmem:[#allocation3 + $0x74] ss:$8 sps:$4 sm:$0xff]  }
  0x65   : > { %1668 = vmatpush1.bf16.msra.mxu1 %v4584_v10  ;;  %v4612_v29 = vld [vmem:[#allocation3 + $0x274] ss:$8 sps:$4 sm:$0xff]   ;;  %v4614_v30 = vld [vmem:[#allocation3 + $0x70] ss:$8 sps:$4 sm:$0xff]   ;;  %v4616_v32 = vld [vmem:[#allocation3 + $0x84] ss:$8 sps:$4 sm:$0xff]  }
  0x66   : > { %1894 = vmatpush1.bf16.msra.mxu0 %v4585_v11  ;;  %1669 = vmatprep.subr.bf16.mxu1 %v4586_v12  ;;  %v4615_v31 = vld [vmem:[#allocation3 + $0x270] ss:$8 sps:$4 sm:$0xff]   ;;  %p255_p5 = scmp.lt.s32.totalorder %s5074_s21, 1  ;;  %v4618_v33 = vld [vmem:[#allocation3 + $0x284] ss:$8 sps:$4 sm:$0xff]   ;;  %vm1638_vm0 = vcmask 392192  }
  0x67   : > { %1895 = vmatprep.subr.bf16.mxu0 %v4588_v13  ;;  %v4620_v34 = vld [vmem:[#allocation3 + $0x80] ss:$8 sps:$4 sm:$0xff]   ;;  %v4622_v36 = vld [vmem:[#allocation3 + $0x94] ss:$8 sps:$4 sm:$0xff]   ;;  %v4626_v38 = vld [vmem:[#allocation3 + $0x90] ss:$8 sps:$4 sm:$0xff]  }
  0x68   : > { %v4621_v35 = vld [vmem:[#allocation3 + $0x280] ss:$8 sps:$4 sm:$0xff]   ;;  %s6914_s21 = smov (!%p255_p5, %s5074_s21), 1  ;;  %v4624_v37 = vld [vmem:[#allocation3 + $0x294] ss:$8 sps:$4 sm:$0xff]   ;;  %vm2340_vm1 = vcmask 1045504  }
  0x69   : > { %1670 = vmatpush1.bf16.msra.mxu1 %v4590_v14  ;;  %v4627_v39 = vld [vmem:[#allocation3 + $0x290] ss:$8 sps:$4 sm:$0xff]   ;;  %v4628_v40 = vld [vmem:[#allocation3 + $0xa4] ss:$8 sps:$4 sm:$0xff]   ;;  %s4522_s22 = smul.u32 640, %s6914_s21  ;;  %vm2244_vm2 = vcmask 1046528  }
  0x6a   : > { %1896 = vmatpush1.bf16.msra.mxu0 %v4591_v15  ;;  %1671 = vmatprep.subr.bf16.mxu1 %v4592_v16  ;;  %v4630_v41 = vld [vmem:[#allocation3 + $0x2a4] ss:$8 sps:$4 sm:$0xff]   ;;  %v4632_v42 = vld [vmem:[#allocation3 + $0xa0] ss:$8 sps:$4 sm:$0xff]   ;;  %v4634_v44 = vld [vmem:[#allocation3 + $0xb4] ss:$8 sps:$4 sm:$0xff]  }
  0x6b   : > { %1897 = vmatprep.subr.bf16.mxu0 %v4594_v17  ;;  %v4633_v43 = vld [vmem:[#allocation3 + $0x2a0] ss:$8 sps:$4 sm:$0xff]   ;;  %s5184_s8 = scalar_lea.vmem %s6856_s0, %s4522_s22  ;;  %v4636_v45 = vld [vmem:[#allocation3 + $0x2b4] ss:$8 sps:$4 sm:$0xff]   ;;  %v4638_v46 = vld [vmem:[#allocation3 + $0xb0] ss:$8 sps:$4 sm:$0xff]  }
  0x6c   : > { %v4639_v47 = vld [vmem:[#allocation3 + $0x2b0] ss:$8 sps:$4 sm:$0xff]   ;;  %v4640_v48 = vld [vmem:[#allocation3 + $0xc4] ss:$8 sps:$4 sm:$0xff]   ;;  %v4669_v51 = vld [vmem:[%s5184_s8 + $0x14] ss:$40 sps:$4 sm:$0xff]  }
  0x6d   : > { %1672 = vmatpush1.bf16.msra.mxu1 %v4596_v18  ;;  %v4666_v49 = vld [vmem:[%s5184_s8 + $0x4] ss:$40 sps:$4 sm:$0xff]   ;;  %v4644_v52 = vld [vmem:[#allocation3 + $0xc0] ss:$8 sps:$4 sm:$0xff]   ;;  %1921 = vmatprep.mubr.bf16.mxu0 %v4669_v51  ;;  %v4646_v54 = vld [vmem:[#allocation3 + $0xd4] ss:$8 sps:$4 sm:$0xff]  }
  0x6e   : > { %1898 = vmatpush1.bf16.msra.mxu0 %v4597_v19  ;;  %1673 = vmatprep.subr.bf16.mxu1 %v4598_v20  ;;  %v4642_v50 = vld [vmem:[#allocation3 + $0x2c4] ss:$8 sps:$4 sm:$0xff]   ;;  %v4645_v53 = vld [vmem:[#allocation3 + $0x2c0] ss:$8 sps:$4 sm:$0xff]   ;;  %v4648_v55 = vld [vmem:[#allocation3 + $0x2d4] ss:$8 sps:$4 sm:$0xff]  }
  0x6f   : > { %1899 = vmatprep.subr.bf16.mxu0 %v4600_v21  ;;  %1695 = vmatprep.mubr.bf16.mxu1 %v4666_v49  ;;  %v4650_v56 = vld [vmem:[#allocation3 + $0xd0] ss:$8 sps:$4 sm:$0xff]   ;;  %v4652_v58 = vld [vmem:[#allocation3 + $0xe4] ss:$8 sps:$4 sm:$0xff]   ;;  %v4656_v60 = vld [vmem:[#allocation3 + $0xe0] ss:$8 sps:$4 sm:$0xff]  }
  0x70   : > { %v4651_v57 = vld [vmem:[#allocation3 + $0x2d0] ss:$8 sps:$4 sm:$0xff]   ;;  %v4654_v59 = vld [vmem:[#allocation3 + $0x2e4] ss:$8 sps:$4 sm:$0xff]   ;;  %v4657_v61 = vld [vmem:[#allocation3 + $0x2e0] ss:$8 sps:$4 sm:$0xff]  }
  0x71   : > { %1674 = vmatpush1.bf16.msra.mxu1 %v4602_v22  ;;  %v4658_v62 = vld [vmem:[#allocation3 + $0xf4] ss:$8 sps:$4 sm:$0xff]   ;;  %v4662_v0 = vld [vmem:[#allocation3 + $0xf0] ss:$8 sps:$4 sm:$0xff]   ;;  %v4672_v2 = vld [vmem:[#allocation3 + $0x104] ss:$8 sps:$4 sm:$0xff]  }
  0x72   : > { %1900 = vmatpush1.bf16.msra.mxu0 %v4603_v23  ;;  %1675 = vmatprep.subr.bf16.mxu1 %v4604_v24  ;;  %v4660_v63 = vld [vmem:[#allocation3 + $0x2f4] ss:$8 sps:$4 sm:$0xff]   ;;  %v4663_v1 = vld [vmem:[#allocation3 + $0x2f0] ss:$8 sps:$4 sm:$0xff]   ;;  %v4675_v3 = vld [vmem:[#allocation3 + $0x304] ss:$8 sps:$4 sm:$0xff]  }
  0x73   : > { %1901 = vmatprep.subr.bf16.mxu0 %v4606_v25  ;;  %v4664_v4 = vld [vmem:[%s5184_s8] ss:$40 sps:$4 sm:$0xff]   ;;  %v4667_v5 = vld [vmem:[%s5184_s8 + $0x10] ss:$40 sps:$4 sm:$0xff]   ;;  %v4678_v8 = vld [vmem:[#allocation3 + $0x114] ss:$8 sps:$4 sm:$0xff]  }
  0x74   : > { %v4670_v6 = vld [vmem:[#allocation3 + $0x100] ss:$8 sps:$4 sm:$0xff]   ;;  %v4681_v9 = vld [vmem:[#allocation3 + $0x314] ss:$8 sps:$4 sm:$0xff]   ;;  %v4684_v11 = vld [vmem:[%s5184_s8 + $0x64] ss:$40 sps:$4 sm:$0xff]  }
  0x75   : > { %1676 = vmatpush1.bf16.msra.mxu1 %v4608_v26  ;;  %v4673_v7 = vld [vmem:[#allocation3 + $0x300] ss:$8 sps:$4 sm:$0xff]   ;;  %v4682_v10 = vld [vmem:[%s5184_s8 + $0x54] ss:$40 sps:$4 sm:$0xff]   ;;  %v4676_v12 = vld [vmem:[#allocation3 + $0x110] ss:$8 sps:$4 sm:$0xff]  }
  0x76   : > { %1902 = vmatpush1.bf16.msra.mxu0 %v4609_v27  ;;  %1677 = vmatprep.subr.bf16.mxu1 %v4610_v28  ;;  %v4679_v13 = vld [vmem:[#allocation3 + $0x310] ss:$8 sps:$4 sm:$0xff]   ;;  %v4689_v14 = vld [vmem:[#allocation3 + $0x124] ss:$8 sps:$4 sm:$0xff]   ;;  %v4687_v17 = vld [vmem:[#allocation3 + $0x120] ss:$8 sps:$4 sm:$0xff]  }
  0x77   : > { %1903 = vmatprep.subr.bf16.mxu0 %v4612_v29  ;;  %v4693_v15 = vld [vmem:[#allocation3 + $0x324] ss:$8 sps:$4 sm:$0xff]   ;;  %v4686_v16 = vld [vmem:[%s5184_s8 + $0x50] ss:$40 sps:$4 sm:$0xff]   ;;  %v4690_v18 = vld [vmem:[%s5184_s8 + $0x60] ss:$40 sps:$4 sm:$0xff]  }
  0x78   : > { %v4691_v19 = vld [vmem:[#allocation3 + $0x320] ss:$8 sps:$4 sm:$0xff]   ;;  %v4696_v20 = vld [vmem:[#allocation3 + $0x134] ss:$8 sps:$4 sm:$0xff]   ;;  %v4700_v22 = vld [vmem:[%s5184_s8 + $0xa4] ss:$40 sps:$4 sm:$0xff]  }
  0x79   : > { %1678 = vmatpush1.bf16.msra.mxu1 %v4614_v30  ;;  %v4699_v21 = vld [vmem:[#allocation3 + $0x334] ss:$8 sps:$4 sm:$0xff]   ;;  %v4694_v24 = vld [vmem:[#allocation3 + $0x130] ss:$8 sps:$4 sm:$0xff]   ;;  %v4707_v26 = vld [vmem:[#allocation3 + $0x144] ss:$8 sps:$4 sm:$0xff]  }
  0x7a   : > { %1904 = vmatpush1.bf16.msra.mxu0 %v4615_v31  ;;  %1679 = vmatprep.subr.bf16.mxu1 %v4616_v32  ;;  %v4702_v23 = vld [vmem:[%s5184_s8 + $0xb4] ss:$40 sps:$4 sm:$0xff]   ;;  %v4697_v25 = vld [vmem:[#allocation3 + $0x330] ss:$8 sps:$4 sm:$0xff]   ;;  %v4711_v27 = vld [vmem:[#allocation3 + $0x344] ss:$8 sps:$4 sm:$0xff]  }
  0x7b   : > { %1905 = vmatprep.subr.bf16.mxu0 %v4618_v33  ;;  %v4704_v28 = vld [vmem:[%s5184_s8 + $0xa0] ss:$40 sps:$4 sm:$0xff]   ;;  %v4708_v30 = vld [vmem:[%s5184_s8 + $0xb0] ss:$40 sps:$4 sm:$0xff]   ;;  %v4714_v32 = vld [vmem:[#allocation3 + $0x154] ss:$8 sps:$4 sm:$0xff]  }
  0x7c   : > { %v4705_v29 = vld [vmem:[#allocation3 + $0x140] ss:$8 sps:$4 sm:$0xff]   ;;  %v4717_v33 = vld [vmem:[#allocation3 + $0x354] ss:$8 sps:$4 sm:$0xff]   ;;  %v4733_v49 = vld [vmem:[#allocation3 + $0x370] ss:$8 sps:$4 sm:$0xff]  }
  0x7d   : > { %1680 = vmatpush1.bf16.msra.mxu1 %v4620_v34  ;;  %v4709_v31 = vld [vmem:[#allocation3 + $0x340] ss:$8 sps:$4 sm:$0xff]   ;;  %v4718_v34 = vld [vmem:[%s5184_s8 + $0xf4] ss:$40 sps:$4 sm:$0xff]   ;;  %v4747_v51 = vld [vmem:[#allocation3 + $0x384] ss:$8 sps:$4 sm:$0xff]  }
  0x7e   : > { %1906 = vmatpush1.bf16.msra.mxu0 %v4621_v35  ;;  %1681 = vmatprep.subr.bf16.mxu1 %v4622_v36  ;;  %v4720_v35 = vld [vmem:[%s5184_s8 + $0x104] ss:$40 sps:$4 sm:$0xff]   ;;  %v4712_v36 = vld [vmem:[#allocation3 + $0x150] ss:$8 sps:$4 sm:$0xff]   ;;  %vm2612_vm3 = vcmask 1042432   ;;  %vm2708_vm4 = vcmask 1041408  }
  0x7f   : > { %1907 = vmatprep.subr.bf16.mxu0 %v4624_v37  ;;  %v4715_v37 = vld [vmem:[#allocation3 + $0x350] ss:$8 sps:$4 sm:$0xff]   ;;  %vm2804_vm5 = vcmask 1040384   ;;  %vm2548_vm6 = vcmask 1043456   ;;  %s5035_s23 = smov 64   ;;  %s5036_s26 = smov 96  }
  0x80   : > { %vm2436_vm7 = vcmask 1044480   ;;  %s5037_s28 = smov 32   ;;  %vm2939_vm8 = vcmask 261120   ;;  %vm3045_vm9 = vcmask 523520   ;;  %vm2954_vm10 = vcmask 254976  }
  0x81   : > { %1682 = vmatpush1.bf16.msra.mxu1 %v4626_v38  ;;  %v4725_v38 = vld [vmem:[#allocation3 + $0x164] ss:$8 sps:$4 sm:$0xff]   ;;  %vm3136_vm11 = vcmask 785920   ;;  %vm3227_vm12 = vcmask 1048320   ;;  %vm3060_vm13 = vcmask 517376   ;;  %vm3151_vm14 = vcmask 779776  }
  0x82   : > { %1908 = vmatpush1.bf16.msra.mxu0 %v4627_v39  ;;  %1683 = vmatprep.subr.bf16.mxu1 %v4628_v40  ;;  %v4729_v39 = vld [vmem:[#allocation3 + $0x364] ss:$8 sps:$4 sm:$0xff]   ;;  %v4722_v40 = vld [vmem:[%s5184_s8 + $0xf0] ss:$40 sps:$4 sm:$0xff]   ;;  %vm3242_vm15 = vcmask 1042176  }
  0x83   : > { %1909 = vmatprep.subr.bf16.mxu0 %v4630_v41  ;;  %v4723_v41 = vld [vmem:[#allocation3 + $0x160] ss:$8 sps:$4 sm:$0xff]  }
  0x85   : > { %1684 = vmatpush1.bf16.msra.mxu1 %v4632_v42  ;;  %v4726_v42 = vld [vmem:[%s5184_s8 + $0x100] ss:$40 sps:$4 sm:$0xff]  }
  0x86   : > { %1910 = vmatpush1.bf16.msra.mxu0 %v4633_v43  ;;  %1685 = vmatprep.subr.bf16.mxu1 %v4634_v44  ;;  %v4727_v43 = vld [vmem:[#allocation3 + $0x360] ss:$8 sps:$4 sm:$0xff]   ;;  %v4732_v44 = vld [vmem:[#allocation3 + $0x174] ss:$8 sps:$4 sm:$0xff]  }
  0x87   : > { %1911 = vmatprep.subr.bf16.mxu0 %v4636_v45  ;;  %v4735_v45 = vld [vmem:[#allocation3 + $0x374] ss:$8 sps:$4 sm:$0xff]  }
  0x89   : > { %1686 = vmatpush1.bf16.msra.mxu1 %v4638_v46  ;;  %v4736_v46 = vld [vmem:[%s5184_s8 + $0x144] ss:$40 sps:$4 sm:$0xff]  }
  0x8a   : > { %1912 = vmatpush1.bf16.msra.mxu0 %v4639_v47  ;;  %1687 = vmatprep.subr.bf16.mxu1 %v4640_v48  ;;  %v4738_v47 = vld [vmem:[%s5184_s8 + $0x154] ss:$40 sps:$4 sm:$0xff]   ;;  %v4730_v48 = vld [vmem:[#allocation3 + $0x170] ss:$8 sps:$4 sm:$0xff]  }
  0x8b   : > { %1913 = vmatprep.subr.bf16.mxu0 %v4642_v50  ;;  %v4743_v50 = vld [vmem:[#allocation3 + $0x184] ss:$8 sps:$4 sm:$0xff]  }
  0x8d   : > { %1688 = vmatpush1.bf16.msra.mxu1 %v4644_v52  ;;  %v4740_v52 = vld [vmem:[%s5184_s8 + $0x140] ss:$40 sps:$4 sm:$0xff]  }
  0x8e   : > { %1914 = vmatpush1.bf16.msra.mxu0 %v4645_v53  ;;  %1689 = vmatprep.subr.bf16.mxu1 %v4646_v54  ;;  %v4741_v53 = vld [vmem:[#allocation3 + $0x180] ss:$8 sps:$4 sm:$0xff]   ;;  %v4744_v54 = vld [vmem:[%s5184_s8 + $0x150] ss:$40 sps:$4 sm:$0xff]  }
  0x8f   : > { %1915 = vmatprep.subr.bf16.mxu0 %v4648_v55  ;;  %v4745_v55 = vld [vmem:[#allocation3 + $0x380] ss:$8 sps:$4 sm:$0xff]  }
  0x91   : > { %1690 = vmatpush1.bf16.msra.mxu1 %v4650_v56  ;;  %v4750_v56 = vld [vmem:[#allocation3 + $0x194] ss:$8 sps:$4 sm:$0xff]  }
  0x92   : > { %1916 = vmatpush1.bf16.msra.mxu0 %v4651_v57  ;;  %1691 = vmatprep.subr.bf16.mxu1 %v4652_v58  ;;  %v4753_v57 = vld [vmem:[#allocation3 + $0x394] ss:$8 sps:$4 sm:$0xff]  }
  0x93   : > { %1917 = vmatprep.subr.bf16.mxu0 %v4654_v59  ;;  %v4754_v58 = vld [vmem:[%s5184_s8 + $0x194] ss:$40 sps:$4 sm:$0xff]   ;;  %v4756_v59 = vld [vmem:[%s5184_s8 + $0x1a4] ss:$40 sps:$4 sm:$0xff]  }
  0x95   : > { %1692 = vmatpush1.bf16.msra.mxu1 %v4656_v60  ;;  %v4748_v60 = vld [vmem:[#allocation3 + $0x190] ss:$8 sps:$4 sm:$0xff]  }
  0x96   : > { %1918 = vmatpush1.bf16.msra.mxu0 %v4657_v61  ;;  %1693 = vmatprep.subr.bf16.mxu1 %v4658_v62  ;;  %v4751_v61 = vld [vmem:[#allocation3 + $0x390] ss:$8 sps:$4 sm:$0xff]   ;;  %v4761_v62 = vld [vmem:[#allocation3 + $0x1a4] ss:$8 sps:$4 sm:$0xff]  }
  0x97   : > { %1919 = vmatprep.subr.bf16.mxu0 %v4660_v63  ;;  %v4765_v63 = vld [vmem:[#allocation3 + $0x3a4] ss:$8 sps:$4 sm:$0xff]  }
  0x99   : > { %1694 = vmatpush1.bf16.msra.mxu1 %v4662_v0  ;;  %v4758_v0 = vld [vmem:[%s5184_s8 + $0x190] ss:$40 sps:$4 sm:$0xff]  }
  0x9a   : > { %1920 = vmatpush1.bf16.msra.mxu0 %v4663_v1  ;;  %1776 = vmatprep.subr.bf16.mxu1 %v4672_v2  ;;  %v4759_v1 = vld [vmem:[#allocation3 + $0x1a0] ss:$8 sps:$4 sm:$0xff]  }
  0x9b   : > { %2002 = vmatprep.subr.bf16.mxu0 %v4675_v3  ;;  %v4762_v2 = vld [vmem:[%s5184_s8 + $0x1a0] ss:$40 sps:$4 sm:$0xff]  }
  0x9c   : > { %1696 = vmatmul.mubr.bf16.vlgmr.msra.gmra.mrb[0].mxu1 %v4664_v4  ;;  %v4763_v3 = vld [vmem:[#allocation3 + $0x3a0] ss:$8 sps:$4 sm:$0xff]   ;;  %v4768_v4 = vld [vmem:[#allocation3 + $0x1b4] ss:$8 sps:$4 sm:$0xff]  }
  0x9d   : > { %1922 = vmatmul.mubr.bf16.vlgmr.msra.gmra.mrb[0].mxu0 %v4667_v5  ;;  %1777 = vmatpush1.bf16.msra.mxu1 %v4670_v6  ;;  %v4771_v5 = vld [vmem:[#allocation3 + $0x3b4] ss:$8 sps:$4 sm:$0xff]   ;;  %v4772_v6 = vld [vmem:[%s5184_s8 + $0x1e4] ss:$40 sps:$4 sm:$0xff]  }
  0x9e   : > { %2003 = vmatpush1.bf16.msra.mxu0 %v4673_v7  ;;  %1778 = vmatprep.subr.bf16.mxu1 %v4678_v8  ;;  %v4774_v7 = vld [vmem:[%s5184_s8 + $0x1f4] ss:$40 sps:$4 sm:$0xff]   ;;  %v4766_v8 = vld [vmem:[#allocation3 + $0x1b0] ss:$8 sps:$4 sm:$0xff]  }
  0x9f   : > { %2004 = vmatprep.subr.bf16.mxu0 %v4681_v9  ;;  %1705 = vmatprep.mubr.bf16.mxu1 %v4682_v10  ;;  %v4769_v9 = vld [vmem:[#allocation3 + $0x3b0] ss:$8 sps:$4 sm:$0xff]   ;;  %v4779_v10 = vld [vmem:[#allocation3 + $0x1c4] ss:$8 sps:$4 sm:$0xff]  }
  0xa0   : > { %1931 = vmatprep.mubr.bf16.mxu0 %v4684_v11  ;;  %v4783_v11 = vld [vmem:[#allocation3 + $0x3c4] ss:$8 sps:$4 sm:$0xff]  }
  0xa1   : > { %1779 = vmatpush1.bf16.msra.mxu1 %v4676_v12  ;;  %v4776_v12 = vld [vmem:[%s5184_s8 + $0x1e0] ss:$40 sps:$4 sm:$0xff]  }
  0xa2   : > { %2005 = vmatpush1.bf16.msra.mxu0 %v4679_v13  ;;  %1780 = vmatprep.subr.bf16.mxu1 %v4689_v14  ;;  %v4777_v13 = vld [vmem:[#allocation3 + $0x1c0] ss:$8 sps:$4 sm:$0xff]   ;;  %v4780_v14 = vld [vmem:[%s5184_s8 + $0x1f0] ss:$40 sps:$4 sm:$0xff]  }
  0xa3   : > { %2006 = vmatprep.subr.bf16.mxu0 %v4693_v15  ;;  %v4781_v15 = vld [vmem:[#allocation3 + $0x3c0] ss:$8 sps:$4 sm:$0xff]  }
  0xa4   : > { %1706 = vmatmul.mubr.bf16.gmra.mrb[4].mxu1 %v4686_v16  ;;  %v4786_v16 = vld [vmem:[#allocation3 + $0x1d4] ss:$8 sps:$4 sm:$0xff]  }
  0xa5   : > { %1932 = vmatmul.mubr.bf16.gmra.mrb[4].mxu0 %v4690_v18  ;;  %1781 = vmatpush1.bf16.msra.mxu1 %v4687_v17  ;;  %v4789_v17 = vld [vmem:[#allocation3 + $0x3d4] ss:$8 sps:$4 sm:$0xff]  }
  0xa6   : > { %2007 = vmatpush1.bf16.msra.mxu0 %v4691_v19  ;;  %1782 = vmatprep.subr.bf16.mxu1 %v4696_v20  ;;  %v4790_v18 = vld [vmem:[%s5184_s8 + $0x234] ss:$40 sps:$4 sm:$0xff]   ;;  %v4792_v19 = vld [vmem:[%s5184_s8 + $0x244] ss:$40 sps:$4 sm:$0xff]   ;;  %v4784_v20 = vld [vmem:[#allocation3 + $0x1d0] ss:$8 sps:$4 sm:$0xff]  }
  0xa7   : > { %2008 = vmatprep.subr.bf16.mxu0 %v4699_v21  ;;  %1715 = vmatprep.mubr.bf16.mxu1 %v4700_v22  ;;  %v4787_v21 = vld [vmem:[#allocation3 + $0x3d0] ss:$8 sps:$4 sm:$0xff]   ;;  %v4797_v22 = vld [vmem:[#allocation3 + $0x1e4] ss:$8 sps:$4 sm:$0xff]  }
  0xa8   : > { %1941 = vmatprep.mubr.bf16.mxu0 %v4702_v23  ;;  %v4801_v23 = vld [vmem:[#allocation3 + $0x3e4] ss:$8 sps:$4 sm:$0xff]  }
  0xa9   : > { %1783 = vmatpush1.bf16.msra.mxu1 %v4694_v24  ;;  %v4794_v24 = vld [vmem:[%s5184_s8 + $0x230] ss:$40 sps:$4 sm:$0xff]  }
  0xaa   : > { %2009 = vmatpush1.bf16.msra.mxu0 %v4697_v25  ;;  %1784 = vmatprep.subr.bf16.mxu1 %v4707_v26  ;;  %v4795_v25 = vld [vmem:[#allocation3 + $0x1e0] ss:$8 sps:$4 sm:$0xff]  }
  0xab   : > { %2010 = vmatprep.subr.bf16.mxu0 %v4711_v27  ;;  %v4798_v26 = vld [vmem:[%s5184_s8 + $0x240] ss:$40 sps:$4 sm:$0xff]  }
  0xac   : > { %1716 = vmatmul.mubr.bf16.gmra.mrb[8].mxu1 %v4704_v28  ;;  %v4799_v27 = vld [vmem:[#allocation3 + $0x3e0] ss:$8 sps:$4 sm:$0xff]   ;;  %v4804_v28 = vld [vmem:[#allocation3 + $0x1f4] ss:$8 sps:$4 sm:$0xff]  }
  0xad   : > { %1942 = vmatmul.mubr.bf16.gmra.mrb[8].mxu0 %v4708_v30  ;;  %1785 = vmatpush1.bf16.msra.mxu1 %v4705_v29  ;;  %v4807_v29 = vld [vmem:[#allocation3 + $0x3f4] ss:$8 sps:$4 sm:$0xff]  }
  0xae   : > { %2011 = vmatpush1.bf16.msra.mxu0 %v4709_v31  ;;  %1786 = vmatprep.subr.bf16.mxu1 %v4714_v32  ;;  %v4810_v30 = vld [vmem:[%s5184_s8 + $0xc] ss:$40 sps:$4 sm:$0xff]   ;;  %v4813_v31 = vld [vmem:[%s5184_s8 + $0x1c] ss:$40 sps:$4 sm:$0xff]   ;;  %v4802_v32 = vld [vmem:[#allocation3 + $0x1f0] ss:$8 sps:$4 sm:$0xff]  }
  0xaf   : > { %2012 = vmatprep.subr.bf16.mxu0 %v4717_v33  ;;  %1725 = vmatprep.mubr.bf16.mxu1 %v4718_v34  ;;  %v4805_v33 = vld [vmem:[#allocation3 + $0x3f0] ss:$8 sps:$4 sm:$0xff]   ;;  %v4816_v34 = vld [vmem:[#allocation3 + $0x404] ss:$8 sps:$4 sm:$0xff]  }
  0xb0   : > { %1951 = vmatprep.mubr.bf16.mxu0 %v4720_v35  ;;  %v4808_v35 = vld [vmem:[%s5184_s8 + $0x8] ss:$40 sps:$4 sm:$0xff]  }
  0xb1   : > { %1787 = vmatpush1.bf16.msra.mxu1 %v4712_v36  ;;  %v4811_v36 = vld [vmem:[%s5184_s8 + $0x18] ss:$40 sps:$4 sm:$0xff]  }
  0xb2   : > { %2013 = vmatpush1.bf16.msra.mxu0 %v4715_v37  ;;  %1788 = vmatprep.subr.bf16.mxu1 %v4725_v38  ;;  %v4814_v37 = vld [vmem:[#allocation3 + $0x400] ss:$8 sps:$4 sm:$0xff]   ;;  %v4819_v38 = vld [vmem:[#allocation3 + $0x414] ss:$8 sps:$4 sm:$0xff]  }
  0xb3   : > { %2014 = vmatprep.subr.bf16.mxu0 %v4729_v39  ;;  %v4820_v39 = vld [vmem:[%s5184_s8 + $0x5c] ss:$40 sps:$4 sm:$0xff]  }
  0xb4   : > { %1726 = vmatmul.mubr.bf16.gmra.mrb[12].mxu1 %v4722_v40  ;;  %v4822_v40 = vld [vmem:[%s5184_s8 + $0x6c] ss:$40 sps:$4 sm:$0xff]  }
  0xb5   : > { %1952 = vmatmul.mubr.bf16.gmra.mrb[12].mxu0 %v4726_v42  ;;  %1789 = vmatpush1.bf16.msra.mxu1 %v4723_v41  ;;  %v4817_v41 = vld [vmem:[#allocation3 + $0x410] ss:$8 sps:$4 sm:$0xff]   ;;  %v4828_v42 = vld [vmem:[#allocation3 + $0x424] ss:$8 sps:$4 sm:$0xff]  }
  0xb6   : > { %2015 = vmatpush1.bf16.msra.mxu0 %v4727_v43  ;;  %1790 = vmatprep.subr.bf16.mxu1 %v4732_v44  ;;  %v4824_v43 = vld [vmem:[%s5184_s8 + $0x58] ss:$40 sps:$4 sm:$0xff]   ;;  %v4825_v44 = vld [vmem:[%s5184_s8 + $0x68] ss:$40 sps:$4 sm:$0xff]  }
  0xb7   : > { %2016 = vmatprep.subr.bf16.mxu0 %v4735_v45  ;;  %1735 = vmatprep.mubr.bf16.mxu1 %v4736_v46  ;;  %v4826_v45 = vld [vmem:[#allocation3 + $0x420] ss:$8 sps:$4 sm:$0xff]   ;;  %v4829_v46 = vld [vmem:[%s5184_s8 + $0xac] ss:$40 sps:$4 sm:$0xff]  }
  0xb8   : > { %1961 = vmatprep.mubr.bf16.mxu0 %v4738_v47  ;;  %v4831_v47 = vld [vmem:[%s5184_s8 + $0xbc] ss:$40 sps:$4 sm:$0xff]  }
  0xb9   : > { %1791 = vmatpush1.bf16.msra.mxu1 %v4730_v48  ;;  %v4837_v48 = vld [vmem:[#allocation3 + $0x434] ss:$8 sps:$4 sm:$0xff]  }
  0xba   : > { %2017 = vmatpush1.bf16.msra.mxu0 %v4733_v49  ;;  %1792 = vmatprep.subr.bf16.mxu1 %v4743_v50  ;;  %v4835_v49 = vld [vmem:[#allocation3 + $0x430] ss:$8 sps:$4 sm:$0xff]   ;;  %v4846_v50 = vld [vmem:[#allocation3 + $0x444] ss:$8 sps:$4 sm:$0xff]  }
  0xbb   : > { %2018 = vmatprep.subr.bf16.mxu0 %v4747_v51  ;;  %v4833_v51 = vld [vmem:[%s5184_s8 + $0xa8] ss:$40 sps:$4 sm:$0xff]  }
  0xbc   : > { %1736 = vmatmul.mubr.bf16.gmra.mrb[16].mxu1 %v4740_v52  ;;  %v4834_v52 = vld [vmem:[%s5184_s8 + $0xb8] ss:$40 sps:$4 sm:$0xff]  }
  0xbd   : > { %1962 = vmatmul.mubr.bf16.gmra.mrb[16].mxu0 %v4744_v54  ;;  %1793 = vmatpush1.bf16.msra.mxu1 %v4741_v53  ;;  %v4838_v53 = vld [vmem:[%s5184_s8 + $0xfc] ss:$40 sps:$4 sm:$0xff]   ;;  %v4840_v54 = vld [vmem:[%s5184_s8 + $0x10c] ss:$40 sps:$4 sm:$0xff]  }
  0xbe   : > { %2019 = vmatpush1.bf16.msra.mxu0 %v4745_v55  ;;  %1794 = vmatprep.subr.bf16.mxu1 %v4750_v56  ;;  %v4844_v55 = vld [vmem:[#allocation3 + $0x440] ss:$8 sps:$4 sm:$0xff]   ;;  %v4849_v56 = vld [vmem:[#allocation3 + $0x454] ss:$8 sps:$4 sm:$0xff]  }
  0xbf   : > { %2020 = vmatprep.subr.bf16.mxu0 %v4753_v57  ;;  %1745 = vmatprep.mubr.bf16.mxu1 %v4754_v58  ;;  %v4842_v57 = vld [vmem:[%s5184_s8 + $0xf8] ss:$40 sps:$4 sm:$0xff]  }
  0xc0   : > { %1971 = vmatprep.mubr.bf16.mxu0 %v4756_v59  ;;  %v4847_v58 = vld [vmem:[#allocation3 + $0x450] ss:$8 sps:$4 sm:$0xff]  }
  0xc1   : > { %1795 = vmatpush1.bf16.msra.mxu1 %v4748_v60  ;;  %v4843_v59 = vld [vmem:[%s5184_s8 + $0x108] ss:$40 sps:$4 sm:$0xff]   ;;  %v4858_v60 = vld [vmem:[#allocation3 + $0x464] ss:$8 sps:$4 sm:$0xff]  }
  0xc2   : > { %2021 = vmatpush1.bf16.msra.mxu0 %v4751_v61  ;;  %1796 = vmatprep.subr.bf16.mxu1 %v4761_v62  ;;  %v4850_v61 = vld [vmem:[%s5184_s8 + $0x14c] ss:$40 sps:$4 sm:$0xff]   ;;  %v4852_v62 = vld [vmem:[%s5184_s8 + $0x15c] ss:$40 sps:$4 sm:$0xff]  }
  0xc3   : > { %2022 = vmatprep.subr.bf16.mxu0 %v4765_v63  ;;  %v4856_v63 = vld [vmem:[#allocation3 + $0x460] ss:$8 sps:$4 sm:$0xff]  }
  0xc4   : > { %1746 = vmatmul.mubr.bf16.gmra.mrb[20].mxu1 %v4758_v0  ;;  %v4867_v0 = vld [vmem:[#allocation3 + $0x474] ss:$8 sps:$4 sm:$0xff]  }
  0xc5   : > { %1972 = vmatmul.mubr.bf16.gmra.mrb[20].mxu0 %v4762_v2  ;;  %1797 = vmatpush1.bf16.msra.mxu1 %v4759_v1  ;;  %v4865_v1 = vld [vmem:[#allocation3 + $0x470] ss:$8 sps:$4 sm:$0xff]   ;;  %v4874_v2 = vld [vmem:[#allocation3 + $0x484] ss:$8 sps:$4 sm:$0xff]  }
  0xc6   : > { %2023 = vmatpush1.bf16.msra.mxu0 %v4763_v3  ;;  %1798 = vmatprep.subr.bf16.mxu1 %v4768_v4  ;;  %v4854_v3 = vld [vmem:[%s5184_s8 + $0x148] ss:$40 sps:$4 sm:$0xff]   ;;  %v4855_v4 = vld [vmem:[%s5184_s8 + $0x158] ss:$40 sps:$4 sm:$0xff]  }
  0xc7   : > { %2024 = vmatprep.subr.bf16.mxu0 %v4771_v5  ;;  %1755 = vmatprep.mubr.bf16.mxu1 %v4772_v6  ;;  %v4859_v5 = vld [vmem:[%s5184_s8 + $0x19c] ss:$40 sps:$4 sm:$0xff]   ;;  %v4861_v6 = vld [vmem:[%s5184_s8 + $0x1ac] ss:$40 sps:$4 sm:$0xff]  }
  0xc8   : > { %1981 = vmatprep.mubr.bf16.mxu0 %v4774_v7  ;;  %v4872_v7 = vld [vmem:[#allocation3 + $0x480] ss:$8 sps:$4 sm:$0xff]  }
  0xc9   : > { %1799 = vmatpush1.bf16.msra.mxu1 %v4766_v8  ;;  %v4879_v8 = vld [vmem:[#allocation3 + $0x494] ss:$8 sps:$4 sm:$0xff]  }
  0xca   : > { %2025 = vmatpush1.bf16.msra.mxu0 %v4769_v9  ;;  %1800 = vmatprep.subr.bf16.mxu1 %v4779_v10  ;;  %v4877_v9 = vld [vmem:[#allocation3 + $0x490] ss:$8 sps:$4 sm:$0xff]   ;;  %v4888_v10 = vld [vmem:[#allocation3 + $0x4a4] ss:$8 sps:$4 sm:$0xff]  }
  0xcb   : > { %2026 = vmatprep.subr.bf16.mxu0 %v4783_v11  ;;  %v4863_v11 = vld [vmem:[%s5184_s8 + $0x198] ss:$40 sps:$4 sm:$0xff]  }
  0xcc   : > { %1756 = vmatmul.mubr.bf16.gmra.mrb[24].mxu1 %v4776_v12  ;;  %v4864_v12 = vld [vmem:[%s5184_s8 + $0x1a8] ss:$40 sps:$4 sm:$0xff]  }
  0xcd   : > { %1982 = vmatmul.mubr.bf16.gmra.mrb[24].mxu0 %v4780_v14  ;;  %1801 = vmatpush1.bf16.msra.mxu1 %v4777_v13  ;;  %v4868_v13 = vld [vmem:[%s5184_s8 + $0x1ec] ss:$40 sps:$4 sm:$0xff]   ;;  %v4870_v14 = vld [vmem:[%s5184_s8 + $0x1fc] ss:$40 sps:$4 sm:$0xff]  }
  0xce   : > { %2027 = vmatpush1.bf16.msra.mxu0 %v4781_v15  ;;  %1802 = vmatprep.subr.bf16.mxu1 %v4786_v16  ;;  %v4886_v15 = vld [vmem:[#allocation3 + $0x4a0] ss:$8 sps:$4 sm:$0xff]  }
  0xcf   : > { %2028 = vmatprep.subr.bf16.mxu0 %v4789_v17  ;;  %1765 = vmatprep.mubr.bf16.mxu1 %v4790_v18  ;;  %v4875_v16 = vld [vmem:[%s5184_s8 + $0x1e8] ss:$40 sps:$4 sm:$0xff]   ;;  %v4876_v17 = vld [vmem:[%s5184_s8 + $0x1f8] ss:$40 sps:$4 sm:$0xff]   ;;  %v4880_v18 = vld [vmem:[%s5184_s8 + $0x23c] ss:$40 sps:$4 sm:$0xff]  }
  0xd0   : > { %1991 = vmatprep.mubr.bf16.mxu0 %v4792_v19  ;;  %v4882_v19 = vld [vmem:[%s5184_s8 + $0x24c] ss:$40 sps:$4 sm:$0xff]  }
  0xd1   : > { %1803 = vmatpush1.bf16.msra.mxu1 %v4784_v20  ;;  %v4884_v20 = vld [vmem:[%s5184_s8 + $0x238] ss:$40 sps:$4 sm:$0xff]  }
  0xd2   : > { %2029 = vmatpush1.bf16.msra.mxu0 %v4787_v21  ;;  %1804 = vmatprep.subr.bf16.mxu1 %v4797_v22  ;;  %v4885_v21 = vld [vmem:[%s5184_s8 + $0x248] ss:$40 sps:$4 sm:$0xff]   ;;  %v4891_v22 = vld [vmem:[%s5184_s8 + $0x24] ss:$40 sps:$4 sm:$0xff]  }
  0xd3   : > { %2030 = vmatprep.subr.bf16.mxu0 %v4801_v23  ;;  %v4889_v23 = vld [vmem:[%s5184_s8 + $0x20] ss:$40 sps:$4 sm:$0xff]  }
  0xd4   : > { %1766 = vmatmul.mubr.bf16.gmra.mrb[28].mxu1 %v4794_v24  ;;  %v4892_v24 = vld [vmem:[%s5184_s8 + $0x74] ss:$40 sps:$4 sm:$0xff]  }
  0xd5   : > { %1992 = vmatmul.mubr.bf16.gmra.mrb[28].mxu0 %v4798_v26  ;;  %1805 = vmatpush1.bf16.msra.mxu1 %v4795_v25  ;;  %v4894_v25 = vld [vmem:[%s5184_s8 + $0x70] ss:$40 sps:$4 sm:$0xff]   ;;  %v4895_v26 = vld [vmem:[%s5184_s8 + $0xc4] ss:$40 sps:$4 sm:$0xff]  }
  0xd6   : > { %2031 = vmatpush1.bf16.msra.mxu0 %v4799_v27  ;;  %1806 = vmatprep.subr.bf16.mxu1 %v4804_v28  ;;  %v4897_v27 = vld [vmem:[%s5184_s8 + $0xc0] ss:$40 sps:$4 sm:$0xff]   ;;  %v4898_v28 = vld [vmem:[%s5184_s8 + $0x114] ss:$40 sps:$4 sm:$0xff]  }
  0xd7   : > { %2032 = vmatprep.subr.bf16.mxu0 %v4807_v29  ;;  %1808 = vmatprep.mubr.bf16.mxu1 %v4810_v30  ;;  %v4900_v29 = vld [vmem:[%s5184_s8 + $0x110] ss:$40 sps:$4 sm:$0xff]   ;;  %v4901_v30 = vld [vmem:[%s5184_s8 + $0x164] ss:$40 sps:$4 sm:$0xff]  }
  0xd8   : > { %2034 = vmatprep.mubr.bf16.mxu0 %v4813_v31  ;;  %v4903_v31 = vld [vmem:[%s5184_s8 + $0x160] ss:$40 sps:$4 sm:$0xff]  }
  0xd9   : > { %1807 = vmatpush1.bf16.msra.mxu1 %v4802_v32  ;;  %v4904_v32 = vld [vmem:[%s5184_s8 + $0x1b4] ss:$40 sps:$4 sm:$0xff]  }
  0xda   : > { %2033 = vmatpush1.bf16.msra.mxu0 %v4805_v33  ;;  %v4906_v33 = vld [vmem:[%s5184_s8 + $0x1b0] ss:$40 sps:$4 sm:$0xff]  }
  0xdb   : > { %2115 = vmatprep.subr.bf16.mxu0 %v4816_v34  ;;  %v4907_v34 = vld [vmem:[%s5184_s8 + $0x204] ss:$40 sps:$4 sm:$0xff]  }
  0xdc   : > { %1809 = vmatmul.mubr.bf16.vlgmr.msra.gmra.mrb[0].mxu1 %v4808_v35  ;;  %v4909_v35 = vld [vmem:[%s5184_s8 + $0x200] ss:$40 sps:$4 sm:$0xff]  }
  0xdd   : > { %2035 = vmatmul.mubr.bf16.vlgmr.msra.gmra.mrb[0].mxu0 %v4811_v36  ;;  %1818 = vmatprep.mubr.bf16.mxu1 %v4820_v39  ;;  %v4910_v36 = vld [vmem:[%s5184_s8 + $0x254] ss:$40 sps:$4 sm:$0xff]  }
  0xde   : > { %2116 = vmatpush1.bf16.msra.mxu0 %v4814_v37  ;;  %2044 = vmatprep.mubr.bf16.mxu0 %v4822_v40  ;;  %v4912_v37 = vld [vmem:[%s5184_s8 + $0x250] ss:$40 sps:$4 sm:$0xff]  }
  0xdf   : > { %2117 = vmatprep.subr.bf16.mxu0 %v4819_v38 }
  0xe2   : > { %2118 = vmatpush1.bf16.msra.mxu0 %v4817_v41 }
  0xe3   : > { %2119 = vmatprep.subr.bf16.mxu0 %v4828_v42 }
  0xe4   : > { %1819 = vmatmul.mubr.bf16.gmra.mrb[4].mxu1 %v4824_v43 }
  0xe5   : > { %2045 = vmatmul.mubr.bf16.gmra.mrb[4].mxu0 %v4825_v44  ;;  %1828 = vmatprep.mubr.bf16.mxu1 %v4829_v46 }
  0xe6   : > { %2120 = vmatpush1.bf16.msra.mxu0 %v4826_v45  ;;  %2054 = vmatprep.mubr.bf16.mxu0 %v4831_v47 }
  0xe7   : > { %2121 = vmatprep.subr.bf16.mxu0 %v4837_v48 }
  0xea   : > { %2122 = vmatpush1.bf16.msra.mxu0 %v4835_v49 }
  0xeb   : > { %2123 = vmatprep.subr.bf16.mxu0 %v4846_v50 }
  0xec   : > { %1829 = vmatmul.mubr.bf16.gmra.mrb[8].mxu1 %v4833_v51 }
  0xed   : > { %2055 = vmatmul.mubr.bf16.gmra.mrb[8].mxu0 %v4834_v52  ;;  %1838 = vmatprep.mubr.bf16.mxu1 %v4838_v53 }
  0xee   : > { %2064 = vmatprep.mubr.bf16.mxu0 %v4840_v54  ;;  %2124 = vmatpush1.bf16.msra.mxu0 %v4844_v55 }
  0xef   : > { %2125 = vmatprep.subr.bf16.mxu0 %v4849_v56 }
  0xf2   : > { %2126 = vmatpush1.bf16.msra.mxu0 %v4847_v58 }
  0xf3   : > { %2127 = vmatprep.subr.bf16.mxu0 %v4858_v60 }
  0xf4   : > { %1839 = vmatmul.mubr.bf16.gmra.mrb[12].mxu1 %v4842_v57 }
  0xf5   : > { %2065 = vmatmul.mubr.bf16.gmra.mrb[12].mxu0 %v4843_v59  ;;  %1848 = vmatprep.mubr.bf16.mxu1 %v4850_v61 }
  0xf6   : > { %2074 = vmatprep.mubr.bf16.mxu0 %v4852_v62  ;;  %2128 = vmatpush1.bf16.msra.mxu0 %v4856_v63 }
  0xf7   : > { %2129 = vmatprep.subr.bf16.mxu0 %v4867_v0 }
  0xfa   : > { %2130 = vmatpush1.bf16.msra.mxu0 %v4865_v1 }
  0xfb   : > { %2131 = vmatprep.subr.bf16.mxu0 %v4874_v2 }
  0xfc   : > { %1849 = vmatmul.mubr.bf16.gmra.mrb[16].mxu1 %v4854_v3 }
  0xfd   : > { %2075 = vmatmul.mubr.bf16.gmra.mrb[16].mxu0 %v4855_v4  ;;  %1858 = vmatprep.mubr.bf16.mxu1 %v4859_v5 }
  0xfe   : > { %2084 = vmatprep.mubr.bf16.mxu0 %v4861_v6  ;;  %2132 = vmatpush1.bf16.msra.mxu0 %v4872_v7 }
  0xff   : > { %2133 = vmatprep.subr.bf16.mxu0 %v4879_v8 }
 0x102   : > { %2134 = vmatpush1.bf16.msra.mxu0 %v4877_v9 }
 0x103   : > { %2135 = vmatprep.subr.bf16.mxu0 %v4888_v10 }
 0x104   : > { %1859 = vmatmul.mubr.bf16.gmra.mrb[20].mxu1 %v4863_v11 }
 0x105   : > { %2085 = vmatmul.mubr.bf16.gmra.mrb[20].mxu0 %v4864_v12  ;;  %1868 = vmatprep.mubr.bf16.mxu1 %v4868_v13 }
 0x106   : > { %2094 = vmatprep.mubr.bf16.mxu0 %v4870_v14  ;;  %2136 = vmatpush1.bf16.msra.mxu0 %v4886_v15 }
 0x10c   : > { %1869 = vmatmul.mubr.bf16.gmra.mrb[24].mxu1 %v4875_v16 }
 0x10d   : > { %2095 = vmatmul.mubr.bf16.gmra.mrb[24].mxu0 %v4876_v17  ;;  %1878 = vmatprep.mubr.bf16.mxu1 %v4880_v18 }
 0x10e   : > { %2104 = vmatprep.mubr.bf16.mxu0 %v4882_v19 }
 0x114   : > { %1879 = vmatmul.mubr.bf16.gmra.mrb[28].mxu1 %v4884_v20 }
 0x115   : > { %2105 = vmatmul.mubr.bf16.gmra.mrb[28].mxu0 %v4885_v21 }
 0x116   : > { %4272 = vmatprep.mubr.msk.bf16.mxu0 %vm1638_vm0, %v4891_v22 }
 0x11d   : > { %2148 = vmatmul.mubr.bf16.vlgmr.msra.gmra.mrb[0].mxu0 %v4889_v23 }
 0x11e   : > { %4273 = vmatprep.mubr.msk.bf16.mxu0 %vm1638_vm0, %v4892_v24 }
 0x125   : > { %2158 = vmatmul.mubr.bf16.gmra.mrb[4].mxu0 %v4894_v25 }
 0x126   : > { %4274 = vmatprep.mubr.msk.bf16.mxu0 %vm1638_vm0, %v4895_v26 }
 0x12d   : > { %2168 = vmatmul.mubr.bf16.gmra.mrb[8].mxu0 %v4897_v27 }
 0x12e   : > { %4275 = vmatprep.mubr.msk.bf16.mxu0 %vm1638_vm0, %v4898_v28 }
 0x135   : > { %2178 = vmatmul.mubr.bf16.gmra.mrb[12].mxu0 %v4900_v29 }
 0x136   : > { %4276 = vmatprep.mubr.msk.bf16.mxu0 %vm1638_vm0, %v4901_v30 }
 0x13d   : > { %2188 = vmatmul.mubr.bf16.gmra.mrb[16].mxu0 %v4903_v31 }
 0x13e   : > { %4277 = vmatprep.mubr.msk.bf16.mxu0 %vm1638_vm0, %v4904_v32 }
 0x145   : > { %2198 = vmatmul.mubr.bf16.gmra.mrb[20].mxu0 %v4906_v33 }
 0x146   : > { %4278 = vmatprep.mubr.msk.bf16.mxu0 %vm1638_vm0, %v4907_v34 }
 0x14d   : > { %2208 = vmatmul.mubr.bf16.gmra.mrb[24].mxu0 %v4909_v35 }
 0x14e   : > { %4279 = vmatprep.mubr.msk.bf16.mxu0 %vm1638_vm0, %v4910_v36  ;;  %vm3926_vm0 = vcmask 519168  }
 0x155   : > { %2218 = vmatmul.mubr.bf16.gmra.mrb[28].mxu0 %v4912_v37 }
 0x1af   : > { %v1810_v38 = vpop.f32.mrb[0].mxu1 }
 0x1b0   : > { %v1812_v39 = vpop.f32.mrb[1].mxu1 }
 0x1b1   : > { %v1814_v40 = vpop.f32.mrb[2].mxu1 }
 0x1b2   : > { %v1816_v41 = vpop.f32.mrb[3].mxu1 }
 0x1b7   : > { %v5274_v42 = vpop.f32.mrb[4].mxu1 }
 0x1b8   : > { %v5276_v43 = vpop.f32.mrb[5].mxu1 }
 0x1b9   : > { %v5278_v44 = vpop.f32.mrb[6].mxu1 }
 0x1ba   : > { %v5280_v45 = vpop.f32.mrb[7].mxu1 }
 0x1bf   : > { %v5282_v46 = vpop.f32.mrb[8].mxu1 }
 0x1c0   : > { %v5284_v47 = vpop.f32.mrb[9].mxu1 }
 0x1c1   : > { %v5286_v48 = vpop.f32.mrb[10].mxu1 }
 0x1c2   : > { %v5288_v49 = vpop.f32.mrb[11].mxu1 }
 0x1c7   : > { %v5290_v50 = vpop.f32.mrb[12].mxu1 }
 0x1c8   : > { %v5292_v51 = vpop.f32.mrb[13].mxu1 }
 0x1c9   : > { %v5294_v52 = vpop.f32.mrb[14].mxu1 }
 0x1ca   : > { %v5296_v53 = vpop.f32.mrb[15].mxu1 }
 0x1cf   : > { %v5298_v54 = vpop.f32.mrb[16].mxu1 }
 0x1d0   : > { %v5300_v55 = vpop.f32.mrb[17].mxu1 }
 0x1d1   : > { %v5302_v56 = vpop.f32.mrb[18].mxu1 }
 0x1d2   : > { %v5304_v57 = vpop.f32.mrb[19].mxu1 }
 0x1d7   : > { %v5306_v58 = vpop.f32.mrb[20].mxu1 }
 0x1d8   : > { %v5308_v59 = vpop.f32.mrb[21].mxu1 }
 0x1d9   : > { %v5310_v60 = vpop.f32.mrb[22].mxu1 }
 0x1da   : > { %v5312_v61 = vpop.f32.mrb[23].mxu1 }
 0x1df   : > { %v5314_v62 = vpop.f32.mrb[24].mxu1 }
 0x1e0   : > { %v5316_v63 = vpop.f32.mrb[25].mxu1 }
 0x1e1   : > { %v5318_v0 = vpop.f32.mrb[26].mxu1 }
 0x1e2   : > { %v5320_v1 = vpop.f32.mrb[27].mxu1 }
 0x1e7   : > { %v5322_v2 = vpop.f32.mrb[28].mxu1 }
 0x1e8   : > { %v5324_v3 = vpop.f32.mrb[29].mxu1 }
 0x1e9   : > { %v5326_v4 = vpop.f32.mrb[30].mxu1 }
 0x1ea   : > { %v5328_v5 = vpop.f32.mrb[31].mxu1 }
 0x1f0   : > { %v2149_v6 = vpop.f32.mrb[0].mxu0 }
 0x1f1   : > { %v5330_v7 = vadd.f32 %v2149_v6, %v1810_v38  ;;  %v2151_v8 = vpop.f32.mrb[1].mxu0 }
 0x1f2   : > { %v4395_v9 = vadd.f32 %v2151_v8, %v1812_v39  ;;  %v2153_v10 = vpop.f32.mrb[2].mxu0 }
 0x1f3   : > { %v5332_v11 = vadd.f32 %v2153_v10, %v1814_v40  ;;  %v2155_v12 = vpop.f32.mrb[3].mxu0  ;;  %v2341_v14 = vrot.slane %v5330_v7, 2  ;;  %v2245_v15 = vrot.slane %v5330_v7, 1  ;;  %v2437_v35 = vrot.slane %v5330_v7, 3 }
 0x1f4   : > { %v4397_v13 = vadd.f32 %v2155_v12, %v1816_v41  ;;  %v2613_v16 = vrot.slane %v4395_v9, 5  ;;  %v2709_v19 = vrot.slane %v4395_v9, 6  ;;  %v2805_v20 = vrot.slane %v4395_v9, 7 }
 0x1f5   : > { %v2342_v17 = vrot.slane %v5332_v11, 2  ;;  %v2246_v18 = vrot.slane %v5332_v11, 1  ;;  %v2549_v25 = vrot.slane %v4395_v9, 4  ;;  %v2438_v28 = vrot.slane %v5332_v11, 3 }
 0x1f6   : > { %v2550_v21 = vrot.slane %v4397_v13, 4  ;;  %v2614_v22 = vrot.slane %v4397_v13, 5  ;;  %v2710_v23 = vrot.slane %v4397_v13, 6  ;;  %v2806_v24 = vrot.slane %v4397_v13, 7 }
 0x1f7   : > { %v2343_v26 = vsel %vm2340_vm1, %v2341_v14, %v2342_v17  ;;  %v2247_v27 = vsel %vm2244_vm2, %v2245_v15, %v2246_v18  ;;  %v2439_v41 = vsel %vm2436_vm7, %v2437_v35, %v2438_v28 }
 0x1f8   : > { %v2159_v29 = vpop.f32.mrb[4].mxu0  ;;  %2372 = vrot.lane.b32.xlu1 %v2343_v26, %s5035_s23  ;;  %2276 = vrot.lane.b32.xlu0 %v2247_v27, %s5036_s26  ;;  %v2615_v30 = vsel %vm2612_vm3, %v2613_v16, %v2614_v22  ;;  %v2711_v31 = vsel %vm2708_vm4, %v2709_v19, %v2710_v23  ;;  %v2807_v32 = vsel %vm2804_vm5, %v2805_v20, %v2806_v24 }
 0x1f9   : > { %v5349_v33 = vadd.f32 %v2159_v29, %v5274_v42  ;;  %v2161_v34 = vpop.f32.mrb[5].mxu0  ;;  %v5353_v36 = vsel %vm2548_vm6, %v2549_v25, %v2550_v21 }
 0x1fa   : > { %v4399_v37 = vadd.f32 %v2161_v34, %v5276_v43  ;;  %v2163_v38 = vpop.f32.mrb[6].mxu0 }
 0x1fb   : > { %v5357_v39 = vadd.f32 %v2163_v38, %v5278_v44  ;;  %v2165_v40 = vpop.f32.mrb[7].mxu0  ;;  %v2440_v13 = vrot.slane %v5349_v33, 3  ;;  %v2248_v14 = vrot.slane %v5349_v33, 1  ;;  %v2344_v34 = vrot.slane %v5349_v33, 2 }
 0x1fc   : > { %v2552_v6 = vrot.slane %v4399_v37, 4  ;;  %v4401_v8 = vadd.f32 %v2165_v40, %v5280_v45  ;;  %2468 = vrot.lane.b32.xlu0 %v2439_v41, %s5037_s28  ;;  %2644 = vrot.lane.b32.xlu1 %v2615_v30, %s5036_s26  ;;  %v2712_v42 = vrot.slane %v4399_v37, 6  ;;  %v2616_v9 = vrot.slane %v4399_v37, 5 }
 0x1fd   : > { %6878 = vst [vmem:[#allocation10_spill] sm:$0xff] %v5357_v39  ;;  %v2808_v44 = vrot.slane %v4399_v37, 7 }
 0x1fe   : > { %v2554_v10 = vrot.slane %v4401_v8, 4  ;;  %v2713_v43 = vsel %vm2708_vm4, %v2710_v23, %v2712_v42  ;;  %v2617_v12 = vsel %vm2612_vm3, %v2614_v22, %v2616_v9  ;;  %v2618_v15 = vrot.slane %v4401_v8, 5 }
 0x1ff   : > { %v2809_v45 = vsel %vm2804_vm5, %v2806_v24, %v2808_v44  ;;  %v2714_v19 = vrot.slane %v4401_v8, 6  ;;  %v2810_v20 = vrot.slane %v4401_v8, 7  ;;  %v5371_v25 = vsel %vm2548_vm6, %v2550_v21, %v2552_v6 }
 0x200   : > { %v2169_v16 = vpop.f32.mrb[8].mxu0  ;;  %2740 = vrot.lane.b32.xlu0 %v2711_v31, %s5035_s23  ;;  %2836 = vrot.lane.b32.xlu1 %v2807_v32, %s5037_s28  ;;  %v5377_v26 = vsel %vm2612_vm3, %v2616_v9, %v2618_v15  ;;  %v5387_v31 = vsel %vm2548_vm6, %v2552_v6, %v2554_v10  ;;  %v2441_v32 = vsel %vm2436_vm7, %v2438_v28, %v2440_v13 }
 0x201   : > { %v5374_v22 = vadd.f32 %v2169_v16, %v5282_v46  ;;  %v2171_v23 = vpop.f32.mrb[9].mxu0  ;;  %v5381_v30 = vsel %vm2708_vm4, %v2712_v42, %v2714_v19  ;;  %v5384_v24 = vsel %vm2804_vm5, %v2808_v44, %v2810_v20 }
 0x202   : > { %v4403_v27 = vadd.f32 %v2171_v23, %v5284_v47  ;;  %v2173_v29 = vpop.f32.mrb[10].mxu0  ;;  %v2249_v47 = vsel %vm2244_vm2, %v2246_v18, %v2248_v14  ;;  %v2345_v18 = vsel %vm2340_vm1, %v2342_v17, %v2344_v34 }
 0x203   : > { %v5390_v21 = vadd.f32 %v2173_v29, %v5286_v48  ;;  %v2175_v46 = vpop.f32.mrb[11].mxu0 }
 0x204   : > { %v2556_v35 = vrot.slane %v4403_v27, 4  ;;  %v4405_v37 = vadd.f32 %v2175_v46, %v5288_v49  ;;  %2470 = vrot.lane.b32.xlu1 %v2441_v32, %s5037_s28  ;;  %2278 = vrot.lane.b32.xlu0 %v2249_v47, %s5036_s26  ;;  %v2620_v38 = vrot.slane %v4403_v27, 5  ;;  %v2716_v40 = vrot.slane %v4403_v27, 6 }
 0x205   : > { %v2812_v28 = vrot.slane %v4403_v27, 7  ;;  %v6864_v49 = vrot.slane %v5357_v39, 1  ;;  %v6866_v47 = vrot.slane %v5357_v39, 2 }
 0x206   : > { %v2558_v48 = vrot.slane %v4405_v37, 4  ;;  %v5401_v41 = vsel %vm2612_vm3, %v2618_v15, %v2620_v38  ;;  %v5404_v6 = vsel %vm2708_vm4, %v2714_v19, %v2716_v40  ;;  %v2622_v8 = vrot.slane %v4405_v37, 5 }
 0x207   : > { %v2718_v42 = vrot.slane %v4405_v37, 6  ;;  %v5413_v44 = vsel %vm2804_vm5, %v2810_v20, %v2812_v28  ;;  %v2814_v15 = vrot.slane %v4405_v37, 7  ;;  %v5416_v16 = vsel %vm2548_vm6, %v2554_v10, %v2556_v35 }
 0x208   : > { %v2179_v9 = vpop.f32.mrb[12].mxu0  ;;  %2374 = vrot.lane.b32.xlu0 %v2345_v18, %s5035_s23  ;;  %2742 = vrot.lane.b32.xlu1 %v2713_v43, %s5035_s23  ;;  %6879 = vst [vmem:[#allocation11_spill] sm:$0xff] %v5416_v16  ;;  %v5422_v23 = vsel %vm2612_vm3, %v2620_v38, %v2622_v8  ;;  %v5432_v46 = vsel %vm2548_vm6, %v2556_v35, %v2558_v48 }
 0x209   : > { %v5419_v19 = vadd.f32 %v2179_v9, %v5290_v50  ;;  %v2181_v17 = vpop.f32.mrb[13].mxu0  ;;  %v5425_v27 = vsel %vm2708_vm4, %v2716_v40, %v2718_v42  ;;  %v5429_v20 = vsel %vm2804_vm5, %v2812_v28, %v2814_v15  ;;  %6880 = vst [vmem:[#allocation12_spill] sm:$0xff] %v5432_v46  ;;  %v2251_v32 = vsel %vm2244_vm2, %v2248_v14, %v6864_v49 }
 0x20a   : > { %v4407_v29 = vadd.f32 %v2181_v17, %v5292_v51  ;;  %v2183_v43 = vpop.f32.mrb[14].mxu0  ;;  %v2347_v28 = vsel %vm2340_vm1, %v2344_v34, %v6866_v47  ;;  %v6865_v14 = vrot.slane %v5357_v39, 3 }
 0x20b   : > { %v5435_v10 = vadd.f32 %v2183_v43, %v5294_v52  ;;  %v2185_v50 = vpop.f32.mrb[15].mxu0 }
 0x20c   : > { %v4409_v37 = vadd.f32 %v2185_v50, %v5296_v53  ;;  %2646 = vrot.lane.b32.xlu0 %v2617_v12, %s5036_s26  ;;  %2280 = vrot.lane.b32.xlu1 %v2251_v32, %s5036_s26  ;;  %v2624_v51 = vrot.slane %v4407_v29, 5  ;;  %v2720_v38 = vrot.slane %v4407_v29, 6  ;;  %v2560_v35 = vrot.slane %v4407_v29, 4 }
 0x20d   : > { %v2816_v17 = vrot.slane %v4407_v29, 7 }
 0x20e   : > { %v2562_v40 = vrot.slane %v4409_v37, 4  ;;  %v5445_v52 = vsel %vm2612_vm3, %v2622_v8, %v2624_v51  ;;  %v2626_v18 = vrot.slane %v4409_v37, 5  ;;  %v5452_v53 = vsel %vm2708_vm4, %v2718_v42, %v2720_v38 }
 0x20f   : > { %v2722_v9 = vrot.slane %v4409_v37, 6  ;;  %v2818_v43 = vrot.slane %v4409_v37, 7  ;;  %v5463_v32 = vsel %vm2548_vm6, %v2558_v48, %v2560_v35  ;;  %v5473_v29 = vsel %vm2804_vm5, %v2814_v15, %v2816_v17 }
 0x210   : > { %v2189_v12 = vpop.f32.mrb[16].mxu0  ;;  %2838 = vrot.lane.b32.xlu0 %v2809_v45, %s5037_s28  ;;  %2376 = vrot.lane.b32.xlu1 %v2347_v28, %s5035_s23  ;;  %v5460_v34 = vsel %vm2612_vm3, %v2624_v51, %v2626_v18  ;;  %6881 = vst [vmem:[#allocation13_spill] sm:$0xff] %v5463_v32  ;;  %v5466_v42 = vsel %vm2548_vm6, %v2560_v35, %v2562_v40 }
 0x211   : > { %v5457_v8 = vadd.f32 %v2189_v12, %v5298_v54  ;;  %v2191_v50 = vpop.f32.mrb[17].mxu0  ;;  %6882 = vst [vmem:[#allocation14_spill] sm:$0xff] %v5466_v42  ;;  %v5470_v28 = vsel %vm2708_vm4, %v2720_v38, %v2722_v9  ;;  %v5476_v54 = vsel %vm2804_vm5, %v2816_v17, %v2818_v43 }
 0x212   : > { %v4411_v45 = vadd.f32 %v2191_v50, %v5300_v55  ;;  %v2193_v49 = vpop.f32.mrb[18].mxu0  ;;  %v2443_v55 = vsel %vm2436_vm7, %v2440_v13, %v6865_v14 }
 0x213   : > { %v5479_v37 = vadd.f32 %v2193_v49, %v5302_v56  ;;  %v2195_v48 = vpop.f32.mrb[19].mxu0  ;;  %v2348_v49 = vrot.slane %v5374_v22, 2 }
 0x214   : > { %v4413_v51 = vadd.f32 %v2195_v48, %v5304_v57  ;;  %2472 = vrot.lane.b32.xlu0 %v2443_v55, %s5037_s28  ;;  %2648 = vrot.lane.b32.xlu1 %v5377_v26, %s5036_s26  ;;  %v2628_v15 = vrot.slane %v4411_v45, 5  ;;  %v2724_v38 = vrot.slane %v4411_v45, 6  ;;  %v2564_v35 = vrot.slane %v4411_v45, 4 }
 0x215   : > { %v2820_v48 = vrot.slane %v4411_v45, 7 }
 0x216   : > { %v2566_v12 = vrot.slane %v4413_v51, 4  ;;  %v5491_v56 = vsel %vm2612_vm3, %v2626_v18, %v2628_v15  ;;  %v2630_v50 = vrot.slane %v4413_v51, 5  ;;  %v5496_v13 = vsel %vm2708_vm4, %v2722_v9, %v2724_v38 }
 0x217   : > { %v2726_v26 = vrot.slane %v4413_v51, 6  ;;  %v2822_v55 = vrot.slane %v4413_v51, 7  ;;  %v5509_v9 = vsel %vm2548_vm6, %v2562_v40, %v2564_v35  ;;  %v5519_v45 = vsel %vm2804_vm5, %v2818_v43, %v2820_v48 }
 0x218   : > { %v2199_v57 = vpop.f32.mrb[20].mxu0  ;;  %2744 = vrot.lane.b32.xlu0 %v5381_v30, %s5035_s23  ;;  %2840 = vrot.lane.b32.xlu1 %v5384_v24, %s5037_s28  ;;  %v5506_v17 = vsel %vm2612_vm3, %v2628_v15, %v2630_v50  ;;  %6883 = vst [vmem:[#allocation15_spill] sm:$0xff] %v5509_v9  ;;  %v5512_v47 = vsel %vm2548_vm6, %v2564_v35, %v2566_v12  ;;  %v6885_v15 = vrot.slane %v5357_v39, 2  ;;  %v6867_v43 = vrot.slane %v5374_v22, 3 }
 0x219   : > { %v5503_v18 = vadd.f32 %v2199_v57, %v5306_v58  ;;  %v2201_v14 = vpop.f32.mrb[21].mxu0  ;;  %6884 = vst [vmem:[#allocation16_spill] sm:$0xff] %v5512_v47  ;;  %v5516_v24 = vsel %vm2708_vm4, %v2724_v38, %v2726_v26  ;;  %v5522_v58 = vsel %vm2804_vm5, %v2820_v48, %v2822_v55  ;;  %v6888_v9 = vrot.slane %v5357_v39, 3 }
 0x21a   : > { %v4415_v30 = vadd.f32 %v2201_v14, %v5308_v59  ;;  %v2203_v42 = vpop.f32.mrb[22].mxu0  ;;  %v2349_v35 = vsel %vm2340_vm1, %v6885_v15, %v2348_v49  ;;  %v6886_v59 = vrot.slane %v5374_v22, 1  ;;  %v6887_v14 = vrot.slane %v5357_v39, 1 }
 0x21b   : > { %v5525_v51 = vadd.f32 %v2203_v42, %v5310_v60  ;;  %v2205_v40 = vpop.f32.mrb[23].mxu0 }
 0x21c   : > { %v2253_v38 = vsel %vm2244_vm2, %v6887_v14, %v6886_v59  ;;  %v4417_v57 = vadd.f32 %v2205_v40, %v5312_v61  ;;  %2378 = vrot.lane.b32.xlu0 %v2349_v35, %s5035_s23  ;;  %v2632_v60 = vrot.slane %v4415_v30, 5  ;;  %v2728_v42 = vrot.slane %v4415_v30, 6 }
 0x21d   : > { %2282 = vrot.lane.b32.xlu1 %v2253_v38, %s5036_s26  ;;  %v2568_v48 = vrot.slane %v4415_v30, 4  ;;  %v2445_v59 = vsel %vm2436_vm7, %v6888_v9, %v6867_v43  ;;  %v2824_v38 = vrot.slane %v4415_v30, 7 }
 0x21e   : > { %v2570_v47 = vrot.slane %v4417_v57, 4  ;;  %v5540_v15 = vsel %vm2612_vm3, %v2630_v50, %v2632_v60  ;;  %v2634_v61 = vrot.slane %v4417_v57, 5  ;;  %v5549_v40 = vsel %vm2708_vm4, %v2726_v26, %v2728_v42 }
 0x21f   : > { %v2730_v50 = vrot.slane %v4417_v57, 6  ;;  %v2826_v32 = vrot.slane %v4417_v57, 7  ;;  %v5561_v43 = vsel %vm2548_vm6, %v2566_v12, %v2568_v48  ;;  %v5571_v30 = vsel %vm2804_vm5, %v2822_v55, %v2824_v38 }
 0x220   : > { %v2209_v35 = vpop.f32.mrb[24].mxu0  ;;  %2650 = vrot.lane.b32.xlu0 %v5401_v41, %s5036_s26  ;;  %v5558_v9 = vsel %vm2612_vm3, %v2632_v60, %v2634_v61  ;;  %6889 = vst [vmem:[#allocation17_spill] sm:$0xff] %v5561_v43  ;;  %v5564_v26 = vsel %vm2548_vm6, %v2568_v48, %v2570_v47  ;;  %v6891_v60 = vrot.slane %v5390_v21, 2 }
 0x221   : > { %2474 = vrot.lane.b32.xlu1 %v2445_v59, %s5037_s28  ;;  %v5555_v46 = vadd.f32 %v2209_v35, %v5314_v62  ;;  %v2211_v16 = vpop.f32.mrb[25].mxu0  ;;  %6890 = vst [vmem:[#allocation18_spill] sm:$0xff] %v5564_v26  ;;  %v5568_v41 = vsel %vm2708_vm4, %v2728_v42, %v2730_v50  ;;  %v5574_v62 = vsel %vm2804_vm5, %v2824_v38, %v2826_v32 }
 0x222   : > { %v4419_v59 = vadd.f32 %v2211_v16, %v5316_v63  ;;  %v2213_v14 = vpop.f32.mrb[26].mxu0  ;;  %v2351_v48 = vsel %vm2340_vm1, %v2348_v49, %v6891_v60 }
 0x223   : > { %v5577_v57 = vadd.f32 %v2213_v14, %v5318_v0  ;;  %v2215_v12 = vpop.f32.mrb[27].mxu0  ;;  %v2254_v0 = vrot.slane %v5390_v21, 1 }
 0x224   : > { %v4421_v63 = vadd.f32 %v2215_v12, %v5320_v1  ;;  %2746 = vrot.lane.b32.xlu0 %v5404_v6, %s5035_s23  ;;  %v2636_v16 = vrot.slane %v4419_v59, 5  ;;  %v2732_v55 = vrot.slane %v4419_v59, 6  ;;  %v2572_v42 = vrot.slane %v4419_v59, 4 }
 0x225   : > { %2380 = vrot.lane.b32.xlu1 %v2351_v48, %s5035_s23  ;;  %v2446_v1 = vrot.slane %v5390_v21, 3  ;;  %v2828_v12 = vrot.slane %v4419_v59, 7 }
 0x226   : > { %v2574_v35 = vrot.slane %v4421_v63, 4  ;;  %v5587_v38 = vsel %vm2612_vm3, %v2634_v61, %v2636_v16  ;;  %v2638_v14 = vrot.slane %v4421_v63, 5  ;;  %v5591_v26 = vsel %vm2708_vm4, %v2730_v50, %v2732_v55 }
 0x227   : > { %6892 = vst [vmem:[#allocation19_spill] sm:$0xff] %v5591_v26  ;;  %v2734_v6 = vrot.slane %v4421_v63, 6  ;;  %v2830_v60 = vrot.slane %v4421_v63, 7  ;;  %v5605_v50 = vsel %vm2548_vm6, %v2570_v47, %v2572_v42  ;;  %v5615_v59 = vsel %vm2804_vm5, %v2826_v32, %v2828_v12 }
 0x228   : > { %v2219_v49 = vpop.f32.mrb[28].mxu0  ;;  %2842 = vrot.lane.b32.xlu0 %v5413_v44, %s5037_s28  ;;  %v5602_v43 = vsel %vm2612_vm3, %v2636_v16, %v2638_v14  ;;  %v5608_v44 = vsel %vm2548_vm6, %v2572_v42, %v2574_v35  ;;  %v6894_v16 = vrot.slane %v5374_v22, 1 }
 0x229   : > { %2652 = vrot.lane.b32.xlu1 %v5422_v23, %s5036_s26  ;;  %v5599_v61 = vadd.f32 %v2219_v49, %v5322_v2  ;;  %v2221_v48 = vpop.f32.mrb[29].mxu0  ;;  %6893 = vst [vmem:[#allocation20_spill] sm:$0xff] %v5608_v44  ;;  %v5612_v26 = vsel %vm2708_vm4, %v2732_v55, %v2734_v6  ;;  %v5618_v2 = vsel %vm2804_vm5, %v2828_v12, %v2830_v60  ;;  %v6895_v12 = vrot.slane %v5374_v22, 3 }
 0x22a   : > { %v4423_v23 = vadd.f32 %v2221_v48, %v5324_v3  ;;  %v2223_v39 = vpop.f32.mrb[30].mxu0  ;;  %v2255_v42 = vsel %vm2244_vm2, %v6894_v16, %v2254_v0 }
 0x22b   : > { %v5621_v63 = vadd.f32 %v2223_v39, %v5326_v4  ;;  %v2225_v47 = vpop.f32.mrb[31].mxu0  ;;  %v2447_v4 = vsel %vm2436_vm7, %v6895_v12, %v2446_v1  ;;  %v2256_v39 = vrot.slane %v5419_v19, 1  ;;  %v2352_v12 = vrot.slane %v5419_v19, 2 }
 0x22c   : > { %v2576_v49 = vrot.slane %v4423_v23, 4  ;;  %v5627_v3 = vadd.f32 %v2225_v47, %v5328_v5  ;;  %2284 = vrot.lane.b32.xlu0 %v2255_v42, %s5036_s26  ;;  %v2736_v32 = vrot.slane %v4423_v23, 6  ;;  %v2640_v55 = vrot.slane %v4423_v23, 5 }
 0x22d   : > { %2748 = vrot.lane.b32.xlu1 %v5425_v27, %s5035_s23  ;;  %v2258_v5 = vrot.slane %v5435_v10, 1  ;;  %v2832_v47 = vrot.slane %v4423_v23, 7 }
 0x22e   : > { %v5637_v48 = vsel %vm2708_vm4, %v2734_v6, %v2736_v32  ;;  %v5640_v16 = vsel %vm2612_vm3, %v2638_v14, %v2640_v55  ;;  %v2642_v42 = vrot.slane %v5627_v3, 5  ;;  %v6869_v27 = vrot.slane %v5627_v3, 7 }
 0x22f   : > { %v5650_v6 = vsel %vm2548_vm6, %v2574_v35, %v2576_v49  ;;  %v5653_v14 = vsel %vm2804_vm5, %v2830_v60, %v2832_v47  ;;  %v6897_v35 = vrot.slane %v5627_v3, 6  ;;  %v2257_v60 = vsel %vm2244_vm2, %v2254_v0, %v2256_v39 }
 0x230   : > { %2476 = vrot.lane.b32.xlu0 %v2447_v4, %s5037_s28  ;;  %6896 = vst [vmem:[#allocation21_spill] sm:$0xff] %v5650_v6  ;;  %v5658_v23 = vsel %vm2612_vm3, %v2640_v55, %v2642_v42  ;;  %v5663_v4 = vsel %vm2804_vm5, %v2832_v47, %v6869_v27  ;;  %v2259_v44 = vsel %vm2244_vm2, %v2256_v39, %v2258_v5  ;;  %v2354_v55 = vrot.slane %v5435_v10, 2 }
 0x231   : > { %2844 = vrot.lane.b32.xlu1 %v5429_v20, %s5037_s28  ;;  %v2578_v20 = vrot.slane %v5627_v3, 4  ;;  %v5670_v6 = vsel %vm2708_vm4, %v2736_v32, %v6897_v35  ;;  %v6898_v27 = vrot.slane %v5390_v21, 2  ;;  %v2448_v0 = vrot.slane %v5419_v19, 3 }
 0x232   : > { %v2355_v35 = vsel %vm2340_vm1, %v2352_v12, %v2354_v55  ;;  %v2450_v39 = vrot.slane %v5435_v10, 3 }
 0x233   : > { %v5678_v47 = vsel %vm2548_vm6, %v2576_v49, %v2578_v20  ;;  %v2353_v32 = vsel %vm2340_vm1, %v6898_v27, %v2352_v12  ;;  %v2449_v49 = vsel %vm2436_vm7, %v2446_v1, %v2448_v0  ;;  %v2260_v1 = vrot.slane %v5457_v8, 1 }
 0x234   : > { %2286 = vrot.lane.b32.xlu0 %v2257_v60, %s5036_s26  ;;  %v2451_v60 = vsel %vm2436_vm7, %v2448_v0, %v2450_v39  ;;  %v2356_v27 = vrot.slane %v5457_v8, 2  ;;  %v2360_v0 = vrot.slane %v5503_v18, 2 }
 0x235   : > { %2288 = vrot.lane.b32.xlu1 %v2259_v44, %s5036_s26  ;;  %v2262_v44 = vrot.slane %v5479_v37, 1 }
 0x238   : > { %2382 = vrot.lane.b32.xlu0 %v2353_v32, %s5035_s23 }
 0x239   : > { %2384 = vrot.lane.b32.xlu1 %v2355_v35, %s5035_s23  ;;  %v2266_v35 = vrot.slane %v5525_v51, 1 }
 0x23c   : > { %2478 = vrot.lane.b32.xlu0 %v2449_v49, %s5037_s28 }
 0x23d   : > { %2480 = vrot.lane.b32.xlu1 %v2451_v60, %s5037_s28 }
 0x240   : > { %2654 = vrot.lane.b32.xlu0 %v5445_v52, %s5036_s26  ;;  %v2261_v52 = vsel %vm2244_vm2, %v2258_v5, %v2260_v1 }
 0x241   : > { %2656 = vrot.lane.b32.xlu1 %v5460_v34, %s5036_s26  ;;  %v2263_v34 = vsel %vm2244_vm2, %v2260_v1, %v2262_v44 }
 0x244   : > { %2750 = vrot.lane.b32.xlu0 %v5452_v53, %s5035_s23  ;;  %v2358_v53 = vrot.slane %v5479_v37, 2 }
 0x245   : > { %2752 = vrot.lane.b32.xlu1 %v5470_v28, %s5035_s23  ;;  %v2357_v28 = vsel %vm2340_vm1, %v2354_v55, %v2356_v27  ;;  %v2264_v55 = vrot.slane %v5503_v18, 1 }
 0x246   : > { %v2359_v12 = vsel %vm2340_vm1, %v2356_v27, %v2358_v53 }
 0x248   : > { %2846 = vrot.lane.b32.xlu0 %v5473_v29, %s5037_s28  ;;  %v2452_v29 = vrot.slane %v5457_v8, 3 }
 0x249   : > { %2848 = vrot.lane.b32.xlu1 %v5476_v54, %s5037_s28  ;;  %v2454_v54 = vrot.slane %v5479_v37, 3 }
 0x24a   : > { %v2453_v5 = vsel %vm2436_vm7, %v2450_v39, %v2452_v29 }
 0x24b   : > { %v2455_v32 = vsel %vm2436_vm7, %v2452_v29, %v2454_v54 }
 0x24c   : > { %2290 = vrot.lane.b32.xlu0 %v2261_v52, %s5036_s26 }
 0x24d   : > { %2292 = vrot.lane.b32.xlu1 %v2263_v34, %s5036_s26 }
 0x250   : > { %2386 = vrot.lane.b32.xlu0 %v2357_v28, %s5035_s23 }
 0x251   : > { %2388 = vrot.lane.b32.xlu1 %v2359_v12, %s5035_s23 }
 0x254   : > { %2482 = vrot.lane.b32.xlu0 %v2453_v5, %s5037_s28 }
 0x255   : > { %2484 = vrot.lane.b32.xlu1 %v2455_v32, %s5037_s28  ;;  %v5764_v32 = vld [vmem:[#allocation5] ss:$0 sm:$0xff] }
 0x258   : > { %2658 = vrot.lane.b32.xlu0 %v5491_v56, %s5036_s26  ;;  %v2265_v56 = vsel %vm2244_vm2, %v2262_v44, %v2264_v55 }
 0x259   : > { %2660 = vrot.lane.b32.xlu1 %v5506_v17, %s5036_s26  ;;  %v2267_v17 = vsel %vm2244_vm2, %v2264_v55, %v2266_v35 }
 0x25c   : > { %2754 = vrot.lane.b32.xlu0 %v5496_v13, %s5035_s23  ;;  %v2362_v13 = vrot.slane %v5525_v51, 2 }
 0x25d   : > { %2756 = vrot.lane.b32.xlu1 %v5516_v24, %s5035_s23  ;;  %v2361_v24 = vsel %vm2340_vm1, %v2358_v53, %v2360_v0 }
 0x25e   : > { %v2363_v39 = vsel %vm2340_vm1, %v2360_v0, %v2362_v13 }
 0x260   : > { %2850 = vrot.lane.b32.xlu0 %v5519_v45, %s5037_s28  ;;  %v2456_v45 = vrot.slane %v5503_v18, 3 }
 0x261   : > { %2852 = vrot.lane.b32.xlu1 %v5522_v58, %s5037_s28  ;;  %v2458_v58 = vrot.slane %v5525_v51, 3 }
 0x262   : > { %v2457_v44 = vsel %vm2436_vm7, %v2454_v54, %v2456_v45 }
 0x263   : > { %v2459_v52 = vsel %vm2436_vm7, %v2456_v45, %v2458_v58 }
 0x264   : > { %2294 = vrot.lane.b32.xlu0 %v2265_v56, %s5036_s26 }
 0x265   : > { %2296 = vrot.lane.b32.xlu1 %v2267_v17, %s5036_s26 }
 0x268   : > { %2390 = vrot.lane.b32.xlu0 %v2361_v24, %s5035_s23 }
 0x269   : > { %2392 = vrot.lane.b32.xlu1 %v2363_v39, %s5035_s23  ;;  %v2364_v39 = vrot.slane %v5555_v46, 2 }
 0x26a   : > { %v2373_v49 = vpop.permute.xlu1 %2372  ;;  %v2277_v60 = vpop.permute.xlu0 %2276 }
 0x26b   : > { %v2324_v1 = vadd.f32 %v5330_v7, %v2277_v60 }
 0x26c   : > { %2486 = vrot.lane.b32.xlu0 %v2457_v44, %s5037_s28 }
 0x26d   : > { %2488 = vrot.lane.b32.xlu1 %v2459_v52, %s5037_s28  ;;  %v2420_v34 = vadd.f32 %v2373_v49, %v2324_v1  ;;  %v2460_v1 = vrot.slane %v5555_v46, 3  ;;  %v2365_v52 = vsel %vm2340_vm1, %v2362_v13, %v2364_v39 }
 0x26e   : > { %v2469_v27 = vpop.permute.xlu0 %2468  ;;  %v2645_v53 = vpop.permute.xlu1 %2644 }
 0x26f   : > { %v2516_v28 = vadd.f32 %v2469_v27, %v2420_v34  ;;  %v2462_v27 = vrot.slane %v5577_v57, 3 }
 0x270   : > { %2662 = vrot.lane.b32.xlu0 %v5540_v15, %s5036_s26  ;;  %v2268_v15 = vrot.slane %v5555_v46, 1 }
 0x271   : > { %2664 = vrot.lane.b32.xlu1 %v5558_v9, %s5036_s26  ;;  %v2596_v7 = vadd.f32 %v5353_v36, %v2516_v28  ;;  %v2270_v9 = vrot.slane %v5577_v57, 1  ;;  %v2463_v13 = vsel %vm2436_vm7, %v2460_v1, %v2462_v27 }
 0x272   : > { %v2741_v12 = vpop.permute.xlu0 %2740  ;;  %v2837_v29 = vpop.permute.xlu1 %2836  ;;  %v2269_v24 = vsel %vm2244_vm2, %v2266_v35, %v2268_v15 }
 0x273   : > { %v2692_v54 = vadd.f32 %v2645_v53, %v2596_v7 }
 0x274   : > { %2758 = vrot.lane.b32.xlu0 %v5549_v40, %s5035_s23 }
 0x275   : > { %2760 = vrot.lane.b32.xlu1 %v5568_v41, %s5035_s23  ;;  %v2788_v5 = vadd.f32 %v2741_v12, %v2692_v54 }
 0x276   : > { %v2471_v55 = vpop.permute.xlu1 %2470  ;;  %v2279_v56 = vpop.permute.xlu0 %2278 }
 0x277   : > { %v2884_v17 = vadd.f32 %v2837_v29, %v2788_v5  ;;  %v2325_v40 = vadd.f32 %v5332_v11, %v2279_v56 }
 0x278   : > { %2854 = vrot.lane.b32.xlu0 %v5571_v30, %s5037_s28  ;;  %v2271_v30 = vsel %vm2244_vm2, %v2268_v15, %v2270_v9 }
 0x279   : > { %2856 = vrot.lane.b32.xlu1 %v5574_v62, %s5037_s28  ;;  %v2907_v36 = vadd.f32 %v5764_v32, %v2884_v17  ;;  %v2366_v62 = vrot.slane %v5577_v57, 2 }
 0x27a   : > { %v2375_v41 = vpop.permute.xlu0 %2374  ;;  %v2743_v0 = vpop.permute.xlu1 %2742 }
 0x27b   : > { %v5776_v45 = vmax.f32 %v2907_v36, 0.0  ;;  %v2421_v49 = vadd.f32 %v2375_v41, %v2325_v40  ;;  %v2367_v34 = vsel %vm2340_vm1, %v2364_v39, %v2366_v62 }
 0x27c   : > { %2298 = vrot.lane.b32.xlu0 %v2269_v24, %s5036_s26 }
 0x27d   : > { %2300 = vrot.lane.b32.xlu1 %v2271_v30, %s5036_s26  ;;  %v2517_v11 = vadd.f32 %v2471_v55, %v2421_v49  ;;  %2940 = vst.msk [vmem:[#allocation2] sm:$0xff] %vm2939_vm8, %v5776_v45  ;;  %v2971_v40 = vrot.slane %v5776_v45, 1  ;;  %v3392_v41 = vrot.slane %v5776_v45, 6  ;;  %v3062_v39 = vrot.slane %v5776_v45, 2 }
 0x27e   : > { %v2647_v35 = vpop.permute.xlu0 %2646  ;;  %v2281_v60 = vpop.permute.xlu1 %2280  ;;  %v3482_v49 = vrot.slane %v5776_v45, 7 }
 0x27f   : > { %v2597_v44 = vadd.f32 %v5371_v25, %v2517_v11  ;;  %v2326_v12 = vadd.f32 %v5349_v33, %v2281_v60  ;;  %v2461_v25 = vsel %vm2436_vm7, %v2458_v58, %v2460_v1  ;;  %v3303_v33 = vrot.slane %v5776_v45, 5  ;;  %v6899_v60 = vld [vmem:[#allocation19_spill] sm:$0xff] }
 0x280   : > { %2394 = vrot.lane.b32.xlu0 %v2365_v52, %s5035_s23 }
 0x281   : > { %2396 = vrot.lane.b32.xlu1 %v2367_v34, %s5035_s23  ;;  %v2693_v53 = vadd.f32 %v2647_v35, %v2597_v44 }
 0x282   : > { %v2839_v28 = vpop.permute.xlu0 %2838  ;;  %v2377_v7 = vpop.permute.xlu1 %2376 }
 0x283   : > { %v2789_v29 = vadd.f32 %v2743_v0, %v2693_v53  ;;  %v2422_v5 = vadd.f32 %v2377_v7, %v2326_v12 }
 0x284   : > { %2490 = vrot.lane.b32.xlu0 %v2461_v25, %s5037_s28 }
 0x285   : > { %2492 = vrot.lane.b32.xlu1 %v2463_v13, %s5037_s28  ;;  %v2885_v54 = vadd.f32 %v2839_v28, %v2789_v29 }
 0x286   : > { %v2473_v55 = vpop.permute.xlu0 %2472  ;;  %v2649_v56 = vpop.permute.xlu1 %2648 }
 0x287   : > { %v2908_v15 = vadd.f32 %v5764_v32, %v2885_v54  ;;  %v2518_v17 = vadd.f32 %v2473_v55, %v2422_v5  ;;  %v6900_v55 = vld [vmem:[#allocation10_spill] sm:$0xff] }
 0x288   : > { %2666 = vrot.lane.b32.xlu0 %v5587_v38, %s5036_s26  ;;  %v3153_v38 = vrot.slane %v5776_v45, 3 }
 0x289   : > { %2668 = vrot.lane.b32.xlu1 %v5602_v43, %s5036_s26  ;;  %v5808_v58 = vmax.f32 %v2908_v15, 0.0  ;;  %v2598_v36 = vadd.f32 %v5387_v31, %v2518_v17  ;;  %v3244_v43 = vrot.slane %v5776_v45, 4  ;;  %v2272_v15 = vrot.slane %v5599_v61, 1 }
 0x28a   : > { %v2745_v0 = vpop.permute.xlu0 %2744  ;;  %v2841_v24 = vpop.permute.xlu1 %2840  ;;  %v2368_v17 = vrot.slane %v5599_v61, 2 }
 0x28b   : > { %v2694_v30 = vadd.f32 %v2649_v56, %v2598_v36  ;;  %v3304_v11 = vrot.slane %v5808_v58, 5  ;;  %v2972_v35 = vrot.slane %v5808_v58, 1  ;;  %v3393_v31 = vrot.slane %v5808_v58, 6  ;;  %2941 = vst.msk [vmem:[#allocation2 + $0x10] sm:$0xff] %vm2939_vm8, %v5808_v58 }
 0x28c   : > { %2762 = vrot.lane.b32.xlu0 %v6899_v60, %s5035_s23  ;;  %v3063_v1 = vrot.slane %v5808_v58, 2  ;;  %v3483_v45 = vrot.slane %v5808_v58, 7  ;;  %v3154_v44 = vrot.slane %v5808_v58, 3  ;;  %v3245_v52 = vrot.slane %v5808_v58, 4 }
 0x28d   : > { %2764 = vrot.lane.b32.xlu1 %v5612_v26, %s5035_s23  ;;  %v2790_v34 = vadd.f32 %v2745_v0, %v2694_v30  ;;  %v5831_v53 = vsel %vm2612_vm3, %v3303_v33, %v3304_v11  ;;  %v5834_v28 = vsel %vm2244_vm2, %v2971_v40, %v2972_v35  ;;  %v5837_v7 = vsel %vm2708_vm4, %v3392_v41, %v3393_v31 }
 0x28e   : > { %v2379_v12 = vpop.permute.xlu0 %2378  ;;  %v5840_v29 = vsel %vm2340_vm1, %v3062_v39, %v3063_v1  ;;  %v5843_v25 = vsel %vm2804_vm5, %v3482_v49, %v3483_v45  ;;  %v5846_v13 = vsel %vm2436_vm7, %v3153_v38, %v3154_v44  ;;  %v3246_v54 = vsel %vm2548_vm6, %v3244_v43, %v3245_v52  ;;  %v6901_v38 = vld [vmem:[#allocation11_spill] sm:$0xff] }
 0x28f   : > { %v2283_v26 = vpop.permute.xlu1 %2282  ;;  %v2886_v5 = vadd.f32 %v2841_v24, %v2790_v34  ;;  %3288 = vst.msk [vmem:[#allocation2 + $0x8] sm:$0xff] %vm2939_vm8, %v3246_v54  ;;  %v2273_v24 = vsel %vm2244_vm2, %v2270_v9, %v2272_v15  ;;  %v2464_v39 = vrot.slane %v5599_v61, 3  ;;  %v2274_v49 = vrot.slane %v5621_v63, 1 }
 0x290   : > { %v2327_v56 = vadd.f32 %v6900_v55, %v2283_v26  ;;  %2858 = vrot.lane.b32.xlu0 %v5615_v59, %s5037_s28  ;;  %v2369_v59 = vsel %vm2340_vm1, %v2366_v62, %v2368_v17 }
 0x291   : > { %2860 = vrot.lane.b32.xlu1 %v5618_v2, %s5037_s28  ;;  %v2909_v33 = vadd.f32 %v5764_v32, %v2886_v5  ;;  %v2370_v2 = vrot.slane %v5621_v63, 2 }
 0x292   : > { %v2423_v58 = vadd.f32 %v2379_v12, %v2327_v56  ;;  %v2651_v40 = vpop.permute.xlu0 %2650 }
 0x293   : > { %v2475_v36 = vpop.permute.xlu1 %2474  ;;  %v5858_v41 = vmax.f32 %v2909_v33, 0.0 }
 0x294   : > { %v2519_v0 = vadd.f32 %v2475_v36, %v2423_v58  ;;  %2302 = vrot.lane.b32.xlu0 %v2273_v24, %s5036_s26  ;;  %v2465_v24 = vsel %vm2436_vm7, %v2462_v27, %v2464_v39 }
 0x295   : > { %2766 = vrot.lane.b32.xlu1 %v5637_v48, %s5035_s23  ;;  %v3306_v30 = vrot.slane %v5858_v41, 5  ;;  %v2974_v9 = vrot.slane %v5858_v41, 1  ;;  %v3395_v60 = vrot.slane %v5858_v41, 6  ;;  %2942 = vst.msk [vmem:[#allocation2 + $0x20] sm:$0xff] %vm2939_vm8, %v5858_v41  ;;  %v3065_v62 = vrot.slane %v5858_v41, 2 }
 0x296   : > { %v2599_v43 = vadd.f32 %v6901_v38, %v2519_v0  ;;  %v2747_v48 = vpop.permute.xlu0 %2746  ;;  %v3485_v12 = vrot.slane %v5858_v41, 7  ;;  %v3156_v26 = vrot.slane %v5858_v41, 3  ;;  %v3247_v54 = vrot.slane %v5858_v41, 4 }
 0x297   : > { %v2381_v34 = vpop.permute.xlu1 %2380  ;;  %v5883_v55 = vsel %vm2612_vm3, %v3304_v11, %v3306_v30  ;;  %v5886_v56 = vsel %vm2244_vm2, %v2972_v35, %v2974_v9  ;;  %v5889_v33 = vsel %vm2708_vm4, %v3393_v31, %v3395_v60  ;;  %v5894_v58 = vsel %vm2340_vm1, %v3063_v1, %v3065_v62 }
 0x298   : > { %v2695_v5 = vadd.f32 %v2651_v40, %v2599_v43  ;;  %2398 = vrot.lane.b32.xlu0 %v2369_v59, %s5035_s23  ;;  %v5897_v36 = vsel %vm2804_vm5, %v3483_v45, %v3485_v12  ;;  %v5900_v40 = vsel %vm2436_vm7, %v3154_v44, %v3156_v26  ;;  %v3248_v35 = vsel %vm2548_vm6, %v3245_v52, %v3247_v54 }
 0x299   : > { %2402 = vrot.lane.b32.xlu1 %v2370_v2, %s5035_s23  ;;  %3289 = vst.msk [vmem:[#allocation2 + $0x18] sm:$0xff] %vm2939_vm8, %v3248_v35  ;;  %v2275_v1 = vsel %vm2244_vm2, %v2272_v15, %v2274_v49  ;;  %v2466_v45 = vrot.slane %v5621_v63, 3 }
 0x29a   : > { %v2791_v11 = vadd.f32 %v2747_v48, %v2695_v5  ;;  %v2843_v41 = vpop.permute.xlu0 %2842  ;;  %v2371_v48 = vsel %vm2340_vm1, %v2368_v17, %v2370_v2 }
 0x29b   : > { %v2653_v0 = vpop.permute.xlu1 %2652  ;;  %v2467_v27 = vsel %vm2436_vm7, %v2464_v39, %v2466_v45 }
 0x29c   : > { %v2887_v31 = vadd.f32 %v2843_v41, %v2791_v11  ;;  %2494 = vrot.lane.b32.xlu0 %v2465_v24, %s5037_s28 }
 0x29d   : > { %2304 = vrot.lane.b32.xlu1 %v2275_v1, %s5036_s26 }
 0x29e   : > { %v2910_v44 = vadd.f32 %v5764_v32, %v2887_v31  ;;  %v2285_v52 = vpop.permute.xlu0 %2284 }
 0x29f   : > { %v2749_v59 = vpop.permute.xlu1 %2748  ;;  %v2328_v43 = vadd.f32 %v5374_v22, %v2285_v52 }
 0x2a0   : > { %v5912_v38 = vmax.f32 %v2910_v44, 0.0  ;;  %2670 = vrot.lane.b32.xlu0 %v5640_v16, %s5036_s26 }
 0x2a1   : > { %2400 = vrot.lane.b32.xlu1 %v2371_v48, %s5035_s23  ;;  %v2424_v15 = vadd.f32 %v2381_v34, %v2328_v43 }
 0x2a2   : > { %v3308_v5 = vrot.slane %v5912_v38, 5  ;;  %v2976_v11 = vrot.slane %v5912_v38, 1  ;;  %v3397_v35 = vrot.slane %v5912_v38, 6  ;;  %2943 = vst.msk [vmem:[#allocation2 + $0x30] sm:$0xff] %vm2939_vm8, %v5912_v38  ;;  %v2477_v22 = vpop.permute.xlu0 %2476  ;;  %v3067_v17 = vrot.slane %v5912_v38, 2 }
 0x2a3   : > { %v2845_v41 = vpop.permute.xlu1 %2844  ;;  %v3487_v16 = vrot.slane %v5912_v38, 7  ;;  %v3158_v2 = vrot.slane %v5912_v38, 3  ;;  %v3249_v39 = vrot.slane %v5912_v38, 4  ;;  %v2520_v34 = vadd.f32 %v2477_v22, %v2424_v15  ;;  %v4921_v38 = vld [vmem:[%s6859_s3 + $0x60] sm:$0xff]  }
 0x2a4   : > { %v5932_v31 = vsel %vm2612_vm3, %v3306_v30, %v3308_v5  ;;  %v5937_v24 = vsel %vm2244_vm2, %v2974_v9, %v2976_v11  ;;  %v5942_v1 = vsel %vm2708_vm4, %v3395_v60, %v3397_v35  ;;  %2306 = vrot.lane.b32.xlu0 %v2274_v49, %s5036_s26  ;;  %v5949_v44 = vsel %vm2340_vm1, %v3065_v62, %v3067_v17  ;;  %v6902_v60 = vld [vmem:[#allocation12_spill] sm:$0xff] }
 0x2a5   : > { %2496 = vrot.lane.b32.xlu1 %v2467_v27, %s5037_s28  ;;  %v5954_v30 = vsel %vm2804_vm5, %v3485_v12, %v3487_v16  ;;  %v5959_v9 = vsel %vm2436_vm7, %v3156_v26, %v3158_v2  ;;  %v2600_v52 = vadd.f32 %v6902_v60, %v2520_v34  ;;  %v3250_v49 = vsel %vm2548_vm6, %v3247_v54, %v3249_v39 }
 0x2a6   : > { %v2287_v43 = vpop.permute.xlu0 %2286  ;;  %3290 = vst.msk [vmem:[#allocation2 + $0x28] sm:$0xff] %vm2939_vm8, %v3250_v49 }
 0x2a7   : > { %v2289_v48 = vpop.permute.xlu1 %2288  ;;  %v2696_v62 = vadd.f32 %v2653_v0, %v2600_v52  ;;  %v2329_v22 = vadd.f32 %v5390_v21, %v2287_v43  ;;  %v6903_v0 = vrot.slane %v5627_v3, 7  ;;  %v4914_v21 = vld [vmem:[%s6859_s3] sm:$0xff]   ;;  %v4916_v43 = vld [vmem:[%s6859_s3 + $0x8] sm:$0xff]  }
 0x2a8   : > { %2862 = vrot.lane.b32.xlu0 %v5653_v14, %s5037_s28  ;;  %v2330_v54 = vadd.f32 %v5419_v19, %v2289_v48  ;;  %v4913_v14 = vld [vmem:[%s6859_s3 + $0x40] sm:$0xff]   ;;  %v4915_v19 = vld [vmem:[%s6859_s3 + $0x48] sm:$0xff]   ;;  %v6904_v48 = vrot.slane %v5627_v3, 6 }
 0x2a9   : > { %2674 = vrot.lane.b32.xlu1 %v2642_v42, %s5036_s26  ;;  %v2792_v12 = vadd.f32 %v2749_v59, %v2696_v62  ;;  %4330 = vmatprep.subr.bf16.mxu1 %v4913_v14  ;;  %v6905_v14 = vld [vmem:[#allocation13_spill] sm:$0xff] }
 0x2aa   : > { %v2383_v26 = vpop.permute.xlu0 %2382  ;;  %4331 = vmatpush3.bf16.msra.mxu1 %v4914_v21 }
 0x2ab   : > { %v2385_v27 = vpop.permute.xlu1 %2384  ;;  %v2888_v15 = vadd.f32 %v2845_v41, %v2792_v12  ;;  %v2425_v59 = vadd.f32 %v2383_v26, %v2329_v22  ;;  %4332 = vmatprep.subr.bf16.mxu1 %v4915_v19  ;;  %v4917_v26 = vld [vmem:[%s6859_s3 + $0x50] sm:$0xff]  }
 0x2ac   : > { %2498 = vrot.lane.b32.xlu0 %v2466_v45, %s5037_s28  ;;  %v2426_v34 = vadd.f32 %v2385_v27, %v2330_v54 }
 0x2ad   : > { %2866 = vrot.lane.b32.xlu1 %v6903_v0, %s5037_s28  ;;  %v2911_v42 = vadd.f32 %v5764_v32, %v2888_v15 }
 0x2ae   : > { %v2479_v45 = vpop.permute.xlu0 %2478  ;;  %4333 = vmatpush3.bf16.msra.mxu1 %v4916_v43 }
 0x2af   : > { %v2481_v41 = vpop.permute.xlu1 %2480  ;;  %v5987_v60 = vmax.f32 %v2911_v42, 0.0  ;;  %v2521_v52 = vadd.f32 %v2479_v45, %v2425_v59  ;;  %v6906_v59 = vld [vmem:[#allocation14_spill] sm:$0xff]  ;;  %4334 = vmatprep.subr.bf16.mxu1 %v4917_v26 }
 0x2b0   : > { %v2522_v49 = vadd.f32 %v2481_v41, %v2426_v34  ;;  %2770 = vrot.lane.b32.xlu0 %v6904_v48, %s5035_s23  ;;  %v4918_v45 = vld [vmem:[%s6859_s3 + $0x10] sm:$0xff]  }
 0x2b1   : > { %2672 = vrot.lane.b32.xlu1 %v5658_v23, %s5036_s26  ;;  %v3310_v62 = vrot.slane %v5987_v60, 5  ;;  %v2978_v12 = vrot.slane %v5987_v60, 1  ;;  %2944 = vst.msk [vmem:[#allocation2 + $0x40] sm:$0xff] %vm2939_vm8, %v5987_v60  ;;  %v3399_v22 = vrot.slane %v5987_v60, 6  ;;  %v3069_v54 = vrot.slane %v5987_v60, 2 }
 0x2b2   : > { %v2655_v27 = vpop.permute.xlu0 %2654  ;;  %v3489_v23 = vrot.slane %v5987_v60, 7  ;;  %v3160_v0 = vrot.slane %v5987_v60, 3  ;;  %v2601_v42 = vadd.f32 %v6905_v14, %v2521_v52  ;;  %v2602_v34 = vadd.f32 %v6906_v59, %v2522_v49  ;;  %4335 = vmatpush3.bf16.msra.mxu1 %v4918_v45  ;;  %v4923_v59 = vld [vmem:[%s6859_s3 + $0x68] sm:$0xff]  }
 0x2b3   : > { %v2657_v15 = vpop.permute.xlu1 %2656  ;;  %v6015_v21 = vsel %vm2612_vm3, %v3308_v5, %v3310_v62  ;;  %v6022_v19 = vsel %vm2244_vm2, %v2976_v11, %v2978_v12  ;;  %v6036_v5 = vsel %vm2708_vm4, %v3397_v35, %v3399_v22  ;;  %v6043_v11 = vsel %vm2340_vm1, %v3067_v17, %v3069_v54  ;;  %v4919_v17 = vld [vmem:[%s6859_s3 + $0x58] sm:$0xff]  }
 0x2b4   : > { %2768 = vrot.lane.b32.xlu0 %v5670_v6, %s5035_s23  ;;  %v6050_v6 = vsel %vm2804_vm5, %v3487_v16, %v3489_v23  ;;  %v6058_v35 = vsel %vm2436_vm7, %v3158_v2, %v3160_v0  ;;  %v2697_v49 = vadd.f32 %v2655_v27, %v2601_v42  ;;  %v2698_v43 = vadd.f32 %v2657_v15, %v2602_v34  ;;  %v4920_v2 = vld [vmem:[%s6859_s3 + $0x18] sm:$0xff]   ;;  %v4922_v42 = vld [vmem:[%s6859_s3 + $0x20] sm:$0xff]  }
 0x2b5   : > { %2864 = vrot.lane.b32.xlu1 %v5663_v4, %s5037_s28  ;;  %v3251_v4 = vrot.slane %v5987_v60, 4  ;;  %4336 = vmatprep.subr.bf16.mxu1 %v4919_v17 }
 0x2b6   : > { %v2751_v41 = vpop.permute.xlu0 %2750  ;;  %4337 = vmatpush3.bf16.msra.mxu1 %v4920_v2 }
 0x2b7   : > { %v2753_v52 = vpop.permute.xlu1 %2752  ;;  %v3252_v16 = vsel %vm2548_vm6, %v3249_v39, %v3251_v4  ;;  %v2793_v48 = vadd.f32 %v2751_v41, %v2697_v49  ;;  %4338 = vmatprep.subr.bf16.mxu1 %v4921_v38 }
 0x2b8   : > { %3291 = vst.msk [vmem:[#allocation2 + $0x38] sm:$0xff] %vm2939_vm8, %v3252_v16  ;;  %3332 = vrot.lane.b32.xlu0 %v5831_v53, %s5037_s28  ;;  %v2794_v26 = vadd.f32 %v2753_v52, %v2698_v43 }
 0x2b9   : > { %3334 = vrot.lane.b32.xlu1 %v5883_v55, %s5037_s28 }
 0x2ba   : > { %v2847_v39 = vpop.permute.xlu0 %2846  ;;  %4339 = vmatpush3.bf16.msra.mxu1 %v4922_v42  ;;  %v4926_v42 = vld [vmem:[%s6859_s3 + $0x30] sm:$0xff]  }
 0x2bb   : > { %v2849_v27 = vpop.permute.xlu1 %2848  ;;  %v2889_v15 = vadd.f32 %v2847_v39, %v2793_v48  ;;  %4340 = vmatprep.subr.bf16.mxu1 %v4923_v59 }
 0x2bc   : > { %v2890_v14 = vadd.f32 %v2849_v27, %v2794_v26  ;;  %3000 = vrot.lane.b32.xlu0 %v5834_v28, %s5037_s28  ;;  %v4924_v28 = vld [vmem:[%s6859_s3 + $0x28] sm:$0xff]  }
 0x2bd   : > { %3002 = vrot.lane.b32.xlu1 %v5886_v56, %s5037_s28  ;;  %v2912_v53 = vadd.f32 %v5764_v32, %v2889_v15 }
 0x2be   : > { %v2913_v55 = vadd.f32 %v5764_v32, %v2890_v14  ;;  %v2291_v34 = vpop.permute.xlu0 %2290  ;;  %4341 = vmatpush3.bf16.msra.mxu1 %v4924_v28 }
 0x2bf   : > { %v2293_v45 = vpop.permute.xlu1 %2292  ;;  %v2928_v17 = vmax.f32 %v2912_v53, 0.0  ;;  %v2331_v56 = vadd.f32 %v5435_v10, %v2291_v34  ;;  %v4925_v10 = vld [vmem:[%s6859_s3 + $0x70] sm:$0xff]  }
 0x2c0   : > { %v6091_v41 = vmax.f32 %v2913_v55, 0.0  ;;  %v2332_v52 = vadd.f32 %v5457_v8, %v2293_v45  ;;  %3421 = vrot.lane.b32.xlu0 %v5837_v7, %s5035_s23  ;;  %4342 = vmatprep.subr.bf16.mxu1 %v4925_v10 }
 0x2c1   : > { %3423 = vrot.lane.b32.xlu1 %v5889_v33, %s5035_s23  ;;  %v3312_v16 = vrot.slane %v2928_v17, 5  ;;  %v2980_v43 = vrot.slane %v2928_v17, 1  ;;  %2945 = vst.msk [vmem:[#allocation2 + $0x50] sm:$0xff] %vm2939_vm8, %v2928_v17  ;;  %v3401_v48 = vrot.slane %v2928_v17, 6  ;;  %v3071_v26 = vrot.slane %v2928_v17, 2 }
 0x2c2   : > { %v3314_v49 = vrot.slane %v6091_v41, 5  ;;  %v2982_v2 = vrot.slane %v6091_v41, 1  ;;  %2946 = vst.msk [vmem:[#allocation2 + $0x60] sm:$0xff] %vm2939_vm8, %v6091_v41  ;;  %v2387_v8 = vpop.permute.xlu0 %2386  ;;  %v3403_v33 = vrot.slane %v6091_v41, 6  ;;  %v3073_v38 = vrot.slane %v6091_v41, 2  ;;  %4343 = vmatpush3.bf16.msra.mxu1 %v4926_v42  ;;  %v6908_v42 = vld [vmem:[#allocation16_spill] sm:$0xff] }
 0x2c3   : > { %v2389_v7 = vpop.permute.xlu1 %2388  ;;  %v2427_v39 = vadd.f32 %v2387_v8, %v2331_v56  ;;  %v6115_v15 = vsel %vm2612_vm3, %v3310_v62, %v3312_v16  ;;  %v6132_v62 = vsel %vm2244_vm2, %v2978_v12, %v2980_v43  ;;  %v6142_v55 = vsel %vm2708_vm4, %v3399_v22, %v3401_v48  ;;  %v4927_v22 = vld [vmem:[%s6859_s3 + $0x78] sm:$0xff]  }
 0x2c4   : > { %v2428_v27 = vadd.f32 %v2389_v7, %v2332_v52  ;;  %v6120_v14 = vsel %vm2612_vm3, %v3312_v16, %v3314_v49  ;;  %3091 = vrot.lane.b32.xlu0 %v5840_v29, %s5035_s23  ;;  %v6137_v53 = vsel %vm2244_vm2, %v2980_v43, %v2982_v2  ;;  %v3491_v59 = vrot.slane %v2928_v17, 7  ;;  %v4928_v7 = vld [vmem:[%s6859_s3 + $0x38] sm:$0xff]   ;;  %4344 = vmatprep.subr.bf16.mxu1 %v4927_v22 }
 0x2c5   : > { %3093 = vrot.lane.b32.xlu1 %v5894_v58, %s5035_s23  ;;  %v6147_v29 = vsel %vm2708_vm4, %v3401_v48, %v3403_v33  ;;  %v6152_v58 = vsel %vm2340_vm1, %v3069_v54, %v3071_v26  ;;  %v6157_v12 = vsel %vm2340_vm1, %v3071_v26, %v3073_v38  ;;  %v3493_v34 = vrot.slane %v6091_v41, 7 }
 0x2c6   : > { %v2483_v45 = vpop.permute.xlu0 %2482  ;;  %v6166_v56 = vsel %vm2804_vm5, %v3489_v23, %v3491_v59  ;;  %v3162_v54 = vrot.slane %v2928_v17, 3  ;;  %v3164_v52 = vrot.slane %v6091_v41, 3  ;;  %v3253_v16 = vrot.slane %v2928_v17, 4  ;;  %4345 = vmatpush3.bf16.msra.mxu1 %v4928_v7 }
 0x2c7   : > { %v2485_v28 = vpop.permute.xlu1 %2484  ;;  %v2523_v43 = vadd.f32 %v2483_v45, %v2427_v39  ;;  %v6172_v10 = vsel %vm2804_vm5, %v3491_v59, %v3493_v34  ;;  %v3255_v48 = vrot.slane %v6091_v41, 4 }
 0x2c8   : > { %v2524_v8 = vadd.f32 %v2485_v28, %v2428_v27  ;;  %3513 = vrot.lane.b32.xlu0 %v5843_v25, %s5036_s26  ;;  %v6185_v23 = vsel %vm2436_vm7, %v3160_v0, %v3162_v54  ;;  %v6190_v17 = vsel %vm2436_vm7, %v3162_v54, %v3164_v52  ;;  %v3254_v26 = vsel %vm2548_vm6, %v3251_v4, %v3253_v16  ;;  %v6907_v0 = vld [vmem:[#allocation15_spill] sm:$0xff] }
 0x2c9   : > { %3515 = vrot.lane.b32.xlu1 %v5897_v36, %s5036_s26  ;;  %3292 = vst.msk [vmem:[#allocation2 + $0x48] sm:$0xff] %vm2939_vm8, %v3254_v26  ;;  %v3256_v25 = vsel %vm2548_vm6, %v3253_v16, %v3255_v48  ;;  %v2603_v27 = vadd.f32 %v6907_v0, %v2523_v43 }
 0x2ca   : > { %v2659_v36 = vpop.permute.xlu0 %2658  ;;  %3293 = vst.msk [vmem:[#allocation2 + $0x58] sm:$0xff] %vm2939_vm8, %v3256_v25  ;;  %v2604_v59 = vadd.f32 %v6908_v42, %v2524_v8 }
 0x2cb   : > { %v2661_v39 = vpop.permute.xlu1 %2660  ;;  %v2699_v22 = vadd.f32 %v2659_v36, %v2603_v27 }
 0x2cc   : > { %3182 = vrot.lane.b32.xlu0 %v5846_v13, %s5036_s26  ;;  %v2700_v45 = vadd.f32 %v2661_v39, %v2604_v59 }
 0x2cd   : > { %3184 = vrot.lane.b32.xlu1 %v5900_v40, %s5036_s26 }
 0x2ce   : > { %v2755_v60 = vpop.permute.xlu0 %2754 }
 0x2cf   : > { %v2757_v4 = vpop.permute.xlu1 %2756  ;;  %v2795_v28 = vadd.f32 %v2755_v60, %v2699_v22 }
 0x2d0   : > { %3336 = vrot.lane.b32.xlu0 %v5932_v31, %s5037_s28  ;;  %v2796_v54 = vadd.f32 %v2757_v4, %v2700_v45 }
 0x2d1   : > { %3338 = vrot.lane.b32.xlu1 %v6015_v21, %s5037_s28 }
 0x2d2   : > { %v2851_v16 = vpop.permute.xlu0 %2850 }
 0x2d3   : > { %v2853_v43 = vpop.permute.xlu1 %2852  ;;  %v2891_v8 = vadd.f32 %v2851_v16, %v2795_v28 }
 0x2d4   : > { %v2892_v7 = vadd.f32 %v2853_v43, %v2796_v54  ;;  %3004 = vrot.lane.b32.xlu0 %v5937_v24, %s5037_s28 }
 0x2d5   : > { %3006 = vrot.lane.b32.xlu1 %v6022_v19, %s5037_s28  ;;  %v2914_v13 = vadd.f32 %v5764_v32, %v2891_v8 }
 0x2d6   : > { %v2915_v40 = vadd.f32 %v5764_v32, %v2892_v7  ;;  %v2295_v31 = vpop.permute.xlu0 %2294 }
 0x2d7   : > { %v2297_v26 = vpop.permute.xlu1 %2296  ;;  %v2930_v25 = vmax.f32 %v2914_v13, 0.0  ;;  %v2333_v36 = vadd.f32 %v5479_v37, %v2295_v31 }
 0x2d8   : > { %v6216_v21 = vmax.f32 %v2915_v40, 0.0  ;;  %v2334_v39 = vadd.f32 %v5503_v18, %v2297_v26  ;;  %3425 = vrot.lane.b32.xlu0 %v5942_v1, %s5035_s23 }
 0x2d9   : > { %3427 = vrot.lane.b32.xlu1 %v6036_v5, %s5035_s23  ;;  %v3316_v24 = vrot.slane %v2930_v25, 5  ;;  %v2984_v0 = vrot.slane %v2930_v25, 1  ;;  %2947 = vst.msk [vmem:[#allocation2 + $0x70] sm:$0xff] %vm2939_vm8, %v2930_v25  ;;  %v3405_v18 = vrot.slane %v2930_v25, 6  ;;  %v3075_v1 = vrot.slane %v2930_v25, 2 }
 0x2da   : > { %v3318_v19 = vrot.slane %v6216_v21, 5  ;;  %v2986_v27 = vrot.slane %v6216_v21, 1  ;;  %2948 = vst.msk [vmem:[#allocation2 + $0x80] sm:$0xff] %vm2939_vm8, %v6216_v21  ;;  %v2391_v37 = vpop.permute.xlu0 %2390  ;;  %v3407_v59 = vrot.slane %v6216_v21, 6  ;;  %v3077_v60 = vrot.slane %v6216_v21, 2 }
 0x2db   : > { %v2393_v42 = vpop.permute.xlu1 %2392  ;;  %v2429_v5 = vadd.f32 %v2391_v37, %v2333_v36  ;;  %v6234_v22 = vsel %vm2612_vm3, %v3314_v49, %v3316_v24  ;;  %v6248_v28 = vsel %vm2244_vm2, %v2982_v2, %v2984_v0  ;;  %v6258_v54 = vsel %vm2708_vm4, %v3403_v33, %v3405_v18 }
 0x2dc   : > { %v2430_v4 = vadd.f32 %v2393_v42, %v2334_v39  ;;  %v6239_v45 = vsel %vm2612_vm3, %v3316_v24, %v3318_v19  ;;  %3095 = vrot.lane.b32.xlu0 %v5949_v44, %s5035_s23  ;;  %v6253_v49 = vsel %vm2244_vm2, %v2984_v0, %v2986_v27  ;;  %v3495_v16 = vrot.slane %v2930_v25, 7  ;;  %v6910_v42 = vld [vmem:[#allocation18_spill] sm:$0xff] }
 0x2dd   : > { %3097 = vrot.lane.b32.xlu1 %v6043_v11, %s5035_s23  ;;  %v6263_v44 = vsel %vm2708_vm4, %v3405_v18, %v3407_v59  ;;  %v6268_v11 = vsel %vm2340_vm1, %v3073_v38, %v3075_v1  ;;  %v6273_v2 = vsel %vm2340_vm1, %v3075_v1, %v3077_v60  ;;  %v3497_v43 = vrot.slane %v6216_v21, 7 }
 0x2de   : > { %v2487_v33 = vpop.permute.xlu0 %2486  ;;  %v6279_v7 = vsel %vm2804_vm5, %v3493_v34, %v3495_v16  ;;  %v3166_v13 = vrot.slane %v2930_v25, 3  ;;  %v3168_v40 = vrot.slane %v6216_v21, 3  ;;  %v3257_v31 = vrot.slane %v2930_v25, 4 }
 0x2df   : > { %v2489_v8 = vpop.permute.xlu1 %2488  ;;  %v2525_v38 = vadd.f32 %v2487_v33, %v2429_v5  ;;  %v6285_v36 = vsel %vm2804_vm5, %v3495_v16, %v3497_v43  ;;  %v3259_v39 = vrot.slane %v6216_v21, 4 }
 0x2e0   : > { %v2526_v26 = vadd.f32 %v2489_v8, %v2430_v4  ;;  %3517 = vrot.lane.b32.xlu0 %v5954_v30, %s5036_s26  ;;  %v6295_v34 = vsel %vm2436_vm7, %v3164_v52, %v3166_v13  ;;  %v6300_v25 = vsel %vm2436_vm7, %v3166_v13, %v3168_v40  ;;  %v3258_v24 = vsel %vm2548_vm6, %v3255_v48, %v3257_v31  ;;  %v6909_v52 = vld [vmem:[#allocation17_spill] sm:$0xff] }
 0x2e1   : > { %3519 = vrot.lane.b32.xlu1 %v6050_v6, %s5036_s26  ;;  %3294 = vst.msk [vmem:[#allocation2 + $0x68] sm:$0xff] %vm2939_vm8, %v3258_v24  ;;  %v3260_v30 = vsel %vm2548_vm6, %v3257_v31, %v3259_v39  ;;  %v2605_v37 = vadd.f32 %v6909_v52, %v2525_v38 }
 0x2e2   : > { %v2663_v6 = vpop.permute.xlu0 %2662  ;;  %3295 = vst.msk [vmem:[#allocation2 + $0x78] sm:$0xff] %vm2939_vm8, %v3260_v30  ;;  %v2606_v18 = vadd.f32 %v6910_v42, %v2526_v26 }
 0x2e3   : > { %v2665_v0 = vpop.permute.xlu1 %2664  ;;  %v2701_v1 = vadd.f32 %v2663_v6, %v2605_v37 }
 0x2e4   : > { %3186 = vrot.lane.b32.xlu0 %v5959_v9, %s5036_s26  ;;  %v2702_v5 = vadd.f32 %v2665_v0, %v2606_v18 }
 0x2e5   : > { %3188 = vrot.lane.b32.xlu1 %v6058_v35, %s5036_s26 }
 0x2e6   : > { %v2759_v41 = vpop.permute.xlu0 %2758 }
 0x2e7   : > { %v2761_v48 = vpop.permute.xlu1 %2760  ;;  %v2797_v4 = vadd.f32 %v2759_v41, %v2701_v1 }
 0x2e8   : > { %3340 = vrot.lane.b32.xlu0 %v6115_v15, %s5037_s28  ;;  %v2798_v16 = vadd.f32 %v2761_v48, %v2702_v5 }
 0x2e9   : > { %3342 = vrot.lane.b32.xlu1 %v6120_v14, %s5037_s28 }
 0x2ea   : > { %v2855_v33 = vpop.permute.xlu0 %2854 }
 0x2eb   : > { %v2857_v8 = vpop.permute.xlu1 %2856  ;;  %v2893_v13 = vadd.f32 %v2855_v33, %v2797_v4 }
 0x2ec   : > { %v2894_v31 = vadd.f32 %v2857_v8, %v2798_v16  ;;  %3008 = vrot.lane.b32.xlu0 %v6132_v62, %s5037_s28 }
 0x2ed   : > { %3010 = vrot.lane.b32.xlu1 %v6137_v53, %s5037_s28  ;;  %v2916_v9 = vadd.f32 %v5764_v32, %v2893_v13 }
 0x2ee   : > { %v2917_v35 = vadd.f32 %v5764_v32, %v2894_v31  ;;  %v2299_v15 = vpop.permute.xlu0 %2298 }
 0x2ef   : > { %v2301_v38 = vpop.permute.xlu1 %2300  ;;  %v2932_v26 = vmax.f32 %v2916_v9, 0.0  ;;  %v2335_v24 = vadd.f32 %v5525_v51, %v2299_v15 }
 0x2f0   : > { %v6326_v14 = vmax.f32 %v2917_v35, 0.0  ;;  %v2336_v30 = vadd.f32 %v5555_v46, %v2301_v38  ;;  %3429 = vrot.lane.b32.xlu0 %v6142_v55, %s5035_s23 }
 0x2f1   : > { %3431 = vrot.lane.b32.xlu1 %v6147_v29, %s5035_s23  ;;  %v3320_v62 = vrot.slane %v2932_v26, 5  ;;  %v2988_v6 = vrot.slane %v2932_v26, 1  ;;  %2949 = vst.msk [vmem:[#allocation2 + $0x90] sm:$0xff] %vm2939_vm8, %v2932_v26  ;;  %v3409_v46 = vrot.slane %v2932_v26, 6  ;;  %v3079_v55 = vrot.slane %v2932_v26, 2 }
 0x2f2   : > { %v3322_v53 = vrot.slane %v6326_v14, 5  ;;  %v2990_v0 = vrot.slane %v6326_v14, 1  ;;  %2950 = vst.msk [vmem:[#allocation2 + $0xa0] sm:$0xff] %vm2939_vm8, %v6326_v14  ;;  %v2395_v51 = vpop.permute.xlu0 %2394  ;;  %v3411_v37 = vrot.slane %v6326_v14, 6  ;;  %v3081_v42 = vrot.slane %v6326_v14, 2 }
 0x2f3   : > { %v2397_v52 = vpop.permute.xlu1 %2396  ;;  %v2431_v29 = vadd.f32 %v2395_v51, %v2335_v24  ;;  %v6344_v41 = vsel %vm2612_vm3, %v3318_v19, %v3320_v62  ;;  %v6358_v1 = vsel %vm2244_vm2, %v2986_v27, %v2988_v6  ;;  %v6368_v5 = vsel %vm2708_vm4, %v3407_v59, %v3409_v46 }
 0x2f4   : > { %v2432_v18 = vadd.f32 %v2397_v52, %v2336_v30  ;;  %v6349_v48 = vsel %vm2612_vm3, %v3320_v62, %v3322_v53  ;;  %3099 = vrot.lane.b32.xlu0 %v6152_v58, %s5035_s23  ;;  %v6363_v19 = vsel %vm2244_vm2, %v2988_v6, %v2990_v0  ;;  %v3499_v4 = vrot.slane %v2932_v26, 7  ;;  %v6911_v62 = vld [vmem:[#allocation20_spill] sm:$0xff] }
 0x2f5   : > { %3101 = vrot.lane.b32.xlu1 %v6157_v12, %s5035_s23  ;;  %v6373_v58 = vsel %vm2708_vm4, %v3409_v46, %v3411_v37  ;;  %v6378_v12 = vsel %vm2340_vm1, %v3077_v60, %v3079_v55  ;;  %v6383_v27 = vsel %vm2340_vm1, %v3079_v55, %v3081_v42  ;;  %v3501_v16 = vrot.slane %v6326_v14, 7 }
 0x2f6   : > { %v2491_v59 = vpop.permute.xlu0 %2490  ;;  %v6389_v8 = vsel %vm2804_vm5, %v3497_v43, %v3499_v4  ;;  %v3170_v13 = vrot.slane %v2932_v26, 3  ;;  %v3172_v31 = vrot.slane %v6326_v14, 3  ;;  %v3261_v9 = vrot.slane %v2932_v26, 4 }
 0x2f7   : > { %v2493_v33 = vpop.permute.xlu1 %2492  ;;  %v2527_v60 = vadd.f32 %v2491_v59, %v2431_v29  ;;  %v6395_v15 = vsel %vm2804_vm5, %v3499_v4, %v3501_v16  ;;  %v3263_v38 = vrot.slane %v6326_v14, 4 }
 0x2f8   : > { %v2528_v35 = vadd.f32 %v2493_v33, %v2432_v18  ;;  %3521 = vrot.lane.b32.xlu0 %v6166_v56, %s5036_s26  ;;  %v6405_v43 = vsel %vm2436_vm7, %v3168_v40, %v3170_v13  ;;  %v6410_v26 = vsel %vm2436_vm7, %v3170_v13, %v3172_v31  ;;  %v3262_v24 = vsel %vm2548_vm6, %v3259_v39, %v3261_v9 }
 0x2f9   : > { %3523 = vrot.lane.b32.xlu1 %v6172_v10, %s5036_s26  ;;  %3296 = vst.msk [vmem:[#allocation2 + $0x88] sm:$0xff] %vm2939_vm8, %v3262_v24  ;;  %v3264_v56 = vsel %vm2548_vm6, %v3261_v9, %v3263_v38  ;;  %v2607_v40 = vadd.f32 %v5605_v50, %v2527_v60 }
 0x2fa   : > { %v2667_v10 = vpop.permute.xlu0 %2666  ;;  %3297 = vst.msk [vmem:[#allocation2 + $0x98] sm:$0xff] %vm2939_vm8, %v3264_v56  ;;  %v2608_v6 = vadd.f32 %v6911_v62, %v2528_v35 }
 0x2fb   : > { %v2669_v30 = vpop.permute.xlu1 %2668  ;;  %v2703_v51 = vadd.f32 %v2667_v10, %v2607_v40 }
 0x2fc   : > { %3190 = vrot.lane.b32.xlu0 %v6185_v23, %s5036_s26  ;;  %v2704_v52 = vadd.f32 %v2669_v30, %v2608_v6 }
 0x2fd   : > { %3192 = vrot.lane.b32.xlu1 %v6190_v17, %s5036_s26 }
 0x2fe   : > { %v2763_v21 = vpop.permute.xlu0 %2762 }
 0x2ff   : > { %v2765_v39 = vpop.permute.xlu1 %2764  ;;  %v2799_v46 = vadd.f32 %v2763_v21, %v2703_v51 }
 0x300   : > { %3344 = vrot.lane.b32.xlu0 %v6234_v22, %s5037_s28  ;;  %v2800_v50 = vadd.f32 %v2765_v39, %v2704_v52 }
 0x301   : > { %3346 = vrot.lane.b32.xlu1 %v6239_v45, %s5037_s28 }
 0x302   : > { %v2859_v55 = vpop.permute.xlu0 %2858 }
 0x303   : > { %v2861_v29 = vpop.permute.xlu1 %2860  ;;  %v2895_v18 = vadd.f32 %v2859_v55, %v2799_v46 }
 0x304   : > { %v2896_v4 = vadd.f32 %v2861_v29, %v2800_v50  ;;  %3012 = vrot.lane.b32.xlu0 %v6248_v28, %s5037_s28 }
 0x305   : > { %3014 = vrot.lane.b32.xlu1 %v6253_v49, %s5037_s28  ;;  %v2918_v23 = vadd.f32 %v5764_v32, %v2895_v18 }
 0x306   : > { %v2919_v17 = vadd.f32 %v5764_v32, %v2896_v4  ;;  %v2303_v22 = vpop.permute.xlu0 %2302 }
 0x307   : > { %v2767_v59 = vpop.permute.xlu1 %2766  ;;  %v2934_v33 = vmax.f32 %v2918_v23, 0.0  ;;  %v2337_v13 = vadd.f32 %v5577_v57, %v2303_v22  ;;  %v6912_v23 = vld [vmem:[#allocation21_spill] sm:$0xff] }
 0x308   : > { %v6436_v45 = vmax.f32 %v2919_v17, 0.0  ;;  %3433 = vrot.lane.b32.xlu0 %v6258_v54, %s5035_s23 }
 0x309   : > { %3435 = vrot.lane.b32.xlu1 %v6263_v44, %s5035_s23  ;;  %2951 = vst.msk [vmem:[#allocation2 + $0xb0] sm:$0xff] %vm2939_vm8, %v2934_v33  ;;  %v3324_v28 = vrot.slane %v2934_v33, 5  ;;  %v2992_v49 = vrot.slane %v2934_v33, 1  ;;  %v3413_v57 = vrot.slane %v2934_v33, 6  ;;  %v3083_v54 = vrot.slane %v2934_v33, 2 }
 0x30a   : > { %2952 = vst.msk [vmem:[#allocation2 + $0xc0] sm:$0xff] %vm2939_vm8, %v6436_v45  ;;  %v3326_v32 = vrot.slane %v6436_v45, 5  ;;  %v2994_v9 = vrot.slane %v6436_v45, 1  ;;  %v2399_v60 = vpop.permute.xlu0 %2398  ;;  %v3415_v24 = vrot.slane %v6436_v45, 6  ;;  %v3085_v56 = vrot.slane %v6436_v45, 2 }
 0x30b   : > { %v2403_v35 = vpop.permute.xlu1 %2402  ;;  %v2433_v44 = vadd.f32 %v2399_v60, %v2337_v13  ;;  %v6453_v10 = vsel %vm2612_vm3, %v3322_v53, %v3324_v28  ;;  %v6463_v40 = vsel %vm2244_vm2, %v2990_v0, %v2992_v49  ;;  %v6477_v62 = vsel %vm2708_vm4, %v3411_v37, %v3413_v57 }
 0x30c   : > { %v6458_v30 = vsel %vm2612_vm3, %v3324_v28, %v3326_v32  ;;  %3103 = vrot.lane.b32.xlu0 %v6268_v11, %s5035_s23  ;;  %v6472_v53 = vsel %vm2244_vm2, %v2992_v49, %v2994_v9  ;;  %v6482_v0 = vsel %vm2708_vm4, %v3413_v57, %v3415_v24  ;;  %v3503_v6 = vrot.slane %v2934_v33, 7  ;;  %v4929_v57 = vld [vmem:[#allocation5] ss:$0 sm:$0xff] }
 0x30d   : > { %3105 = vrot.lane.b32.xlu1 %v6273_v2, %s5035_s23  ;;  %v6487_v11 = vsel %vm2340_vm1, %v3081_v42, %v3083_v54  ;;  %v6492_v2 = vsel %vm2340_vm1, %v3083_v54, %v3085_v56  ;;  %v3505_v21 = vrot.slane %v6436_v45, 7  ;;  %v3174_v37 = vrot.slane %v2934_v33, 3 }
 0x30e   : > { %v2495_v39 = vpop.permute.xlu0 %2494  ;;  %v6498_v52 = vsel %vm2804_vm5, %v3501_v16, %v3503_v6  ;;  %v3176_v46 = vrot.slane %v6436_v45, 3  ;;  %v3265_v50 = vrot.slane %v2934_v33, 4  ;;  %v3267_v42 = vrot.slane %v6436_v45, 4 }
 0x30f   : > { %v2305_v51 = vpop.permute.xlu1 %2304  ;;  %v2529_v55 = vadd.f32 %v2495_v39, %v2433_v44  ;;  %v6505_v29 = vsel %vm2804_vm5, %v3503_v6, %v3505_v21  ;;  %v6510_v18 = vsel %vm2436_vm7, %v3172_v31, %v3174_v37 }
 0x310   : > { %3525 = vrot.lane.b32.xlu0 %v6279_v7, %s5036_s26  ;;  %v6519_v16 = vsel %vm2436_vm7, %v3174_v37, %v3176_v46  ;;  %v3266_v4 = vsel %vm2548_vm6, %v3263_v38, %v3265_v50  ;;  %v3268_v31 = vsel %vm2548_vm6, %v3265_v50, %v3267_v42  ;;  %v2338_v60 = vadd.f32 %v5599_v61, %v2305_v51 }
 0x311   : > { %3527 = vrot.lane.b32.xlu1 %v6285_v36, %s5036_s26  ;;  %v2609_v17 = vadd.f32 %v6912_v23, %v2529_v55  ;;  %3298 = vst.msk [vmem:[#allocation2 + $0xa8] sm:$0xff] %vm2939_vm8, %v3266_v4  ;;  %3299 = vst.msk [vmem:[#allocation2 + $0xb8] sm:$0xff] %vm2939_vm8, %v3268_v31 }
 0x312   : > { %v2671_v7 = vpop.permute.xlu0 %2670 }
 0x313   : > { %v2401_v36 = vpop.permute.xlu1 %2400  ;;  %v2705_v14 = vadd.f32 %v2671_v7, %v2609_v17 }
 0x314   : > { %3194 = vrot.lane.b32.xlu0 %v6295_v34, %s5036_s26 }
 0x315   : > { %3196 = vrot.lane.b32.xlu1 %v6300_v25, %s5036_s26  ;;  %v2801_v13 = vadd.f32 %v2767_v59, %v2705_v14  ;;  %v2434_v25 = vadd.f32 %v2401_v36, %v2338_v60 }
 0x316   : > { %v2307_v38 = vpop.permute.xlu0 %2306 }
 0x317   : > { %v2497_v22 = vpop.permute.xlu1 %2496  ;;  %v2339_v33 = vadd.f32 %v5621_v63, %v2307_v38 }
 0x318   : > { %3348 = vrot.lane.b32.xlu0 %v6344_v41, %s5037_s28  ;;  %v2530_v6 = vadd.f32 %v2497_v22, %v2434_v25 }
 0x319   : > { %3350 = vrot.lane.b32.xlu1 %v6349_v48, %s5037_s28  ;;  %v2435_v54 = vadd.f32 %v2403_v35, %v2339_v33 }
 0x31a   : > { %v2863_v28 = vpop.permute.xlu0 %2862  ;;  %v2610_v50 = vadd.f32 %v5678_v47, %v2530_v6 }
 0x31b   : > { %v2675_v49 = vpop.permute.xlu1 %2674  ;;  %v2897_v34 = vadd.f32 %v2863_v28, %v2801_v13 }
 0x31c   : > { %3016 = vrot.lane.b32.xlu0 %v6358_v1, %s5037_s28 }
 0x31d   : > { %3018 = vrot.lane.b32.xlu1 %v6363_v19, %s5037_s28  ;;  %v2920_v41 = vadd.f32 %v4929_v57, %v2897_v34 }
 0x31e   : > { %v2499_v44 = vpop.permute.xlu0 %2498 }
 0x31f   : > { %v2867_v48 = vpop.permute.xlu1 %2866  ;;  %v6544_v63 = vmax.f32 %v2920_v41, 0.0  ;;  %v2531_v59 = vadd.f32 %v2499_v44, %v2435_v54 }
 0x320   : > { %3437 = vrot.lane.b32.xlu0 %v6368_v5, %s5035_s23 }
 0x321   : > { %3439 = vrot.lane.b32.xlu1 %v6373_v58, %s5035_s23  ;;  %v2611_v61 = vadd.f32 %v2578_v20, %v2531_v59  ;;  %2953 = vst.msk [vmem:[#allocation2 + $0xd0] sm:$0xff] %vm2939_vm8, %v6544_v63  ;;  %v3328_v1 = vrot.slane %v6544_v63, 5  ;;  %v2996_v19 = vrot.slane %v6544_v63, 1  ;;  %v3417_v35 = vrot.slane %v6544_v63, 6 }
 0x322   : > { %v2771_v37 = vpop.permute.xlu0 %2770  ;;  %v3087_v51 = vrot.slane %v6544_v63, 2  ;;  %v3507_v5 = vrot.slane %v6544_v63, 7  ;;  %v3178_v58 = vrot.slane %v6544_v63, 3  ;;  %v3269_v3 = vrot.slane %v6544_v63, 4 }
 0x323   : > { %v2673_v39 = vpop.permute.xlu1 %2672  ;;  %v2707_v20 = vadd.f32 %v2675_v49, %v2611_v61  ;;  %v6565_v55 = vsel %vm2612_vm3, %v3326_v32, %v3328_v1  ;;  %v6570_v4 = vsel %vm2244_vm2, %v2994_v9, %v2996_v19  ;;  %v6579_v47 = vsel %vm2708_vm4, %v3415_v24, %v3417_v35 }
 0x324   : > { %3107 = vrot.lane.b32.xlu0 %v6378_v12, %s5035_s23  ;;  %v6584_v32 = vsel %vm2340_vm1, %v3085_v56, %v3087_v51  ;;  %v6589_v9 = vsel %vm2804_vm5, %v3505_v21, %v3507_v5  ;;  %v2706_v12 = vadd.f32 %v2673_v39, %v2610_v50  ;;  %v3270_v24 = vsel %vm2548_vm6, %v3267_v42, %v3269_v3 }
 0x325   : > { %3109 = vrot.lane.b32.xlu1 %v6383_v27, %s5035_s23  ;;  %v2803_v31 = vadd.f32 %v2771_v37, %v2707_v20  ;;  %v6594_v27 = vsel %vm2436_vm7, %v3176_v46, %v3178_v58  ;;  %3300 = vst.msk [vmem:[#allocation2 + $0xc8] sm:$0xff] %vm2939_vm8, %v3270_v24 }
 0x326   : > { %v2769_v23 = vpop.permute.xlu0 %2768 }
 0x327   : > { %v2865_v17 = vpop.permute.xlu1 %2864  ;;  %v2899_v56 = vadd.f32 %v2867_v48, %v2803_v31  ;;  %v2802_v7 = vadd.f32 %v2769_v23, %v2706_v12 }
 0x328   : > { %3529 = vrot.lane.b32.xlu0 %v6389_v8, %s5036_s26 }
 0x329   : > { %3531 = vrot.lane.b32.xlu1 %v6395_v15, %s5036_s26  ;;  %v2922_v21 = vadd.f32 %v4929_v57, %v2899_v56  ;;  %v2898_v46 = vadd.f32 %v2865_v17, %v2802_v7 }
 0x32a   : > { %v3333_v36 = vpop.permute.xlu0 %3332 }
 0x32b   : > { %v3335_v14 = vpop.permute.xlu1 %3334  ;;  %v2921_v45 = vadd.f32 %v4929_v57, %v2898_v46  ;;  %3377 = vst.msk [vmem:[#allocation2 + $0x8] sm:$0xff] %vm3045_vm9, %v3333_v36  ;;  %v2938_v42 = vmax.f32 %v2922_v21, 0.0 }
 0x32c   : > { %3378 = vst.msk [vmem:[#allocation2 + $0x18] sm:$0xff] %vm3045_vm9, %v3335_v14  ;;  %3198 = vrot.lane.b32.xlu0 %v6405_v43, %s5036_s26 }
 0x32d   : > { %3200 = vrot.lane.b32.xlu1 %v6410_v26, %s5036_s26  ;;  %v6610_v8 = vmax.f32 %v2921_v45, 0.0  ;;  %v3511_v26 = vrot.slane %v2938_v42, 7 }
 0x32e   : > { %v3001_v15 = vpop.permute.xlu0 %3000 }
 0x32f   : > { %v3003_v38 = vpop.permute.xlu1 %3002  ;;  %3046 = vst.msk [vmem:[#allocation2] sm:$0xff] %vm3045_vm9, %v3001_v15  ;;  %v2998_v22 = vrot.slane %v6610_v8, 1  ;;  %v3330_v33 = vrot.slane %v6610_v8, 5  ;;  %v3419_v13 = vrot.slane %v6610_v8, 6  ;;  %v3089_v43 = vrot.slane %v6610_v8, 2 }
 0x330   : > { %3047 = vst.msk [vmem:[#allocation2 + $0x10] sm:$0xff] %vm3045_vm9, %v3003_v38  ;;  %3352 = vrot.lane.b32.xlu0 %v6453_v10, %s5037_s28  ;;  %v3509_v28 = vrot.slane %v6610_v8, 7  ;;  %v3180_v49 = vrot.slane %v6610_v8, 3  ;;  %v3271_v60 = vrot.slane %v6610_v8, 4 }
 0x331   : > { %2955 = vst.msk [vmem:[#allocation2 + $0xe0] sm:$0x3] %vm2954_vm10, %v6610_v8  ;;  %3354 = vrot.lane.b32.xlu1 %v6458_v30, %s5037_s28  ;;  %v3331_v34 = vsel %vm2612_vm3, %v3328_v1, %v3330_v33  ;;  %v6633_v25 = vsel %vm2244_vm2, %v2996_v19, %v2998_v22  ;;  %v6638_v10 = vsel %vm2708_vm4, %v3417_v35, %v3419_v13 }
 0x332   : > { %v6643_v30 = vsel %vm2340_vm1, %v3087_v51, %v3089_v43  ;;  %v3422_v57 = vpop.permute.xlu0 %3421  ;;  %v6646_v54 = vsel %vm2804_vm5, %v3507_v5, %v3509_v28  ;;  %v6651_v44 = vsel %vm2436_vm7, %v3178_v58, %v3180_v49  ;;  %v6654_v48 = vsel %vm2804_vm5, %v3509_v28, %v3511_v26  ;;  %3302 = vst.msk [vmem:[#allocation2 + $0xe8] sm:$0x3] %vm2954_vm10, %v3271_v60 }
 0x333   : > { %v3424_v41 = vpop.permute.xlu1 %3423  ;;  %v3272_v6 = vsel %vm2548_vm6, %v3269_v3, %v3271_v60  ;;  %3466 = vst.msk [vmem:[#allocation2 + $0x8] sm:$0xff] %vm3136_vm11, %v3422_v57  ;;  %vm3941_vm1 = vcmask 516096  }
 0x334   : > { %3467 = vst.msk [vmem:[#allocation2 + $0x18] sm:$0xff] %vm3136_vm11, %v3424_v41  ;;  %3020 = vrot.lane.b32.xlu0 %v6463_v40, %s5037_s28 }
 0x335   : > { %3301 = vst.msk [vmem:[#allocation2 + $0xd8] sm:$0xff] %vm2939_vm8, %v3272_v6  ;;  %3022 = vrot.lane.b32.xlu1 %v6472_v53, %s5037_s28 }
 0x336   : > { %v3092_v63 = vpop.permute.xlu0 %3091 }
 0x337   : > { %v3094_v59 = vpop.permute.xlu1 %3093  ;;  %3137 = vst.msk [vmem:[#allocation2] sm:$0xff] %vm3136_vm11, %v3092_v63 }
 0x338   : > { %3138 = vst.msk [vmem:[#allocation2 + $0x10] sm:$0xff] %vm3136_vm11, %v3094_v59  ;;  %3441 = vrot.lane.b32.xlu0 %v6477_v62, %s5035_s23 }
 0x339   : > { %3443 = vrot.lane.b32.xlu1 %v6482_v0, %s5035_s23 }
 0x33a   : > { %v3514_v61 = vpop.permute.xlu0 %3513 }
 0x33b   : > { %v3516_v1 = vpop.permute.xlu1 %3515  ;;  %3558 = vst.msk [vmem:[#allocation2 + $0x8] sm:$0xff] %vm3227_vm12, %v3514_v61 }
 0x33c   : > { %3559 = vst.msk [vmem:[#allocation2 + $0x18] sm:$0xff] %vm3227_vm12, %v3516_v1  ;;  %3111 = vrot.lane.b32.xlu0 %v6487_v11, %s5035_s23 }
 0x33d   : > { %3113 = vrot.lane.b32.xlu1 %v6492_v2, %s5035_s23 }
 0x33e   : > { %v3183_v40 = vpop.permute.xlu0 %3182 }
 0x33f   : > { %v3185_v53 = vpop.permute.xlu1 %3184  ;;  %3228 = vst.msk [vmem:[#allocation2] sm:$0xff] %vm3227_vm12, %v3183_v40 }
 0x340   : > { %3229 = vst.msk [vmem:[#allocation2 + $0x10] sm:$0xff] %vm3227_vm12, %v3185_v53  ;;  %3533 = vrot.lane.b32.xlu0 %v6498_v52, %s5036_s26 }
 0x341   : > { %3535 = vrot.lane.b32.xlu1 %v6505_v29, %s5036_s26 }
 0x342   : > { %v3337_v62 = vpop.permute.xlu0 %3336  ;;  %v3574_v19 = vld [vmem:[#allocation2 + $0x8] sm:$0xff] }
 0x343   : > { %v3339_v0 = vpop.permute.xlu1 %3338  ;;  %v3576_v35 = vld [vmem:[#allocation2 + $0x18] sm:$0xff]  ;;  %3379 = vst.msk [vmem:[#allocation2 + $0x28] sm:$0xff] %vm3045_vm9, %v3337_v62 }
 0x344   : > { %3380 = vst.msk [vmem:[#allocation2 + $0x38] sm:$0xff] %vm3045_vm9, %v3339_v0  ;;  %v3604_v11 = vpack.c.bf16 %v3576_v35, %v3574_v19  ;;  %3202 = vrot.lane.b32.xlu0 %v6510_v18, %s5036_s26 }
 0x345   : > { %3204 = vrot.lane.b32.xlu1 %v6519_v16, %s5036_s26 }
 0x346   : > { %3786 = vmatprep.mubr.bf16.mxu1 %v3604_v11  ;;  %v3005_v2 = vpop.permute.xlu0 %3004  ;;  %v3573_v37 = vld [vmem:[#allocation2] sm:$0xff] }
 0x347   : > { %v3007_v52 = vpop.permute.xlu1 %3006  ;;  %v3575_v29 = vld [vmem:[#allocation2 + $0x10] sm:$0xff]  ;;  %3048 = vst.msk [vmem:[#allocation2 + $0x20] sm:$0xff] %vm3045_vm9, %v3005_v2 }
 0x348   : > { %3049 = vst.msk [vmem:[#allocation2 + $0x30] sm:$0xff] %vm3045_vm9, %v3007_v52  ;;  %v3603_v39 = vpack.c.bf16 %v3575_v29, %v3573_v37  ;;  %3356 = vrot.lane.b32.xlu0 %v6565_v55, %s5037_s28 }
 0x349   : > { %3028 = vrot.lane.b32.xlu1 %v2998_v22, %s5037_s28 }
 0x34a   : > { %3787 = vmatmul.mubr.bf16.vlgmr.msra.gmra.mrb[32].mxu1 %v3603_v39  ;;  %v3426_v18 = vpop.permute.xlu0 %3425 }
 0x34b   : > { %v3428_v16 = vpop.permute.xlu1 %3427  ;;  %3468 = vst.msk [vmem:[#allocation2 + $0x28] sm:$0xff] %vm3136_vm11, %v3426_v18 }
 0x34c   : > { %3469 = vst.msk [vmem:[#allocation2 + $0x38] sm:$0xff] %vm3136_vm11, %v3428_v16  ;;  %3024 = vrot.lane.b32.xlu0 %v6570_v4, %s5037_s28 }
 0x34d   : > { %3358 = vrot.lane.b32.xlu1 %v3331_v34, %s5037_s28 }
 0x34e   : > { %v3096_v51 = vpop.permute.xlu0 %3095 }
 0x34f   : > { %v3098_v5 = vpop.permute.xlu1 %3097  ;;  %3139 = vst.msk [vmem:[#allocation2 + $0x20] sm:$0xff] %vm3136_vm11, %v3096_v51 }
 0x350   : > { %3140 = vst.msk [vmem:[#allocation2 + $0x30] sm:$0xff] %vm3136_vm11, %v3098_v5  ;;  %3445 = vrot.lane.b32.xlu0 %v6579_v47, %s5035_s23 }
 0x351   : > { %3026 = vrot.lane.b32.xlu1 %v6633_v25, %s5037_s28 }
 0x352   : > { %v3518_v58 = vpop.permute.xlu0 %3517 }
 0x353   : > { %v3520_v3 = vpop.permute.xlu1 %3519  ;;  %3560 = vst.msk [vmem:[#allocation2 + $0x28] sm:$0xff] %vm3227_vm12, %v3518_v58 }
 0x354   : > { %3561 = vst.msk [vmem:[#allocation2 + $0x38] sm:$0xff] %vm3227_vm12, %v3520_v3  ;;  %3115 = vrot.lane.b32.xlu0 %v6584_v32, %s5035_s23 }
 0x355   : > { %3447 = vrot.lane.b32.xlu1 %v6638_v10, %s5035_s23 }
 0x356   : > { %v3187_v20 = vpop.permute.xlu0 %3186 }
 0x357   : > { %v3189_v50 = vpop.permute.xlu1 %3188  ;;  %3230 = vst.msk [vmem:[#allocation2 + $0x20] sm:$0xff] %vm3227_vm12, %v3187_v20 }
 0x358   : > { %3231 = vst.msk [vmem:[#allocation2 + $0x30] sm:$0xff] %vm3227_vm12, %v3189_v50  ;;  %3537 = vrot.lane.b32.xlu0 %v6589_v9, %s5036_s26 }
 0x359   : > { %3117 = vrot.lane.b32.xlu1 %v6643_v30, %s5035_s23 }
 0x35a   : > { %v3341_v55 = vpop.permute.xlu0 %3340  ;;  %v3578_v47 = vld [vmem:[#allocation2 + $0x28] sm:$0xff] }
 0x35b   : > { %v3343_v4 = vpop.permute.xlu1 %3342  ;;  %v3580_v31 = vld [vmem:[#allocation2 + $0x38] sm:$0xff]  ;;  %3381 = vst.msk [vmem:[#allocation2 + $0x48] sm:$0xff] %vm3045_vm9, %v3341_v55 }
 0x35c   : > { %3382 = vst.msk [vmem:[#allocation2 + $0x58] sm:$0xff] %vm3045_vm9, %v3343_v4  ;;  %v3606_v32 = vpack.c.bf16 %v3580_v31, %v3578_v47  ;;  %3206 = vrot.lane.b32.xlu0 %v6594_v27, %s5036_s26 }
 0x35d   : > { %3539 = vrot.lane.b32.xlu1 %v6646_v54, %s5036_s26 }
 0x35e   : > { %3794 = vmatprep.mubr.bf16.mxu1 %v3606_v32  ;;  %v3009_v9 = vpop.permute.xlu0 %3008  ;;  %v3577_v24 = vld [vmem:[#allocation2 + $0x20] sm:$0xff] }
 0x35f   : > { %v3011_v12 = vpop.permute.xlu1 %3010  ;;  %v3579_v23 = vld [vmem:[#allocation2 + $0x30] sm:$0xff]  ;;  %3050 = vst.msk [vmem:[#allocation2 + $0x40] sm:$0xff] %vm3045_vm9, %v3009_v9 }
 0x360   : > { %3051 = vst.msk [vmem:[#allocation2 + $0x50] sm:$0xff] %vm3045_vm9, %v3011_v12  ;;  %v3605_v17 = vpack.c.bf16 %v3579_v23, %v3577_v24  ;;  %3360 = vrot.lane.b32.xlu0 %v3330_v33, %s5037_s28 }
 0x361   : > { %3208 = vrot.lane.b32.xlu1 %v6651_v44, %s5036_s26 }
 0x362   : > { %3795 = vmatmul.mubr.bf16.gmra.mrb[36].mxu1 %v3605_v17  ;;  %v3430_v27 = vpop.permute.xlu0 %3429 }
 0x363   : > { %v3432_v56 = vpop.permute.xlu1 %3431  ;;  %3470 = vst.msk [vmem:[#allocation2 + $0x48] sm:$0xff] %vm3136_vm11, %v3430_v27 }
 0x364   : > { %3471 = vst.msk [vmem:[#allocation2 + $0x58] sm:$0xff] %vm3136_vm11, %v3432_v56  ;;  %3449 = vrot.lane.b32.xlu0 %v3419_v13, %s5035_s23 }
 0x365   : > { %3119 = vrot.lane.b32.xlu1 %v3089_v43, %s5035_s23  ;;  %s4523_s23 = smul.u32 60, %s6914_s21 }
 0x366   : > { %v3100_v7 = vpop.permute.xlu0 %3099 }
 0x367   : > { %v3102_v21 = vpop.permute.xlu1 %3101  ;;  %3141 = vst.msk [vmem:[#allocation2 + $0x40] sm:$0xff] %vm3136_vm11, %v3100_v7  ;;  %s6809_s24 = scalar_lea.vmem %s6861_s5, %s4523_s23 }
 0x368   : > { %3142 = vst.msk [vmem:[#allocation2 + $0x50] sm:$0xff] %vm3136_vm11, %v3102_v21  ;;  %3541 = vrot.lane.b32.xlu0 %v6654_v48, %s5036_s26 }
 0x369   : > { %3210 = vrot.lane.b32.xlu1 %v3180_v49, %s5036_s26 }
 0x36a   : > { %v3522_v46 = vpop.permute.xlu0 %3521 }
 0x36b   : > { %v3524_v36 = vpop.permute.xlu1 %3523  ;;  %3562 = vst.msk [vmem:[#allocation2 + $0x48] sm:$0xff] %vm3227_vm12, %v3522_v46 }
 0x36c   : > { %3563 = vst.msk [vmem:[#allocation2 + $0x58] sm:$0xff] %vm3227_vm12, %v3524_v36 }
 0x36e   : > { %v3191_v14 = vpop.permute.xlu0 %3190 }
 0x36f   : > { %v3193_v45 = vpop.permute.xlu1 %3192  ;;  %3232 = vst.msk [vmem:[#allocation2 + $0x40] sm:$0xff] %vm3227_vm12, %v3191_v14 }
 0x370   : > { %3233 = vst.msk [vmem:[#allocation2 + $0x50] sm:$0xff] %vm3227_vm12, %v3193_v45 }
 0x372   : > { %v3345_v42 = vpop.permute.xlu0 %3344  ;;  %v3582_v38 = vld [vmem:[#allocation2 + $0x48] sm:$0xff] }
 0x373   : > { %v3347_v15 = vpop.permute.xlu1 %3346  ;;  %v3584_v22 = vld [vmem:[#allocation2 + $0x58] sm:$0xff]  ;;  %3383 = vst.msk [vmem:[#allocation2 + $0x68] sm:$0xff] %vm3045_vm9, %v3345_v42 }
 0x374   : > { %3384 = vst.msk [vmem:[#allocation2 + $0x78] sm:$0xff] %vm3045_vm9, %v3347_v15  ;;  %v3608_v8 = vpack.c.bf16 %v3584_v22, %v3582_v38 }
 0x376   : > { %3802 = vmatprep.mubr.bf16.mxu1 %v3608_v8  ;;  %v3013_v33 = vpop.permute.xlu0 %3012  ;;  %v3581_v43 = vld [vmem:[#allocation2 + $0x40] sm:$0xff] }
 0x377   : > { %v3015_v13 = vpop.permute.xlu1 %3014  ;;  %v3583_v26 = vld [vmem:[#allocation2 + $0x50] sm:$0xff]  ;;  %3052 = vst.msk [vmem:[#allocation2 + $0x60] sm:$0xff] %vm3045_vm9, %v3013_v33 }
 0x378   : > { %3053 = vst.msk [vmem:[#allocation2 + $0x70] sm:$0xff] %vm3045_vm9, %v3015_v13  ;;  %v3607_v28 = vpack.c.bf16 %v3583_v26, %v3581_v43 }
 0x37a   : > { %3803 = vmatmul.mubr.bf16.gmra.mrb[40].mxu1 %v3607_v28  ;;  %v3434_v49 = vpop.permute.xlu0 %3433 }
 0x37b   : > { %v3436_v60 = vpop.permute.xlu1 %3435  ;;  %3472 = vst.msk [vmem:[#allocation2 + $0x68] sm:$0xff] %vm3136_vm11, %v3434_v49 }
 0x37c   : > { %3473 = vst.msk [vmem:[#allocation2 + $0x78] sm:$0xff] %vm3136_vm11, %v3436_v60 }
 0x37e   : > { %v3104_v34 = vpop.permute.xlu0 %3103 }
 0x37f   : > { %v3106_v25 = vpop.permute.xlu1 %3105  ;;  %3143 = vst.msk [vmem:[#allocation2 + $0x60] sm:$0xff] %vm3136_vm11, %v3104_v34 }
 0x380   : > { %3144 = vst.msk [vmem:[#allocation2 + $0x70] sm:$0xff] %vm3136_vm11, %v3106_v25 }
 0x382   : > { %v3526_v10 = vpop.permute.xlu0 %3525 }
 0x383   : > { %v3528_v30 = vpop.permute.xlu1 %3527  ;;  %3564 = vst.msk [vmem:[#allocation2 + $0x68] sm:$0xff] %vm3227_vm12, %v3526_v10 }
 0x384   : > { %3565 = vst.msk [vmem:[#allocation2 + $0x78] sm:$0xff] %vm3227_vm12, %v3528_v30 }
 0x386   : > { %v3195_v57 = vpop.permute.xlu0 %3194 }
 0x387   : > { %v3197_v41 = vpop.permute.xlu1 %3196  ;;  %3234 = vst.msk [vmem:[#allocation2 + $0x60] sm:$0xff] %vm3227_vm12, %v3195_v57 }
 0x388   : > { %3235 = vst.msk [vmem:[#allocation2 + $0x70] sm:$0xff] %vm3227_vm12, %v3197_v41 }
 0x38a   : > { %v3349_v54 = vpop.permute.xlu0 %3348  ;;  %v3586_v48 = vld [vmem:[#allocation2 + $0x68] sm:$0xff] }
 0x38b   : > { %v3351_v44 = vpop.permute.xlu1 %3350  ;;  %v3588_v6 = vld [vmem:[#allocation2 + $0x78] sm:$0xff]  ;;  %3385 = vst.msk [vmem:[#allocation2 + $0x88] sm:$0xff] %vm3045_vm9, %v3349_v54 }
 0x38c   : > { %3386 = vst.msk [vmem:[#allocation2 + $0x98] sm:$0xff] %vm3045_vm9, %v3351_v44  ;;  %v3610_v63 = vpack.c.bf16 %v3588_v6, %v3586_v48 }
 0x38e   : > { %3810 = vmatprep.mubr.bf16.mxu1 %v3610_v63  ;;  %v3017_v59 = vpop.permute.xlu0 %3016  ;;  %v3585_v1 = vld [vmem:[#allocation2 + $0x60] sm:$0xff] }
 0x38f   : > { %v3019_v61 = vpop.permute.xlu1 %3018  ;;  %v3587_v40 = vld [vmem:[#allocation2 + $0x70] sm:$0xff]  ;;  %3054 = vst.msk [vmem:[#allocation2 + $0x80] sm:$0xff] %vm3045_vm9, %v3017_v59 }
 0x390   : > { %3055 = vst.msk [vmem:[#allocation2 + $0x90] sm:$0xff] %vm3045_vm9, %v3019_v61  ;;  %v3609_v53 = vpack.c.bf16 %v3587_v40, %v3585_v1  ;;  %v6801_v1 = vld [vmem:[#allocation7] ss:$0 sm:$0xff] }
 0x392   : > { %3811 = vmatmul.mubr.bf16.gmra.mrb[44].mxu1 %v3609_v53  ;;  %v3438_v62 = vpop.permute.xlu0 %3437 }
 0x393   : > { %v3440_v0 = vpop.permute.xlu1 %3439  ;;  %3474 = vst.msk [vmem:[#allocation2 + $0x88] sm:$0xff] %vm3136_vm11, %v3438_v62 }
 0x394   : > { %3475 = vst.msk [vmem:[#allocation2 + $0x98] sm:$0xff] %vm3136_vm11, %v3440_v0 }
 0x396   : > { %v3108_v19 = vpop.permute.xlu0 %3107 }
 0x397   : > { %v3110_v35 = vpop.permute.xlu1 %3109  ;;  %3145 = vst.msk [vmem:[#allocation2 + $0x80] sm:$0xff] %vm3136_vm11, %v3108_v19 }
 0x398   : > { %3146 = vst.msk [vmem:[#allocation2 + $0x90] sm:$0xff] %vm3136_vm11, %v3110_v35 }
 0x39a   : > { %v3530_v11 = vpop.permute.xlu0 %3529 }
 0x39b   : > { %v3532_v2 = vpop.permute.xlu1 %3531  ;;  %3566 = vst.msk [vmem:[#allocation2 + $0x88] sm:$0xff] %vm3227_vm12, %v3530_v11 }
 0x39c   : > { %3567 = vst.msk [vmem:[#allocation2 + $0x98] sm:$0xff] %vm3227_vm12, %v3532_v2 }
 0x39e   : > { %v3199_v52 = vpop.permute.xlu0 %3198 }
 0x39f   : > { %v3201_v37 = vpop.permute.xlu1 %3200  ;;  %3236 = vst.msk [vmem:[#allocation2 + $0x80] sm:$0xff] %vm3227_vm12, %v3199_v52 }
 0x3a0   : > { %3237 = vst.msk [vmem:[#allocation2 + $0x90] sm:$0xff] %vm3227_vm12, %v3201_v37 }
 0x3a2   : > { %v3353_v29 = vpop.permute.xlu0 %3352  ;;  %v3590_v18 = vld [vmem:[#allocation2 + $0x88] sm:$0xff] }
 0x3a3   : > { %v3355_v39 = vpop.permute.xlu1 %3354  ;;  %v3592_v16 = vld [vmem:[#allocation2 + $0x98] sm:$0xff]  ;;  %3387 = vst.msk [vmem:[#allocation2 + $0xa8] sm:$0xff] %vm3045_vm9, %v3353_v29 }
 0x3a4   : > { %3388 = vst.msk [vmem:[#allocation2 + $0xb8] sm:$0xff] %vm3045_vm9, %v3355_v39  ;;  %v3612_v51 = vpack.c.bf16 %v3592_v16, %v3590_v18 }
 0x3a6   : > { %3818 = vmatprep.mubr.bf16.mxu1 %v3612_v51  ;;  %v3021_v5 = vpop.permute.xlu0 %3020  ;;  %v3589_v3 = vld [vmem:[#allocation2 + $0x80] sm:$0xff] }
 0x3a7   : > { %v3023_v58 = vpop.permute.xlu1 %3022  ;;  %v3591_v20 = vld [vmem:[#allocation2 + $0x90] sm:$0xff]  ;;  %3056 = vst.msk [vmem:[#allocation2 + $0xa0] sm:$0xff] %vm3045_vm9, %v3021_v5 }
 0x3a8   : > { %3057 = vst.msk [vmem:[#allocation2 + $0xb0] sm:$0xff] %vm3045_vm9, %v3023_v58  ;;  %v3611_v50 = vpack.c.bf16 %v3591_v20, %v3589_v3 }
 0x3aa   : > { %3819 = vmatmul.mubr.bf16.gmra.mrb[48].mxu1 %v3611_v50  ;;  %v3442_v55 = vpop.permute.xlu0 %3441 }
 0x3ab   : > { %v3444_v4 = vpop.permute.xlu1 %3443  ;;  %3476 = vst.msk [vmem:[#allocation2 + $0xa8] sm:$0xff] %vm3136_vm11, %v3442_v55 }
 0x3ac   : > { %3477 = vst.msk [vmem:[#allocation2 + $0xb8] sm:$0xff] %vm3136_vm11, %v3444_v4 }
 0x3ae   : > { %v3112_v47 = vpop.permute.xlu0 %3111 }
 0x3af   : > { %v3114_v31 = vpop.permute.xlu1 %3113  ;;  %3147 = vst.msk [vmem:[#allocation2 + $0xa0] sm:$0xff] %vm3136_vm11, %v3112_v47 }
 0x3b0   : > { %3148 = vst.msk [vmem:[#allocation2 + $0xb0] sm:$0xff] %vm3136_vm11, %v3114_v31 }
 0x3b2   : > { %v3534_v32 = vpop.permute.xlu0 %3533 }
 0x3b3   : > { %v3536_v9 = vpop.permute.xlu1 %3535  ;;  %3568 = vst.msk [vmem:[#allocation2 + $0xa8] sm:$0xff] %vm3227_vm12, %v3534_v32 }
 0x3b4   : > { %3569 = vst.msk [vmem:[#allocation2 + $0xb8] sm:$0xff] %vm3227_vm12, %v3536_v9 }
 0x3b6   : > { %v3203_v12 = vpop.permute.xlu0 %3202 }
 0x3b7   : > { %v3205_v24 = vpop.permute.xlu1 %3204  ;;  %3238 = vst.msk [vmem:[#allocation2 + $0xa0] sm:$0xff] %vm3227_vm12, %v3203_v12 }
 0x3b8   : > { %3239 = vst.msk [vmem:[#allocation2 + $0xb0] sm:$0xff] %vm3227_vm12, %v3205_v24 }
 0x3ba   : > { %v3357_v23 = vpop.permute.xlu0 %3356  ;;  %v3594_v27 = vld [vmem:[#allocation2 + $0xa8] sm:$0xff] }
 0x3bb   : > { %v3029_v17 = vpop.permute.xlu1 %3028  ;;  %v3596_v56 = vld [vmem:[#allocation2 + $0xb8] sm:$0xff]  ;;  %3389 = vst.msk [vmem:[#allocation2 + $0xc8] sm:$0xff] %vm3045_vm9, %v3357_v23 }
 0x3bc   : > { %3061 = vst.msk [vmem:[#allocation2 + $0xe0] sm:$0x3] %vm3060_vm13, %v3029_v17  ;;  %v3614_v7 = vpack.c.bf16 %v3596_v56, %v3594_v27 }
 0x3be   : > { %3826 = vmatprep.mubr.bf16.mxu1 %v3614_v7  ;;  %v3025_v21 = vpop.permute.xlu0 %3024  ;;  %v3593_v36 = vld [vmem:[#allocation2 + $0xa0] sm:$0xff] }
 0x3bf   : > { %v3359_v46 = vpop.permute.xlu1 %3358  ;;  %v3595_v14 = vld [vmem:[#allocation2 + $0xb0] sm:$0xff]  ;;  %3058 = vst.msk [vmem:[#allocation2 + $0xc0] sm:$0xff] %vm3045_vm9, %v3025_v21 }
 0x3c0   : > { %3390 = vst.msk [vmem:[#allocation2 + $0xd8] sm:$0xff] %vm3045_vm9, %v3359_v46  ;;  %v3613_v45 = vpack.c.bf16 %v3595_v14, %v3593_v36 }
 0x3c2   : > { %3827 = vmatmul.mubr.bf16.gmra.mrb[52].mxu1 %v3613_v45  ;;  %v3446_v42 = vpop.permute.xlu0 %3445 }
 0x3c3   : > { %v3027_v15 = vpop.permute.xlu1 %3026  ;;  %3478 = vst.msk [vmem:[#allocation2 + $0xc8] sm:$0xff] %vm3136_vm11, %v3446_v42 }
 0x3c4   : > { %3059 = vst.msk [vmem:[#allocation2 + $0xd0] sm:$0xff] %vm3045_vm9, %v3027_v15 }
 0x3c6   : > { %v3116_v38 = vpop.permute.xlu0 %3115 }
 0x3c7   : > { %v3448_v22 = vpop.permute.xlu1 %3447  ;;  %3149 = vst.msk [vmem:[#allocation2 + $0xc0] sm:$0xff] %vm3136_vm11, %v3116_v38 }
 0x3c8   : > { %3479 = vst.msk [vmem:[#allocation2 + $0xd8] sm:$0xff] %vm3136_vm11, %v3448_v22 }
 0x3ca   : > { %v3538_v8 = vpop.permute.xlu0 %3537 }
 0x3cb   : > { %v3118_v33 = vpop.permute.xlu1 %3117  ;;  %3570 = vst.msk [vmem:[#allocation2 + $0xc8] sm:$0xff] %vm3227_vm12, %v3538_v8 }
 0x3cc   : > { %3150 = vst.msk [vmem:[#allocation2 + $0xd0] sm:$0xff] %vm3136_vm11, %v3118_v33 }
 0x3ce   : > { %v3207_v13 = vpop.permute.xlu0 %3206 }
 0x3cf   : > { %v3540_v43 = vpop.permute.xlu1 %3539  ;;  %3240 = vst.msk [vmem:[#allocation2 + $0xc0] sm:$0xff] %vm3227_vm12, %v3207_v13 }
 0x3d0   : > { %3571 = vst.msk [vmem:[#allocation2 + $0xd8] sm:$0xff] %vm3227_vm12, %v3540_v43 }
 0x3d2   : > { %v3361_v26 = vpop.permute.xlu0 %3360  ;;  %v3598_v34 = vld [vmem:[#allocation2 + $0xc8] sm:$0xff] }
 0x3d3   : > { %v3209_v28 = vpop.permute.xlu1 %3208  ;;  %3391 = vst.msk [vmem:[#allocation2 + $0xe8] sm:$0x3] %vm3060_vm13, %v3361_v26 }
 0x3d4   : > { %3241 = vst.msk [vmem:[#allocation2 + $0xd0] sm:$0xff] %vm3227_vm12, %v3209_v28 }
 0x3d6   : > { %v3450_v49 = vpop.permute.xlu0 %3449  ;;  %v3597_v41 = vld [vmem:[#allocation2 + $0xc0] sm:$0xff] }
 0x3d7   : > { %v3120_v60 = vpop.permute.xlu1 %3119  ;;  %v3600_v25 = vld [vmem:[#allocation2 + $0xd8] sm:$0xff]  ;;  %3480 = vst.msk [vmem:[#allocation2 + $0xe8] sm:$0x3] %vm3151_vm14, %v3450_v49 }
 0x3d8   : > { %3152 = vst.msk [vmem:[#allocation2 + $0xe0] sm:$0x3] %vm3151_vm14, %v3120_v60  ;;  %v3616_v10 = vpack.c.bf16 %v3600_v25, %v3598_v34 }
 0x3da   : > { %3834 = vmatprep.mubr.bf16.mxu1 %v3616_v10  ;;  %v3542_v30 = vpop.permute.xlu0 %3541 }
 0x3db   : > { %v3211_v57 = vpop.permute.xlu1 %3210  ;;  %v3599_v54 = vld [vmem:[#allocation2 + $0xd0] sm:$0xff]  ;;  %3572 = vst.msk [vmem:[#allocation2 + $0xe8] sm:$0x3] %vm3242_vm15, %v3542_v30 }
 0x3dc   : > { %3243 = vst.msk [vmem:[#allocation2 + $0xe0] sm:$0x3] %vm3242_vm15, %v3211_v57  ;;  %v3615_v44 = vpack.c.bf16 %v3599_v54, %v3597_v41 }
 0x3de   : > { %3835 = vmatmul.mubr.bf16.gmra.mrb[56].mxu1 %v3615_v44 }
 0x3e2   : > { %v3602_v48 = vld [vmem:[#allocation2 + $0xe8] sm:$0x3] }
 0x3e3   : > { %v3601_v6 = vld [vmem:[#allocation2 + $0xe0] sm:$0x3]  ;;  %v3618_v63 = vpack.c.bf16 %v3602_v48, %v3602_v48 }
 0x3e4   : > { %v3617_v59 = vpack.c.bf16 %v3601_v6, %v3601_v6 }
 0x3e5   : > { %3842 = vmatprep.mubr.bf16.mxu1 %v3618_v63 }
 0x3e6   : > { %3843 = vmatmul.mubr.bf16.gmra.mrb[60].mxu1 %v3617_v59 }
 0x41d   : > { %v4346_v61 = vpop.f32.mrb[32].mxu1 }
 0x41e   : > { %v4347_v40 = vpop.f32.mrb[33].mxu1 }
 0x41f   : > { %v4348_v53 = vadd.f32 %v4347_v40, %v4346_v61  ;;  %v4349_v62 = vpop.f32.mrb[34].mxu1 }
 0x420   : > { %v4350_v0 = vpop.f32.mrb[35].mxu1 }
 0x421   : > { %v3789_v19 = vadd.f32 %v4348_v53, %v6801_v1  ;;  %v4351_v35 = vadd.f32 %v4350_v0, %v4349_v62 }
 0x423   : > { %v3850_v11 = vmax.f32 %v3789_v19, 0.0  ;;  %v3792_v2 = vadd.f32 %v4351_v35, %v6801_v1 }
 0x425   : > { %v4315_v52 = vpack.c.bf16 %v3850_v11, %v3850_v11  ;;  %v3851_v37 = vmax.f32 %v3792_v2, 0.0 }
 0x427   : > { %3927 = vst.msk [vmem:[%s6809_s24] sm:$0xf] %vm3926_vm0, %v4315_v52  ;;  %v4316_v29 = vpack.c.bf16 %v3851_v37, %v3851_v37 }
 0x429   : > { %3928 = vst.msk [vmem:[%s6809_s24 + $0x4] sm:$0xf] %vm3926_vm0, %v4316_v29 }
 0x435   : > { %v4352_v39 = vpop.f32.mrb[36].mxu1 }
 0x436   : > { %v4353_v18 = vpop.f32.mrb[37].mxu1 }
 0x437   : > { %v4354_v16 = vadd.f32 %v4353_v18, %v4352_v39  ;;  %v4355_v51 = vpop.f32.mrb[38].mxu1 }
 0x438   : > { %v4356_v5 = vpop.f32.mrb[39].mxu1 }
 0x439   : > { %v3797_v58 = vadd.f32 %v4354_v16, %v6801_v1  ;;  %v4357_v3 = vadd.f32 %v4356_v5, %v4355_v51 }
 0x43b   : > { %v3852_v20 = vmax.f32 %v3797_v58, 0.0  ;;  %v3800_v50 = vadd.f32 %v4357_v3, %v6801_v1 }
 0x43d   : > { %v4317_v55 = vpack.c.bf16 %v3852_v20, %v3852_v20  ;;  %v3853_v4 = vmax.f32 %v3800_v50, 0.0 }
 0x43f   : > { %3929 = vst.msk [vmem:[%s6809_s24 + $0x8] sm:$0xf] %vm3926_vm0, %v4317_v55  ;;  %v4318_v47 = vpack.c.bf16 %v3853_v4, %v3853_v4 }
 0x441   : > { %3930 = vst.msk [vmem:[%s6809_s24 + $0xc] sm:$0xf] %vm3926_vm0, %v4318_v47 }
 0x44d   : > { %v4358_v31 = vpop.f32.mrb[40].mxu1 }
 0x44e   : > { %v4359_v32 = vpop.f32.mrb[41].mxu1 }
 0x44f   : > { %v4360_v9 = vadd.f32 %v4359_v32, %v4358_v31  ;;  %v4361_v12 = vpop.f32.mrb[42].mxu1 }
 0x450   : > { %v4362_v24 = vpop.f32.mrb[43].mxu1 }
 0x451   : > { %v3805_v23 = vadd.f32 %v4360_v9, %v6801_v1  ;;  %v4363_v17 = vadd.f32 %v4362_v24, %v4361_v12 }
 0x453   : > { %v3854_v27 = vmax.f32 %v3805_v23, 0.0  ;;  %v3808_v56 = vadd.f32 %v4363_v17, %v6801_v1 }
 0x455   : > { %v4319_v7 = vpack.c.bf16 %v3854_v27, %v3854_v27  ;;  %v3855_v21 = vmax.f32 %v3808_v56, 0.0 }
 0x457   : > { %3931 = vst.msk [vmem:[%s6809_s24 + $0x10] sm:$0xf] %vm3926_vm0, %v4319_v7  ;;  %v4320_v46 = vpack.c.bf16 %v3855_v21, %v3855_v21 }
 0x459   : > { %3932 = vst.msk [vmem:[%s6809_s24 + $0x14] sm:$0xf] %vm3926_vm0, %v4320_v46 }
 0x465   : > { %v4364_v36 = vpop.f32.mrb[44].mxu1 }
 0x466   : > { %v4365_v14 = vpop.f32.mrb[45].mxu1 }
 0x467   : > { %v4366_v45 = vadd.f32 %v4365_v14, %v4364_v36  ;;  %v4367_v42 = vpop.f32.mrb[46].mxu1 }
 0x468   : > { %v4368_v15 = vpop.f32.mrb[47].mxu1 }
 0x469   : > { %v3813_v38 = vadd.f32 %v4366_v45, %v6801_v1  ;;  %v4369_v22 = vadd.f32 %v4368_v15, %v4367_v42 }
 0x46b   : > { %v3856_v8 = vmax.f32 %v3813_v38, 0.0  ;;  %v3816_v33 = vadd.f32 %v4369_v22, %v6801_v1 }
 0x46d   : > { %v4321_v13 = vpack.c.bf16 %v3856_v8, %v3856_v8  ;;  %v3857_v43 = vmax.f32 %v3816_v33, 0.0 }
 0x46f   : > { %3933 = vst.msk [vmem:[%s6809_s24 + $0x18] sm:$0xf] %vm3926_vm0, %v4321_v13  ;;  %v4322_v26 = vpack.c.bf16 %v3857_v43, %v3857_v43 }
 0x471   : > { %3934 = vst.msk [vmem:[%s6809_s24 + $0x1c] sm:$0xf] %vm3926_vm0, %v4322_v26 }
 0x47d   : > { %v4370_v28 = vpop.f32.mrb[48].mxu1 }
 0x47e   : > { %v4371_v49 = vpop.f32.mrb[49].mxu1 }
 0x47f   : > { %v4372_v60 = vadd.f32 %v4371_v49, %v4370_v28  ;;  %v4373_v34 = vpop.f32.mrb[50].mxu1 }
 0x480   : > { %v4374_v25 = vpop.f32.mrb[51].mxu1 }
 0x481   : > { %v3821_v10 = vadd.f32 %v4372_v60, %v6801_v1  ;;  %v4375_v30 = vadd.f32 %v4374_v25, %v4373_v34 }
 0x483   : > { %v3858_v57 = vmax.f32 %v3821_v10, 0.0  ;;  %v3824_v41 = vadd.f32 %v4375_v30, %v6801_v1 }
 0x485   : > { %v4323_v54 = vpack.c.bf16 %v3858_v57, %v3858_v57  ;;  %v3859_v44 = vmax.f32 %v3824_v41, 0.0 }
 0x487   : > { %3935 = vst.msk [vmem:[%s6809_s24 + $0x20] sm:$0xf] %vm3926_vm0, %v4323_v54  ;;  %v4324_v48 = vpack.c.bf16 %v3859_v44, %v3859_v44 }
 0x489   : > { %3936 = vst.msk [vmem:[%s6809_s24 + $0x24] sm:$0xf] %vm3926_vm0, %v4324_v48 }
 0x495   : > { %v4376_v6 = vpop.f32.mrb[52].mxu1 }
 0x496   : > { %v4377_v63 = vpop.f32.mrb[53].mxu1 }
 0x497   : > { %v4378_v59 = vadd.f32 %v4377_v63, %v4376_v6  ;;  %v4379_v61 = vpop.f32.mrb[54].mxu1 }
 0x498   : > { %v4380_v40 = vpop.f32.mrb[55].mxu1 }
 0x499   : > { %v3829_v53 = vadd.f32 %v4378_v59, %v6801_v1  ;;  %v4381_v62 = vadd.f32 %v4380_v40, %v4379_v61 }
 0x49b   : > { %v3860_v0 = vmax.f32 %v3829_v53, 0.0  ;;  %v3832_v19 = vadd.f32 %v4381_v62, %v6801_v1 }
 0x49d   : > { %v4325_v35 = vpack.c.bf16 %v3860_v0, %v3860_v0  ;;  %v3861_v11 = vmax.f32 %v3832_v19, 0.0 }
 0x49f   : > { %3937 = vst.msk [vmem:[%s6809_s24 + $0x28] sm:$0xf] %vm3926_vm0, %v4325_v35  ;;  %v4326_v2 = vpack.c.bf16 %v3861_v11, %v3861_v11 }
 0x4a1   : > { %3938 = vst.msk [vmem:[%s6809_s24 + $0x2c] sm:$0xf] %vm3926_vm0, %v4326_v2 }
 0x4b1   : > { %v4382_v52 = vpop.f32.mrb[56].mxu1 }
 0x4b2   : > { %v4383_v37 = vpop.f32.mrb[57].mxu1 }
 0x4b3   : > { %v4384_v29 = vadd.f32 %v4383_v37, %v4382_v52  ;;  %v4385_v39 = vpop.f32.mrb[58].mxu1 }
 0x4b4   : > { %v4386_v18 = vpop.f32.mrb[59].mxu1 }
 0x4b5   : > { %v3837_v16 = vadd.f32 %v4384_v29, %v6801_v1  ;;  %v4387_v51 = vadd.f32 %v4386_v18, %v4385_v39 }
 0x4b7   : > { %v3862_v5 = vmax.f32 %v3837_v16, 0.0  ;;  %v3840_v58 = vadd.f32 %v4387_v51, %v6801_v1 }
 0x4b9   : > { %v4327_v3 = vpack.c.bf16 %v3862_v5, %v3862_v5  ;;  %v3863_v20 = vmax.f32 %v3840_v58, 0.0  ;;  %v4388_v50 = vpop.f32.mrb[60].mxu1 }
 0x4ba   : > { %v4389_v4 = vpop.f32.mrb[61].mxu1 }
 0x4bb   : > { %3939 = vst.msk [vmem:[%s6809_s24 + $0x30] sm:$0xf] %vm3926_vm0, %v4327_v3  ;;  %v4328_v55 = vpack.c.bf16 %v3863_v20, %v3863_v20  ;;  %v4390_v47 = vadd.f32 %v4389_v4, %v4388_v50  ;;  %v4391_v31 = vpop.f32.mrb[62].mxu1 }
 0x4bc   : > { %v4392_v32 = vpop.f32.mrb[63].mxu1 }
 0x4bd   : > { %3940 = vst.msk [vmem:[%s6809_s24 + $0x34] sm:$0xf] %vm3926_vm0, %v4328_v55  ;;  %v3845_v9 = vadd.f32 %v4390_v47, %v6801_v1 }
 0x4bf   : > { %v3864_v12 = vmax.f32 %v3845_v9, 0.0 }
 0x4c1   : > { %v4329_v24 = vpack.c.bf16 %v3864_v12, %v3864_v12 }
 0x4c3   : > { %3942 = vst.msk [vmem:[%s6809_s24 + $0x38] sm:$0x1] %vm3941_vm1, %v4329_v24 }
 0x4c4 PF: > { %s17_s18 = sadd.s32 1, %s5028_s18  }
 0x4c5   : > { %p14_p3 = scmp.ge.s32.totalorder %s17_s18, 4  }
 0x4c7   :  { %16 = sbr.rel (!%p14_p3) target bundleno = 2 (0x2), region = 83 }
 0x4ce   :  { %3964 = vsyncpa [#allocation4], 1 }
 0x4cf   :  { %3966 = vsyncpa [#allocation4 + $0x1], 1 }
 0x4d0   :  { %3967 = vsyncpa [#allocation6], 1 }

// kernel: graphdta_gin_forward.3
= control target key start
LH: loop header
LB: loop body
LE: loop exit
PB: predicated region body
PF: predicated region fallthrough
CT: control target
= control target key end

     0   :  { %s12078_s6 = smov 1   ;;  %s12079_s10 = smov 2   ;;  %s13631_s0 = inlined_call_operand.smem [shape: u32[36], index: -1, kind: input, shape index: {}] }
   0x1   :  { %s12128_s5 = sld [smem:[%s13631_s0]]   ;;  %s12080_s14 = smov 3  }
   0x2   :  { %s12133_s9 = sld [smem:[%s13631_s0 + %s12078_s6]]   ;;  %s12081_s18 = smov 4  }
   0x3   :  { %s12138_s13 = sld [smem:[%s13631_s0 + %s12079_s10]]   ;;  %s12082_s22 = smov 5  }
   0x4   :  { %s12143_s17 = sld [smem:[%s13631_s0 + %s12080_s14]]   ;;  %s12083_s26 = smov 6  }
   0x5   :  { %s12148_s21 = sld [smem:[%s13631_s0 + %s12081_s18]]   ;;  %s12084_s30 = smov 7  }
   0x6   :  { %s12153_s25 = sld [smem:[%s13631_s0 + %s12082_s22]]   ;;  %s12085_s4 = smov 8  }
   0x7   :  { %s12158_s29 = sld [smem:[%s13631_s0 + %s12083_s26]]   ;;  %s12086_s10 = smov 9  }
   0x8   :  { %s12163_s3 = sld [smem:[%s13631_s0 + %s12084_s30]]   ;;  %s12087_s15 = smov 10  }
   0x9   :  { %s12168_s8 = sld [smem:[%s13631_s0 + %s12085_s4]]   ;;  %s12088_s20 = smov 11  }
   0xa   :  { %s12173_s14 = sld [smem:[%s13631_s0 + %s12086_s10]]   ;;  %s12089_s26 = smov 12  }
   0xb   :  { %s12178_s19 = sld [smem:[%s13631_s0 + %s12087_s15]]   ;;  %s12090_s1 = smov 13  }
   0xc   :  { %s12183_s24 = sld [smem:[%s13631_s0 + %s12088_s20]]   ;;  %s12091_s7 = smov 14  }
   0xd   :  { %s12188_s30 = sld [smem:[%s13631_s0 + %s12089_s26]]   ;;  %s12092_s15 = smov 15  }
   0xe   :  { %s12193_s6 = sld [smem:[%s13631_s0 + %s12090_s1]]   ;;  %s12093_s22 = smov 16  }
   0xf   :  { %s12198_s12 = sld [smem:[%s13631_s0 + %s12091_s7]]   ;;  %s12094_s28 = smov 17  }
  0x10   :  { %s12203_s20 = sld [smem:[%s13631_s0 + %s12092_s15]]   ;;  %s12095_s7 = smov 18  }
  0x11   :  { %s12208_s27 = sld [smem:[%s13631_s0 + %s12093_s22]]   ;;  %s12096_s15 = smov 19  }
  0x12   :  { %s12213_s4 = sld [smem:[%s13631_s0 + %s12094_s28]]   ;;  %s12097_s22 = smov 20  }
  0x13   :  { %s12098_s28 = smov 21   ;;  %s12112_s16 = smov 35  }
  0x15   :  { %13643 = sst [smem:[#allocation6_spill]] %s12198_s12 }
  0x16   :  { %13644 = sst [smem:[#allocation7_spill]] %s12203_s20 }
  0x17   :  { %13645 = sst [smem:[#allocation8_spill]] %s12208_s27 }
  0x18   :  { %13646 = sst [smem:[#allocation9_spill]] %s12213_s4 }
  0x19   :  { %s12218_s12 = sld [smem:[%s13631_s0 + %s12095_s7]]   ;;  %s12099_s7 = smov 22  }
  0x1a   :  { %s12223_s20 = sld [smem:[%s13631_s0 + %s12096_s15]]   ;;  %s12100_s15 = smov 23  }
  0x1b   :  { %s12228_s27 = sld [smem:[%s13631_s0 + %s12097_s22]]   ;;  %s12101_s22 = smov 24  }
  0x1c   :  { %s12233_s4 = sld [smem:[%s13631_s0 + %s12098_s28]]   ;;  %s12102_s28 = smov 25  }
  0x1f   :  { %13647 = sst [smem:[#allocation10_spill]] %s12218_s12 }
  0x20   :  { %13648 = sst [smem:[#allocation11_spill]] %s12223_s20 }
  0x21   :  { %13649 = sst [smem:[#allocation12_spill]] %s12228_s27 }
  0x22   :  { %13650 = sst [smem:[#allocation13_spill]] %s12233_s4 }
  0x23   :  { %s12238_s12 = sld [smem:[%s13631_s0 + %s12099_s7]]   ;;  %s12103_s7 = smov 26  }
  0x24   :  { %s12243_s20 = sld [smem:[%s13631_s0 + %s12100_s15]]   ;;  %s12104_s15 = smov 27  }
  0x25   :  { %s12248_s27 = sld [smem:[%s13631_s0 + %s12101_s22]]   ;;  %s12105_s22 = smov 28  }
  0x26   :  { %s12253_s4 = sld [smem:[%s13631_s0 + %s12102_s28]]   ;;  %s12106_s28 = smov 29  }
  0x29   :  { %13651 = sst [smem:[#allocation14_spill]] %s12238_s12 }
  0x2a   :  { %13652 = sst [smem:[#allocation15_spill]] %s12243_s20 }
  0x2b   :  { %13653 = sst [smem:[#allocation16_spill]] %s12248_s27 }
  0x2c   :  { %13654 = sst [smem:[#allocation17_spill]] %s12253_s4 }
  0x2d   :  { %s12258_s12 = sld [smem:[%s13631_s0 + %s12103_s7]]   ;;  %s12107_s7 = smov 30  }
  0x2e   :  { %s12263_s20 = sld [smem:[%s13631_s0 + %s12104_s15]]   ;;  %s12108_s15 = smov 31  }
  0x2f   :  { %s12268_s27 = sld [smem:[%s13631_s0 + %s12105_s22]]   ;;  %s12109_s22 = smov 32  }
  0x30   :  { %s12273_s4 = sld [smem:[%s13631_s0 + %s12106_s28]]   ;;  %s12110_s28 = smov 33  }
  0x33   :  { %13655 = sst [smem:[#allocation18_spill]] %s12258_s12 }
  0x34   :  { %13656 = sst [smem:[#allocation19_spill]] %s12263_s20 }
  0x35   :  { %13657 = sst [smem:[#allocation20_spill]] %s12268_s27 }
  0x36   :  { %13658 = sst [smem:[#allocation21_spill]] %s12273_s4 }
  0x37   :  { %s12278_s12 = sld [smem:[%s13631_s0 + %s12107_s7]]   ;;  %s12111_s7 = smov 34  }
  0x38   :  { %s12283_s20 = sld [smem:[%s13631_s0 + %s12108_s15]]  }
  0x39   :  { %s12288_s27 = sld [smem:[%s13631_s0 + %s12109_s22]]  }
  0x3a   :  { %s12293_s4 = sld [smem:[%s13631_s0 + %s12110_s28]]  }
  0x3d   :  { %13659 = sst [smem:[#allocation22_spill]] %s12278_s12 }
  0x3e   :  { %13660 = sst [smem:[#allocation23_spill]] %s12283_s20 }
  0x3f   :  { %s9508_s12 = sld [smem:[%s13631_s0 + %s12111_s7]]  }
  0x40   :  { %s12301_s20 = sld [smem:[%s13631_s0 + %s12112_s16]]  }
  0x45   :  { %v76_v0 = vstv %s9508_s12 }
  0x46   :  { %77 = vst [vmem:[#allocation2] sm:$0x1] %v76_v0 }
  0x47   :  { %78 = vsyncpa [#allocation4], 0  ;;  %s12113_s22 = smov [#allocation3]   ;;  %s12054_s26 = scalar_lea.hbm %s12128_s5, 128 }
  0x48   :  { %s85_s23 = sshll.u32 %s12113_s22, 4  ;;  %p12055_p0 = scmp.ne.s32.totalorder %s12128_s5, %s12054_s26  ;;  %s86_s23 = int_to_ptr.vmem [resolvable:$true] %s85_s23 }
  0x49   :  { %p12058_p1 = scmp.lt.u32.totalorder %s12054_s26, %s12128_s5 }
  0x4b   :  { %p12060_p2 = pnand %p12058_p1, %p12055_p0 }
  0x4d   :  { %12063 = shalt.err (!%p12060_p2)
}
  0x4e   :  { %s12064_s28 = scalar_lea.vmem %s86_s23, 128  ;;  %p12069_p4 = scmp.lt.s32.totalorder %s86_s23, %s86_s23 }
  0x4f   :  { %p12065_p3 = scmp.ne.s32.totalorder %s86_s23, %s12064_s28  ;;  %p12070_p5 = scmp.lt.s32.totalorder %s12064_s28, %s12064_s28 }
  0x51   :  { %p12071_p6 = por %p12070_p5, %p12069_p4 }
  0x53   :  { %p12072_p7 = pnand %p12071_p6, %p12065_p3 }
  0x55   :  { %12075 = shalt.err (!%p12072_p7)
}
  0x56   :  { %88 = dma.hbm_to_vmem [thread:$0]  %s12128_s5, 128, %s86_s23, [#allocation4]  }
  0x57   :  { %12076 = dma.done.wait [#allocation4], 128  }
  0x58   :  { %12077 = vsyncadd [#allocation4], 4294967168  ;;  %v12114_v1 = vmov 0.0   ;;  %vm12115_vm0 = vmmov 0   ;;  %v12116_v2 = vmov 0.0|0.0   ;;  %vm177_vm1 = vcmask 64512  }
  0x59   :  { %10994 = vmatprep.subr.mxu0 %v12114_v1  ;;  %10996 = vmatprep.mubr.msk.f32.mxu0 %vm12115_vm0, %v12114_v1  ;;  %v162_v3 = vld [vmem:[%s12133_s9] sm:$0xff]  ;;  %v161_v4 = vld [vmem:[#allocation3] sm:$0xff]  ;;  %v164_v6 = vld [vmem:[%s12138_s13 + $0x8] sm:$0xff]  ;;  %vm259_vm2 = vcmask 1041408   ;;  %vm255_vm3 = vcmask 146432   ;;  %vm342_vm4 = vcmask 1045504   ;;  %v251_v27 = vlaneseq }
  0x5a   :  { %11203 = vmatprep.subr.bf16.mxu1 %v12116_v2  ;;  %11005 = vmatprep.mubr.msk.f32.mxu1 %vm12115_vm0, %v12114_v1  ;;  %v163_v5 = vld [vmem:[%s12138_s13] sm:$0xff]  ;;  %v165_v8 = vld [vmem:[%s12138_s13 + $0x10] sm:$0x3]  ;;  %v167_v10 = vld [vmem:[%s12143_s17 + $0x8] sm:$0xff]  ;;  %vm12117_vm5 = vmmov 1   ;;  %vm338_vm7 = vcmask 637952  }
  0x5b   :  { %10995 = vmatpush3.msra.mxu0 %v162_v3  ;;  %v11204_v7 = vpack.c.bf16 %v164_v6, %v163_v5  ;;  %v166_v9 = vld [vmem:[%s12143_s17] sm:$0xff]  ;;  %v168_v11 = vld [vmem:[%s12143_s17 + $0x10] sm:$0xff]  ;;  %v169_v13 = vld [vmem:[%s12143_s17 + $0x18] sm:$0xff]  ;;  %v12347_v28 = vshrl.u32 %v251_v27, 7  ;;  %vm622_vm8 = vcmask 261120   ;;  %s13663_s0 = sld [smem:[#allocation6_spill]] }
  0x5c   :  { %10997 = vmatmul.mubr.msk.f32.vlgmr.msra.gmra.mrb[0].mxu0 %vm177_vm1, %v161_v4  ;;  %11206 = vmatprep.subr.bf16.mxu0 %v12116_v2  ;;  %v11207_v12 = vpack.c.bf16 %v167_v10, %v166_v9  ;;  %v170_v14 = vld [vmem:[%s12143_s17 + $0x20] sm:$0xff]  ;;  %v171_v15 = vld [vmem:[%s12143_s17 + $0x28] sm:$0xff]  ;;  %v11210_v16 = vpack.c.bf16 %v169_v13, %v168_v11  ;;  %v172_v17 = vld [vmem:[%s12143_s17 + $0x30] sm:$0xff]  ;;  %s13664_s5 = sld [smem:[#allocation7_spill]]  ;;  %s13665_s9 = sld [smem:[#allocation8_spill]]  ;;  %vm9468_vm9 = vcmask 1024  }
  0x5d   :  { %11028 = vmatprep.mubr.msk.f32.mxu0 %vm12115_vm0, %v12114_v1  ;;  %11205 = vmatpush3.bf16.msra.mxu1 %v11204_v7  ;;  %v173_v18 = vld [vmem:[%s12143_s17 + $0x38] sm:$0xff]  ;;  %v11213_v19 = vpack.c.bf16 %v171_v15, %v170_v14  ;;  %v174_v23 = vld [vmem:[%s12143_s17 + $0x40] sm:$0xff]  ;;  %v175_v24 = vld [vmem:[%s12143_s17 + $0x48] sm:$0x3f]  ;;  %v12350_v29 = vsub.s32 0, %v12347_v28  ;;  %v12358_v36 = vsub.s32 1, %v12347_v28 }
  0x5e   :  { %11003 = vmatprep.subr.mxu1 %v12114_v1  ;;  %11208 = vmatpush3.bf16.msra.mxu0 %v11207_v12  ;;  %v11216_v20 = vpack.c.bf16 %v173_v18, %v172_v17  ;;  %v11219_v25 = vpack.c.bf16 %v175_v24, %v174_v23  ;;  %vm12340_vm6 = vmpackc.low %vm342_vm4, %vm12117_vm5  ;;  %v176_v30 = vld [vmem:[%s12148_s21] sm:$0xf]  ;;  %v12364_v63 = vsub.s32 2, %v12347_v28  ;;  %v12368_v4 = vsub.s32 3, %v12347_v28  ;;  %v453_v9 = vld [vmem:[%s12153_s25 + $0x8] sm:$0xff]  ;;  %s13666_s13 = sld [smem:[#allocation9_spill]] }
  0x5f   :  { %11209 = vmatprep.subr.bf16.mxu0 %v12116_v2  ;;  %v254_v31 = vrot.slane %v176_v30, %v12350_v29  ;;  %v337_v37 = vrot.slane %v176_v30, %v12358_v36  ;;  %v454_v13 = vld [vmem:[%s12153_s25 + $0x10] sm:$0xff]  ;;  %v455_v14 = vld [vmem:[%s12153_s25 + $0x18] sm:$0xff]  ;;  %v456_v17 = vld [vmem:[%s12153_s25 + $0x20] sm:$0xff]  ;;  %s13667_s17 = sld [smem:[#allocation10_spill]]  ;;  %s13668_s21 = sld [smem:[#allocation11_spill]] }
  0x60   :  { %v442_v3 = vrot.slane %v176_v30, %v12364_v63  ;;  %v450_v6 = vrot.slane %v176_v30, %v12368_v4  ;;  %v12375_v15 = vld [vmem:[#allocation3] sm:$0xff]  ;;  %v457_v18 = vld [vmem:[%s12153_s25 + $0x28] sm:$0xff]  ;;  %v460_v23 = vld [vmem:[%s12153_s25 + $0x40] sm:$0xff]  ;;  %s13678_s12 = sld [smem:[#allocation16_spill]]  ;;  %s13679_s1 = sld [smem:[#allocation23_spill]] }
  0x61   :  { %11004 = vmatpush3.msk.msra.mxu1 %vm259_vm2, %v165_v8  ;;  %v452_v8 = vld [vmem:[%s12153_s25] sm:$0xff]  ;;  %v461_v24 = vld [vmem:[%s12153_s25 + $0x48] sm:$0x3f]  ;;  %v464_v26 = vld [vmem:[%s12158_s29 + $0x10] sm:$0xff]  ;;  %s13680_s2 = sld [smem:[#allocation22_spill]] }
  0x62   :  { %11031 = vmatprep.subr.mxu1 %v12114_v1  ;;  %11211 = vmatpush3.bf16.msra.mxu0 %v11210_v16  ;;  %v11223_v12 = vpack.c.bf16 %v453_v9, %v452_v8  ;;  %v11226_v16 = vpack.c.bf16 %v455_v14, %v454_v13  ;;  %v462_v27 = vld [vmem:[%s12158_s29] sm:$0xff]  ;;  %v463_v30 = vld [vmem:[%s12158_s29 + $0x8] sm:$0xff] }
  0x63   :  { %11212 = vmatprep.subr.bf16.mxu0 %v12116_v2 }
  0x66   :  { %11214 = vmatpush3.bf16.msra.mxu0 %v11213_v19  ;;  %v11229_v19 = vpack.c.bf16 %v457_v18, %v456_v17 }
  0x67   :  { %11215 = vmatprep.subr.bf16.mxu0 %v12116_v2 }
  0x6a   :  { %11217 = vmatpush3.bf16.msra.mxu0 %v11216_v20  ;;  %v458_v20 = vld [vmem:[%s12153_s25 + $0x30] sm:$0xff] }
  0x6b   :  { %11218 = vmatprep.subr.bf16.mxu0 %v12116_v2 }
  0x6e   :  { %11221 = vmatpush3.bf16.msk.msra.mxu0 %vm12340_vm6, %v11219_v25  ;;  %v11235_v25 = vpack.c.bf16 %v461_v24, %v460_v23  ;;  %v735_v23 = vld [vmem:[%s12173_s14] sm:$0xff]  ;;  %v736_v24 = vld [vmem:[%s12173_s14 + $0x8] sm:$0xff] }
  0x6f   :  { %11238 = vmatprep.subr.bf16.mxu0 %v12116_v2 }
 0x12f   :  { %v247_v21 = vpop.f32.mrb[0].mxu0 }
 0x130   :  { %v10998_v22 = vpop.f32.mrb[1].mxu0  ;;  %11006 = vmatmul.mubr.msk.f32.vlgmr.msra.gmra.mrb[0].mxu1 %vm255_vm3, %v247_v21  ;;  %v459_v21 = vld [vmem:[%s12153_s25 + $0x38] sm:$0xff]  ;;  %s13669_s25 = sld [smem:[#allocation13_spill]] }
 0x131   :  { %11033 = vmatprep.mubr.msk.f32.mxu1 %vm12115_vm0, %v12114_v1  ;;  %v11232_v22 = vpack.c.bf16 %v459_v21, %v458_v20 }
 0x203   :  { %v329_v32 = vpop.f32.mrb[0].mxu1 }
 0x204   :  { %v330_v33 = vadd.f32 %v329_v32, %v254_v31  ;;  %v11007_v34 = vpop.f32.mrb[1].mxu1  ;;  %v11239_v31 = vpack.c.bf16 %v463_v30, %v462_v27 }
 0x205   :  { %v465_v34 = vld [vmem:[%s12158_s29 + $0x18] sm:$0xff]  ;;  %s13670_s29 = sld [smem:[#allocation12_spill]] }
 0x206   :  { %v333_v35 = vmax.f32 %v330_v33, 0.0 }
 0x208   :  { %11029 = vmatmul.mubr.msk.f32.vlgmr.msra.gmra.mrb[2].mxu0 %vm338_vm7, %v333_v35  ;;  %v11242_v35 = vpack.c.bf16 %v465_v34, %v464_v26  ;;  %v739_v26 = vld [vmem:[%s12178_s19] sm:$0xf]  ;;  %s13674_s19 = sld [smem:[#allocation14_spill]] }
 0x209   :  { %11067 = vmatprep.mubr.msk.f32.mxu0 %vm12115_vm0, %v12114_v1  ;;  %11240 = vmatpush3.bf16.msra.mxu0 %v11239_v31  ;;  %v737_v31 = vld [vmem:[%s12173_s14 + $0x10] sm:$0xff]  ;;  %v813_v34 = vrot.slane %v739_v26, %v12350_v29 }
 0x20a   :  { %11241 = vmatprep.subr.bf16.mxu0 %v12116_v2 }
 0x20d   :  { %11243 = vmatpush3.bf16.msra.mxu0 %v11242_v35 }
 0x20e   :  { %11070 = vmatprep.subr.mxu0 %v12114_v1 }
 0x2db   :  { %v412_v38 = vpop.f32.mrb[2].mxu0 }
 0x2dc   :  { %v413_v39 = vadd.f32 %v412_v38, %v337_v37  ;;  %v11030_v40 = vpop.f32.mrb[3].mxu0  ;;  %v466_v37 = vld [vmem:[%s12163_s3] sm:$0xf]  ;;  %s13671_s3 = sld [smem:[#allocation15_spill]] }
 0x2dd   :  { %v540_v38 = vrot.slane %v466_v37, %v12350_v29  ;;  %v721_v17 = vrot.slane %v466_v37, %v12364_v63 }
 0x2de   :  { %v416_v41 = vmax.f32 %v413_v39, 0.0 }
 0x2e0   :  { %v417_v42 = vsel %vm338_vm7, %v416_v41, 0.0  ;;  %v426_v43 = vmul.f32 %v416_v41, %v416_v41 }
 0x2e1   :  { %v418_v44 = vrot.slane %v417_v42, 4 }
 0x2e2   :  { %v427_v45 = vsel %vm338_vm7, %v426_v43, 0.0  ;;  %v731_v43 = vld [vmem:[%s12168_s8] sm:$0xff] }
 0x2e3   :  { %v419_v46 = vadd.f32 %v418_v44, %v417_v42  ;;  %v428_v47 = vrot.slane %v427_v45, 4  ;;  %v732_v44 = vld [vmem:[%s12168_s8 + $0x8] sm:$0xff] }
 0x2e5   :  { %v420_v48 = vrot.slane %v419_v46, 2  ;;  %v429_v49 = vadd.f32 %v428_v47, %v427_v45  ;;  %v733_v45 = vld [vmem:[%s12168_s8 + $0x10] sm:$0xff]  ;;  %v734_v47 = vld [vmem:[%s12168_s8 + $0x18] sm:$0xff]  ;;  %s13672_s8 = sld [smem:[#allocation18_spill]] }
 0x2e7   :  { %v421_v50 = vadd.f32 %v420_v48, %v419_v46  ;;  %v430_v51 = vrot.slane %v429_v49, 2  ;;  %v11245_v46 = vpack.c.bf16 %v732_v44, %v731_v43  ;;  %v11248_v48 = vpack.c.bf16 %v734_v47, %v733_v45  ;;  %v1003_v44 = vld [vmem:[%s12183_s24 + $0x18] sm:$0xff] }
 0x2e9   :  { %v422_v52 = vrot.slane %v421_v50, 1  ;;  %v431_v53 = vadd.f32 %v430_v51, %v429_v49  ;;  %v621_v49 = vrot.slane %v466_v37, %v12358_v36 }
 0x2eb   :  { %v423_v54 = vadd.f32 %v422_v52, %v421_v50  ;;  %v432_v55 = vrot.slane %v431_v53, 1 }
 0x2ed   :  { %v425_v56 = vmul.f32 0.125, %v423_v54  ;;  %v433_v57 = vadd.f32 %v432_v55, %v431_v53 }
 0x2ef   :  { %v434_v58 = vmul.f32 0.125, %v433_v57  ;;  %v435_v59 = vmul.f32 %v425_v56, %v425_v56  ;;  %v438_v0 = vsub.f32 %v416_v41, %v425_v56 }
 0x2f1   :  { %v436_v60 = vsub.f32 %v434_v58, %v435_v59  ;;  %v443_v5 = vmul.f32 %v442_v3, %v438_v0 }
 0x2f3   :  { %v437_v61 = vmax.f32 %v436_v60, 0.0 }
 0x2f5   :  { %v444_v62 = vadd.f32 1e-05, %v437_v61 }
 0x2f7   :  { %12041 = vrsqrt.f32 %v444_v62 }
 0x301   :  { %v12042_v7 = vpop.eup %12041 }
 0x302   :  { %v446_v10 = vmul.f32 %v12042_v7, %v443_v5 }
 0x304   :  { %v451_v11 = vadd.f32 %v450_v6, %v446_v10 }
 0x306   :  { %11032 = vmatpush3.msra.mxu1 %v451_v11 }
 0x307   :  { %11034 = vmatmul.mubr.msk.f32.vlgmr.msra.gmra.mrb[2].mxu1 %vm177_vm1, %v12375_v15  ;;  %11222 = vmatprep.subr.bf16.mxu1 %v12116_v2 }
 0x308   :  { %11224 = vmatpush3.bf16.msra.mxu1 %v11223_v12  ;;  %11056 = vmatprep.mubr.msk.f32.mxu1 %vm12115_vm0, %v12114_v1 }
 0x309   :  { %11225 = vmatprep.subr.bf16.mxu1 %v12116_v2 }
 0x30c   :  { %11227 = vmatpush3.bf16.msra.mxu1 %v11226_v16 }
 0x30d   :  { %11228 = vmatprep.subr.bf16.mxu1 %v12116_v2 }
 0x310   :  { %11230 = vmatpush3.bf16.msra.mxu1 %v11229_v19  ;;  %v729_v19 = vrot.slane %v466_v37, %v12368_v4 }
 0x311   :  { %11231 = vmatprep.subr.bf16.mxu1 %v12116_v2 }
 0x314   :  { %11233 = vmatpush3.bf16.msra.mxu1 %v11232_v22 }
 0x315   :  { %11234 = vmatprep.subr.bf16.mxu1 %v12116_v2 }
 0x318   :  { %11237 = vmatpush3.bf16.msk.msra.mxu1 %vm12340_vm6, %v11235_v25  ;;  %v11251_v25 = vpack.c.bf16 %v736_v24, %v735_v23 }
 0x319   :  { %11244 = vmatprep.subr.bf16.mxu1 %v12116_v2 }
 0x3da   :  { %v533_v32 = vpop.f32.mrb[2].mxu1 }
 0x3db   :  { %v11035_v33 = vpop.f32.mrb[3].mxu1  ;;  %11057 = vmatmul.mubr.msk.f32.vlgmr.msra.gmra.mrb[4].mxu1 %vm338_vm7, %v533_v32  ;;  %v738_v32 = vld [vmem:[%s12173_s14 + $0x18] sm:$0xff]  ;;  %s13673_s14 = sld [smem:[#allocation17_spill]] }
 0x3dc   :  { %11083 = vmatprep.mubr.msk.f32.mxu1 %vm12115_vm0, %v12114_v1  ;;  %11246 = vmatpush3.bf16.msra.mxu1 %v11245_v46  ;;  %v11254_v33 = vpack.c.bf16 %v738_v32, %v737_v31  ;;  %v891_v46 = vrot.slane %v739_v26, %v12358_v36  ;;  %v1008_v31 = vld [vmem:[%s12193_s6] sm:$0xf]  ;;  %s13677_s6 = sld [smem:[#allocation20_spill]] }
 0x3dd   :  { %11247 = vmatprep.subr.bf16.mxu1 %v12116_v2  ;;  %v1082_v32 = vrot.slane %v1008_v31, %v12350_v29 }
 0x3e0   :  { %11249 = vmatpush3.bf16.msra.mxu1 %v11248_v48 }
 0x3e1   :  { %11097 = vmatprep.subr.mxu1 %v12114_v1 }
 0x4ae   :  { %v613_v39 = vpop.f32.mrb[4].mxu1 }
 0x4af   :  { %v614_v40 = vadd.f32 %v613_v39, %v540_v38  ;;  %v11058_v41 = vpop.f32.mrb[5].mxu1 }
 0x4b0   :  { %v1001_v41 = vld [vmem:[%s12183_s24 + $0x8] sm:$0xff] }
 0x4b1   :  { %v617_v42 = vmax.f32 %v614_v40, 0.0  ;;  %v1000_v40 = vld [vmem:[%s12183_s24] sm:$0xff] }
 0x4b2   :  { %v11257_v43 = vpack.c.bf16 %v1001_v41, %v1000_v40  ;;  %v1272_v41 = vld [vmem:[%s13663_s0 + $0x18] sm:$0xff] }
 0x4b3   :  { %11068 = vmatmul.mubr.msk.f32.vlgmr.msra.gmra.mrb[4].mxu0 %vm622_vm8, %v617_v42  ;;  %v1002_v42 = vld [vmem:[%s12183_s24 + $0x10] sm:$0xff]  ;;  %s13675_s24 = sld [smem:[#allocation19_spill]] }
 0x4b4   :  { %11072 = vmatprep.mubr.msk.f32.mxu0 %vm12115_vm0, %v12114_v1  ;;  %v11260_v45 = vpack.c.bf16 %v1003_v44, %v1002_v42 }
 0x586   :  { %v692_v50 = vpop.f32.mrb[4].mxu0 }
 0x587   :  { %v693_v51 = vadd.f32 %v692_v50, %v621_v49  ;;  %v11069_v52 = vpop.f32.mrb[5].mxu0 }
 0x589   :  { %v696_v53 = vmax.f32 %v693_v51, 0.0 }
 0x58b   :  { %v697_v54 = vsel %vm622_vm8, %v696_v53, 0.0  ;;  %v705_v55 = vmul.f32 %v696_v53, %v696_v53 }
 0x58c   :  { %v698_v56 = vrot.slane %v697_v54, 4 }
 0x58d   :  { %v706_v57 = vsel %vm622_vm8, %v705_v55, 0.0 }
 0x58e   :  { %v699_v58 = vadd.f32 %v698_v56, %v697_v54  ;;  %v707_v59 = vrot.slane %v706_v57, 4 }
 0x590   :  { %v700_v60 = vrot.slane %v699_v58, 2  ;;  %v708_v61 = vadd.f32 %v707_v59, %v706_v57 }
 0x592   :  { %v701_v62 = vadd.f32 %v700_v60, %v699_v58  ;;  %v709_v0 = vrot.slane %v708_v61, 2 }
 0x594   :  { %v702_v3 = vrot.slane %v701_v62, 1  ;;  %v710_v5 = vadd.f32 %v709_v0, %v708_v61 }
 0x596   :  { %v703_v6 = vadd.f32 %v702_v3, %v701_v62  ;;  %v711_v7 = vrot.slane %v710_v5, 1 }
 0x598   :  { %v704_v8 = vmul.f32 0.125, %v703_v6  ;;  %v712_v9 = vadd.f32 %v711_v7, %v710_v5 }
 0x59a   :  { %v713_v10 = vmul.f32 0.125, %v712_v9  ;;  %v714_v11 = vmul.f32 %v704_v8, %v704_v8  ;;  %v717_v16 = vsub.f32 %v696_v53, %v704_v8 }
 0x59c   :  { %v715_v12 = vsub.f32 %v713_v10, %v714_v11  ;;  %v722_v18 = vmul.f32 %v721_v17, %v717_v16  ;;  %v998_v16 = vrot.slane %v739_v26, %v12368_v4 }
 0x59e   :  { %v716_v13 = vmax.f32 %v715_v12, 0.0 }
 0x5a0   :  { %v723_v14 = vadd.f32 1e-05, %v716_v13  ;;  %v990_v13 = vrot.slane %v739_v26, %v12364_v63 }
 0x5a2   :  { %12043 = vrsqrt.f32 %v723_v14 }
 0x5ac   :  { %v12044_v20 = vpop.eup %12043 }
 0x5ad   :  { %v725_v21 = vmul.f32 %v12044_v20, %v722_v18  ;;  %v1004_v20 = vld [vmem:[%s12188_s30] sm:$0xff] }
 0x5af   :  { %v730_v22 = vadd.f32 %v729_v19, %v725_v21  ;;  %v1005_v21 = vld [vmem:[%s12188_s30 + $0x8] sm:$0xff] }
 0x5b1   :  { %11071 = vmatpush3.msra.mxu0 %v730_v22  ;;  %v11263_v22 = vpack.c.bf16 %v1005_v21, %v1004_v20 }
 0x5b2   :  { %11073 = vmatmul.mubr.msk.f32.vlgmr.msra.gmra.mrb[6].mxu0 %vm177_vm1, %v12375_v15  ;;  %11250 = vmatprep.subr.bf16.mxu0 %v12116_v2 }
 0x5b3   :  { %11094 = vmatprep.mubr.msk.f32.mxu0 %vm12115_vm0, %v12114_v1  ;;  %11252 = vmatpush3.bf16.msra.mxu0 %v11251_v25  ;;  %v1006_v25 = vld [vmem:[%s12188_s30 + $0x10] sm:$0xff] }
 0x5b4   :  { %11253 = vmatprep.subr.bf16.mxu0 %v12116_v2 }
 0x5b7   :  { %11255 = vmatpush3.bf16.msra.mxu0 %v11254_v33 }
 0x5b8   :  { %11256 = vmatprep.subr.bf16.mxu0 %v12116_v2 }
 0x685   :  { %v806_v27 = vpop.f32.mrb[6].mxu0 }
 0x686   :  { %v11074_v30 = vpop.f32.mrb[7].mxu0  ;;  %11084 = vmatmul.mubr.msk.f32.vlgmr.msra.gmra.mrb[6].mxu1 %vm622_vm8, %v806_v27  ;;  %v1007_v27 = vld [vmem:[%s12188_s30 + $0x18] sm:$0xff]  ;;  %s13676_s30 = sld [smem:[#allocation21_spill]] }
 0x687   :  { %11099 = vmatprep.mubr.msk.f32.mxu1 %vm12115_vm0, %v12114_v1  ;;  %v11266_v30 = vpack.c.bf16 %v1007_v27, %v1006_v25  ;;  %v1277_v25 = vld [vmem:[%s13665_s9] sm:$0xf] }
 0x688   :  { %v1351_v27 = vrot.slane %v1277_v25, %v12350_v29 }
 0x759   :  { %v883_v35 = vpop.f32.mrb[6].mxu1 }
 0x75a   :  { %v884_v37 = vadd.f32 %v883_v35, %v813_v34  ;;  %v11085_v38 = vpop.f32.mrb[7].mxu1 }
 0x75b   :  { %v1270_v38 = vld [vmem:[%s13663_s0 + $0x8] sm:$0xff] }
 0x75c   :  { %v887_v39 = vmax.f32 %v884_v37, 0.0  ;;  %v1269_v37 = vld [vmem:[%s13663_s0] sm:$0xff] }
 0x75d   :  { %v11269_v40 = vpack.c.bf16 %v1270_v38, %v1269_v37  ;;  %v1541_v38 = vld [vmem:[%s13666_s13 + $0x18] sm:$0xff] }
 0x75e   :  { %11095 = vmatmul.mubr.msk.f32.vlgmr.msra.gmra.mrb[8].mxu0 %vm622_vm8, %v887_v39  ;;  %v1271_v39 = vld [vmem:[%s13663_s0 + $0x10] sm:$0xff] }
 0x75f   :  { %11110 = vmatprep.mubr.msk.f32.mxu0 %vm12115_vm0, %v12114_v1  ;;  %11258 = vmatpush3.bf16.msra.mxu0 %v11257_v43  ;;  %v11272_v42 = vpack.c.bf16 %v1272_v41, %v1271_v39  ;;  %v1160_v43 = vrot.slane %v1008_v31, %v12358_v36 }
 0x760   :  { %11259 = vmatprep.subr.bf16.mxu0 %v12116_v2 }
 0x763   :  { %11261 = vmatpush3.bf16.msra.mxu0 %v11260_v45 }
 0x764   :  { %11124 = vmatprep.subr.mxu0 %v12114_v1 }
 0x831   :  { %v961_v47 = vpop.f32.mrb[8].mxu0 }
 0x832   :  { %v962_v48 = vadd.f32 %v961_v47, %v891_v46  ;;  %v11096_v49 = vpop.f32.mrb[9].mxu0 }
 0x834   :  { %v965_v50 = vmax.f32 %v962_v48, 0.0 }
 0x836   :  { %v966_v51 = vsel %vm622_vm8, %v965_v50, 0.0  ;;  %v974_v52 = vmul.f32 %v965_v50, %v965_v50 }
 0x837   :  { %v967_v53 = vrot.slane %v966_v51, 4 }
 0x838   :  { %v975_v54 = vsel %vm622_vm8, %v974_v52, 0.0 }
 0x839   :  { %v968_v55 = vadd.f32 %v967_v53, %v966_v51  ;;  %v976_v56 = vrot.slane %v975_v54, 4 }
 0x83b   :  { %v969_v57 = vrot.slane %v968_v55, 2  ;;  %v977_v58 = vadd.f32 %v976_v56, %v975_v54 }
 0x83d   :  { %v970_v59 = vadd.f32 %v969_v57, %v968_v55  ;;  %v978_v60 = vrot.slane %v977_v58, 2 }
 0x83f   :  { %v971_v61 = vrot.slane %v970_v59, 1  ;;  %v979_v62 = vadd.f32 %v978_v60, %v977_v58 }
 0x841   :  { %v972_v0 = vadd.f32 %v971_v61, %v970_v59  ;;  %v980_v3 = vrot.slane %v979_v62, 1 }
 0x843   :  { %v973_v5 = vmul.f32 0.125, %v972_v0  ;;  %v981_v6 = vadd.f32 %v980_v3, %v979_v62 }
 0x845   :  { %v982_v7 = vmul.f32 0.125, %v981_v6  ;;  %v983_v8 = vmul.f32 %v973_v5, %v973_v5  ;;  %v986_v12 = vsub.f32 %v965_v50, %v973_v5 }
 0x847   :  { %v984_v9 = vsub.f32 %v982_v7, %v983_v8  ;;  %v991_v14 = vmul.f32 %v990_v13, %v986_v12  ;;  %v1267_v12 = vrot.slane %v1008_v31, %v12368_v4 }
 0x849   :  { %v985_v10 = vmax.f32 %v984_v9, 0.0 }
 0x84b   :  { %v992_v11 = vadd.f32 1e-05, %v985_v10  ;;  %v1259_v10 = vrot.slane %v1008_v31, %v12364_v63 }
 0x84d   :  { %12045 = vrsqrt.f32 %v992_v11 }
 0x857   :  { %v12046_v17 = vpop.eup %12045 }
 0x858   :  { %v994_v18 = vmul.f32 %v12046_v17, %v991_v14  ;;  %v1273_v17 = vld [vmem:[%s13664_s5] sm:$0xff] }
 0x85a   :  { %v999_v19 = vadd.f32 %v998_v16, %v994_v18  ;;  %v1274_v18 = vld [vmem:[%s13664_s5 + $0x8] sm:$0xff] }
 0x85c   :  { %11098 = vmatpush3.msra.mxu1 %v999_v19  ;;  %v11275_v19 = vpack.c.bf16 %v1274_v18, %v1273_v17 }
 0x85d   :  { %11100 = vmatmul.mubr.msk.f32.vlgmr.msra.gmra.mrb[8].mxu1 %vm177_vm1, %v12375_v15  ;;  %11262 = vmatprep.subr.bf16.mxu1 %v12116_v2 }
 0x85e   :  { %11121 = vmatprep.mubr.msk.f32.mxu1 %vm12115_vm0, %v12114_v1  ;;  %11264 = vmatpush3.bf16.msra.mxu1 %v11263_v22  ;;  %v1275_v22 = vld [vmem:[%s13664_s5 + $0x10] sm:$0xff] }
 0x85f   :  { %11265 = vmatprep.subr.bf16.mxu1 %v12116_v2 }
 0x862   :  { %11267 = vmatpush3.bf16.msra.mxu1 %v11266_v30 }
 0x863   :  { %11268 = vmatprep.subr.bf16.mxu1 %v12116_v2 }
 0x930   :  { %v1075_v23 = vpop.f32.mrb[8].mxu1 }
 0x931   :  { %v11101_v24 = vpop.f32.mrb[9].mxu1  ;;  %11111 = vmatmul.mubr.msk.f32.vlgmr.msra.gmra.mrb[10].mxu0 %vm622_vm8, %v1075_v23  ;;  %v1276_v23 = vld [vmem:[%s13664_s5 + $0x18] sm:$0xff] }
 0x932   :  { %11126 = vmatprep.mubr.msk.f32.mxu0 %vm12115_vm0, %v12114_v1  ;;  %v11278_v24 = vpack.c.bf16 %v1276_v23, %v1275_v22 }
 0xa04   :  { %v1152_v33 = vpop.f32.mrb[10].mxu0 }
 0xa05   :  { %v1153_v26 = vadd.f32 %v1152_v33, %v1082_v32  ;;  %v11112_v34 = vpop.f32.mrb[11].mxu0 }
 0xa06   :  { %v1539_v34 = vld [vmem:[%s13666_s13 + $0x8] sm:$0xff] }
 0xa07   :  { %v1156_v35 = vmax.f32 %v1153_v26, 0.0  ;;  %v1538_v26 = vld [vmem:[%s13666_s13] sm:$0xff] }
 0xa08   :  { %v11281_v37 = vpack.c.bf16 %v1539_v34, %v1538_v26  ;;  %v1886_v26 = vld [vmem:[%s13669_s25 + $0x28] sm:$0xff]  ;;  %v1888_v34 = vld [vmem:[%s13669_s25 + $0x38] sm:$0xff] }
 0xa09   :  { %11122 = vmatmul.mubr.msk.f32.vlgmr.msra.gmra.mrb[10].mxu1 %vm622_vm8, %v1156_v35  ;;  %v1540_v35 = vld [vmem:[%s13666_s13 + $0x10] sm:$0xff] }
 0xa0a   :  { %11137 = vmatprep.mubr.msk.f32.mxu1 %vm12115_vm0, %v12114_v1  ;;  %11270 = vmatpush3.bf16.msra.mxu1 %v11269_v40  ;;  %v11284_v39 = vpack.c.bf16 %v1541_v38, %v1540_v35  ;;  %v1429_v40 = vrot.slane %v1277_v25, %v12358_v36  ;;  %v1885_v38 = vld [vmem:[%s13669_s25 + $0x20] sm:$0xff] }
 0xa0b   :  { %11271 = vmatprep.subr.bf16.mxu1 %v12116_v2 }
 0xa0e   :  { %11273 = vmatpush3.bf16.msra.mxu1 %v11272_v42 }
 0xa0f   :  { %11151 = vmatprep.subr.mxu1 %v12114_v1 }
 0xadc   :  { %v1230_v44 = vpop.f32.mrb[10].mxu1 }
 0xadd   :  { %v1231_v45 = vadd.f32 %v1230_v44, %v1160_v43  ;;  %v11123_v46 = vpop.f32.mrb[11].mxu1 }
 0xadf   :  { %v1234_v47 = vmax.f32 %v1231_v45, 0.0 }
 0xae1   :  { %v1235_v48 = vsel %vm622_vm8, %v1234_v47, 0.0  ;;  %v1243_v49 = vmul.f32 %v1234_v47, %v1234_v47 }
 0xae2   :  { %v1236_v50 = vrot.slane %v1235_v48, 4 }
 0xae3   :  { %v1244_v51 = vsel %vm622_vm8, %v1243_v49, 0.0 }
 0xae4   :  { %v1237_v52 = vadd.f32 %v1236_v50, %v1235_v48  ;;  %v1245_v53 = vrot.slane %v1244_v51, 4 }
 0xae6   :  { %v1238_v54 = vrot.slane %v1237_v52, 2  ;;  %v1246_v55 = vadd.f32 %v1245_v53, %v1244_v51 }
 0xae8   :  { %v1239_v56 = vadd.f32 %v1238_v54, %v1237_v52  ;;  %v1247_v57 = vrot.slane %v1246_v55, 2 }
 0xaea   :  { %v1240_v58 = vrot.slane %v1239_v56, 1  ;;  %v1248_v59 = vadd.f32 %v1247_v57, %v1246_v55 }
 0xaec   :  { %v1241_v60 = vadd.f32 %v1240_v58, %v1239_v56  ;;  %v1249_v61 = vrot.slane %v1248_v59, 1 }
 0xaee   :  { %v1242_v62 = vmul.f32 0.125, %v1241_v60  ;;  %v1250_v0 = vadd.f32 %v1249_v61, %v1248_v59 }
 0xaf0   :  { %v1251_v3 = vmul.f32 0.125, %v1250_v0  ;;  %v1252_v5 = vmul.f32 %v1242_v62, %v1242_v62  ;;  %v1255_v9 = vsub.f32 %v1234_v47, %v1242_v62 }
 0xaf2   :  { %v1253_v6 = vsub.f32 %v1251_v3, %v1252_v5  ;;  %v1260_v11 = vmul.f32 %v1259_v10, %v1255_v9  ;;  %v1536_v9 = vrot.slane %v1277_v25, %v12368_v4 }
 0xaf4   :  { %v1254_v7 = vmax.f32 %v1253_v6, 0.0 }
 0xaf6   :  { %v1261_v8 = vadd.f32 1e-05, %v1254_v7  ;;  %v1528_v7 = vrot.slane %v1277_v25, %v12364_v63 }
 0xaf8   :  { %12047 = vrsqrt.f32 %v1261_v8 }
 0xb02   :  { %v12048_v13 = vpop.eup %12047 }
 0xb03   :  { %v1263_v14 = vmul.f32 %v12048_v13, %v1260_v11  ;;  %v1542_v13 = vld [vmem:[%s13667_s17] sm:$0xff] }
 0xb05   :  { %v1268_v16 = vadd.f32 %v1267_v12, %v1263_v14  ;;  %v1543_v14 = vld [vmem:[%s13667_s17 + $0x8] sm:$0xff] }
 0xb07   :  { %11125 = vmatpush3.msra.mxu0 %v1268_v16  ;;  %v11287_v16 = vpack.c.bf16 %v1543_v14, %v1542_v13  ;;  %v1807_v14 = vld [vmem:[%s13670_s29] sm:$0x3] }
 0xb08   :  { %11127 = vmatmul.mubr.msk.f32.vlgmr.msra.gmra.mrb[12].mxu0 %vm177_vm1, %v12375_v15  ;;  %11274 = vmatprep.subr.bf16.mxu0 %v12116_v2 }
 0xb09   :  { %11148 = vmatprep.mubr.msk.f32.mxu0 %vm12115_vm0, %v12114_v1  ;;  %11276 = vmatpush3.bf16.msra.mxu0 %v11275_v19  ;;  %v1545_v19 = vld [vmem:[%s13667_s17 + $0x18] sm:$0xff] }
 0xb0a   :  { %11277 = vmatprep.subr.bf16.mxu0 %v12116_v2 }
 0xb0d   :  { %11279 = vmatpush3.bf16.msra.mxu0 %v11278_v24 }
 0xb0e   :  { %11280 = vmatprep.subr.bf16.mxu0 %v12116_v2 }
 0xbdb   :  { %v1344_v20 = vpop.f32.mrb[12].mxu0 }
 0xbdc   :  { %v11128_v21 = vpop.f32.mrb[13].mxu0  ;;  %11138 = vmatmul.mubr.msk.f32.vlgmr.msra.gmra.mrb[12].mxu1 %vm622_vm8, %v1344_v20 }
 0xbdd   :  { %11153 = vmatprep.mubr.msk.f32.mxu1 %vm12115_vm0, %v12114_v1  ;;  %v1546_v21 = vld [vmem:[%s13668_s21] sm:$0xf] }
 0xcaf   :  { %v1421_v30 = vpop.f32.mrb[12].mxu1 }
 0xcb0   :  { %v1422_v31 = vadd.f32 %v1421_v30, %v1351_v27  ;;  %v11139_v32 = vpop.f32.mrb[13].mxu1  ;;  %v1882_v27 = vld [vmem:[%s13669_s25 + $0x8] sm:$0xff]  ;;  %v1884_v30 = vld [vmem:[%s13669_s25 + $0x18] sm:$0xff] }
 0xcb1   :  { %v11292_v32 = vpack.c.bf16 %v1884_v30, %v1882_v27  ;;  %v1997_v30 = vld [vmem:[%s13671_s3 + $0xa0] sm:$0xff] }
 0xcb2   :  { %v1425_v33 = vmax.f32 %v1422_v31, 0.0  ;;  %v1881_v31 = vld [vmem:[%s13669_s25] sm:$0xff] }
 0xcb4   :  { %11149 = vmatmul.mubr.msk.f32.vlgmr.msra.gmra.mrb[14].mxu0 %vm622_vm8, %v1425_v33  ;;  %v1883_v33 = vld [vmem:[%s13669_s25 + $0x10] sm:$0xff] }
 0xcb5   :  { %11164 = vmatprep.mubr.msk.f32.mxu0 %vm12115_vm0, %v12114_v1  ;;  %11282 = vmatpush3.bf16.msra.mxu0 %v11281_v37  ;;  %v11294_v35 = vpack.c.bf16 %v1883_v33, %v1881_v31  ;;  %v11296_v37 = vpack.c.bf16 %v1888_v34, %v1886_v26  ;;  %v1998_v31 = vld [vmem:[%s13671_s3 + $0xa8] sm:$0xff] }
 0xcb6   :  { %11283 = vmatprep.subr.bf16.mxu0 %v12116_v2  ;;  %v11308_v33 = vpack.c.bf16 %v1998_v31, %v1997_v30  ;;  %v1982_v26 = vld [vmem:[%s13671_s3 + $0x28] sm:$0xff]  ;;  %v11402_v31 = vld [vmem:[%s13672_s8 + $0xc0] sm:$0xff]  }
 0xcb9   :  { %11285 = vmatpush3.bf16.msra.mxu0 %v11284_v39  ;;  %v1887_v39 = vld [vmem:[%s13669_s25 + $0x30] sm:$0xff] }
 0xcba   :  { %11178 = vmatprep.subr.mxu0 %v12114_v1 }
 0xd87   :  { %v1499_v41 = vpop.f32.mrb[14].mxu0 }
 0xd88   :  { %v1500_v42 = vadd.f32 %v1499_v41, %v1429_v40  ;;  %v11150_v43 = vpop.f32.mrb[15].mxu0  ;;  %v11298_v40 = vpack.c.bf16 %v1887_v39, %v1885_v38  ;;  %v1698_v41 = vrot.slane %v1546_v21, %v12358_v36  ;;  %v1983_v38 = vld [vmem:[%s13671_s3 + $0x30] sm:$0xff] }
 0xd8a   :  { %v1503_v44 = vmax.f32 %v1500_v42, 0.0 }
 0xd8c   :  { %v1504_v45 = vsel %vm622_vm8, %v1503_v44, 0.0  ;;  %v1512_v46 = vmul.f32 %v1503_v44, %v1503_v44 }
 0xd8d   :  { %v1505_v47 = vrot.slane %v1504_v45, 4 }
 0xd8e   :  { %v1513_v48 = vsel %vm622_vm8, %v1512_v46, 0.0 }
 0xd8f   :  { %v1506_v49 = vadd.f32 %v1505_v47, %v1504_v45  ;;  %v1514_v50 = vrot.slane %v1513_v48, 4 }
 0xd91   :  { %v1507_v51 = vrot.slane %v1506_v49, 2  ;;  %v1515_v52 = vadd.f32 %v1514_v50, %v1513_v48 }
 0xd93   :  { %v1508_v53 = vadd.f32 %v1507_v51, %v1506_v49  ;;  %v1516_v54 = vrot.slane %v1515_v52, 2 }
 0xd95   :  { %v1509_v55 = vrot.slane %v1508_v53, 1  ;;  %v1517_v56 = vadd.f32 %v1516_v54, %v1515_v52 }
 0xd97   :  { %v1510_v57 = vadd.f32 %v1509_v55, %v1508_v53  ;;  %v1518_v58 = vrot.slane %v1517_v56, 1 }
 0xd99   :  { %v1511_v59 = vmul.f32 0.125, %v1510_v57  ;;  %v1519_v60 = vadd.f32 %v1518_v58, %v1517_v56 }
 0xd9b   :  { %v1520_v61 = vmul.f32 0.125, %v1519_v60  ;;  %v1521_v62 = vmul.f32 %v1511_v59, %v1511_v59  ;;  %v1524_v6 = vsub.f32 %v1503_v44, %v1511_v59 }
 0xd9d   :  { %v1522_v0 = vsub.f32 %v1520_v61, %v1521_v62  ;;  %v1529_v8 = vmul.f32 %v1528_v7, %v1524_v6 }
 0xd9f   :  { %v1523_v3 = vmax.f32 %v1522_v0, 0.0 }
 0xda1   :  { %v1530_v5 = vadd.f32 1e-05, %v1523_v3 }
 0xda3   :  { %12049 = vrsqrt.f32 %v1530_v5 }
 0xdad   :  { %v12050_v10 = vpop.eup %12049 }
 0xdae   :  { %v1532_v11 = vmul.f32 %v12050_v10, %v1529_v8  ;;  %v1797_v8 = vrot.slane %v1546_v21, %v12364_v63  ;;  %v1805_v10 = vrot.slane %v1546_v21, %v12368_v4 }
 0xdb0   :  { %v1537_v12 = vadd.f32 %v1536_v9, %v1532_v11 }
 0xdb2   :  { %11152 = vmatpush3.msra.mxu1 %v1537_v12 }
 0xdb3   :  { %11154 = vmatmul.mubr.msk.f32.vlgmr.msra.gmra.mrb[14].mxu1 %vm177_vm1, %v12375_v15  ;;  %11286 = vmatprep.subr.bf16.mxu1 %v12116_v2  ;;  %v1544_v15 = vld [vmem:[%s13667_s17 + $0x10] sm:$0xff] }
 0xdb4   :  { %11175 = vmatprep.mubr.msk.f32.mxu1 %vm12115_vm0, %v12114_v1  ;;  %11288 = vmatpush3.bf16.msra.mxu1 %v11287_v16  ;;  %v11290_v20 = vpack.c.bf16 %v1545_v19, %v1544_v15  ;;  %v1993_v16 = vld [vmem:[%s13671_s3 + $0x80] sm:$0xff]  ;;  %v1978_v19 = vld [vmem:[%s13671_s3 + $0x8] sm:$0xff] }
 0xdb5   :  { %11289 = vmatprep.subr.bf16.mxu1 %v12116_v2  ;;  %v1620_v2 = vrot.slane %v1546_v21, %v12350_v29 }
 0xdb8   :  { %11291 = vmatpush3.bf16.msra.mxu1 %v11290_v20  ;;  %v11386_v20 = vld [vmem:[%s13672_s8 + $0x40] sm:$0xff]  }
 0xdb9   :  { %11293 = vmatprep.subr.bf16.mxu1 %v11292_v32  ;;  %v1981_v32 = vld [vmem:[%s13671_s3 + $0x20] sm:$0xff] }
 0xdba   :  { %v11310_v34 = vpack.c.bf16 %v1982_v26, %v1981_v32  ;;  %v11404_v26 = vld [vmem:[%s13672_s8 + $0x140] sm:$0xff]  }
 0xe86   :  { %v1613_v17 = vpop.f32.mrb[14].mxu1 }
 0xe87   :  { %v11155_v18 = vpop.f32.mrb[15].mxu1  ;;  %11165 = vmatmul.mubr.msk.f32.vlgmr.msra.gmra.mrb[16].mxu0 %vm622_vm8, %v1613_v17  ;;  %v1994_v17 = vld [vmem:[%s13671_s3 + $0x88] sm:$0xff] }
 0xe88   :  { %11180 = vmatprep.mubr.msk.f32.mxu0 %vm12115_vm0, %v12114_v1  ;;  %v1977_v18 = vld [vmem:[%s13671_s3] sm:$0xff]  ;;  %v11300_v15 = vpack.c.bf16 %v1994_v17, %v1993_v16  ;;  %v11398_v17 = vld [vmem:[%s13672_s8 + $0x70] sm:$0xff]  }
 0xe89   :  { %v11302_v21 = vpack.c.bf16 %v1978_v19, %v1977_v18  ;;  %v2007_v19 = vld [vmem:[%s13671_s3 + $0xf0] sm:$0xff] }
 0xf5a   :  { %v1690_v22 = vpop.f32.mrb[16].mxu0 }
 0xf5b   :  { %v1691_v23 = vadd.f32 %v1690_v22, %v1620_v2  ;;  %v11166_v24 = vpop.f32.mrb[17].mxu0  ;;  %v1995_v2 = vld [vmem:[%s13671_s3 + $0x90] sm:$0xff]  ;;  %v1996_v22 = vld [vmem:[%s13671_s3 + $0x98] sm:$0xff] }
 0xf5c   :  { %v11304_v24 = vpack.c.bf16 %v1996_v22, %v1995_v2  ;;  %v1991_v2 = vld [vmem:[%s13671_s3 + $0x70] sm:$0xff]  ;;  %v1992_v22 = vld [vmem:[%s13671_s3 + $0x78] sm:$0xff] }
 0xf5d   :  { %v1694_v25 = vmax.f32 %v1691_v23, 0.0  ;;  %v1979_v23 = vld [vmem:[%s13671_s3 + $0x10] sm:$0xff] }
 0xf5f   :  { %11176 = vmatmul.mubr.msk.f32.vlgmr.msra.gmra.mrb[16].mxu1 %vm622_vm8, %v1694_v25  ;;  %v1980_v25 = vld [vmem:[%s13671_s3 + $0x18] sm:$0xff] }
 0xf60   :  { %1968 = vmatprep.mubr.f32.mxu1 %v12114_v1  ;;  %11295 = vmatpush1.bf16.msra.mxu1 %v11294_v35  ;;  %v11306_v27 = vpack.c.bf16 %v1980_v25, %v1979_v23  ;;  %v1999_v35 = vld [vmem:[%s13671_s3 + $0xb0] sm:$0xff]  ;;  %v11330_v23 = vpack.c.bf16 %v1992_v22, %v1991_v2  ;;  %v2086_v25 = vld [vmem:[%s13673_s14] sm:$0xff] }
 0xf61   :  { %11297 = vmatprep.subr.bf16.mxu1 %v11296_v37  ;;  %v2000_v37 = vld [vmem:[%s13671_s3 + $0xb8] sm:$0xff]  ;;  %v11477_v2 = vld [vmem:[%s13672_s8 + $0x350] sm:$0xff]  }
 0xf62   :  { %v11312_v39 = vpack.c.bf16 %v2000_v37, %v1999_v35  ;;  %v11405_v35 = vld [vmem:[%s13672_s8 + $0x100] sm:$0xff]   ;;  %v11408_v37 = vld [vmem:[%s13672_s8 + $0x148] sm:$0xff]   ;;  %v11478_v22 = vld [vmem:[%s13672_s8 + $0x310] sm:$0xff]  }
 0xf64   :  { %11299 = vmatpush1.bf16.msra.mxu1 %v11298_v40  ;;  %v1984_v40 = vld [vmem:[%s13671_s3 + $0x38] sm:$0xff] }
 0xf65   :  { %10369 = vmatprep.subr.bf16.mxu1 %v11386_v20  ;;  %v2008_v20 = vld [vmem:[%s13671_s3 + $0xf8] sm:$0xff] }
0x1032   :  { %v1768_v42 = vpop.f32.mrb[16].mxu1 }
0x1033   :  { %v1769_v43 = vadd.f32 %v1768_v42, %v1698_v41  ;;  %v11177_v44 = vpop.f32.mrb[17].mxu1  ;;  %v11314_v41 = vpack.c.bf16 %v1984_v40, %v1983_v38  ;;  %v2001_v42 = vld [vmem:[%s13671_s3 + $0xc0] sm:$0xff]  ;;  %v11409_v38 = vld [vmem:[%s13672_s8 + $0x108] sm:$0xff]   ;;  %v11413_v40 = vld [vmem:[%s13672_s8 + $0x110] sm:$0xff]  }
0x1034   :  { %v1985_v44 = vld [vmem:[%s13671_s3 + $0x40] sm:$0xff] }
0x1035   :  { %v1772_v45 = vmax.f32 %v1769_v43, 0.0  ;;  %v2002_v43 = vld [vmem:[%s13671_s3 + $0xc8] sm:$0xff] }
0x1037   :  { %v1773_v46 = vsel %vm622_vm8, %v1772_v45, 0.0  ;;  %v1781_v47 = vmul.f32 %v1772_v45, %v1772_v45 }
0x1038   :  { %v1774_v48 = vrot.slane %v1773_v46, 4 }
0x1039   :  { %v1782_v49 = vsel %vm622_vm8, %v1781_v47, 0.0 }
0x103a   :  { %v1775_v50 = vadd.f32 %v1774_v48, %v1773_v46  ;;  %v1783_v51 = vrot.slane %v1782_v49, 4  ;;  %v1986_v46 = vld [vmem:[%s13671_s3 + $0x48] sm:$0xff]  ;;  %v2003_v48 = vld [vmem:[%s13671_s3 + $0xd0] sm:$0xff] }
0x103b   :  { %v11318_v47 = vpack.c.bf16 %v1986_v46, %v1985_v44  ;;  %v11421_v44 = vld [vmem:[%s13672_s8 + $0x120] sm:$0xff]   ;;  %v11425_v46 = vld [vmem:[%s13672_s8 + $0x128] sm:$0xff]  }
0x103c   :  { %v1776_v52 = vrot.slane %v1775_v50, 2  ;;  %v1784_v53 = vadd.f32 %v1783_v51, %v1782_v49  ;;  %v2004_v49 = vld [vmem:[%s13671_s3 + $0xd8] sm:$0xff] }
0x103d   :  { %v11320_v51 = vpack.c.bf16 %v2004_v49, %v2003_v48  ;;  %v11429_v48 = vld [vmem:[%s13672_s8 + $0x130] sm:$0xff]   ;;  %v3021_v49 = vcombine.high %v2086_v25, %v2086_v25 }
0x103e   :  { %v1777_v54 = vadd.f32 %v1776_v52, %v1775_v50  ;;  %v1785_v55 = vrot.slane %v1784_v53, 2  ;;  %v1987_v50 = vld [vmem:[%s13671_s3 + $0x50] sm:$0xff]  ;;  %v1988_v52 = vld [vmem:[%s13671_s3 + $0x58] sm:$0xff] }
0x1040   :  { %v1778_v56 = vrot.slane %v1777_v54, 1  ;;  %v1786_v57 = vadd.f32 %v1785_v55, %v1784_v53  ;;  %v11322_v53 = vpack.c.bf16 %v1988_v52, %v1987_v50  ;;  %v2006_v55 = vld [vmem:[%s13671_s3 + $0xe8] sm:$0xff]  ;;  %v11433_v52 = vld [vmem:[%s13672_s8 + $0x138] sm:$0xff]  }
0x1042   :  { %v1779_v58 = vadd.f32 %v1778_v56, %v1777_v54  ;;  %v1787_v59 = vrot.slane %v1786_v57, 1  ;;  %v2005_v54 = vld [vmem:[%s13671_s3 + $0xe0] sm:$0xff] }
0x1043   :  { %v1989_v56 = vld [vmem:[%s13671_s3 + $0x60] sm:$0xff] }
0x1044   :  { %v1780_v60 = vmul.f32 0.125, %v1779_v58  ;;  %v1788_v61 = vadd.f32 %v1787_v59, %v1786_v57  ;;  %v11324_v57 = vpack.c.bf16 %v2006_v55, %v2005_v54  ;;  %v1990_v58 = vld [vmem:[%s13671_s3 + $0x68] sm:$0xff] }
0x1045   :  { %v11326_v59 = vpack.c.bf16 %v1990_v58, %v1989_v56  ;;  %v11437_v56 = vld [vmem:[%s13672_s8 + $0x240] sm:$0xff]   ;;  %v11441_v58 = vld [vmem:[%s13672_s8 + $0x248] sm:$0xff]  }
0x1046   :  { %v1789_v62 = vmul.f32 0.125, %v1788_v61  ;;  %v1790_v0 = vmul.f32 %v1780_v60, %v1780_v60  ;;  %v1793_v7 = vsub.f32 %v1772_v45, %v1780_v60  ;;  %v11316_v45 = vpack.c.bf16 %v2002_v43, %v2001_v42  ;;  %v11387_v60 = vld [vmem:[%s13672_s8] sm:$0xff]   ;;  %v11388_v61 = vld [vmem:[%s13672_s8 + $0x48] sm:$0xff]   ;;  %v11417_v42 = vld [vmem:[%s13672_s8 + $0x118] sm:$0xff]  }
0x1047   :  { %v11420_v43 = vld [vmem:[%s13672_s8 + $0x160] sm:$0xff]  }
0x1048   :  { %v1791_v3 = vsub.f32 %v1789_v62, %v1790_v0  ;;  %v1798_v9 = vmul.f32 %v1797_v8, %v1793_v7  ;;  %v11392_v7 = vld [vmem:[%s13672_s8 + $0x58] sm:$0xff]  }
0x1049   :  { %v11393_v8 = vld [vmem:[%s13672_s8 + $0x18] sm:$0xff]  }
0x104a   :  { %v1792_v5 = vmax.f32 %v1791_v3, 0.0  ;;  %v11389_v3 = vld [vmem:[%s13672_s8 + $0x8] sm:$0xff]  }
0x104c   :  { %v1799_v6 = vadd.f32 1e-05, %v1792_v5  ;;  %v11390_v5 = vld [vmem:[%s13672_s8 + $0x50] sm:$0xff]  }
0x104e   :  { %12051 = vrsqrt.f32 %v1799_v6  ;;  %v11391_v6 = vld [vmem:[%s13672_s8 + $0x10] sm:$0xff]  }
0x1058   :  { %v12052_v11 = vpop.eup %12051 }
0x1059   :  { %v1801_v12 = vmul.f32 %v12052_v11, %v1798_v9  ;;  %v11394_v9 = vld [vmem:[%s13672_s8 + $0x60] sm:$0xff]   ;;  %v11396_v11 = vld [vmem:[%s13672_s8 + $0x68] sm:$0xff]  }
0x105b   :  { %v1806_v13 = vadd.f32 %v1805_v10, %v1801_v12  ;;  %v11395_v10 = vld [vmem:[%s13672_s8 + $0x20] sm:$0xff]   ;;  %v11397_v12 = vld [vmem:[%s13672_s8 + $0x28] sm:$0xff]  }
0x105d   :  { %11179 = vmatpush3.msra.mxu0 %v1806_v13  ;;  %v12118_v13 = vmov 1966171168  }
0x105e   :  { %11181 = vmatmul.mubr.msk.f32.vlgmr.msra.gmra.mrb[18].mxu0 %vm177_vm1, %v1807_v14  ;;  %11301 = vmatprep.subr.bf16.mxu0 %v11300_v15  ;;  %v3023_v14 = vunpack.c.l.s4 %v12118_v13  ;;  %v11399_v15 = vld [vmem:[%s13672_s8 + $0x30] sm:$0xff]   ;;  %v11466_v13 = vld [vmem:[%s13672_s8 + $0x238] sm:$0xff]  }
0x105f   :  { %11303 = vmatpush3.bf16.msra.mxu0 %v11302_v21  ;;  %v11328_v21 = vpack.c.bf16 %v2008_v20, %v2007_v19  ;;  %v11470_v19 = vld [vmem:[%s13672_s8 + $0x300] sm:$0xff]   ;;  %v11473_v20 = vld [vmem:[%s13672_s8 + $0x348] sm:$0xff]  }
0x1060   :  { %11305 = vmatprep.subr.bf16.mxu0 %v11304_v24  ;;  %v3024_v16 = vunpack.c.0.s8 %v3023_v14  ;;  %v11400_v24 = vld [vmem:[%s13672_s8 + $0x78] sm:$0xff]  }
0x1062   :  { %v12585_v18 = vsub.s32 %v3024_v16, %v12347_v28 }
0x1063   :  { %11307 = vmatpush3.bf16.msra.mxu0 %v11306_v27  ;;  %v11401_v27 = vld [vmem:[%s13672_s8 + $0x38] sm:$0xff]  }
0x1064   :  { %11309 = vmatprep.subr.bf16.mxu0 %v11308_v33  ;;  %v3028_v30 = vrot.slane %v2086_v25, %v12585_v18  ;;  %v3035_v50 = vrot.slane %v3021_v49, %v12585_v18  ;;  %v11485_v25 = vld [vmem:[%s13672_s8 + $0x360] sm:$0xff]   ;;  %v11514_v49 = vld [vmem:[%s13672_s8 + $0x458] sm:$0xff]  }
0x1066   :  { %v3036_v32 = vcombine.high %v3028_v30, %v3028_v30  ;;  %v12626_v55 = vrot.slane %v3035_v50, %v12585_v18 }
0x1067   :  { %11311 = vmatpush3.bf16.msra.mxu0 %v11310_v34  ;;  %v12602_v34 = vrot.slane %v3028_v30, %v12585_v18  ;;  %v11489_v30 = vld [vmem:[%s13672_s8 + $0x368] sm:$0xff]  }
0x1068   :  { %11313 = vmatprep.subr.bf16.mxu0 %v11312_v39  ;;  %v12598_v33 = vrot.slane %v3036_v32, %v12585_v18  ;;  %v11412_v39 = vld [vmem:[%s13672_s8 + $0x150] sm:$0xff]  }
0x1069   :  { %v11493_v32 = vld [vmem:[%s13672_s8 + $0x370] sm:$0xff]  }
0x106b   :  { %11315 = vmatpush3.bf16.msra.mxu0 %v11314_v41  ;;  %v11416_v41 = vld [vmem:[%s13672_s8 + $0x158] sm:$0xff]  }
0x106c   :  { %11317 = vmatprep.subr.bf16.mxu0 %v11316_v45  ;;  %v11424_v45 = vld [vmem:[%s13672_s8 + $0x168] sm:$0xff]  }
0x106f   :  { %11319 = vmatpush3.bf16.msra.mxu0 %v11318_v47  ;;  %v11428_v47 = vld [vmem:[%s13672_s8 + $0x170] sm:$0xff]  }
0x1070   :  { %11321 = vmatprep.subr.bf16.mxu0 %v11320_v51  ;;  %v11432_v51 = vld [vmem:[%s13672_s8 + $0x178] sm:$0xff]  }
0x1073   :  { %11323 = vmatpush3.bf16.msra.mxu0 %v11322_v53  ;;  %v3037_v53 = vcombine.high %v3035_v50, %v3035_v50  ;;  %v11515_v50 = vld [vmem:[%s13672_s8 + $0x418] sm:$0xff]  }
0x1074   :  { %11325 = vmatprep.subr.bf16.mxu0 %v11324_v57  ;;  %v11438_v57 = vld [vmem:[%s13672_s8 + $0x200] sm:$0xff]  }
0x1075   :  { %v12623_v54 = vrot.slane %v3037_v53, %v12585_v18  ;;  %v1889_v53 = vld [vmem:[%s13674_s19] sm:$0x3] }
0x1077   :  { %11327 = vmatpush3.bf16.msra.mxu0 %v11326_v59  ;;  %v11442_v59 = vld [vmem:[%s13672_s8 + $0x208] sm:$0xff]  }
0x1078   :  { %11329 = vmatprep.subr.bf16.mxu0 %v11328_v21  ;;  %v11474_v21 = vld [vmem:[%s13672_s8 + $0x308] sm:$0xff]  }
0x107b   :  { %11331 = vmatpush3.bf16.msra.mxu0 %v11330_v23  ;;  %v11481_v23 = vld [vmem:[%s13672_s8 + $0x358] sm:$0xff]  }
0x107c   :  { %10391 = vmatprep.subr.bf16.mxu0 %v11402_v31  ;;  %v11490_v31 = vld [vmem:[%s13672_s8 + $0x328] sm:$0xff]  }
0x1131   :  { %v1877_v62 = vpop.f32.mrb[18].mxu0 }
0x1132   :  { %9532 = vmatmul.mubr.msk.f32.vlgmr.msra.gmra.mrb[18].mxu1 %vm622_vm8, %v1877_v62  ;;  %v11182_v0 = vpop.f32.mrb[19].mxu0  ;;  %v11449_v62 = vld [vmem:[%s13672_s8 + $0x258] sm:$0xff]  }
0x1133   :  { %10370 = vmatpush3.bf16.msra.mxu1 %v11387_v60  ;;  %6203 = vmatprep.mubr.bf16.mxu1 %v12598_v33  ;;  %v11445_v60 = vld [vmem:[%s13672_s8 + $0x250] sm:$0xff]   ;;  %v11450_v0 = vld [vmem:[%s13672_s8 + $0x218] sm:$0xff]  }
0x1134   :  { %10371 = vmatprep.subr.bf16.mxu1 %v11388_v61  ;;  %v11446_v61 = vld [vmem:[%s13672_s8 + $0x210] sm:$0xff]  }
0x1137   :  { %10372 = vmatpush3.bf16.msra.mxu1 %v11389_v3  ;;  %v11453_v3 = vld [vmem:[%s13672_s8 + $0x260] sm:$0xff]  }
0x1138   :  { %10373 = vmatprep.subr.bf16.mxu1 %v11390_v5  ;;  %v11454_v5 = vld [vmem:[%s13672_s8 + $0x220] sm:$0xff]  }
0x113b   :  { %10374 = vmatpush3.bf16.msra.mxu1 %v11391_v6  ;;  %v11457_v6 = vld [vmem:[%s13672_s8 + $0x268] sm:$0xff]  }
0x113c   :  { %10375 = vmatprep.subr.bf16.mxu1 %v11392_v7  ;;  %v11458_v7 = vld [vmem:[%s13672_s8 + $0x228] sm:$0xff]  }
0x113f   :  { %10376 = vmatpush3.bf16.msra.mxu1 %v11393_v8  ;;  %v11461_v8 = vld [vmem:[%s13672_s8 + $0x270] sm:$0xff]  }
0x1140   :  { %10377 = vmatprep.subr.bf16.mxu1 %v11394_v9  ;;  %v11462_v9 = vld [vmem:[%s13672_s8 + $0x230] sm:$0xff]  }
0x1143   :  { %10378 = vmatpush3.bf16.msra.mxu1 %v11395_v10  ;;  %v2087_v10 = vld [vmem:[%s13673_s14 + $0x8] sm:$0xff] }
0x1144   :  { %10379 = vmatprep.subr.bf16.mxu1 %v11396_v11  ;;  %v3077_v11 = vrot.slane %v2087_v10, %v12585_v18 }
0x1146   :  { %v3085_v14 = vcombine.high %v3077_v11, %v3077_v11 }
0x1147   :  { %10380 = vmatpush3.bf16.msra.mxu1 %v11397_v12  ;;  %v11465_v12 = vld [vmem:[%s13672_s8 + $0x278] sm:$0xff]  }
0x1148   :  { %10381 = vmatprep.subr.bf16.mxu1 %v11398_v17  ;;  %v12649_v16 = vrot.slane %v3085_v14, %v12585_v18  ;;  %v12652_v17 = vrot.slane %v3077_v11, %v12585_v18  ;;  %v3068_v11 = vcombine.high %v12598_v33, %v12598_v33  ;;  %v11407_v33 = vld [vmem:[%s13672_s8 + $0x88] sm:$0xff]  }
0x114b   :  { %10382 = vmatpush3.bf16.msra.mxu1 %v11399_v15  ;;  %v11469_v15 = vld [vmem:[%s13672_s8 + $0x340] sm:$0xff]  }
0x114c   :  { %10383 = vmatprep.subr.bf16.mxu1 %v11400_v24  ;;  %v11482_v24 = vld [vmem:[%s13672_s8 + $0x318] sm:$0xff]  }
0x114f   :  { %10384 = vmatpush3.bf16.msra.mxu1 %v11401_v27  ;;  %v11486_v27 = vld [vmem:[%s13672_s8 + $0x320] sm:$0xff]  }
0x1150   :  { %10413 = vmatprep.subr.bf16.mxu1 %v11404_v26  ;;  %v11494_v26 = vld [vmem:[%s13672_s8 + $0x330] sm:$0xff]  }
0x1152   :  { %6204 = vmatmul.mubr.bf16.vlgmr.msra.gmra.mrb[20].mxu1 %v12602_v34 }
0x1153   :  { %10414 = vmatpush3.bf16.msra.mxu1 %v11405_v35  ;;  %6283 = vmatprep.mubr.bf16.mxu1 %v12623_v54  ;;  %v3070_v35 = vcombine.high %v2087_v10, %v2087_v10  ;;  %v11403_v10 = vld [vmem:[%s13672_s8 + $0x80] sm:$0xff]  }
0x1154   :  { %10415 = vmatprep.subr.bf16.mxu1 %v11408_v37 }
0x1155   :  { %v3084_v37 = vrot.slane %v3070_v35, %v12585_v18  ;;  %v11546_v35 = vld [vmem:[%s13672_s8 + $0x558] sm:$0xff]  }
0x1157   :  { %10416 = vmatpush3.bf16.msra.mxu1 %v11409_v38  ;;  %v11497_v38 = vld [vmem:[%s13672_s8 + $0x378] sm:$0xff]  }
0x1158   :  { %10417 = vmatprep.subr.bf16.mxu1 %v11412_v39  ;;  %v11498_v39 = vld [vmem:[%s13672_s8 + $0x338] sm:$0xff]  }
0x115b   :  { %10418 = vmatpush3.bf16.msra.mxu1 %v11413_v40  ;;  %v3086_v40 = vcombine.high %v3084_v37, %v3084_v37 }
0x115c   :  { %10419 = vmatprep.subr.bf16.mxu1 %v11416_v41 }
0x115d   :  { %v12674_v41 = vrot.slane %v3086_v40, %v12585_v18  ;;  %v11550_v40 = vld [vmem:[%s13672_s8 + $0x560] sm:$0xff]  }
0x115f   :  { %10420 = vmatpush3.bf16.msra.mxu1 %v11417_v42  ;;  %v12677_v42 = vrot.slane %v3084_v37, %v12585_v18  ;;  %v11419_v37 = vld [vmem:[%s13672_s8 + $0xa0] sm:$0xff]  }
0x1160   :  { %10421 = vmatprep.subr.bf16.mxu1 %v11420_v43  ;;  %v11502_v43 = vld [vmem:[%s13672_s8 + $0x440] sm:$0xff]  }
0x1163   :  { %10422 = vmatpush3.bf16.msra.mxu1 %v11421_v44  ;;  %v11503_v44 = vld [vmem:[%s13672_s8 + $0x400] sm:$0xff]  }
0x1164   :  { %10423 = vmatprep.subr.bf16.mxu1 %v11424_v45  ;;  %v11506_v45 = vld [vmem:[%s13672_s8 + $0x448] sm:$0xff]  }
0x1167   :  { %10424 = vmatpush3.bf16.msra.mxu1 %v11425_v46  ;;  %v11507_v46 = vld [vmem:[%s13672_s8 + $0x408] sm:$0xff]  }
0x1168   :  { %10425 = vmatprep.subr.bf16.mxu1 %v11428_v47  ;;  %v11510_v47 = vld [vmem:[%s13672_s8 + $0x450] sm:$0xff]  }
0x116b   :  { %10426 = vmatpush3.bf16.msra.mxu1 %v11429_v48  ;;  %v11511_v48 = vld [vmem:[%s13672_s8 + $0x410] sm:$0xff]  }
0x116c   :  { %10427 = vmatprep.subr.bf16.mxu1 %v11432_v51  ;;  %v11518_v51 = vld [vmem:[%s13672_s8 + $0x460] sm:$0xff]  }
0x116f   :  { %10428 = vmatpush3.bf16.msra.mxu1 %v11433_v52  ;;  %v11519_v52 = vld [vmem:[%s13672_s8 + $0x420] sm:$0xff]  }
0x1170   :  { %10457 = vmatprep.subr.bf16.mxu1 %v11437_v56  ;;  %v11522_v56 = vld [vmem:[%s13672_s8 + $0x468] sm:$0xff]  }
0x1172   :  { %6284 = vmatmul.mubr.bf16.vlgmr.msra.gmra.mrb[24].mxu1 %v12626_v55 }
0x1173   :  { %10458 = vmatpush3.bf16.msra.mxu1 %v11438_v57  ;;  %6363 = vmatprep.mubr.bf16.mxu1 %v12649_v16  ;;  %v11523_v57 = vld [vmem:[%s13672_s8 + $0x428] sm:$0xff]  }
0x1174   :  { %10459 = vmatprep.subr.bf16.mxu1 %v11441_v58  ;;  %v1894_v58 = vrot.slane %v1889_v53, %v12350_v29 }
0x1177   :  { %10460 = vmatpush3.bf16.msra.mxu1 %v11442_v59  ;;  %v1898_v59 = vrot.slane %v1889_v53, %v12358_v36 }
0x1178   :  { %10461 = vmatprep.subr.bf16.mxu1 %v11445_v60  ;;  %v11526_v60 = vld [vmem:[%s13672_s8 + $0x470] sm:$0xff]  }
0x117b   :  { %10462 = vmatpush3.bf16.msra.mxu1 %v11446_v61 }
0x117c   :  { %10463 = vmatprep.subr.bf16.mxu1 %v11449_v62  ;;  %v11527_v62 = vld [vmem:[%s13672_s8 + $0x430] sm:$0xff]  }
0x117f   :  { %10464 = vmatpush3.bf16.msra.mxu1 %v11450_v0 }
0x1180   :  { %10465 = vmatprep.subr.bf16.mxu1 %v11453_v3 }
0x1183   :  { %10466 = vmatpush3.bf16.msra.mxu1 %v11454_v5  ;;  %v12699_v5 = vld [vmem:[%s13673_s14 + $0x10] sm:$0xff] }
0x1184   :  { %10467 = vmatprep.subr.bf16.mxu1 %v11457_v6  ;;  %v3119_v53 = vcombine.high %v12699_v5, %v12699_v5 }
0x1187   :  { %10468 = vmatpush3.bf16.msra.mxu1 %v11458_v7  ;;  %v3126_v7 = vrot.slane %v12699_v5, %v12585_v18 }
0x1188   :  { %10469 = vmatprep.subr.bf16.mxu1 %v11461_v8  ;;  %v11530_v8 = vld [vmem:[%s13672_s8 + $0x478] sm:$0xff]  }
0x118b   :  { %10470 = vmatpush3.bf16.msra.mxu1 %v11462_v9 }
0x118c   :  { %10471 = vmatprep.subr.bf16.mxu1 %v11465_v12  ;;  %v11531_v12 = vld [vmem:[%s13672_s8 + $0x438] sm:$0xff]  }
0x118f   :  { %10472 = vmatpush3.bf16.msra.mxu1 %v11466_v13  ;;  %v3134_v13 = vcombine.high %v3126_v7, %v3126_v7 }
0x1190   :  { %10501 = vmatprep.subr.bf16.mxu1 %v11469_v15  ;;  %v11406_v15 = vld [vmem:[%s13672_s8 + $0xc8] sm:$0xff]  }
0x1192   :  { %6364 = vmatmul.mubr.bf16.vlgmr.msra.gmra.mrb[28].mxu1 %v12652_v17 }
0x1193   :  { %10502 = vmatpush3.bf16.msra.mxu1 %v11470_v19  ;;  %6443 = vmatprep.mubr.bf16.mxu1 %v12674_v41  ;;  %v12710_v19 = vrot.slane %v3134_v13, %v12585_v18  ;;  %v11575_v13 = vld [vmem:[%s13672_s8 + $0x650] sm:$0xff]  }
0x1194   :  { %10503 = vmatprep.subr.bf16.mxu1 %v11473_v20  ;;  %v12713_v20 = vrot.slane %v3126_v7, %v12585_v18  ;;  %v11568_v7 = vld [vmem:[%s13672_s8 + $0x600] sm:$0xff]  }
0x1197   :  { %10504 = vmatpush3.bf16.msra.mxu1 %v11474_v21  ;;  %v11534_v21 = vld [vmem:[%s13672_s8 + $0x540] sm:$0xff]  }
0x1198   :  { %10505 = vmatprep.subr.bf16.mxu1 %v11477_v2  ;;  %v11535_v2 = vld [vmem:[%s13672_s8 + $0x500] sm:$0xff]  }
0x119b   :  { %10506 = vmatpush3.bf16.msra.mxu1 %v11478_v22  ;;  %v11410_v22 = vld [vmem:[%s13672_s8 + $0xd0] sm:$0xff]  }
0x119c   :  { %10507 = vmatprep.subr.bf16.mxu1 %v11481_v23  ;;  %v11538_v23 = vld [vmem:[%s13672_s8 + $0x548] sm:$0xff]  }
0x119f   :  { %10508 = vmatpush3.bf16.msra.mxu1 %v11482_v24  ;;  %v11411_v24 = vld [vmem:[%s13672_s8 + $0x90] sm:$0xff]  }
0x11a0   :  { %10509 = vmatprep.subr.bf16.mxu1 %v11485_v25  ;;  %v11539_v25 = vld [vmem:[%s13672_s8 + $0x508] sm:$0xff]  }
0x11a3   :  { %10510 = vmatpush3.bf16.msra.mxu1 %v11486_v27  ;;  %v11414_v27 = vld [vmem:[%s13672_s8 + $0xd8] sm:$0xff]  }
0x11a4   :  { %10511 = vmatprep.subr.bf16.mxu1 %v11489_v30  ;;  %v11542_v30 = vld [vmem:[%s13672_s8 + $0x550] sm:$0xff]  }
0x11a7   :  { %10512 = vmatpush3.bf16.msra.mxu1 %v11490_v31  ;;  %v11415_v31 = vld [vmem:[%s13672_s8 + $0x98] sm:$0xff]  }
0x11a8   :  { %10513 = vmatprep.subr.bf16.mxu1 %v11493_v32  ;;  %v11543_v32 = vld [vmem:[%s13672_s8 + $0x510] sm:$0xff]  }
0x11ab   :  { %10514 = vmatpush3.bf16.msra.mxu1 %v11494_v26  ;;  %v11418_v26 = vld [vmem:[%s13672_s8 + $0xe0] sm:$0xff]  }
0x11ac   :  { %10515 = vmatprep.subr.bf16.mxu1 %v11497_v38  ;;  %v11547_v38 = vld [vmem:[%s13672_s8 + $0x518] sm:$0xff]  }
0x11af   :  { %10516 = vmatpush3.bf16.msra.mxu1 %v11498_v39  ;;  %v11422_v39 = vld [vmem:[%s13672_s8 + $0xe8] sm:$0xff]  }
0x11b0   :  { %10545 = vmatprep.subr.bf16.mxu1 %v11502_v43  ;;  %v11423_v43 = vld [vmem:[%s13672_s8 + $0xa8] sm:$0xff]  }
0x11b2   :  { %6444 = vmatmul.mubr.bf16.vlgmr.msra.gmra.mrb[32].mxu1 %v12677_v42 }
0x11b3   :  { %10546 = vmatpush3.bf16.msra.mxu1 %v11503_v44  ;;  %6523 = vmatprep.mubr.bf16.mxu1 %v12710_v19  ;;  %v11551_v44 = vld [vmem:[%s13672_s8 + $0x520] sm:$0xff]  }
0x11b4   :  { %10547 = vmatprep.subr.bf16.mxu1 %v11506_v45  ;;  %v11426_v45 = vld [vmem:[%s13672_s8 + $0xf0] sm:$0xff]  }
0x11b7   :  { %10548 = vmatpush3.bf16.msra.mxu1 %v11507_v46  ;;  %v11554_v46 = vld [vmem:[%s13672_s8 + $0x568] sm:$0xff]  }
0x11b8   :  { %10549 = vmatprep.subr.bf16.mxu1 %v11510_v47  ;;  %v11427_v47 = vld [vmem:[%s13672_s8 + $0xb0] sm:$0xff]  }
0x11bb   :  { %10550 = vmatpush3.bf16.msra.mxu1 %v11511_v48  ;;  %v11555_v48 = vld [vmem:[%s13672_s8 + $0x528] sm:$0xff]  }
0x11bc   :  { %10551 = vmatprep.subr.bf16.mxu1 %v11514_v49  ;;  %v11430_v49 = vld [vmem:[%s13672_s8 + $0xf8] sm:$0xff]  }
0x11bf   :  { %10552 = vmatpush3.bf16.msra.mxu1 %v11515_v50  ;;  %v11558_v50 = vld [vmem:[%s13672_s8 + $0x570] sm:$0xff]  }
0x11c0   :  { %10553 = vmatprep.subr.bf16.mxu1 %v11518_v51  ;;  %v11431_v51 = vld [vmem:[%s13672_s8 + $0xb8] sm:$0xff]  }
0x11c3   :  { %10554 = vmatpush3.bf16.msra.mxu1 %v11519_v52  ;;  %v11559_v52 = vld [vmem:[%s13672_s8 + $0x530] sm:$0xff]  }
0x11c4   :  { %10555 = vmatprep.subr.bf16.mxu1 %v11522_v56  ;;  %v11434_v56 = vld [vmem:[%s13672_s8 + $0x1c0] sm:$0xff]  }
0x11c7   :  { %10556 = vmatpush3.bf16.msra.mxu1 %v11523_v57  ;;  %v3133_v57 = vrot.slane %v3119_v53, %v12585_v18  ;;  %v11599_v53 = vld [vmem:[%s13672_s8 + $0x740] sm:$0xff]  }
0x11c8   :  { %10557 = vmatprep.subr.bf16.mxu1 %v11526_v60  ;;  %v11436_v60 = vld [vmem:[%s13672_s8 + $0x180] sm:$0xff]  }
0x11cb   :  { %10558 = vmatpush3.bf16.msra.mxu1 %v11527_v62  ;;  %v11563_v62 = vld [vmem:[%s13672_s8 + $0x538] sm:$0xff]  }
0x11cc   :  { %10559 = vmatprep.subr.bf16.mxu1 %v11530_v8  ;;  %v11443_v8 = vld [vmem:[%s13672_s8 + $0x1d0] sm:$0xff]  }
0x11cf   :  { %10560 = vmatpush3.bf16.msra.mxu1 %v11531_v12  ;;  %v11447_v12 = vld [vmem:[%s13672_s8 + $0x1d8] sm:$0xff]  }
0x11d0   :  { %10589 = vmatprep.subr.bf16.mxu1 %v11534_v21  ;;  %v11451_v21 = vld [vmem:[%s13672_s8 + $0x1e0] sm:$0xff]  }
0x11d2   :  { %6524 = vmatmul.mubr.bf16.vlgmr.msra.gmra.mrb[36].mxu1 %v12713_v20 }
0x11d3   :  { %10590 = vmatpush3.bf16.msra.mxu1 %v11535_v2  ;;  %v11452_v2 = vld [vmem:[%s13672_s8 + $0x1a0] sm:$0xff]  }
0x11d4   :  { %10591 = vmatprep.subr.bf16.mxu1 %v11538_v23  ;;  %v11455_v23 = vld [vmem:[%s13672_s8 + $0x1e8] sm:$0xff]  }
0x11d7   :  { %10592 = vmatpush3.bf16.msra.mxu1 %v11539_v25  ;;  %v11456_v25 = vld [vmem:[%s13672_s8 + $0x1a8] sm:$0xff]  }
0x11d8   :  { %10593 = vmatprep.subr.bf16.mxu1 %v11542_v30  ;;  %v11459_v30 = vld [vmem:[%s13672_s8 + $0x1f0] sm:$0xff]  }
0x11db   :  { %10594 = vmatpush3.bf16.msra.mxu1 %v11543_v32  ;;  %v11460_v32 = vld [vmem:[%s13672_s8 + $0x1b0] sm:$0xff]  }
0x11dc   :  { %10595 = vmatprep.subr.bf16.mxu1 %v11546_v35  ;;  %v11463_v35 = vld [vmem:[%s13672_s8 + $0x1f8] sm:$0xff]  }
0x11df   :  { %10596 = vmatpush3.bf16.msra.mxu1 %v11547_v38  ;;  %v11464_v38 = vld [vmem:[%s13672_s8 + $0x1b8] sm:$0xff]  }
0x11e0   :  { %10597 = vmatprep.subr.bf16.mxu1 %v11550_v40  ;;  %v11467_v40 = vld [vmem:[%s13672_s8 + $0x2c0] sm:$0xff]  }
0x11e3   :  { %10598 = vmatpush3.bf16.msra.mxu1 %v11551_v44 }
0x11e4   :  { %10599 = vmatprep.subr.bf16.mxu1 %v11554_v46  ;;  %v11595_v46 = vld [vmem:[%s13672_s8 + $0x678] sm:$0xff]  }
0x11e7   :  { %10600 = vmatpush3.bf16.msra.mxu1 %v11555_v48  ;;  %v3117_v48 = vcombine.high %v12649_v16, %v12649_v16  ;;  %v11472_v16 = vld [vmem:[%s13672_s8 + $0x288] sm:$0xff]  }
0x11e8   :  { %10601 = vmatprep.subr.bf16.mxu1 %v11558_v50 }
0x11eb   :  { %10602 = vmatpush3.bf16.msra.mxu1 %v11559_v52 }
0x1205   :  { %v1970_v61 = vpop.f32.mrb[18].mxu1 }
0x1206   :  { %v1971_v0 = vadd.f32 %v1970_v61, %v1894_v58  ;;  %v1972_v3 = vpop.f32.mrb[19].mxu1  ;;  %v3066_v58 = vcombine.high %v12602_v34, %v12602_v34  ;;  %v3069_v61 = vcombine.high %v12623_v54, %v12623_v54  ;;  %v12760_v34 = vrot.slane %v3133_v57, %v12585_v18  ;;  %v11440_v54 = vld [vmem:[%s13672_s8 + $0x188] sm:$0xff]  }
0x1207   :  { %v1973_v6 = vadd.f32 %v1972_v3, %v1898_v59  ;;  %v11562_v59 = vld [vmem:[%s13672_s8 + $0x578] sm:$0xff]   ;;  %v11439_v3 = vld [vmem:[%s13672_s8 + $0x1c8] sm:$0xff]  }
0x1208   :  { %v1975_v14 = vmax.f32 %v1971_v0, 0.0  ;;  %v3135_v0 = vcombine.high %v3133_v57, %v3133_v57  ;;  %10603 = vmatprep.subr.bf16.mxu1 %v11562_v59  ;;  %v11475_v57 = vld [vmem:[%s13672_s8 + $0x2d0] sm:$0xff]  }
0x1209   :  { %v1976_v9 = vmax.f32 %v1973_v6, 0.0  ;;  %10604 = vmatpush3.bf16.msra.mxu1 %v11563_v62  ;;  %v11567_v6 = vld [vmem:[%s13672_s8 + $0x640] sm:$0xff]   ;;  %v11476_v59 = vld [vmem:[%s13672_s8 + $0x290] sm:$0xff]  }
0x120a   :  { %v12757_v5 = vrot.slane %v3135_v0, %v12585_v18  ;;  %10633 = vmatprep.subr.bf16.mxu1 %v11567_v6  ;;  %v11607_v62 = vld [vmem:[%s13672_s8 + $0x750] sm:$0xff]   ;;  %v11480_v0 = vld [vmem:[%s13672_s8 + $0x298] sm:$0xff]   ;;  %v11483_v6 = vld [vmem:[%s13672_s8 + $0x2e0] sm:$0xff]  }
0x120b   :  { %2080 = vmatprep.mubr.f32.mxu0 %v1976_v9  ;;  %v11571_v9 = vld [vmem:[%s13672_s8 + $0x648] sm:$0xff]  }
0x120c   :  { %2081 = vmatmul.mubr.f32.vlgmr.msra.gmra.mrb[20].mxu0 %v1975_v14  ;;  %6603 = vmatprep.mubr.bf16.mxu1 %v12757_v5  ;;  %v11448_v14 = vld [vmem:[%s13672_s8 + $0x198] sm:$0xff]  }
0x120d   :  { %10392 = vmatpush3.bf16.msra.mxu0 %v11403_v10  ;;  %6243 = vmatprep.mubr.bf16.mxu0 %v3068_v11  ;;  %v11444_v10 = vld [vmem:[%s13672_s8 + $0x190] sm:$0xff]   ;;  %v11572_v11 = vld [vmem:[%s13672_s8 + $0x608] sm:$0xff]  }
0x120e   :  { %10393 = vmatprep.subr.bf16.mxu0 %v11406_v15  ;;  %6604 = vmatmul.mubr.bf16.vlgmr.msra.gmra.mrb[40].mxu1 %v12760_v34  ;;  %v11576_v15 = vld [vmem:[%s13672_s8 + $0x610] sm:$0xff]  }
0x120f   :  { %10634 = vmatpush3.bf16.msra.mxu1 %v11568_v7  ;;  %v11484_v7 = vld [vmem:[%s13672_s8 + $0x2a0] sm:$0xff]  }
0x1210   :  { %10635 = vmatprep.subr.bf16.mxu1 %v11571_v9  ;;  %v11487_v9 = vld [vmem:[%s13672_s8 + $0x2e8] sm:$0xff]  }
0x1211   :  { %10394 = vmatpush3.bf16.msra.mxu0 %v11407_v33  ;;  %v11579_v33 = vld [vmem:[%s13672_s8 + $0x658] sm:$0xff]  }
0x1212   :  { %10395 = vmatprep.subr.bf16.mxu0 %v11410_v22  ;;  %v11580_v22 = vld [vmem:[%s13672_s8 + $0x618] sm:$0xff]  }
0x1213   :  { %10636 = vmatpush3.bf16.msra.mxu1 %v11572_v11  ;;  %v11488_v11 = vld [vmem:[%s13672_s8 + $0x2a8] sm:$0xff]  }
0x1214   :  { %10637 = vmatprep.subr.bf16.mxu1 %v11575_v13  ;;  %v11491_v13 = vld [vmem:[%s13672_s8 + $0x2f0] sm:$0xff]  }
0x1215   :  { %10396 = vmatpush3.bf16.msra.mxu0 %v11411_v24  ;;  %v11583_v24 = vld [vmem:[%s13672_s8 + $0x660] sm:$0xff]  }
0x1216   :  { %10397 = vmatprep.subr.bf16.mxu0 %v11414_v27  ;;  %v11584_v27 = vld [vmem:[%s13672_s8 + $0x620] sm:$0xff]  }
0x1217   :  { %10638 = vmatpush3.bf16.msra.mxu1 %v11576_v15  ;;  %v11492_v15 = vld [vmem:[%s13672_s8 + $0x2b0] sm:$0xff]  }
0x1218   :  { %10639 = vmatprep.subr.bf16.mxu1 %v11579_v33  ;;  %v11495_v33 = vld [vmem:[%s13672_s8 + $0x2f8] sm:$0xff]  }
0x1219   :  { %10398 = vmatpush3.bf16.msra.mxu0 %v11415_v31  ;;  %v11587_v31 = vld [vmem:[%s13672_s8 + $0x668] sm:$0xff]  }
0x121a   :  { %10399 = vmatprep.subr.bf16.mxu0 %v11418_v26  ;;  %v11588_v26 = vld [vmem:[%s13672_s8 + $0x628] sm:$0xff]  }
0x121b   :  { %10640 = vmatpush3.bf16.msra.mxu1 %v11580_v22 }
0x121c   :  { %10641 = vmatprep.subr.bf16.mxu1 %v11583_v24 }
0x121d   :  { %10400 = vmatpush3.bf16.msra.mxu0 %v11419_v37  ;;  %v11591_v37 = vld [vmem:[%s13672_s8 + $0x670] sm:$0xff]  }
0x121e   :  { %10401 = vmatprep.subr.bf16.mxu0 %v11422_v39  ;;  %v11592_v39 = vld [vmem:[%s13672_s8 + $0x630] sm:$0xff]  }
0x121f   :  { %10642 = vmatpush3.bf16.msra.mxu1 %v11584_v27 }
0x1220   :  { %10643 = vmatprep.subr.bf16.mxu1 %v11587_v31 }
0x1221   :  { %10402 = vmatpush3.bf16.msra.mxu0 %v11423_v43  ;;  %v12793_v43 = vld [vmem:[%s13673_s14 + $0x18] sm:$0xff] }
0x1222   :  { %10403 = vmatprep.subr.bf16.mxu0 %v11426_v45  ;;  %v3175_v44 = vrot.slane %v12793_v43, %v12585_v18  ;;  %v3067_v45 = vcombine.high %v12626_v55, %v12626_v55 }
0x1223   :  { %10644 = vmatpush3.bf16.msra.mxu1 %v11588_v26  ;;  %v11499_v26 = vld [vmem:[%s13672_s8 + $0x3c0] sm:$0xff]  }
0x1224   :  { %10645 = vmatprep.subr.bf16.mxu1 %v11591_v37  ;;  %v3183_v50 = vcombine.high %v3175_v44, %v3175_v44  ;;  %v12809_v55 = vrot.slane %v3175_v44, %v12585_v18  ;;  %v3115_v37 = vcombine.high %v12652_v17, %v12652_v17 }
0x1225   :  { %10404 = vmatpush3.bf16.msra.mxu0 %v11427_v47  ;;  %v11468_v47 = vld [vmem:[%s13672_s8 + $0x280] sm:$0xff]  }
0x1226   :  { %10405 = vmatprep.subr.bf16.mxu0 %v11430_v49  ;;  %v11596_v49 = vld [vmem:[%s13672_s8 + $0x638] sm:$0xff]   ;;  %v12806_v52 = vrot.slane %v3183_v50, %v12585_v18  ;;  %v11636_v50 = vld [vmem:[%s13672_s8 + $0x848] sm:$0xff]  }
0x1227   :  { %10646 = vmatpush3.bf16.msra.mxu1 %v11592_v39  ;;  %v11501_v39 = vld [vmem:[%s13672_s8 + $0x380] sm:$0xff]  }
0x1228   :  { %10647 = vmatprep.subr.bf16.mxu1 %v11595_v46  ;;  %6683 = vmatprep.mubr.bf16.mxu1 %v12806_v52 }
0x1229   :  { %10406 = vmatpush3.bf16.msra.mxu0 %v11431_v51  ;;  %v11471_v51 = vld [vmem:[%s13672_s8 + $0x2c8] sm:$0xff]  }
0x122a   :  { %10435 = vmatprep.subr.bf16.mxu0 %v11434_v56  ;;  %v11600_v56 = vld [vmem:[%s13672_s8 + $0x700] sm:$0xff]  }
0x122b   :  { %10648 = vmatpush3.bf16.msra.mxu1 %v11596_v49  ;;  %v11508_v49 = vld [vmem:[%s13672_s8 + $0x3d0] sm:$0xff]  }
0x122c   :  { %6244 = vmatmul.mubr.bf16.vlgmr.msra.gmra.mrb[24].mxu0 %v3066_v58  ;;  %10677 = vmatprep.subr.bf16.mxu1 %v11599_v53  ;;  %v11603_v58 = vld [vmem:[%s13672_s8 + $0x748] sm:$0xff]  }
0x122d   :  { %10436 = vmatpush3.bf16.msra.mxu0 %v11436_v60  ;;  %6323 = vmatprep.mubr.bf16.mxu0 %v3069_v61  ;;  %v11604_v60 = vld [vmem:[%s13672_s8 + $0x708] sm:$0xff]   ;;  %v11479_v61 = vld [vmem:[%s13672_s8 + $0x2d8] sm:$0xff]  }
0x122e   :  { %10437 = vmatprep.subr.bf16.mxu0 %v11439_v3  ;;  %6684 = vmatmul.mubr.bf16.vlgmr.msra.gmra.mrb[44].mxu1 %v12809_v55  ;;  %v11608_v3 = vld [vmem:[%s13672_s8 + $0x710] sm:$0xff]   ;;  %v11637_v53 = vld [vmem:[%s13672_s8 + $0x808] sm:$0xff]  }
0x122f   :  { %10678 = vmatpush3.bf16.msra.mxu1 %v11600_v56  ;;  %v11640_v56 = vld [vmem:[%s13672_s8 + $0x850] sm:$0xff]  }
0x1230   :  { %10679 = vmatprep.subr.bf16.mxu1 %v11603_v58  ;;  %v11641_v58 = vld [vmem:[%s13672_s8 + $0x810] sm:$0xff]  }
0x1231   :  { %10438 = vmatpush3.bf16.msra.mxu0 %v11440_v54  ;;  %v11611_v54 = vld [vmem:[%s13672_s8 + $0x758] sm:$0xff]  }
0x1232   :  { %10439 = vmatprep.subr.bf16.mxu0 %v11443_v8  ;;  %v11612_v8 = vld [vmem:[%s13672_s8 + $0x718] sm:$0xff]  }
0x1233   :  { %10680 = vmatpush3.bf16.msra.mxu1 %v11604_v60  ;;  %v11644_v60 = vld [vmem:[%s13672_s8 + $0x858] sm:$0xff]  }
0x1234   :  { %10681 = vmatprep.subr.bf16.mxu1 %v11607_v62  ;;  %v11645_v62 = vld [vmem:[%s13672_s8 + $0x818] sm:$0xff]  }
0x1235   :  { %10440 = vmatpush3.bf16.msra.mxu0 %v11444_v10  ;;  %v11615_v10 = vld [vmem:[%s13672_s8 + $0x760] sm:$0xff]  }
0x1236   :  { %10441 = vmatprep.subr.bf16.mxu0 %v11447_v12  ;;  %v11616_v12 = vld [vmem:[%s13672_s8 + $0x720] sm:$0xff]  }
0x1237   :  { %10682 = vmatpush3.bf16.msra.mxu1 %v11608_v3  ;;  %v11648_v3 = vld [vmem:[%s13672_s8 + $0x860] sm:$0xff]  }
0x1238   :  { %10683 = vmatprep.subr.bf16.mxu1 %v11611_v54  ;;  %v11649_v54 = vld [vmem:[%s13672_s8 + $0x820] sm:$0xff]  }
0x1239   :  { %10442 = vmatpush3.bf16.msra.mxu0 %v11448_v14  ;;  %v11619_v14 = vld [vmem:[%s13672_s8 + $0x768] sm:$0xff]  }
0x123a   :  { %10443 = vmatprep.subr.bf16.mxu0 %v11451_v21  ;;  %v11620_v21 = vld [vmem:[%s13672_s8 + $0x728] sm:$0xff]  }
0x123b   :  { %10684 = vmatpush3.bf16.msra.mxu1 %v11612_v8  ;;  %v11652_v8 = vld [vmem:[%s13672_s8 + $0x868] sm:$0xff]  }
0x123c   :  { %10685 = vmatprep.subr.bf16.mxu1 %v11615_v10  ;;  %v11653_v10 = vld [vmem:[%s13672_s8 + $0x828] sm:$0xff]  }
0x123d   :  { %10444 = vmatpush3.bf16.msra.mxu0 %v11452_v2  ;;  %v10385_v2 = vpop.f32.mrb[20].mxu1 }
0x123e   :  { %10445 = vmatprep.subr.bf16.mxu0 %v11455_v23  ;;  %v10386_v22 = vpop.f32.mrb[21].mxu1  ;;  %v11623_v23 = vld [vmem:[%s13672_s8 + $0x770] sm:$0xff]  }
0x123f   :  { %10686 = vmatpush3.bf16.msra.mxu1 %v11616_v12  ;;  %v10388_v24 = vpop.f32.mrb[22].mxu1  ;;  %v12839_v27 = vadd.f32 %v10386_v22, %v10385_v2  ;;  %v11657_v2 = vld [vmem:[%s13672_s8 + $0x830] sm:$0xff]  }
0x1240   :  { %10687 = vmatprep.subr.bf16.mxu1 %v11619_v14  ;;  %v10389_v31 = vpop.f32.mrb[23].mxu1  ;;  %v12893_v24 = vld [vmem:[%s13673_s14 + $0x20] sm:$0xff] }
0x1241   :  { %10446 = vmatpush3.bf16.msra.mxu0 %v11456_v25  ;;  %v11496_v25 = vld [vmem:[%s13672_s8 + $0x2b8] sm:$0xff]  }
0x1242   :  { %10447 = vmatprep.subr.bf16.mxu0 %v11459_v30  ;;  %v11624_v30 = vld [vmem:[%s13672_s8 + $0x730] sm:$0xff]   ;;  %v11660_v31 = vld [vmem:[%s13672_s8 + $0x878] sm:$0xff]  }
0x1243   :  { %10688 = vmatpush3.bf16.msra.mxu1 %v11620_v21 }
0x1244   :  { %10689 = vmatprep.subr.bf16.mxu1 %v11623_v23  ;;  %v11532_v23 = vld [vmem:[%s13672_s8 + $0x4c0] sm:$0xff]  }
0x1245   :  { %10448 = vmatpush3.bf16.msra.mxu0 %v11460_v32  ;;  %v3168_v32 = vcombine.high %v12793_v43, %v12793_v43  ;;  %v11628_v43 = vld [vmem:[%s13672_s8 + $0x738] sm:$0xff]   ;;  %v10429_v12 = vpop.f32.mrb[24].mxu1 }
0x1246   :  { %10449 = vmatprep.subr.bf16.mxu0 %v11463_v35 }
0x1247   :  { %v3182_v35 = vrot.slane %v3168_v32, %v12585_v18  ;;  %10690 = vmatpush3.bf16.msra.mxu1 %v11624_v30  ;;  %v3116_v30 = vcombine.high %v12677_v42, %v12677_v42  ;;  %v11533_v32 = vld [vmem:[%s13672_s8 + $0x480] sm:$0xff]  }
0x1249   :  { %10450 = vmatpush3.bf16.msra.mxu0 %v11464_v38  ;;  %v11627_v38 = vld [vmem:[%s13672_s8 + $0x778] sm:$0xff]   ;;  %v3184_v44 = vcombine.high %v3182_v35, %v3182_v35  ;;  %v12858_v17 = vrot.slane %v3182_v35, %v12585_v18 }
0x124a   :  { %10479 = vmatprep.subr.bf16.mxu0 %v11467_v40  ;;  %v3118_v40 = vcombine.high %v12674_v41, %v12674_v41  ;;  %10691 = vmatprep.subr.bf16.mxu1 %v11627_v38  ;;  %v11505_v41 = vld [vmem:[%s13672_s8 + $0x388] sm:$0xff]   ;;  %v11661_v35 = vld [vmem:[%s13672_s8 + $0x838] sm:$0xff]  }
0x124b   :  { %v12855_v46 = vrot.slane %v3184_v44, %v12585_v18  ;;  %10692 = vmatpush3.bf16.msra.mxu1 %v11628_v43  ;;  %v11536_v38 = vld [vmem:[%s13672_s8 + $0x4c8] sm:$0xff]   ;;  %v11665_v43 = vld [vmem:[%s13672_s8 + $0x900] sm:$0xff]   ;;  %v11540_v44 = vld [vmem:[%s13672_s8 + $0x4d0] sm:$0xff]  }
0x124c   :  { %6324 = vmatmul.mubr.bf16.vlgmr.msra.gmra.mrb[28].mxu0 %v3067_v45  ;;  %v11504_v45 = vld [vmem:[%s13672_s8 + $0x3c8] sm:$0xff]  }
0x124d   :  { %10480 = vmatpush3.bf16.msra.mxu0 %v11468_v47  ;;  %6403 = vmatprep.mubr.bf16.mxu0 %v3117_v48  ;;  %v11632_v47 = vld [vmem:[%s13672_s8 + $0x840] sm:$0xff]  }
0x124e   :  { %10481 = vmatprep.subr.bf16.mxu0 %v11471_v51  ;;  %v11633_v48 = vld [vmem:[%s13672_s8 + $0x800] sm:$0xff]   ;;  %6763 = vmatprep.mubr.bf16.mxu1 %v12855_v46  ;;  %v11509_v51 = vld [vmem:[%s13672_s8 + $0x390] sm:$0xff]  }
0x124f   :  { %6764 = vmatmul.mubr.bf16.vlgmr.msra.gmra.mrb[48].mxu1 %v12858_v17  ;;  %10721 = vmatprep.subr.bf16.mxu1 %v11632_v47  ;;  %v11541_v47 = vld [vmem:[%s13672_s8 + $0x490] sm:$0xff]  }
0x1250   :  { %10722 = vmatpush3.bf16.msra.mxu1 %v11633_v48  ;;  %v11544_v48 = vld [vmem:[%s13672_s8 + $0x4d8] sm:$0xff]  }
0x1251   :  { %10482 = vmatpush3.bf16.msra.mxu0 %v11472_v16  ;;  %v11512_v16 = vld [vmem:[%s13672_s8 + $0x3d8] sm:$0xff]   ;;  %10723 = vmatprep.subr.bf16.mxu1 %v11636_v50 }
0x1252   :  { %10483 = vmatprep.subr.bf16.mxu0 %v11475_v57  ;;  %v11513_v57 = vld [vmem:[%s13672_s8 + $0x398] sm:$0xff]  }
0x1253   :  { %v11545_v50 = vld [vmem:[%s13672_s8 + $0x498] sm:$0xff]  }
0x1254   :  { %10724 = vmatpush3.bf16.msra.mxu1 %v11637_v53  ;;  %v11548_v53 = vld [vmem:[%s13672_s8 + $0x4e0] sm:$0xff]  }
0x1255   :  { %10484 = vmatpush3.bf16.msra.mxu0 %v11476_v59  ;;  %v11516_v59 = vld [vmem:[%s13672_s8 + $0x3e0] sm:$0xff]   ;;  %10725 = vmatprep.subr.bf16.mxu1 %v11640_v56 }
0x1256   :  { %10485 = vmatprep.subr.bf16.mxu0 %v11479_v61  ;;  %v11517_v61 = vld [vmem:[%s13672_s8 + $0x3a0] sm:$0xff]  }
0x1257   :  { %v11549_v56 = vld [vmem:[%s13672_s8 + $0x4a0] sm:$0xff]  }
0x1258   :  { %10726 = vmatpush3.bf16.msra.mxu1 %v11641_v58  ;;  %v11552_v58 = vld [vmem:[%s13672_s8 + $0x4e8] sm:$0xff]  }
0x1259   :  { %10486 = vmatpush3.bf16.msra.mxu0 %v11480_v0  ;;  %v11520_v0 = vld [vmem:[%s13672_s8 + $0x3e8] sm:$0xff]   ;;  %10727 = vmatprep.subr.bf16.mxu1 %v11644_v60 }
0x125a   :  { %10487 = vmatprep.subr.bf16.mxu0 %v11483_v6  ;;  %v11521_v6 = vld [vmem:[%s13672_s8 + $0x3a8] sm:$0xff]  }
0x125b   :  { %v11553_v60 = vld [vmem:[%s13672_s8 + $0x4a8] sm:$0xff]  }
0x125c   :  { %10728 = vmatpush3.bf16.msra.mxu1 %v11645_v62  ;;  %v11556_v62 = vld [vmem:[%s13672_s8 + $0x4f0] sm:$0xff]  }
0x125d   :  { %10488 = vmatpush3.bf16.msra.mxu0 %v11484_v7  ;;  %v11524_v7 = vld [vmem:[%s13672_s8 + $0x3f0] sm:$0xff]   ;;  %10729 = vmatprep.subr.bf16.mxu1 %v11648_v3 }
0x125e   :  { %10489 = vmatprep.subr.bf16.mxu0 %v11487_v9  ;;  %v11525_v9 = vld [vmem:[%s13672_s8 + $0x3b0] sm:$0xff]  }
0x125f   :  { %v11557_v3 = vld [vmem:[%s13672_s8 + $0x4b0] sm:$0xff]  }
0x1260   :  { %10730 = vmatpush3.bf16.msra.mxu1 %v11649_v54  ;;  %v11560_v54 = vld [vmem:[%s13672_s8 + $0x4f8] sm:$0xff]  }
0x1261   :  { %10490 = vmatpush3.bf16.msra.mxu0 %v11488_v11  ;;  %v11528_v11 = vld [vmem:[%s13672_s8 + $0x3f8] sm:$0xff]   ;;  %10731 = vmatprep.subr.bf16.mxu1 %v11652_v8 }
0x1262   :  { %10491 = vmatprep.subr.bf16.mxu0 %v11491_v13  ;;  %v10430_v13 = vpop.f32.mrb[25].mxu1 }
0x1263   :  { %v12886_v14 = vadd.f32 %v10430_v13, %v10429_v12  ;;  %v10432_v21 = vpop.f32.mrb[26].mxu1  ;;  %v11561_v12 = vld [vmem:[%s13672_s8 + $0x4b8] sm:$0xff]   ;;  %v11689_v13 = vld [vmem:[%s13672_s8 + $0x930] sm:$0xff]  }
0x1264   :  { %10732 = vmatpush3.bf16.msra.mxu1 %v11653_v10  ;;  %v10433_v22 = vpop.f32.mrb[27].mxu1  ;;  %v11688_v10 = vld [vmem:[%s13672_s8 + $0x970] sm:$0xff]   ;;  %v3217_v21 = vcombine.high %v12893_v24, %v12893_v24 }
0x1265   :  { %10492 = vmatpush3.bf16.msra.mxu0 %v11492_v15  ;;  %v11656_v15 = vld [vmem:[%s13672_s8 + $0x870] sm:$0xff]   ;;  %v3164_v22 = vcombine.high %v12713_v20, %v12713_v20 }
0x1266   :  { %10493 = vmatprep.subr.bf16.mxu0 %v11495_v33  ;;  %v11529_v33 = vld [vmem:[%s13672_s8 + $0x3b8] sm:$0xff]   ;;  %10733 = vmatprep.subr.bf16.mxu1 %v11656_v15 }
0x1268   :  { %10734 = vmatpush3.bf16.msra.mxu1 %v11657_v2  ;;  %v3231_v2 = vrot.slane %v3217_v21, %v12585_v18  ;;  %v3165_v21 = vcombine.high %v12760_v34, %v12760_v34 }
0x1269   :  { %10494 = vmatpush3.bf16.msra.mxu0 %v11496_v25  ;;  %v3224_v25 = vrot.slane %v12893_v24, %v12585_v18  ;;  %10735 = vmatprep.subr.bf16.mxu1 %v11660_v31  ;;  %v11693_v24 = vld [vmem:[%s13672_s8 + $0x938] sm:$0xff]  }
0x126a   :  { %10523 = vmatprep.subr.bf16.mxu0 %v11499_v26  ;;  %v3166_v26 = vcombine.high %v12710_v19, %v12710_v19  ;;  %v11537_v19 = vld [vmem:[%s13672_s8 + $0x488] sm:$0xff]   ;;  %v3233_v31 = vcombine.high %v3231_v2, %v3231_v2  ;;  %v12958_v20 = vrot.slane %v3231_v2, %v12585_v18  ;;  %v11598_v2 = vld [vmem:[%s13672_s8 + $0x680] sm:$0xff]  }
0x126b   :  { %v12909_v42 = vrot.slane %v3224_v25, %v12585_v18 }
0x126c   :  { %6404 = vmatmul.mubr.bf16.vlgmr.msra.gmra.mrb[32].mxu0 %v3115_v37  ;;  %v3232_v37 = vcombine.high %v3224_v25, %v3224_v25  ;;  %10736 = vmatpush3.bf16.msra.mxu1 %v11661_v35  ;;  %v11566_v25 = vld [vmem:[%s13672_s8 + $0x580] sm:$0xff]  }
0x126d   :  { %10524 = vmatpush3.bf16.msra.mxu0 %v11501_v39  ;;  %6483 = vmatprep.mubr.bf16.mxu0 %v3118_v40  ;;  %v11664_v40 = vld [vmem:[%s13672_s8 + $0x940] sm:$0xff]  }
0x126e   :  { %10525 = vmatprep.subr.bf16.mxu0 %v11504_v45  ;;  %v12906_v39 = vrot.slane %v3232_v37, %v12585_v18  ;;  %10765 = vmatprep.subr.bf16.mxu1 %v11664_v40  ;;  %v11668_v45 = vld [vmem:[%s13672_s8 + $0x948] sm:$0xff]   ;;  %v11697_v35 = vld [vmem:[%s13672_s8 + $0xa40] sm:$0xff]  }
0x126f   :  { %v11698_v37 = vld [vmem:[%s13672_s8 + $0xa00] sm:$0xff]   ;;  %v11701_v40 = vld [vmem:[%s13672_s8 + $0xa48] sm:$0xff]  }
0x1270   :  { %6843 = vmatprep.mubr.bf16.mxu1 %v12906_v39 }
0x1271   :  { %10526 = vmatpush3.bf16.msra.mxu0 %v11505_v41  ;;  %6844 = vmatmul.mubr.bf16.vlgmr.msra.gmra.mrb[52].mxu1 %v12909_v42  ;;  %v11669_v41 = vld [vmem:[%s13672_s8 + $0x908] sm:$0xff]  }
0x1272   :  { %10527 = vmatprep.subr.bf16.mxu0 %v11508_v49  ;;  %10766 = vmatpush3.bf16.msra.mxu1 %v11665_v43  ;;  %v11672_v49 = vld [vmem:[%s13672_s8 + $0x950] sm:$0xff]   ;;  %v11702_v43 = vld [vmem:[%s13672_s8 + $0xa08] sm:$0xff]  }
0x1273   :  { %10767 = vmatprep.subr.bf16.mxu1 %v11668_v45  ;;  %v11705_v45 = vld [vmem:[%s13672_s8 + $0xa50] sm:$0xff]  }
0x1275   :  { %10528 = vmatpush3.bf16.msra.mxu0 %v11509_v51  ;;  %v11673_v51 = vld [vmem:[%s13672_s8 + $0x910] sm:$0xff]  }
0x1276   :  { %10529 = vmatprep.subr.bf16.mxu0 %v11512_v16  ;;  %10768 = vmatpush3.bf16.msra.mxu1 %v11669_v41  ;;  %v11676_v16 = vld [vmem:[%s13672_s8 + $0x958] sm:$0xff]   ;;  %v11706_v41 = vld [vmem:[%s13672_s8 + $0xa10] sm:$0xff]  }
0x1277   :  { %10769 = vmatprep.subr.bf16.mxu1 %v11672_v49  ;;  %v11709_v49 = vld [vmem:[%s13672_s8 + $0xa58] sm:$0xff]  }
0x1279   :  { %10530 = vmatpush3.bf16.msra.mxu0 %v11513_v57  ;;  %v11677_v57 = vld [vmem:[%s13672_s8 + $0x918] sm:$0xff]  }
0x127a   :  { %10531 = vmatprep.subr.bf16.mxu0 %v11516_v59  ;;  %10770 = vmatpush3.bf16.msra.mxu1 %v11673_v51  ;;  %v11680_v59 = vld [vmem:[%s13672_s8 + $0x960] sm:$0xff]   ;;  %v11710_v51 = vld [vmem:[%s13672_s8 + $0xa18] sm:$0xff]  }
0x127b   :  { %10771 = vmatprep.subr.bf16.mxu1 %v11676_v16  ;;  %v11713_v16 = vld [vmem:[%s13672_s8 + $0xa60] sm:$0xff]  }
0x127d   :  { %10532 = vmatpush3.bf16.msra.mxu0 %v11517_v61  ;;  %v11681_v61 = vld [vmem:[%s13672_s8 + $0x920] sm:$0xff]  }
0x127e   :  { %10533 = vmatprep.subr.bf16.mxu0 %v11520_v0  ;;  %10772 = vmatpush3.bf16.msra.mxu1 %v11677_v57  ;;  %v11684_v0 = vld [vmem:[%s13672_s8 + $0x968] sm:$0xff]   ;;  %v11714_v57 = vld [vmem:[%s13672_s8 + $0xa20] sm:$0xff]  }
0x127f   :  { %10773 = vmatprep.subr.bf16.mxu1 %v11680_v59  ;;  %v11717_v59 = vld [vmem:[%s13672_s8 + $0xa68] sm:$0xff]  }
0x1281   :  { %10534 = vmatpush3.bf16.msra.mxu0 %v11521_v6  ;;  %v11685_v6 = vld [vmem:[%s13672_s8 + $0x928] sm:$0xff]  }
0x1282   :  { %10535 = vmatprep.subr.bf16.mxu0 %v11524_v7  ;;  %10774 = vmatpush3.bf16.msra.mxu1 %v11681_v61  ;;  %v10473_v7 = vpop.f32.mrb[28].mxu1  ;;  %v11718_v61 = vld [vmem:[%s13672_s8 + $0xa28] sm:$0xff]  }
0x1283   :  { %10775 = vmatprep.subr.bf16.mxu1 %v11684_v0  ;;  %v10474_v8 = vpop.f32.mrb[29].mxu1 }
0x1285   :  { %10536 = vmatpush3.bf16.msra.mxu0 %v11525_v9  ;;  %v12937_v9 = vadd.f32 %v10474_v8, %v10473_v7  ;;  %v11594_v8 = vld [vmem:[%s13672_s8 + $0x5b8] sm:$0xff]  }
0x1286   :  { %10537 = vmatprep.subr.bf16.mxu0 %v11528_v11  ;;  %10776 = vmatpush3.bf16.msra.mxu1 %v11685_v6  ;;  %v10476_v11 = vpop.f32.mrb[30].mxu1 }
0x1287   :  { %v10477_v15 = vpop.f32.mrb[31].mxu1  ;;  %10777 = vmatprep.subr.bf16.mxu1 %v11688_v10  ;;  %v11722_v10 = vld [vmem:[%s13672_s8 + $0xa30] sm:$0xff]  }
0x1288   :  { %v10517_v0 = vpop.f32.mrb[32].mxu1 }
0x1289   :  { %10538 = vmatpush3.bf16.msra.mxu0 %v11529_v33  ;;  %v11564_v33 = vld [vmem:[%s13672_s8 + $0x5c0] sm:$0xff]  }
0x128a   :  { %10567 = vmatprep.subr.bf16.mxu0 %v11532_v23  ;;  %10778 = vmatpush3.bf16.msra.mxu1 %v11689_v13  ;;  %v11692_v23 = vld [vmem:[%s13672_s8 + $0x978] sm:$0xff]   ;;  %v12993_v13 = vld [vmem:[%s13673_s14 + $0x28] sm:$0xff] }
0x128b   :  { %10779 = vmatprep.subr.bf16.mxu1 %v11692_v23  ;;  %v3273_v15 = vrot.slane %v12993_v13, %v12585_v18  ;;  %v11726_v23 = vld [vmem:[%s13672_s8 + $0xa38] sm:$0xff]  }
0x128c   :  { %6484 = vmatmul.mubr.bf16.vlgmr.msra.gmra.mrb[36].mxu0 %v3116_v30  ;;  %v3167_v30 = vcombine.high %v12757_v5, %v12757_v5  ;;  %v11570_v5 = vld [vmem:[%s13672_s8 + $0x588] sm:$0xff]  }
0x128d   :  { %10568 = vmatpush3.bf16.msra.mxu0 %v11533_v32  ;;  %6563 = vmatprep.mubr.bf16.mxu0 %v3166_v26  ;;  %v11569_v32 = vld [vmem:[%s13672_s8 + $0x5c8] sm:$0xff]   ;;  %v12955_v26 = vrot.slane %v3233_v31, %v12585_v18  ;;  %v13009_v34 = vrot.slane %v3273_v15, %v12585_v18  ;;  %v11729_v31 = vld [vmem:[%s13672_s8 + $0xb40] sm:$0xff]  }
0x128e   :  { %10569 = vmatprep.subr.bf16.mxu0 %v11536_v38  ;;  %10780 = vmatpush3.bf16.msra.mxu1 %v11693_v24  ;;  %v11573_v38 = vld [vmem:[%s13672_s8 + $0x5d0] sm:$0xff]  }
0x128f   :  { %6923 = vmatprep.mubr.bf16.mxu1 %v12955_v26  ;;  %10809 = vmatprep.subr.bf16.mxu1 %v11697_v35  ;;  %v11605_v35 = vld [vmem:[%s13672_s8 + $0x6d0] sm:$0xff]  }
0x1291   :  { %10570 = vmatpush3.bf16.msra.mxu0 %v11537_v19  ;;  %6924 = vmatmul.mubr.bf16.vlgmr.msra.gmra.mrb[56].mxu1 %v12958_v20  ;;  %v11574_v19 = vld [vmem:[%s13672_s8 + $0x590] sm:$0xff]  }
0x1292   :  { %10571 = vmatprep.subr.bf16.mxu0 %v11540_v44  ;;  %10810 = vmatpush3.bf16.msra.mxu1 %v11698_v37  ;;  %v11577_v44 = vld [vmem:[%s13672_s8 + $0x5d8] sm:$0xff]   ;;  %v11606_v37 = vld [vmem:[%s13672_s8 + $0x690] sm:$0xff]  }
0x1293   :  { %10811 = vmatprep.subr.bf16.mxu1 %v11701_v40  ;;  %v11609_v40 = vld [vmem:[%s13672_s8 + $0x6d8] sm:$0xff]  }
0x1295   :  { %10572 = vmatpush3.bf16.msra.mxu0 %v11541_v47  ;;  %v11578_v47 = vld [vmem:[%s13672_s8 + $0x598] sm:$0xff]  }
0x1296   :  { %10573 = vmatprep.subr.bf16.mxu0 %v11544_v48  ;;  %10812 = vmatpush3.bf16.msra.mxu1 %v11702_v43  ;;  %v11581_v48 = vld [vmem:[%s13672_s8 + $0x5e0] sm:$0xff]   ;;  %v11610_v43 = vld [vmem:[%s13672_s8 + $0x698] sm:$0xff]  }
0x1297   :  { %10813 = vmatprep.subr.bf16.mxu1 %v11705_v45  ;;  %v11613_v45 = vld [vmem:[%s13672_s8 + $0x6e0] sm:$0xff]  }
0x1299   :  { %10574 = vmatpush3.bf16.msra.mxu0 %v11545_v50  ;;  %v11582_v50 = vld [vmem:[%s13672_s8 + $0x5a0] sm:$0xff]  }
0x129a   :  { %10575 = vmatprep.subr.bf16.mxu0 %v11548_v53  ;;  %10814 = vmatpush3.bf16.msra.mxu1 %v11706_v41  ;;  %v11585_v53 = vld [vmem:[%s13672_s8 + $0x5e8] sm:$0xff]   ;;  %v11614_v41 = vld [vmem:[%s13672_s8 + $0x6a0] sm:$0xff]  }
0x129b   :  { %10815 = vmatprep.subr.bf16.mxu1 %v11709_v49  ;;  %v11617_v49 = vld [vmem:[%s13672_s8 + $0x6e8] sm:$0xff]  }
0x129d   :  { %10576 = vmatpush3.bf16.msra.mxu0 %v11549_v56  ;;  %v11586_v56 = vld [vmem:[%s13672_s8 + $0x5a8] sm:$0xff]  }
0x129e   :  { %10577 = vmatprep.subr.bf16.mxu0 %v11552_v58  ;;  %10816 = vmatpush3.bf16.msra.mxu1 %v11710_v51  ;;  %v11589_v58 = vld [vmem:[%s13672_s8 + $0x5f0] sm:$0xff]   ;;  %v11618_v51 = vld [vmem:[%s13672_s8 + $0x6a8] sm:$0xff]  }
0x129f   :  { %10817 = vmatprep.subr.bf16.mxu1 %v11713_v16  ;;  %v11621_v16 = vld [vmem:[%s13672_s8 + $0x6f0] sm:$0xff]  }
0x12a1   :  { %10578 = vmatpush3.bf16.msra.mxu0 %v11553_v60  ;;  %v11590_v60 = vld [vmem:[%s13672_s8 + $0x5b0] sm:$0xff]  }
0x12a2   :  { %10579 = vmatprep.subr.bf16.mxu0 %v11556_v62  ;;  %10818 = vmatpush3.bf16.msra.mxu1 %v11714_v57  ;;  %v11593_v62 = vld [vmem:[%s13672_s8 + $0x5f8] sm:$0xff]  }
0x12a3   :  { %10819 = vmatprep.subr.bf16.mxu1 %v11717_v59 }
0x12a5   :  { %10580 = vmatpush3.bf16.msra.mxu0 %v11557_v3  ;;  %v10518_v3 = vpop.f32.mrb[33].mxu1 }
0x12a6   :  { %10581 = vmatprep.subr.bf16.mxu0 %v11560_v54  ;;  %v12986_v6 = vadd.f32 %v10518_v3, %v10517_v0  ;;  %10820 = vmatpush3.bf16.msra.mxu1 %v11718_v61  ;;  %v11721_v54 = vld [vmem:[%s13672_s8 + $0xa70] sm:$0xff]   ;;  %v10520_v7 = vpop.f32.mrb[34].mxu1  ;;  %v11750_v61 = vld [vmem:[%s13672_s8 + $0xb28] sm:$0xff]  }
0x12a7   :  { %v10521_v11 = vpop.f32.mrb[35].mxu1  ;;  %10821 = vmatprep.subr.bf16.mxu1 %v11721_v54  ;;  %v11753_v7 = vld [vmem:[%s13672_s8 + $0xb70] sm:$0xff]  }
0x12a8   :  { %v10561_v0 = vpop.f32.mrb[36].mxu1  ;;  %v11754_v11 = vld [vmem:[%s13672_s8 + $0xb30] sm:$0xff]  }
0x12a9   :  { %10582 = vmatpush3.bf16.msra.mxu0 %v11561_v12  ;;  %v11597_v12 = vld [vmem:[%s13672_s8 + $0x6c0] sm:$0xff]   ;;  %v10562_v3 = vpop.f32.mrb[37].mxu1 }
0x12aa   :  { %10611 = vmatprep.subr.bf16.mxu0 %v11564_v33  ;;  %10822 = vmatpush3.bf16.msra.mxu1 %v11722_v10  ;;  %v11725_v33 = vld [vmem:[%s13672_s8 + $0xa78] sm:$0xff]   ;;  %v13039_v54 = vadd.f32 %v10562_v3, %v10561_v0 }
0x12ab   :  { %10823 = vmatprep.subr.bf16.mxu1 %v11725_v33  ;;  %v11626_v10 = vld [vmem:[%s13672_s8 + $0x6b8] sm:$0xff]  }
0x12ac   :  { %6564 = vmatmul.mubr.bf16.vlgmr.msra.gmra.mrb[40].mxu0 %v3164_v22  ;;  %v3215_v22 = vcombine.high %v12806_v52, %v12806_v52  ;;  %v11602_v52 = vld [vmem:[%s13672_s8 + $0x688] sm:$0xff]  }
0x12ad   :  { %10612 = vmatpush3.bf16.msra.mxu0 %v11566_v25  ;;  %6643 = vmatprep.mubr.bf16.mxu0 %v3167_v30  ;;  %v3281_v25 = vcombine.high %v3273_v15, %v3273_v15  ;;  %v11601_v30 = vld [vmem:[%s13672_s8 + $0x6c8] sm:$0xff]   ;;  %v3266_v15 = vcombine.high %v12993_v13, %v12993_v13  ;;  %v11758_v13 = vld [vmem:[%s13672_s8 + $0xb38] sm:$0xff]  }
0x12ae   :  { %10613 = vmatprep.subr.bf16.mxu0 %v11569_v32  ;;  %10824 = vmatpush3.bf16.msra.mxu1 %v11726_v23  ;;  %v11730_v32 = vld [vmem:[%s13672_s8 + $0xb00] sm:$0xff]  }
0x12af   :  { %v13006_v24 = vrot.slane %v3281_v25, %v12585_v18  ;;  %10853 = vmatprep.subr.bf16.mxu1 %v11729_v31  ;;  %v3280_v33 = vrot.slane %v3266_v15, %v12585_v18  ;;  %v11631_v23 = vld [vmem:[%s13672_s8 + $0x780] sm:$0xff]   ;;  %v3216_v25 = vcombine.high %v12855_v46, %v12855_v46  ;;  %v11634_v31 = vld [vmem:[%s13672_s8 + $0x7c8] sm:$0xff]  }
0x12b0   :  { %v11635_v46 = vld [vmem:[%s13672_s8 + $0x788] sm:$0xff]  }
0x12b1   :  { %10614 = vmatpush3.bf16.msra.mxu0 %v11570_v5  ;;  %7003 = vmatprep.mubr.bf16.mxu1 %v13006_v24  ;;  %v11733_v5 = vld [vmem:[%s13672_s8 + $0xb48] sm:$0xff]  }
0x12b2   :  { %10615 = vmatprep.subr.bf16.mxu0 %v11573_v38  ;;  %7004 = vmatmul.mubr.bf16.vlgmr.msra.gmra.mrb[60].mxu1 %v13009_v34  ;;  %v11734_v38 = vld [vmem:[%s13672_s8 + $0xb08] sm:$0xff]  }
0x12b3   :  { %10854 = vmatpush3.bf16.msra.mxu1 %v11730_v32  ;;  %v11762_v32 = vld [vmem:[%s13672_s8 + $0xc40] sm:$0xff]  }
0x12b4   :  { %10855 = vmatprep.subr.bf16.mxu1 %v11733_v5  ;;  %v11638_v5 = vld [vmem:[%s13672_s8 + $0x7d0] sm:$0xff]  }
0x12b5   :  { %10616 = vmatpush3.bf16.msra.mxu0 %v11574_v19  ;;  %v11737_v19 = vld [vmem:[%s13672_s8 + $0xb50] sm:$0xff]  }
0x12b6   :  { %10617 = vmatprep.subr.bf16.mxu0 %v11577_v44  ;;  %v11738_v44 = vld [vmem:[%s13672_s8 + $0xb10] sm:$0xff]  }
0x12b7   :  { %10856 = vmatpush3.bf16.msra.mxu1 %v11734_v38  ;;  %v11639_v38 = vld [vmem:[%s13672_s8 + $0x790] sm:$0xff]  }
0x12b8   :  { %10857 = vmatprep.subr.bf16.mxu1 %v11737_v19  ;;  %v11642_v19 = vld [vmem:[%s13672_s8 + $0x7d8] sm:$0xff]  }
0x12b9   :  { %10618 = vmatpush3.bf16.msra.mxu0 %v11578_v47  ;;  %v11741_v47 = vld [vmem:[%s13672_s8 + $0xb58] sm:$0xff]  }
0x12ba   :  { %10619 = vmatprep.subr.bf16.mxu0 %v11581_v48  ;;  %v11742_v48 = vld [vmem:[%s13672_s8 + $0xb18] sm:$0xff]  }
0x12bb   :  { %10858 = vmatpush3.bf16.msra.mxu1 %v11738_v44  ;;  %v11643_v44 = vld [vmem:[%s13672_s8 + $0x798] sm:$0xff]  }
0x12bc   :  { %10859 = vmatprep.subr.bf16.mxu1 %v11741_v47  ;;  %v11646_v47 = vld [vmem:[%s13672_s8 + $0x7e0] sm:$0xff]  }
0x12bd   :  { %10620 = vmatpush3.bf16.msra.mxu0 %v11582_v50  ;;  %v11745_v50 = vld [vmem:[%s13672_s8 + $0xb60] sm:$0xff]  }
0x12be   :  { %10621 = vmatprep.subr.bf16.mxu0 %v11585_v53  ;;  %v11746_v53 = vld [vmem:[%s13672_s8 + $0xb20] sm:$0xff]  }
0x12bf   :  { %10860 = vmatpush3.bf16.msra.mxu1 %v11742_v48  ;;  %v11647_v48 = vld [vmem:[%s13672_s8 + $0x7a0] sm:$0xff]  }
0x12c0   :  { %10861 = vmatprep.subr.bf16.mxu1 %v11745_v50  ;;  %v11650_v50 = vld [vmem:[%s13672_s8 + $0x7e8] sm:$0xff]  }
0x12c1   :  { %10622 = vmatpush3.bf16.msra.mxu0 %v11586_v56 }
0x12c2   :  { %10623 = vmatprep.subr.bf16.mxu0 %v11589_v58  ;;  %v11749_v58 = vld [vmem:[%s13672_s8 + $0xb68] sm:$0xff]  }
0x12c3   :  { %10862 = vmatpush3.bf16.msra.mxu1 %v11746_v53  ;;  %v11651_v53 = vld [vmem:[%s13672_s8 + $0x7a8] sm:$0xff]  }
0x12c4   :  { %10863 = vmatprep.subr.bf16.mxu1 %v11749_v58 }
0x12c5   :  { %10624 = vmatpush3.bf16.msra.mxu0 %v11590_v60  ;;  %v11622_v60 = vld [vmem:[%s13672_s8 + $0x6b0] sm:$0xff]  }
0x12c6   :  { %10625 = vmatprep.subr.bf16.mxu0 %v11593_v62  ;;  %v11625_v62 = vld [vmem:[%s13672_s8 + $0x6f8] sm:$0xff]  }
0x12c7   :  { %10864 = vmatpush3.bf16.msra.mxu1 %v11750_v61  ;;  %v11782_v61 = vld [vmem:[%s13672_s8 + $0xc68] sm:$0xff]  }
0x12c8   :  { %10865 = vmatprep.subr.bf16.mxu1 %v11753_v7  ;;  %v11655_v7 = vld [vmem:[%s13672_s8 + $0x7b0] sm:$0xff]  }
0x12c9   :  { %10626 = vmatpush3.bf16.msra.mxu0 %v11594_v8  ;;  %v10564_v8 = vpop.f32.mrb[38].mxu1 }
0x12ca   :  { %10655 = vmatprep.subr.bf16.mxu0 %v11597_v12  ;;  %v10565_v12 = vpop.f32.mrb[39].mxu1  ;;  %v11783_v8 = vld [vmem:[%s13672_s8 + $0xc28] sm:$0xff]  }
0x12cb   :  { %10866 = vmatpush3.bf16.msra.mxu1 %v11754_v11  ;;  %v11658_v11 = vld [vmem:[%s13672_s8 + $0x7f8] sm:$0xff]  }
0x12cc   :  { %6644 = vmatmul.mubr.bf16.vlgmr.msra.gmra.mrb[44].mxu0 %v3165_v21  ;;  %v11629_v21 = vld [vmem:[%s13672_s8 + $0x7c0] sm:$0xff]  }
0x12cd   :  { %10656 = vmatpush3.bf16.msra.mxu0 %v11598_v2  ;;  %6723 = vmatprep.mubr.bf16.mxu0 %v3215_v22  ;;  %v3213_v2 = vcombine.high %v12809_v55, %v12809_v55  ;;  %v11757_v22 = vld [vmem:[%s13672_s8 + $0xb78] sm:$0xff]   ;;  %v13060_v55 = vrot.slane %v3280_v33, %v12585_v18 }
0x12ce   :  { %10657 = vmatprep.subr.bf16.mxu0 %v11601_v30  ;;  %v3282_v30 = vcombine.high %v3280_v33, %v3280_v33  ;;  %10867 = vmatprep.subr.bf16.mxu1 %v11757_v22 }
0x12cf   :  { %10868 = vmatpush3.bf16.msra.mxu1 %v11758_v13 }
0x12d0   :  { %10897 = vmatprep.subr.bf16.mxu1 %v11762_v32 }
0x12d1   :  { %10658 = vmatpush3.bf16.msra.mxu0 %v11602_v52  ;;  %v13057_v52 = vrot.slane %v3282_v30, %v12585_v18  ;;  %v11662_v30 = vld [vmem:[%s13672_s8 + $0x8c0] sm:$0xff]  }
0x12d2   :  { %10659 = vmatprep.subr.bf16.mxu0 %v11605_v35  ;;  %v11763_v35 = vld [vmem:[%s13672_s8 + $0xc00] sm:$0xff]  }
0x12d3   :  { %7083 = vmatprep.mubr.bf16.mxu1 %v13057_v52 }
0x12d4   :  { %7084 = vmatmul.mubr.bf16.vlgmr.msra.gmra.mrb[64].mxu1 %v13060_v55 }
0x12d5   :  { %10660 = vmatpush3.bf16.msra.mxu0 %v11606_v37  ;;  %10898 = vmatpush3.bf16.msra.mxu1 %v11763_v35  ;;  %v11766_v37 = vld [vmem:[%s13672_s8 + $0xc48] sm:$0xff]   ;;  %v11663_v35 = vld [vmem:[%s13672_s8 + $0x880] sm:$0xff]  }
0x12d6   :  { %10661 = vmatprep.subr.bf16.mxu0 %v11609_v40  ;;  %v11767_v40 = vld [vmem:[%s13672_s8 + $0xc08] sm:$0xff]   ;;  %10899 = vmatprep.subr.bf16.mxu1 %v11766_v37  ;;  %v11791_v37 = vld [vmem:[%s13672_s8 + $0xc38] sm:$0xff]  }
0x12d9   :  { %10662 = vmatpush3.bf16.msra.mxu0 %v11610_v43  ;;  %10900 = vmatpush3.bf16.msra.mxu1 %v11767_v40  ;;  %v11770_v43 = vld [vmem:[%s13672_s8 + $0xc50] sm:$0xff]   ;;  %v11666_v40 = vld [vmem:[%s13672_s8 + $0x8c8] sm:$0xff]  }
0x12da   :  { %10663 = vmatprep.subr.bf16.mxu0 %v11613_v45  ;;  %v11771_v45 = vld [vmem:[%s13672_s8 + $0xc10] sm:$0xff]   ;;  %10901 = vmatprep.subr.bf16.mxu1 %v11770_v43  ;;  %v11794_v43 = vld [vmem:[%s13672_s8 + $0xd40] sm:$0xff]  }
0x12dd   :  { %10664 = vmatpush3.bf16.msra.mxu0 %v11614_v41  ;;  %10902 = vmatpush3.bf16.msra.mxu1 %v11771_v45  ;;  %v11774_v41 = vld [vmem:[%s13672_s8 + $0xc58] sm:$0xff]   ;;  %v11670_v45 = vld [vmem:[%s13672_s8 + $0x8d0] sm:$0xff]  }
0x12de   :  { %10665 = vmatprep.subr.bf16.mxu0 %v11617_v49  ;;  %v11775_v49 = vld [vmem:[%s13672_s8 + $0xc18] sm:$0xff]   ;;  %10903 = vmatprep.subr.bf16.mxu1 %v11774_v41  ;;  %v11671_v41 = vld [vmem:[%s13672_s8 + $0x890] sm:$0xff]  }
0x12df   :  { %v10366_v56 = vpop.f32.mrb[20].mxu0 }
0x12e0   :  { %v10367_v57 = vpop.f32.mrb[21].mxu0 }
0x12e1   :  { %v13034_v59 = vadd.f32 %v10367_v57, %v10366_v56  ;;  %10666 = vmatpush3.bf16.msra.mxu0 %v11618_v51  ;;  %10904 = vmatpush3.bf16.msra.mxu1 %v11775_v49  ;;  %v11778_v51 = vld [vmem:[%s13672_s8 + $0xc60] sm:$0xff]   ;;  %v11654_v57 = vld [vmem:[%s13672_s8 + $0x7f0] sm:$0xff]   ;;  %v10605_v12 = vpop.f32.mrb[40].mxu1  ;;  %v11674_v49 = vld [vmem:[%s13672_s8 + $0x8d8] sm:$0xff]  }
0x12e2   :  { %10667 = vmatprep.subr.bf16.mxu0 %v11621_v16  ;;  %v11779_v16 = vld [vmem:[%s13672_s8 + $0xc20] sm:$0xff]   ;;  %10905 = vmatprep.subr.bf16.mxu1 %v11778_v51  ;;  %v11675_v51 = vld [vmem:[%s13672_s8 + $0x898] sm:$0xff]  }
0x12e3   :  { %v9534_v56 = vld [vmem:[%s13675_s24] ss:$0 sm:$0xff] }
0x12e5   :  { %10668 = vmatpush3.bf16.msra.mxu0 %v11622_v60  ;;  %10906 = vmatpush3.bf16.msra.mxu1 %v11779_v16  ;;  %v11678_v16 = vld [vmem:[%s13672_s8 + $0x8e0] sm:$0xff]  }
0x12e6   :  { %10669 = vmatprep.subr.bf16.mxu0 %v11625_v62  ;;  %v6206_v62 = vadd.f32 %v12839_v27, %v9534_v56  ;;  %10907 = vmatprep.subr.bf16.mxu1 %v11782_v61  ;;  %v11786_v27 = vld [vmem:[%s13672_s8 + $0xc70] sm:$0xff]   ;;  %v11806_v56 = vld [vmem:[%s13672_s8 + $0xd58] sm:$0xff]   ;;  %v11810_v61 = vld [vmem:[%s13672_s8 + $0xd60] sm:$0xff]  }
0x12e9   :  { %10670 = vmatpush3.bf16.msra.mxu0 %v11626_v10  ;;  %10908 = vmatpush3.bf16.msra.mxu1 %v11783_v8 }
0x12ea   :  { %10699 = vmatprep.subr.bf16.mxu0 %v11629_v21  ;;  %v10606_v21 = vpop.f32.mrb[41].mxu1  ;;  %10909 = vmatprep.subr.bf16.mxu1 %v11786_v27 }
0x12eb   :  { %v13090_v33 = vadd.f32 %v10606_v21, %v10605_v12  ;;  %v11815_v21 = vld [vmem:[%s13672_s8 + $0xd28] sm:$0xff]  }
0x12ec   :  { %6724 = vmatmul.mubr.bf16.vlgmr.msra.gmra.mrb[48].mxu0 %v3213_v2  ;;  %v10608_v2 = vpop.f32.mrb[42].mxu1 }
0x12ed   :  { %10700 = vmatpush3.bf16.msra.mxu0 %v11631_v23  ;;  %6803 = vmatprep.mubr.bf16.mxu0 %v3216_v25  ;;  %v11659_v23 = vld [vmem:[%s13672_s8 + $0x7b8] sm:$0xff]   ;;  %v11787_v25 = vld [vmem:[%s13672_s8 + $0xc30] sm:$0xff]   ;;  %v10609_v13 = vpop.f32.mrb[43].mxu1 }
0x12ee   :  { %10701 = vmatprep.subr.bf16.mxu0 %v11634_v31  ;;  %v13100_v31 = vld [vmem:[%s13673_s14 + $0x30] sm:$0xff]  ;;  %10910 = vmatpush3.bf16.msra.mxu1 %v11787_v25  ;;  %v11690_v2 = vld [vmem:[%s13672_s8 + $0x8f8] sm:$0xff]  }
0x12ef   :  { %v3322_v32 = vrot.slane %v13100_v31, %v12585_v18 }
0x12f1   :  { %10702 = vmatpush3.bf16.msra.mxu0 %v11635_v46  ;;  %v3214_v46 = vcombine.high %v12858_v17, %v12858_v17  ;;  %v13116_v17 = vrot.slane %v3322_v32, %v12585_v18 }
0x12f2   :  { %10703 = vmatprep.subr.bf16.mxu0 %v11638_v5  ;;  %v3264_v5 = vcombine.high %v12906_v39, %v12906_v39  ;;  %v11667_v39 = vld [vmem:[%s13672_s8 + $0x888] sm:$0xff]  }
0x12f5   :  { %10704 = vmatpush3.bf16.msra.mxu0 %v11639_v38  ;;  %v3330_v38 = vcombine.high %v3322_v32, %v3322_v32  ;;  %v11818_v32 = vld [vmem:[%s13672_s8 + $0xd70] sm:$0xff]  }
0x12f6   :  { %10705 = vmatprep.subr.bf16.mxu0 %v11642_v19 }
0x12f7   :  { %v13113_v19 = vrot.slane %v3330_v38, %v12585_v18  ;;  %v11694_v38 = vld [vmem:[%s13672_s8 + $0x9c0] sm:$0xff]  }
0x12f9   :  { %10706 = vmatpush3.bf16.msra.mxu0 %v11643_v44  ;;  %v11795_v44 = vld [vmem:[%s13672_s8 + $0xd00] sm:$0xff]   ;;  %7163 = vmatprep.mubr.bf16.mxu1 %v13113_v19 }
0x12fa   :  { %10707 = vmatprep.subr.bf16.mxu0 %v11646_v47  ;;  %v11798_v47 = vld [vmem:[%s13672_s8 + $0xd48] sm:$0xff]  }
0x12fd   :  { %10708 = vmatpush3.bf16.msra.mxu0 %v11647_v48  ;;  %v11799_v48 = vld [vmem:[%s13672_s8 + $0xd08] sm:$0xff]  }
0x12fe   :  { %10709 = vmatprep.subr.bf16.mxu0 %v11650_v50  ;;  %v11802_v50 = vld [vmem:[%s13672_s8 + $0xd50] sm:$0xff]  }
0x12ff   :  { %v10407_v58 = vpop.f32.mrb[24].mxu0 }
0x1300   :  { %v10408_v60 = vpop.f32.mrb[25].mxu0 }
0x1301   :  { %v10409_v0 = vadd.f32 %v10408_v60, %v10407_v58  ;;  %10710 = vmatpush3.bf16.msra.mxu0 %v11651_v53  ;;  %v10410_v3 = vpop.f32.mrb[26].mxu0  ;;  %v11803_v53 = vld [vmem:[%s13672_s8 + $0xd10] sm:$0xff]   ;;  %v11807_v58 = vld [vmem:[%s13672_s8 + $0xd18] sm:$0xff]   ;;  %v11682_v60 = vld [vmem:[%s13672_s8 + $0x8e8] sm:$0xff]  }
0x1302   :  { %v10411_v10 = vpop.f32.mrb[27].mxu0  ;;  %10711 = vmatprep.subr.bf16.mxu0 %v11654_v57  ;;  %v11679_v57 = vld [vmem:[%s13672_s8 + $0x8a0] sm:$0xff]   ;;  %v11686_v3 = vld [vmem:[%s13672_s8 + $0x8f0] sm:$0xff]  }
0x1303   :  { %v6246_v15 = vadd.f32 %v10409_v0, %v6206_v62  ;;  %v11683_v62 = vld [vmem:[%s13672_s8 + $0x8a8] sm:$0xff]   ;;  %v11811_v0 = vld [vmem:[%s13672_s8 + $0xd20] sm:$0xff]  }
0x1304   :  { %v11814_v10 = vld [vmem:[%s13672_s8 + $0xd68] sm:$0xff]  }
0x1305   :  { %v13094_v22 = vadd.f32 %v12886_v14, %v6246_v15  ;;  %10712 = vmatpush3.bf16.msra.mxu0 %v11655_v7  ;;  %v11790_v14 = vld [vmem:[%s13672_s8 + $0xc78] sm:$0xff]   ;;  %v11687_v15 = vld [vmem:[%s13672_s8 + $0x8b0] sm:$0xff]  }
0x1306   :  { %10713 = vmatprep.subr.bf16.mxu0 %v11658_v11  ;;  %10911 = vmatprep.subr.bf16.mxu1 %v11790_v14 }
0x1307   :  { %10912 = vmatpush3.bf16.msra.mxu1 %v11791_v37 }
0x1308   :  { %10941 = vmatprep.subr.bf16.mxu1 %v11794_v43  ;;  %v3262_v43 = vcombine.high %v12909_v42, %v12909_v42 }
0x1309   :  { %10714 = vmatpush3.bf16.msra.mxu0 %v11659_v23  ;;  %v10649_v23 = vpop.f32.mrb[44].mxu1 }
0x130a   :  { %10743 = vmatprep.subr.bf16.mxu0 %v11662_v30  ;;  %7164 = vmatmul.mubr.bf16.vlgmr.msra.gmra.mrb[68].mxu1 %v13116_v17  ;;  %v10650_v13 = vpop.f32.mrb[45].mxu1 }
0x130b   :  { %10942 = vmatpush3.bf16.msra.mxu1 %v11795_v44  ;;  %v13145_v30 = vadd.f32 %v10650_v13, %v10649_v23  ;;  %v3265_v44 = vcombine.high %v12955_v26, %v12955_v26  ;;  %v11829_v26 = vld [vmem:[%s13672_s8 + $0xe00] sm:$0xff]  }
0x130c   :  { %6804 = vmatmul.mubr.bf16.vlgmr.msra.gmra.mrb[52].mxu0 %v3214_v46  ;;  %10943 = vmatprep.subr.bf16.mxu1 %v11798_v47  ;;  %v10652_v46 = vpop.f32.mrb[46].mxu1  ;;  %v11699_v47 = vld [vmem:[%s13672_s8 + $0x9c8] sm:$0xff]  }
0x130d   :  { %10744 = vmatpush3.bf16.msra.mxu0 %v11663_v35  ;;  %6883 = vmatprep.mubr.bf16.mxu0 %v3264_v5  ;;  %v11691_v35 = vld [vmem:[%s13672_s8 + $0x8b8] sm:$0xff]   ;;  %v11819_v5 = vld [vmem:[%s13672_s8 + $0xd30] sm:$0xff]   ;;  %v10653_v37 = vpop.f32.mrb[47].mxu1 }
0x130e   :  { %10745 = vmatprep.subr.bf16.mxu0 %v11666_v40  ;;  %v11847_v37 = vld [vmem:[%s13672_s8 + $0xe30] sm:$0xff]  }
0x130f   :  { %10944 = vmatpush3.bf16.msra.mxu1 %v11799_v48  ;;  %v11700_v48 = vld [vmem:[%s13672_s8 + $0x988] sm:$0xff]  }
0x1310   :  { %10945 = vmatprep.subr.bf16.mxu1 %v11802_v50  ;;  %v11704_v50 = vld [vmem:[%s13672_s8 + $0x990] sm:$0xff]  }
0x1311   :  { %10746 = vmatpush3.bf16.msra.mxu0 %v11667_v39  ;;  %v11696_v39 = vld [vmem:[%s13672_s8 + $0x980] sm:$0xff]  }
0x1312   :  { %10747 = vmatprep.subr.bf16.mxu0 %v11670_v45  ;;  %v11823_v45 = vld [vmem:[%s13672_s8 + $0xd38] sm:$0xff]  }
0x1313   :  { %10946 = vmatpush3.bf16.msra.mxu1 %v11803_v53  ;;  %v11707_v53 = vld [vmem:[%s13672_s8 + $0x9d8] sm:$0xff]  }
0x1314   :  { %10947 = vmatprep.subr.bf16.mxu1 %v11806_v56  ;;  %v11835_v56 = vld [vmem:[%s13672_s8 + $0xe10] sm:$0xff]  }
0x1315   :  { %10748 = vmatpush3.bf16.msra.mxu0 %v11671_v41 }
0x1316   :  { %10749 = vmatprep.subr.bf16.mxu0 %v11674_v49  ;;  %v11703_v49 = vld [vmem:[%s13672_s8 + $0x9d0] sm:$0xff]  }
0x1317   :  { %10948 = vmatpush3.bf16.msra.mxu1 %v11807_v58  ;;  %v11712_v58 = vld [vmem:[%s13672_s8 + $0x9a0] sm:$0xff]  }
0x1318   :  { %10949 = vmatprep.subr.bf16.mxu1 %v11810_v61  ;;  %v11715_v61 = vld [vmem:[%s13672_s8 + $0x9e8] sm:$0xff]  }
0x1319   :  { %10750 = vmatpush3.bf16.msra.mxu0 %v11675_v51  ;;  %v11832_v51 = vld [vmem:[%s13672_s8 + $0xe08] sm:$0xff]  }
0x131a   :  { %10751 = vmatprep.subr.bf16.mxu0 %v11678_v16  ;;  %v11708_v16 = vld [vmem:[%s13672_s8 + $0x998] sm:$0xff]  }
0x131b   :  { %10950 = vmatpush3.bf16.msra.mxu1 %v11811_v0  ;;  %v11841_v0 = vld [vmem:[%s13672_s8 + $0xe20] sm:$0xff]  }
0x131c   :  { %10951 = vmatprep.subr.bf16.mxu1 %v11814_v10 }
0x131d   :  { %10752 = vmatpush3.bf16.msra.mxu0 %v11679_v57  ;;  %v11711_v57 = vld [vmem:[%s13672_s8 + $0x9e0] sm:$0xff]  }
0x131e   :  { %10753 = vmatprep.subr.bf16.mxu0 %v11682_v60  ;;  %v11838_v60 = vld [vmem:[%s13672_s8 + $0xe18] sm:$0xff]  }
0x131f   :  { %v10451_v7 = vpop.f32.mrb[28].mxu0  ;;  %10952 = vmatpush3.bf16.msra.mxu1 %v11815_v21 }
0x1320   :  { %v10452_v8 = vpop.f32.mrb[29].mxu0  ;;  %10953 = vmatprep.subr.bf16.mxu1 %v11818_v32 }
0x1321   :  { %v10453_v11 = vadd.f32 %v10452_v8, %v10451_v7  ;;  %10754 = vmatpush3.bf16.msra.mxu0 %v11683_v62  ;;  %v10454_v12 = vpop.f32.mrb[30].mxu0  ;;  %v11716_v62 = vld [vmem:[%s13672_s8 + $0x9a8] sm:$0xff]  }
0x1322   :  { %v10455_v27 = vpop.f32.mrb[31].mxu0  ;;  %10755 = vmatprep.subr.bf16.mxu0 %v11686_v3  ;;  %v11719_v3 = vld [vmem:[%s13672_s8 + $0x9f0] sm:$0xff]  }
0x1323   :  { %v6326_v25 = vadd.f32 %v10453_v11, %v13094_v22  ;;  %v3315_v22 = vcombine.high %v13100_v31, %v13100_v31  ;;  %10954 = vmatpush3.bf16.msra.mxu1 %v11819_v5  ;;  %v11720_v12 = vld [vmem:[%s13672_s8 + $0x9b0] sm:$0xff]   ;;  %v11723_v27 = vld [vmem:[%s13672_s8 + $0x9f8] sm:$0xff]  }
0x1325   :  { %v13149_v14 = vadd.f32 %v12937_v9, %v6326_v25  ;;  %10756 = vmatpush3.bf16.msra.mxu0 %v11687_v15  ;;  %v3329_v40 = vrot.slane %v3315_v22, %v12585_v18  ;;  %v11822_v9 = vld [vmem:[%s13672_s8 + $0xd78] sm:$0xff]   ;;  %v11844_v15 = vld [vmem:[%s13672_s8 + $0xe28] sm:$0xff]   ;;  %v3263_v22 = vcombine.high %v12958_v20, %v12958_v20 }
0x1326   :  { %10757 = vmatprep.subr.bf16.mxu0 %v11690_v2  ;;  %10955 = vmatprep.subr.bf16.mxu1 %v11822_v9  ;;  %v10693_v2 = vpop.f32.mrb[48].mxu1  ;;  %v9535_v9 = vld.sshfl [vmem:[%s13673_s14 + $0x38] sm:$0x1 pattern:$0x75316420] }
0x1327   :  { %v3331_v31 = vcombine.high %v3329_v40, %v3329_v40  ;;  %10956 = vmatpush3.bf16.msra.mxu1 %v11823_v45  ;;  %v13169_v42 = vrot.slane %v3329_v40, %v12585_v18  ;;  %v10694_v25 = vpop.f32.mrb[49].mxu1  ;;  %v11848_v40 = vld [vmem:[%s13672_s8 + $0xe38] sm:$0xff]   ;;  %v3377_v20 = vrot.slane %v9535_v9, %v12585_v18 }
0x1328   :  { %11183 = vmatprep.subr.bf16.mxu1 %v12114_v1  ;;  %v13200_v13 = vadd.f32 %v10694_v25, %v10693_v2  ;;  %v10696_v32 = vpop.f32.mrb[50].mxu1  ;;  %v11740_v45 = vld [vmem:[%s13672_s8 + $0xa98] sm:$0xff]   ;;  %v11777_v25 = vld [vmem:[%s13672_s8 + $0xba0] sm:$0xff]  }
0x1329   :  { %10758 = vmatpush3.bf16.msra.mxu0 %v11691_v35  ;;  %v13166_v41 = vrot.slane %v3331_v31, %v12585_v18  ;;  %v11724_v35 = vld [vmem:[%s13672_s8 + $0x9b8] sm:$0xff]   ;;  %v10697_v5 = vpop.f32.mrb[51].mxu1  ;;  %v11743_v31 = vld [vmem:[%s13672_s8 + $0xae0] sm:$0xff]   ;;  %v11780_v32 = vld [vmem:[%s13672_s8 + $0xbe8] sm:$0xff]  }
0x132a   :  { %10787 = vmatprep.subr.bf16.mxu0 %v11694_v38  ;;  %v11728_v38 = vld [vmem:[%s13672_s8 + $0xa80] sm:$0xff]   ;;  %v11772_v2 = vld [vmem:[%s13672_s8 + $0xbd8] sm:$0xff]  }
0x132b   :  { %7243 = vmatprep.mubr.bf16.mxu1 %v13166_v41  ;;  %v11744_v18 = vld [vmem:[%s13672_s8 + $0xaa0] sm:$0xff]  }
0x132c   :  { %6884 = vmatmul.mubr.bf16.vlgmr.msra.gmra.mrb[56].mxu0 %v3262_v43  ;;  %7244 = vmatmul.mubr.bf16.vlgmr.msra.gmra.mrb[72].mxu1 %v13169_v42  ;;  %v11731_v43 = vld [vmem:[%s13672_s8 + $0xac8] sm:$0xff]  }
0x132d   :  { %10788 = vmatpush3.bf16.msra.mxu0 %v11696_v39  ;;  %6963 = vmatprep.mubr.bf16.mxu0 %v3265_v44  ;;  %v11732_v39 = vld [vmem:[%s13672_s8 + $0xa88] sm:$0xff]   ;;  %v11739_v44 = vld [vmem:[%s13672_s8 + $0xad8] sm:$0xff]  }
0x132e   :  { %10789 = vmatprep.subr.bf16.mxu0 %v11699_v47  ;;  %11184 = vmatpush3.bf16.msra.mxu1 %v11829_v26  ;;  %v11747_v47 = vld [vmem:[%s13672_s8 + $0xae8] sm:$0xff]   ;;  %v11751_v26 = vld [vmem:[%s13672_s8 + $0xaf0] sm:$0xff]  }
0x132f   :  { %11199 = vmatprep.mubr.msk.bf16.mxu1 %vm12115_vm0, %v12114_v1  ;;  %11185 = vmatprep.subr.bf16.mxu1 %v12114_v1 }
0x1331   :  { %10790 = vmatpush3.bf16.msra.mxu0 %v11700_v48  ;;  %v11748_v48 = vld [vmem:[%s13672_s8 + $0xaa8] sm:$0xff]  }
0x1332   :  { %10791 = vmatprep.subr.bf16.mxu0 %v11703_v49  ;;  %11186 = vmatpush3.bf16.msra.mxu1 %v11832_v51 }
0x1333   :  { %11187 = vmatprep.subr.bf16.mxu1 %v12114_v1 }
0x1335   :  { %10792 = vmatpush3.bf16.msra.mxu0 %v11704_v50 }
0x1336   :  { %10793 = vmatprep.subr.bf16.mxu0 %v11707_v53  ;;  %11188 = vmatpush3.bf16.msra.mxu1 %v11835_v56 }
0x1337   :  { %11189 = vmatprep.subr.bf16.mxu1 %v12114_v1 }
0x1339   :  { %10794 = vmatpush3.bf16.msra.mxu0 %v11708_v16  ;;  %v11752_v16 = vld [vmem:[%s13672_s8 + $0xab0] sm:$0xff]  }
0x133a   :  { %10795 = vmatprep.subr.bf16.mxu0 %v11711_v57  ;;  %11190 = vmatpush3.bf16.msra.mxu1 %v11838_v60  ;;  %v11755_v57 = vld [vmem:[%s13672_s8 + $0xaf8] sm:$0xff]  }
0x133b   :  { %11191 = vmatprep.subr.bf16.mxu1 %v12114_v1 }
0x133d   :  { %10796 = vmatpush3.bf16.msra.mxu0 %v11712_v58 }
0x133e   :  { %10797 = vmatprep.subr.bf16.mxu0 %v11715_v61  ;;  %11192 = vmatpush3.bf16.msra.mxu1 %v11841_v0 }
0x133f   :  { %v10495_v7 = vpop.f32.mrb[32].mxu0  ;;  %11193 = vmatprep.subr.bf16.mxu1 %v12114_v1 }
0x1340   :  { %v10496_v8 = vpop.f32.mrb[33].mxu0 }
0x1341   :  { %v10497_v10 = vadd.f32 %v10496_v8, %v10495_v7  ;;  %10798 = vmatpush3.bf16.msra.mxu0 %v11716_v62  ;;  %v10498_v11 = vpop.f32.mrb[34].mxu0  ;;  %v11756_v7 = vld [vmem:[%s13672_s8 + $0xab8] sm:$0xff]  }
0x1342   :  { %v10499_v21 = vpop.f32.mrb[35].mxu0  ;;  %10799 = vmatprep.subr.bf16.mxu0 %v11719_v3  ;;  %11194 = vmatpush3.bf16.msra.mxu1 %v11844_v15  ;;  %v3311_v11 = vcombine.high %v13009_v34, %v13009_v34  ;;  %v3314_v15 = vcombine.high %v13057_v52, %v13057_v52  ;;  %v11769_v34 = vld [vmem:[%s13672_s8 + $0xb90] sm:$0xff]   ;;  %v11776_v52 = vld [vmem:[%s13672_s8 + $0xbe0] sm:$0xff]  }
0x1343   :  { %v6406_v23 = vadd.f32 %v10497_v10, %v13149_v14  ;;  %11195 = vmatprep.subr.bf16.mxu1 %v12114_v1  ;;  %v11727_v14 = vld [vmem:[%s13672_s8 + $0xac0] sm:$0xff]   ;;  %v11765_v21 = vld [vmem:[%s13672_s8 + $0xb88] sm:$0xff]  }
0x1344   :  { %v10737_v58 = vpop.f32.mrb[52].mxu1  ;;  %v11759_v10 = vld [vmem:[%s13672_s8 + $0xbc0] sm:$0xff]  }
0x1345   :  { %v6446_v46 = vadd.f32 %v12986_v6, %v6406_v23  ;;  %10800 = vmatpush3.bf16.msra.mxu0 %v11720_v12  ;;  %v3313_v6 = vcombine.high %v13006_v24, %v13006_v24  ;;  %v11735_v24 = vld [vmem:[%s13672_s8 + $0xad0] sm:$0xff]   ;;  %v10738_v61 = vpop.f32.mrb[53].mxu1  ;;  %v11761_v12 = vld [vmem:[%s13672_s8 + $0xb80] sm:$0xff]   ;;  %v11773_v23 = vld [vmem:[%s13672_s8 + $0xb98] sm:$0xff]  }
0x1346   :  { %10801 = vmatprep.subr.bf16.mxu0 %v11723_v27  ;;  %11196 = vmatpush3.bf16.msra.mxu1 %v11847_v37  ;;  %v13229_v62 = vadd.f32 %v10738_v61, %v10737_v58  ;;  %v10740_v0 = vpop.f32.mrb[54].mxu1  ;;  %v11768_v27 = vld [vmem:[%s13672_s8 + $0xbd0] sm:$0xff]  }
0x1347   :  { %11197 = vmatprep.subr.bf16.mxu1 %v12114_v1  ;;  %v11736_v1 = vld [vmem:[%s13672_s8 + $0xa90] sm:$0xff]   ;;  %v10741_v8 = vpop.f32.mrb[55].mxu1 }
0x1348   :  { %v11820_v8 = vld [vmem:[%s13672_s8 + $0xcf8] sm:$0xff]  }
0x1349   :  { %10802 = vmatpush3.bf16.msra.mxu0 %v11724_v35  ;;  %v11784_v35 = vld [vmem:[%s13672_s8 + $0xbf0] sm:$0xff]  }
0x134a   :  { %10831 = vmatprep.subr.bf16.mxu0 %v11727_v14  ;;  %11198 = vmatpush3.bf16.msra.mxu1 %v11848_v40  ;;  %v11788_v40 = vld [vmem:[%s13672_s8 + $0xbf8] sm:$0xff]  }
0x134c   :  { %6964 = vmatmul.mubr.bf16.vlgmr.msra.gmra.mrb[60].mxu0 %v3263_v22 }
0x134d   :  { %10832 = vmatpush3.bf16.msra.mxu0 %v11728_v38  ;;  %7043 = vmatprep.mubr.bf16.mxu0 %v3313_v6  ;;  %v11785_v38 = vld [vmem:[%s13672_s8 + $0xbb0] sm:$0xff]  }
0x134e   :  { %10833 = vmatprep.subr.bf16.mxu0 %v11731_v43  ;;  %11200 = vmatmul.mubr.bf16.vlgmr.msra.gmra.mrb[76].mxu1 %v3377_v20 }
0x1351   :  { %10834 = vmatpush3.bf16.msra.mxu0 %v11732_v39 }
0x1352   :  { %10835 = vmatprep.subr.bf16.mxu0 %v11735_v24 }
0x1355   :  { %10836 = vmatpush3.bf16.msra.mxu0 %v11736_v1 }
0x1356   :  { %10837 = vmatprep.subr.bf16.mxu0 %v11739_v44  ;;  %v11789_v44 = vld [vmem:[%s13672_s8 + $0xbb8] sm:$0xff]  }
0x1359   :  { %10838 = vmatpush3.bf16.msra.mxu0 %v11740_v45 }
0x135a   :  { %10839 = vmatprep.subr.bf16.mxu0 %v11743_v31  ;;  %v11792_v31 = vld [vmem:[%s13672_s8 + $0xcc0] sm:$0xff]  }
0x135d   :  { %10840 = vmatpush3.bf16.msra.mxu0 %v11744_v18  ;;  %v3312_v18 = vcombine.high %v13060_v55, %v13060_v55  ;;  %v11801_v55 = vld [vmem:[%s13672_s8 + $0xc90] sm:$0xff]  }
0x135e   :  { %10841 = vmatprep.subr.bf16.mxu0 %v11747_v47  ;;  %v11793_v47 = vld [vmem:[%s13672_s8 + $0xc80] sm:$0xff]  }
0x135f   :  { %v10539_v49 = vpop.f32.mrb[36].mxu0 }
0x1360   :  { %v10540_v50 = vpop.f32.mrb[37].mxu0 }
0x1361   :  { %v10541_v51 = vadd.f32 %v10540_v50, %v10539_v49  ;;  %10842 = vmatpush3.bf16.msra.mxu0 %v11748_v48  ;;  %v10542_v53 = vpop.f32.mrb[38].mxu0  ;;  %v3362_v48 = vcombine.high %v13113_v19, %v13113_v19  ;;  %v11800_v49 = vld [vmem:[%s13672_s8 + $0xcd0] sm:$0xff]   ;;  %v11804_v50 = vld [vmem:[%s13672_s8 + $0xcd8] sm:$0xff]   ;;  %v11808_v19 = vld [vmem:[%s13672_s8 + $0xce0] sm:$0xff]  }
0x1362   :  { %v10543_v56 = vpop.f32.mrb[39].mxu0  ;;  %10843 = vmatprep.subr.bf16.mxu0 %v11751_v26  ;;  %v11797_v26 = vld [vmem:[%s13672_s8 + $0xc88] sm:$0xff]   ;;  %v11809_v53 = vld [vmem:[%s13672_s8 + $0xca0] sm:$0xff]  }
0x1363   :  { %v6486_v60 = vadd.f32 %v10541_v51, %v6446_v46  ;;  %v11781_v46 = vld [vmem:[%s13672_s8 + $0xba8] sm:$0xff]   ;;  %v11805_v51 = vld [vmem:[%s13672_s8 + $0xc98] sm:$0xff]  }
0x1364   :  { %v10781_v43 = vpop.f32.mrb[56].mxu1  ;;  %v11813_v56 = vld [vmem:[%s13672_s8 + $0xca8] sm:$0xff]  }
0x1365   :  { %v6526_v3 = vadd.f32 %v13039_v54, %v6486_v60  ;;  %10844 = vmatpush3.bf16.msra.mxu0 %v11752_v16  ;;  %v11764_v54 = vld [vmem:[%s13672_s8 + $0xbc8] sm:$0xff]   ;;  %v10782_v20 = vpop.f32.mrb[57].mxu1 }
0x1366   :  { %10845 = vmatprep.subr.bf16.mxu0 %v11755_v57  ;;  %v13252_v39 = vadd.f32 %v10782_v20, %v10781_v43  ;;  %v10784_v24 = vpop.f32.mrb[58].mxu1  ;;  %v11812_v16 = vld [vmem:[%s13672_s8 + $0xce8] sm:$0xff]   ;;  %v11816_v57 = vld [vmem:[%s13672_s8 + $0xcf0] sm:$0xff]  }
0x1367   :  { %v10785_v45 = vpop.f32.mrb[59].mxu1  ;;  %v11843_v20 = vld [vmem:[%s13672_s8 + $0xdb0] sm:$0xff]  }
0x1369   :  { %10846 = vmatpush3.bf16.msra.mxu0 %v11756_v7 }
0x136a   :  { %10875 = vmatprep.subr.bf16.mxu0 %v11759_v10 }
0x136c   :  { %7044 = vmatmul.mubr.bf16.vlgmr.msra.gmra.mrb[64].mxu0 %v3311_v11 }
0x136d   :  { %10876 = vmatpush3.bf16.msra.mxu0 %v11761_v12  ;;  %7123 = vmatprep.mubr.bf16.mxu0 %v3314_v15 }
0x136e   :  { %10877 = vmatprep.subr.bf16.mxu0 %v11764_v54 }
0x1371   :  { %10878 = vmatpush3.bf16.msra.mxu0 %v11765_v21 }
0x1372   :  { %10879 = vmatprep.subr.bf16.mxu0 %v11768_v27  ;;  %v11821_v27 = vld [vmem:[%s13672_s8 + $0xcb8] sm:$0xff]  }
0x1375   :  { %10880 = vmatpush3.bf16.msra.mxu0 %v11769_v34 }
0x1376   :  { %10881 = vmatprep.subr.bf16.mxu0 %v11772_v2  ;;  %v11824_v2 = vld [vmem:[%s13672_s8 + $0xdc0] sm:$0xff]  }
0x1379   :  { %10882 = vmatpush3.bf16.msra.mxu0 %v11773_v23  ;;  %v3360_v23 = vcombine.high %v13116_v17, %v13116_v17  ;;  %v11831_v17 = vld [vmem:[%s13672_s8 + $0xd90] sm:$0xff]  }
0x137a   :  { %10883 = vmatprep.subr.bf16.mxu0 %v11776_v52  ;;  %v11826_v52 = vld [vmem:[%s13672_s8 + $0xd80] sm:$0xff]  }
0x137d   :  { %10884 = vmatpush3.bf16.msra.mxu0 %v11777_v25  ;;  %v3363_v25 = vcombine.high %v13166_v41, %v13166_v41  ;;  %v11836_v41 = vld [vmem:[%s13672_s8 + $0xde0] sm:$0xff]  }
0x137e   :  { %10885 = vmatprep.subr.bf16.mxu0 %v11780_v32  ;;  %v11828_v32 = vld [vmem:[%s13672_s8 + $0xd88] sm:$0xff]  }
0x137f   :  { %v10583_v5 = vpop.f32.mrb[40].mxu0 }
0x1380   :  { %v10584_v37 = vpop.f32.mrb[41].mxu0 }
0x1381   :  { %v10585_v14 = vadd.f32 %v10584_v37, %v10583_v5  ;;  %10886 = vmatpush3.bf16.msra.mxu0 %v11781_v46  ;;  %v10586_v22 = vpop.f32.mrb[42].mxu0  ;;  %v11830_v46 = vld [vmem:[%s13672_s8 + $0xdd0] sm:$0xff]   ;;  %v11834_v5 = vld [vmem:[%s13672_s8 + $0xd98] sm:$0xff]   ;;  %v11837_v37 = vld [vmem:[%s13672_s8 + $0xda0] sm:$0xff]  }
0x1382   :  { %v10587_v6 = vpop.f32.mrb[43].mxu0  ;;  %10887 = vmatprep.subr.bf16.mxu0 %v11784_v35  ;;  %v11833_v35 = vld [vmem:[%s13672_s8 + $0xdd8] sm:$0xff]   ;;  %v11840_v22 = vld [vmem:[%s13672_s8 + $0xda8] sm:$0xff]  }
0x1383   :  { %v6566_v9 = vadd.f32 %v10585_v14, %v6526_v3  ;;  %v11817_v3 = vld [vmem:[%s13672_s8 + $0xcb0] sm:$0xff]   ;;  %v11839_v14 = vld [vmem:[%s13672_s8 + $0xde8] sm:$0xff]  }
0x1385   :  { %v6606_v1 = vadd.f32 %v13090_v33, %v6566_v9  ;;  %10888 = vmatpush3.bf16.msra.mxu0 %v11785_v38  ;;  %v11796_v33 = vld [vmem:[%s13672_s8 + $0xcc8] sm:$0xff]   ;;  %v10825_v10 = vpop.f32.mrb[60].mxu1  ;;  %v11842_v38 = vld [vmem:[%s13672_s8 + $0xdf0] sm:$0xff]  }
0x1386   :  { %10889 = vmatprep.subr.bf16.mxu0 %v11788_v40  ;;  %v10826_v12 = vpop.f32.mrb[61].mxu1 }
0x1387   :  { %v13275_v15 = vadd.f32 %v10826_v12, %v10825_v10  ;;  %v10828_v54 = vpop.f32.mrb[62].mxu1 }
0x1388   :  { %v10829_v34 = vpop.f32.mrb[63].mxu1 }
0x1389   :  { %10890 = vmatpush3.bf16.msra.mxu0 %v11789_v44  ;;  %v7397_v34 = vld [vmem:[%s13676_s30] sm:$0xff] }
0x138a   :  { %10919 = vmatprep.subr.bf16.mxu0 %v11792_v31 }
0x138c   :  { %7124 = vmatmul.mubr.bf16.vlgmr.msra.gmra.mrb[68].mxu0 %v3312_v18 }
0x138d   :  { %10920 = vmatpush3.bf16.msra.mxu0 %v11793_v47  ;;  %7203 = vmatprep.mubr.bf16.mxu0 %v3362_v48 }
0x138e   :  { %10921 = vmatprep.subr.bf16.mxu0 %v11796_v33  ;;  %v11846_v33 = vld [vmem:[%s13672_s8 + $0xdb8] sm:$0xff]  }
0x1391   :  { %10922 = vmatpush3.bf16.msra.mxu0 %v11797_v26 }
0x1392   :  { %10923 = vmatprep.subr.bf16.mxu0 %v11800_v49  ;;  %v3361_v49 = vcombine.high %v13169_v42, %v13169_v42 }
0x1395   :  { %10924 = vmatpush3.bf16.msra.mxu0 %v11801_v55 }
0x1396   :  { %10925 = vmatprep.subr.bf16.mxu0 %v11804_v50 }
0x1399   :  { %10926 = vmatpush3.bf16.msra.mxu0 %v11805_v51 }
0x139a   :  { %10927 = vmatprep.subr.bf16.mxu0 %v11808_v19 }
0x139d   :  { %10928 = vmatpush3.bf16.msra.mxu0 %v11809_v53 }
0x139e   :  { %10929 = vmatprep.subr.bf16.mxu0 %v11812_v16 }
0x139f   :  { %v10627_v58 = vpop.f32.mrb[44].mxu0 }
0x13a0   :  { %v10628_v60 = vpop.f32.mrb[45].mxu0 }
0x13a1   :  { %v10629_v61 = vadd.f32 %v10628_v60, %v10627_v58  ;;  %10930 = vmatpush3.bf16.msra.mxu0 %v11813_v56  ;;  %v10630_v0 = vpop.f32.mrb[46].mxu0 }
0x13a2   :  { %v10631_v7 = vpop.f32.mrb[47].mxu0  ;;  %10931 = vmatprep.subr.bf16.mxu0 %v11816_v57 }
0x13a3   :  { %v6646_v11 = vadd.f32 %v10629_v61, %v6606_v1  ;;  %v11845_v1 = vld [vmem:[%s13672_s8 + $0xdf8] sm:$0xff]  }
0x13a5   :  { %v6686_v21 = vadd.f32 %v13145_v30, %v6646_v11  ;;  %10932 = vmatpush3.bf16.msra.mxu0 %v11817_v3  ;;  %v11827_v30 = vld [vmem:[%s13672_s8 + $0xdc8] sm:$0xff]  }
0x13a6   :  { %10933 = vmatprep.subr.bf16.mxu0 %v11820_v8 }
0x13a7   :  { %v10869_v44 = vpop.f32.mrb[64].mxu1 }
0x13a8   :  { %v10870_v31 = vpop.f32.mrb[65].mxu1 }
0x13a9   :  { %10934 = vmatpush3.bf16.msra.mxu0 %v11821_v27  ;;  %v13298_v18 = vadd.f32 %v10870_v31, %v10869_v44  ;;  %v10872_v47 = vpop.f32.mrb[66].mxu1  ;;  %v7422_v44 = vld [vmem:[%s13676_s30 + $0xc8] sm:$0xff] }
0x13aa   :  { %10963 = vmatprep.subr.bf16.mxu0 %v11824_v2  ;;  %v10873_v26 = vpop.f32.mrb[67].mxu1  ;;  %v7401_v2 = vld [vmem:[%s13676_s30 + $0x20] sm:$0xff] }
0x13ab   :  { %v7429_v26 = vld [vmem:[%s13676_s30 + $0x100] sm:$0xff] }
0x13ac   :  { %7204 = vmatmul.mubr.bf16.vlgmr.msra.gmra.mrb[72].mxu0 %v3360_v23  ;;  %v7398_v23 = vld [vmem:[%s13676_s30 + $0x8] sm:$0xff] }
0x13ad   :  { %10964 = vmatpush3.bf16.msra.mxu0 %v11826_v52  ;;  %7283 = vmatprep.mubr.bf16.mxu0 %v3363_v25  ;;  %v9992_v52 = vcombine.low %v7397_v34, %v7401_v2  ;;  %v9993_v25 = vcombine.high %v7397_v34, %v7401_v2 }
0x13ae   :  { %10965 = vmatprep.subr.bf16.mxu0 %v11827_v30  ;;  %v7402_v30 = vld [vmem:[%s13676_s30 + $0x28] sm:$0xff] }
0x13b1   :  { %10966 = vmatpush3.bf16.msra.mxu0 %v11828_v32  ;;  %v7405_v32 = vld [vmem:[%s13676_s30 + $0x40] sm:$0xff] }
0x13b2   :  { %10967 = vmatprep.subr.bf16.mxu0 %v11830_v46  ;;  %v7409_v46 = vld [vmem:[%s13676_s30 + $0x60] sm:$0xff] }
0x13b5   :  { %10968 = vmatpush3.bf16.msra.mxu0 %v11831_v17  ;;  %v9994_v17 = vcombine.low %v7398_v23, %v7402_v30 }
0x13b6   :  { %10969 = vmatprep.subr.bf16.mxu0 %v11833_v35  ;;  %v9995_v35 = vcombine.high %v7398_v23, %v7402_v30 }
0x13b8   :  { %7822 = vmatprep.subr.bf16.mxu1 %v9995_v35  ;;  %v7454_v35 = vld [vmem:[%s13676_s30 + $0x1c8] sm:$0xff] }
0x13b9   :  { %10970 = vmatpush3.bf16.msra.mxu0 %v11834_v5  ;;  %v10001_v5 = vcombine.high %v7405_v32, %v7409_v46  ;;  %7823 = vmatpush1.bf16.msra.mxu1 %v9994_v17  ;;  %v7457_v17 = vld [vmem:[%s13676_s30 + $0x1e0] sm:$0xff] }
0x13ba   :  { %10971 = vmatprep.subr.bf16.mxu0 %v11836_v41  ;;  %v7406_v41 = vld [vmem:[%s13676_s30 + $0x48] sm:$0xff] }
0x13bd   :  { %10972 = vmatpush3.bf16.msra.mxu0 %v11837_v37  ;;  %v7410_v37 = vld [vmem:[%s13676_s30 + $0x68] sm:$0xff] }
0x13be   :  { %10973 = vmatprep.subr.bf16.mxu0 %v11839_v14  ;;  %v10003_v14 = vcombine.high %v7406_v41, %v7410_v37 }
0x13bf   :  { %v10671_v6 = vpop.f32.mrb[48].mxu0 }
0x13c0   :  { %v10672_v40 = vpop.f32.mrb[49].mxu0  ;;  %7824 = vmatprep.subr.bf16.mxu1 %v10003_v14 }
0x13c1   :  { %v10673_v43 = vadd.f32 %v10672_v40, %v10671_v6  ;;  %10974 = vmatpush3.bf16.msra.mxu0 %v11840_v22  ;;  %v10674_v9 = vpop.f32.mrb[50].mxu0  ;;  %v7417_v22 = vld [vmem:[%s13676_s30 + $0xa0] sm:$0xff]  ;;  %v7418_v6 = vld [vmem:[%s13676_s30 + $0xa8] sm:$0xff]  ;;  %v10000_v40 = vcombine.low %v7405_v32, %v7409_v46 }
0x13c2   :  { %v10675_v24 = vpop.f32.mrb[51].mxu0  ;;  %10975 = vmatprep.subr.bf16.mxu0 %v11842_v38  ;;  %v7414_v38 = vld [vmem:[%s13676_s30 + $0x88] sm:$0xff]  ;;  %v7453_v46 = vld [vmem:[%s13676_s30 + $0x1c0] sm:$0xff] }
0x13c3   :  { %v6726_v45 = vadd.f32 %v10673_v43, %v6686_v21  ;;  %v10002_v43 = vcombine.low %v7406_v41, %v7410_v37  ;;  %v7421_v24 = vld [vmem:[%s13676_s30 + $0xc0] sm:$0xff]  ;;  %v10010_v47 = vcombine.low %v7414_v38, %v7418_v6  ;;  %v10049_v37 = vcombine.high %v7453_v46, %v7457_v17 }
0x13c5   :  { %v6766_v48 = vadd.f32 %v13200_v13, %v6726_v45  ;;  %10976 = vmatpush3.bf16.msra.mxu0 %v11843_v20  ;;  %v10011_v20 = vcombine.high %v7414_v38, %v7418_v6  ;;  %v7426_v45 = vld [vmem:[%s13676_s30 + $0xe8] sm:$0xff]  ;;  %7825 = vmatpush1.bf16.msra.mxu1 %v10002_v43 }
0x13c6   :  { %10977 = vmatprep.subr.bf16.mxu0 %v11845_v1  ;;  %v7425_v1 = vld [vmem:[%s13676_s30 + $0xe0] sm:$0xff] }
0x13c7   :  { %7826 = vmatprep.subr.bf16.mxu1 %v10011_v20 }
0x13c9   :  { %10978 = vmatpush3.bf16.msra.mxu0 %v11846_v33  ;;  %v10019_v33 = vcombine.high %v7422_v44, %v7426_v45  ;;  %7827 = vmatpush1.bf16.msra.mxu1 %v10010_v47 }
0x13ca   :  { %7781 = vmatprep.subr.bf16.mxu0 %v9993_v25 }
0x13cb   :  { %7828 = vmatprep.subr.bf16.mxu1 %v10019_v33  ;;  %v12119_v33 = vmov 0  }
0x13cc   :  { %7284 = vmatmul.mubr.bf16.vlgmr.msra.gmra.mrb[76].mxu0 %v3361_v49  ;;  %v7433_v49 = vld [vmem:[%s13676_s30 + $0x120] sm:$0xff]  ;;  %7854 = vmatprep.mubr.bf16.mxu1 %v12119_v33 }
0x13cd   :  { %7782 = vmatpush1.bf16.msra.mxu0 %v9992_v52  ;;  %7813 = vmatprep.mubr.bf16.mxu0 %v12119_v33 }
0x13ce   :  { %7783 = vmatprep.subr.bf16.mxu0 %v10001_v5 }
0x13d1   :  { %7784 = vmatpush1.bf16.msra.mxu0 %v10000_v40 }
0x13dd   :  { %v10913_v16 = vpop.f32.mrb[68].mxu1 }
0x13de   :  { %v10914_v57 = vpop.f32.mrb[69].mxu1 }
0x13df   :  { %v10715_v55 = vpop.f32.mrb[52].mxu0  ;;  %v13304_v58 = vadd.f32 %v10914_v57, %v10913_v16  ;;  %v10916_v13 = vpop.f32.mrb[70].mxu1  ;;  %v7441_v57 = vld [vmem:[%s13676_s30 + $0x160] sm:$0xff] }
0x13e0   :  { %v10716_v50 = vpop.f32.mrb[53].mxu0  ;;  %v10917_v61 = vpop.f32.mrb[71].mxu1  ;;  %v7438_v13 = vld [vmem:[%s13676_s30 + $0x148] sm:$0xff] }
0x13e1   :  { %v10717_v51 = vadd.f32 %v10716_v50, %v10715_v55  ;;  %v10718_v19 = vpop.f32.mrb[54].mxu0  ;;  %v7430_v55 = vld [vmem:[%s13676_s30 + $0x108] sm:$0xff]  ;;  %v10024_v61 = vcombine.low %v7429_v26, %v7433_v49 }
0x13e2   :  { %v10719_v53 = vpop.f32.mrb[55].mxu0  ;;  %v7434_v50 = vld [vmem:[%s13676_s30 + $0x128] sm:$0xff]  ;;  %v10018_v19 = vcombine.low %v7422_v44, %v7426_v45  ;;  %v7400_v44 = vld [vmem:[%s13676_s30 + $0x18] sm:$0xff] }
0x13e3   :  { %v6806_v56 = vadd.f32 %v10717_v51, %v6766_v48  ;;  %v10017_v48 = vcombine.high %v7421_v24, %v7425_v1  ;;  %v10016_v51 = vcombine.low %v7421_v24, %v7425_v1  ;;  %v10025_v53 = vcombine.high %v7429_v26, %v7433_v49  ;;  %v7399_v24 = vld [vmem:[%s13676_s30 + $0x10] sm:$0xff] }
0x13e4   :  { %v10027_v16 = vcombine.high %v7430_v55, %v7434_v50  ;;  %7829 = vmatpush1.bf16.msra.mxu1 %v10018_v19  ;;  %v7403_v1 = vld [vmem:[%s13676_s30 + $0x30] sm:$0xff] }
0x13e5   :  { %v6846_v60 = vadd.f32 %v13229_v62, %v6806_v56  ;;  %v7437_v56 = vld [vmem:[%s13676_s30 + $0x140] sm:$0xff]  ;;  %v9997_v45 = vcombine.high %v7399_v24, %v7403_v1  ;;  %v9996_v47 = vcombine.low %v7399_v24, %v7403_v1 }
0x13e6   :  { %7830 = vmatprep.subr.bf16.mxu1 %v10027_v16 }
0x13ff   :  { %v10759_v42 = vpop.f32.mrb[56].mxu0  ;;  %v10957_v10 = vpop.f32.mrb[72].mxu1 }
0x1400   :  { %v10760_v0 = vpop.f32.mrb[57].mxu0  ;;  %v10958_v12 = vpop.f32.mrb[73].mxu1 }
0x1401   :  { %v10761_v3 = vadd.f32 %v10760_v0, %v10759_v42  ;;  %v10762_v7 = vpop.f32.mrb[58].mxu0  ;;  %v13307_v54 = vadd.f32 %v10958_v12, %v10957_v10  ;;  %v10960_v21 = vpop.f32.mrb[74].mxu1  ;;  %v10026_v42 = vcombine.low %v7430_v55, %v7434_v50  ;;  %v10033_v0 = vcombine.high %v7437_v56, %v7441_v57  ;;  %v7445_v10 = vld [vmem:[%s13676_s30 + $0x180] sm:$0xff]  ;;  %v7446_v12 = vld [vmem:[%s13676_s30 + $0x188] sm:$0xff] }
0x1402   :  { %v10763_v8 = vpop.f32.mrb[59].mxu0  ;;  %v10961_v27 = vpop.f32.mrb[75].mxu1  ;;  %v10032_v7 = vcombine.low %v7437_v56, %v7441_v57 }
0x1403   :  { %v6886_v11 = vadd.f32 %v10761_v3, %v6846_v60  ;;  %v7442_v60 = vld [vmem:[%s13676_s30 + $0x168] sm:$0xff]  ;;  %7831 = vmatpush1.bf16.msra.mxu1 %v10026_v42 }
0x1404   :  { %v10035_v3 = vcombine.high %v7438_v13, %v7442_v60  ;;  %v10034_v8 = vcombine.low %v7438_v13, %v7442_v60  ;;  %v7450_v27 = vld [vmem:[%s13676_s30 + $0x1a8] sm:$0xff] }
0x1405   :  { %v13310_v62 = vadd.f32 %v13252_v39, %v6886_v11  ;;  %v7413_v39 = vld [vmem:[%s13676_s30 + $0x80] sm:$0xff]  ;;  %v10042_v23 = vcombine.low %v7446_v12, %v7450_v27  ;;  %v10043_v52 = vcombine.high %v7446_v12, %v7450_v27 }
0x1406   :  { %v10009_v9 = vcombine.high %v7413_v39, %v7417_v22  ;;  %v10008_v31 = vcombine.low %v7413_v39, %v7417_v22  ;;  %7832 = vmatprep.subr.bf16.mxu1 %v10035_v3  ;;  %v7449_v11 = vld [vmem:[%s13676_s30 + $0x1a0] sm:$0xff]  ;;  %v7458_v39 = vld [vmem:[%s13676_s30 + $0x1e8] sm:$0xff]  ;;  %v10048_v22 = vcombine.low %v7453_v46, %v7457_v17 }
0x1407   :  { %7833 = vmatpush1.bf16.msra.mxu1 %v10034_v8  ;;  %v10041_v21 = vcombine.high %v7445_v10, %v7449_v11  ;;  %v10040_v2 = vcombine.low %v7445_v10, %v7449_v11  ;;  %v10050_v38 = vcombine.low %v7454_v35, %v7458_v39  ;;  %v10051_v6 = vcombine.high %v7454_v35, %v7458_v39  ;;  %v7419_v35 = vld [vmem:[%s13676_s30 + $0xb0] sm:$0xff] }
0x1408   :  { %7785 = vmatprep.subr.bf16.mxu0 %v10009_v9  ;;  %7834 = vmatprep.subr.bf16.mxu1 %v10043_v52  ;;  %v7408_v52 = vld [vmem:[%s13676_s30 + $0x58] sm:$0xff] }
0x1409   :  { %7786 = vmatpush1.bf16.msra.mxu0 %v10008_v31  ;;  %v7404_v31 = vld [vmem:[%s13676_s30 + $0x38] sm:$0xff] }
0x140a   :  { %7787 = vmatprep.subr.bf16.mxu0 %v10017_v48  ;;  %v9999_v48 = vcombine.high %v7400_v44, %v7404_v31 }
0x140b   :  { %7835 = vmatpush1.bf16.msra.mxu1 %v10042_v23  ;;  %v7411_v23 = vld [vmem:[%s13676_s30 + $0x70] sm:$0xff] }
0x140c   :  { %7836 = vmatprep.subr.bf16.mxu1 %v10051_v6  ;;  %v7427_v6 = vld [vmem:[%s13676_s30 + $0xf0] sm:$0xff] }
0x140d   :  { %7788 = vmatpush1.bf16.msra.mxu0 %v10016_v51 }
0x140e   :  { %7789 = vmatprep.subr.bf16.mxu0 %v10025_v53 }
0x140f   :  { %7837 = vmatpush1.bf16.msra.mxu1 %v10050_v38  ;;  %v7423_v38 = vld [vmem:[%s13676_s30 + $0xd0] sm:$0xff] }
0x1410   :  { %7904 = vmatprep.subr.bf16.mxu1 %v9999_v48  ;;  %v10021_v24 = vcombine.high %v7423_v38, %v7427_v6 }
0x1411   :  { %7790 = vmatpush1.bf16.msra.mxu0 %v10024_v61 }
0x1412   :  { %7791 = vmatprep.subr.bf16.mxu0 %v10033_v0 }
0x1415   :  { %7792 = vmatpush1.bf16.msra.mxu0 %v10032_v7 }
0x1416   :  { %7793 = vmatprep.subr.bf16.mxu0 %v10041_v21 }
0x1419   :  { %7794 = vmatpush1.bf16.msra.mxu0 %v10040_v2  ;;  %v7407_v2 = vld [vmem:[%s13676_s30 + $0x50] sm:$0xff] }
0x141a   :  { %7795 = vmatprep.subr.bf16.mxu0 %v10049_v37  ;;  %v10005_v46 = vcombine.high %v7407_v2, %v7411_v23  ;;  %v7420_v37 = vld [vmem:[%s13676_s30 + $0xb8] sm:$0xff]  ;;  %v10004_v39 = vcombine.low %v7407_v2, %v7411_v23  ;;  %v7336_v2 = vld [vmem:[%s13677_s6 + $0x20] sm:$0xff]  ;;  %v7333_v23 = vld [vmem:[%s13677_s6 + $0x8] sm:$0xff] }
0x141d   :  { %7796 = vmatpush1.bf16.msra.mxu0 %v10048_v22 }
0x141e   :  { %7863 = vmatprep.subr.bf16.mxu0 %v9997_v45  ;;  %v7435_v45 = vld [vmem:[%s13676_s30 + $0x130] sm:$0xff] }
0x141f   :  { %v10803_v34 = vpop.f32.mrb[60].mxu0 }
0x1420   :  { %v10804_v25 = vpop.f32.mrb[61].mxu0 }
0x1421   :  { %v10805_v30 = vadd.f32 %v10804_v25, %v10803_v34  ;;  %v10806_v32 = vpop.f32.mrb[62].mxu0  ;;  %v7325_v41 = vpop.f32.mrb[76].mxu1  ;;  %v7412_v25 = vld [vmem:[%s13676_s30 + $0x78] sm:$0xff] }
0x1422   :  { %v10807_v5 = vpop.f32.mrb[63].mxu0  ;;  %v11201_v40 = vpop.f32.mrb[77].mxu1  ;;  %v10007_v17 = vcombine.high %v7408_v52, %v7412_v25 }
0x1423   :  { %v6966_v14 = vadd.f32 %v10805_v30, %v13310_v62  ;;  %v7328_v43 = vpop.f32.mrb[78].mxu1  ;;  %v9998_v62 = vcombine.low %v7400_v44, %v7404_v31  ;;  %v7416_v5 = vld [vmem:[%s13676_s30 + $0x98] sm:$0xff]  ;;  %v7431_v44 = vld [vmem:[%s13676_s30 + $0x110] sm:$0xff] }
0x1424   :  { %v11202_v20 = vpop.f32.mrb[79].mxu1  ;;  %v10015_v22 = vcombine.high %v7416_v5, %v7420_v37  ;;  %v7424_v40 = vld [vmem:[%s13676_s30 + $0xd8] sm:$0xff] }
0x1425   :  { %v7006_v9 = vadd.f32 %v13275_v15, %v6966_v14  ;;  %v7428_v43 = vld [vmem:[%s13676_s30 + $0xf8] sm:$0xff]  ;;  %v10014_v20 = vcombine.low %v7416_v5, %v7420_v37  ;;  %v7341_v5 = vld [vmem:[%s13677_s6 + $0x48] sm:$0xff] }
0x1426   :  { %v10023_v1 = vcombine.high %v7424_v40, %v7428_v43  ;;  %v7432_v31 = vld [vmem:[%s13676_s30 + $0x118] sm:$0xff]  ;;  %v10022_v48 = vcombine.low %v7424_v40, %v7428_v43  ;;  %v7345_v37 = vld [vmem:[%s13677_s6 + $0x68] sm:$0xff] }
0x1427   :  { %v7349_v40 = vld [vmem:[%s13677_s6 + $0x88] sm:$0xff] }
0x1428   :  { %v7353_v43 = vld [vmem:[%s13677_s6 + $0xa8] sm:$0xff] }
0x143f   :  { %v10847_v15 = vpop.f32.mrb[64].mxu0 }
0x1440   :  { %v10848_v26 = vpop.f32.mrb[65].mxu0 }
0x1441   :  { %v10849_v49 = vadd.f32 %v10848_v26, %v10847_v15  ;;  %v10850_v55 = vpop.f32.mrb[66].mxu0  ;;  %v10029_v15 = vcombine.high %v7431_v44, %v7435_v45 }
0x1442   :  { %v10851_v50 = vpop.f32.mrb[67].mxu0  ;;  %v7443_v55 = vld [vmem:[%s13676_s30 + $0x170] sm:$0xff] }
0x1443   :  { %v7046_v51 = vadd.f32 %v10849_v49, %v7006_v9  ;;  %v7439_v49 = vld [vmem:[%s13676_s30 + $0x150] sm:$0xff]  ;;  %v7440_v50 = vld [vmem:[%s13676_s30 + $0x158] sm:$0xff] }
0x1445   :  { %v7086_v19 = vadd.f32 %v13298_v18, %v7046_v51  ;;  %v7444_v51 = vld [vmem:[%s13676_s30 + $0x178] sm:$0xff] }
0x145f   :  { %v10891_v53 = vpop.f32.mrb[68].mxu0 }
0x1460   :  { %v10892_v16 = vpop.f32.mrb[69].mxu0 }
0x1461   :  { %v10893_v56 = vadd.f32 %v10892_v16, %v10891_v53  ;;  %v10894_v57 = vpop.f32.mrb[70].mxu0  ;;  %v10037_v16 = vcombine.high %v7439_v49, %v7443_v55 }
0x1462   :  { %v10895_v13 = vpop.f32.mrb[71].mxu0  ;;  %v7447_v57 = vld [vmem:[%s13676_s30 + $0x190] sm:$0xff] }
0x1463   :  { %v7126_v60 = vadd.f32 %v10893_v56, %v7086_v19  ;;  %v10028_v19 = vcombine.low %v7431_v44, %v7435_v45  ;;  %v10039_v56 = vcombine.high %v7440_v50, %v7444_v51  ;;  %v7451_v13 = vld [vmem:[%s13676_s30 + $0x1b0] sm:$0xff]  ;;  %v7356_v44 = vld [vmem:[%s13677_s6 + $0xc0] sm:$0xff] }
0x1464   :  { %v7360_v45 = vld [vmem:[%s13677_s6 + $0xe0] sm:$0xff] }
0x1465   :  { %v7166_v61 = vadd.f32 %v13304_v58, %v7126_v60  ;;  %v7448_v60 = vld [vmem:[%s13676_s30 + $0x198] sm:$0xff] }
0x147f   :  { %v10935_v42 = vpop.f32.mrb[72].mxu0 }
0x1480   :  { %v10936_v0 = vpop.f32.mrb[73].mxu0 }
0x1481   :  { %v10937_v3 = vadd.f32 %v10936_v0, %v10935_v42  ;;  %v10938_v7 = vpop.f32.mrb[74].mxu0  ;;  %v10036_v42 = vcombine.low %v7439_v49, %v7443_v55  ;;  %v10038_v0 = vcombine.low %v7440_v50, %v7444_v51  ;;  %v7368_v49 = vld [vmem:[%s13677_s6 + $0x120] sm:$0xff]  ;;  %v7365_v55 = vld [vmem:[%s13677_s6 + $0x108] sm:$0xff]  ;;  %v10080_v51 = vcombine.low %v7356_v44, %v7360_v45 }
0x1482   :  { %v10939_v8 = vpop.f32.mrb[75].mxu0  ;;  %v7369_v50 = vld [vmem:[%s13677_s6 + $0x128] sm:$0xff] }
0x1483   :  { %v7206_v10 = vadd.f32 %v10937_v3, %v7166_v61  ;;  %v7452_v61 = vld [vmem:[%s13676_s30 + $0x1b8] sm:$0xff]  ;;  %v10045_v3 = vcombine.high %v7447_v57, %v7451_v13  ;;  %v7455_v8 = vld [vmem:[%s13676_s30 + $0x1d0] sm:$0xff] }
0x1484   :  { %v10047_v7 = vcombine.high %v7448_v60, %v7452_v61 }
0x1485   :  { %v7246_v18 = vadd.f32 %v13307_v54, %v7206_v10  ;;  %v7415_v54 = vld [vmem:[%s13676_s30 + $0x90] sm:$0xff] }
0x1486   :  { %v10013_v14 = vcombine.high %v7415_v54, %v7419_v35  ;;  %v10012_v9 = vcombine.low %v7415_v54, %v7419_v35  ;;  %v7459_v10 = vld [vmem:[%s13676_s30 + $0x1f0] sm:$0xff]  ;;  %v7340_v54 = vld [vmem:[%s13677_s6 + $0x40] sm:$0xff] }
0x1487   :  { %v7344_v35 = vld [vmem:[%s13677_s6 + $0x60] sm:$0xff] }
0x149f   :  { %v10979_v11 = vpop.f32.mrb[76].mxu0 }
0x14a0   :  { %v10980_v12 = vpop.f32.mrb[77].mxu0 }
0x14a1   :  { %v10981_v21 = vadd.f32 %v10980_v12, %v10979_v11  ;;  %v10982_v27 = vpop.f32.mrb[78].mxu0  ;;  %v7460_v11 = vld [vmem:[%s13676_s30 + $0x1f8] sm:$0xff]  ;;  %v10044_v12 = vcombine.low %v7447_v57, %v7451_v13  ;;  %v7376_v57 = vld [vmem:[%s13677_s6 + $0x160] sm:$0xff]  ;;  %v7373_v13 = vld [vmem:[%s13677_s6 + $0x148] sm:$0xff] }
0x14a2   :  { %v10983_v34 = vpop.f32.mrb[79].mxu0  ;;  %v10053_v27 = vcombine.high %v7455_v8, %v7459_v10 }
0x14a3   :  { %v7286_v58 = vadd.f32 %v10981_v21, %v7246_v18  ;;  %v7456_v18 = vld [vmem:[%s13676_s30 + $0x1d8] sm:$0xff]  ;;  %v10046_v21 = vcombine.low %v7448_v60, %v7452_v61  ;;  %v7377_v60 = vld [vmem:[%s13677_s6 + $0x168] sm:$0xff] }
0x14a4   :  { %v10055_v34 = vcombine.high %v7456_v18, %v7460_v11 }
0x14a5   :  { %v7326_v30 = vadd.f32 %v7325_v41, %v7286_v58  ;;  %v10006_v41 = vcombine.low %v7408_v52, %v7412_v25  ;;  %v7332_v58 = vld [vmem:[%s13677_s6] sm:$0xff]  ;;  %v7337_v52 = vld [vmem:[%s13677_s6 + $0x28] sm:$0xff]  ;;  %v10052_v25 = vcombine.low %v7455_v8, %v7459_v10 }
0x14a6   :  { %v7384_v8 = vld [vmem:[%s13677_s6 + $0x1a0] sm:$0xff]  ;;  %v7381_v10 = vld [vmem:[%s13677_s6 + $0x188] sm:$0xff] }
0x14a7   :  { %v13359_v32 = vpack.c.bf16 %v7326_v30, %v7326_v30  ;;  %v10054_v30 = vcombine.low %v7456_v18, %v7460_v11  ;;  %v7385_v18 = vld [vmem:[%s13677_s6 + $0x1a8] sm:$0xff] }
0x14a9   :  { %7814 = vmatmul.mubr.bf16.vlgmr.msra.gmra.mrb[80].mxu0 %v13359_v32  ;;  %7855 = vmatmul.mubr.bf16.vlgmr.msra.gmra.mrb[80].mxu1 %v13359_v32 }
0x14aa   :  { %7864 = vmatpush1.bf16.msra.mxu0 %v9996_v47  ;;  %7905 = vmatpush1.bf16.msra.mxu1 %v9998_v62  ;;  %v7436_v47 = vld [vmem:[%s13676_s30 + $0x138] sm:$0xff]  ;;  %v10020_v62 = vcombine.low %v7423_v38, %v7427_v6  ;;  %v7348_v38 = vld [vmem:[%s13677_s6 + $0x80] sm:$0xff] }
0x14ab   :  { %7865 = vmatprep.subr.bf16.mxu0 %v10005_v46  ;;  %7906 = vmatprep.subr.bf16.mxu1 %v10007_v17  ;;  %v10031_v26 = vcombine.high %v7432_v31, %v7436_v47  ;;  %v10030_v53 = vcombine.low %v7432_v31, %v7436_v47  ;;  %v10057_v46 = vcombine.high %v7332_v58, %v7336_v2  ;;  %v7352_v6 = vld [vmem:[%s13677_s6 + $0xa0] sm:$0xff]  ;;  %v7357_v31 = vld [vmem:[%s13677_s6 + $0xc8] sm:$0xff] }
0x14ac   :  { %7895 = vmatprep.mubr.bf16.mxu0 %v12119_v33  ;;  %7936 = vmatprep.mubr.bf16.mxu1 %v12119_v33  ;;  %v10059_v17 = vcombine.high %v7333_v23, %v7337_v52  ;;  %v7361_v47 = vld [vmem:[%s13677_s6 + $0xe8] sm:$0xff] }
0x14ae   :  { %7866 = vmatpush1.bf16.msra.mxu0 %v10004_v39  ;;  %7907 = vmatpush1.bf16.msra.mxu1 %v10006_v41  ;;  %v10056_v39 = vcombine.low %v7332_v58, %v7336_v2  ;;  %v10058_v41 = vcombine.low %v7333_v23, %v7337_v52  ;;  %v7392_v58 = vld [vmem:[%s13677_s6 + $0x1e0] sm:$0xff]  ;;  %v7389_v2 = vld [vmem:[%s13677_s6 + $0x1c8] sm:$0xff] }
0x14af   :  { %7867 = vmatprep.subr.bf16.mxu0 %v10013_v14  ;;  %7908 = vmatprep.subr.bf16.mxu1 %v10015_v22  ;;  %v10065_v14 = vcombine.high %v7340_v54, %v7344_v35  ;;  %v10067_v22 = vcombine.high %v7341_v5, %v7345_v37  ;;  %v7393_v23 = vld [vmem:[%s13677_s6 + $0x1e8] sm:$0xff] }
0x14b2   :  { %7868 = vmatpush1.bf16.msra.mxu0 %v10012_v9  ;;  %7909 = vmatpush1.bf16.msra.mxu1 %v10014_v20  ;;  %v10064_v9 = vcombine.low %v7340_v54, %v7344_v35  ;;  %v10066_v20 = vcombine.low %v7341_v5, %v7345_v37  ;;  %v7334_v54 = vld [vmem:[%s13677_s6 + $0x10] sm:$0xff]  ;;  %v7335_v5 = vld [vmem:[%s13677_s6 + $0x18] sm:$0xff] }
0x14b3   :  { %7869 = vmatprep.subr.bf16.mxu0 %v10021_v24  ;;  %7910 = vmatprep.subr.bf16.mxu1 %v10023_v1  ;;  %v10073_v24 = vcombine.high %v7348_v38, %v7352_v6  ;;  %v10075_v1 = vcombine.high %v7349_v40, %v7353_v43  ;;  %v7338_v35 = vld [vmem:[%s13677_s6 + $0x30] sm:$0xff]  ;;  %v7339_v37 = vld [vmem:[%s13677_s6 + $0x38] sm:$0xff] }
0x14b6   :  { %7870 = vmatpush1.bf16.msra.mxu0 %v10020_v62  ;;  %7911 = vmatpush1.bf16.msra.mxu1 %v10022_v48  ;;  %v10074_v62 = vcombine.low %v7349_v40, %v7353_v43  ;;  %v10081_v48 = vcombine.high %v7356_v44, %v7360_v45  ;;  %v7346_v40 = vld [vmem:[%s13677_s6 + $0x70] sm:$0xff]  ;;  %v7343_v43 = vld [vmem:[%s13677_s6 + $0x58] sm:$0xff] }
0x14b7   :  { %7871 = vmatprep.subr.bf16.mxu0 %v10029_v15  ;;  %7912 = vmatprep.subr.bf16.mxu1 %v10031_v26  ;;  %v10083_v15 = vcombine.high %v7357_v31, %v7361_v47  ;;  %v7364_v26 = vld [vmem:[%s13677_s6 + $0x100] sm:$0xff]  ;;  %v7350_v45 = vld [vmem:[%s13677_s6 + $0x90] sm:$0xff] }
0x14b8   :  { %v10088_v61 = vcombine.low %v7364_v26, %v7368_v49 }
0x14ba   :  { %7872 = vmatpush1.bf16.msra.mxu0 %v10028_v19  ;;  %7913 = vmatpush1.bf16.msra.mxu1 %v10030_v53  ;;  %v10082_v19 = vcombine.low %v7357_v31, %v7361_v47  ;;  %v10089_v53 = vcombine.high %v7364_v26, %v7368_v49  ;;  %v7354_v31 = vld [vmem:[%s13677_s6 + $0xb0] sm:$0xff]  ;;  %v7351_v47 = vld [vmem:[%s13677_s6 + $0x98] sm:$0xff] }
0x14bb   :  { %7873 = vmatprep.subr.bf16.mxu0 %v10037_v16  ;;  %7914 = vmatprep.subr.bf16.mxu1 %v10039_v56  ;;  %v10091_v16 = vcombine.high %v7365_v55, %v7369_v50  ;;  %v7372_v56 = vld [vmem:[%s13677_s6 + $0x140] sm:$0xff]  ;;  %v7358_v49 = vld [vmem:[%s13677_s6 + $0xd0] sm:$0xff] }
0x14bc   :  { %v10096_v11 = vcombine.low %v7372_v56, %v7376_v57 }
0x14be   :  { %7874 = vmatpush1.bf16.msra.mxu0 %v10036_v42  ;;  %7915 = vmatpush1.bf16.msra.mxu1 %v10038_v0  ;;  %v10090_v42 = vcombine.low %v7365_v55, %v7369_v50  ;;  %v10097_v0 = vcombine.high %v7372_v56, %v7376_v57  ;;  %v7362_v55 = vld [vmem:[%s13677_s6 + $0xf0] sm:$0xff]  ;;  %v7359_v50 = vld [vmem:[%s13677_s6 + $0xd8] sm:$0xff] }
0x14bf   :  { %7875 = vmatprep.subr.bf16.mxu0 %v10045_v3  ;;  %7916 = vmatprep.subr.bf16.mxu1 %v10047_v7  ;;  %v10099_v3 = vcombine.high %v7373_v13, %v7377_v60  ;;  %v7380_v7 = vld [vmem:[%s13677_s6 + $0x180] sm:$0xff]  ;;  %v7366_v57 = vld [vmem:[%s13677_s6 + $0x110] sm:$0xff] }
0x14c0   :  { %v10104_v52 = vcombine.low %v7380_v7, %v7384_v8 }
0x14c2   :  { %7876 = vmatpush1.bf16.msra.mxu0 %v10044_v12  ;;  %7917 = vmatpush1.bf16.msra.mxu1 %v10046_v21  ;;  %v10098_v12 = vcombine.low %v7373_v13, %v7377_v60  ;;  %v10105_v21 = vcombine.high %v7380_v7, %v7384_v8  ;;  %v7370_v13 = vld [vmem:[%s13677_s6 + $0x130] sm:$0xff]  ;;  %v7367_v60 = vld [vmem:[%s13677_s6 + $0x118] sm:$0xff] }
0x14c3   :  { %7877 = vmatprep.subr.bf16.mxu0 %v10053_v27  ;;  %7918 = vmatprep.subr.bf16.mxu1 %v10055_v34  ;;  %v10107_v27 = vcombine.high %v7381_v10, %v7385_v18  ;;  %v7388_v34 = vld [vmem:[%s13677_s6 + $0x1c0] sm:$0xff]  ;;  %v7374_v7 = vld [vmem:[%s13677_s6 + $0x150] sm:$0xff] }
0x14c4   :  { %v7378_v8 = vld [vmem:[%s13677_s6 + $0x170] sm:$0xff] }
0x14c6   :  { %7878 = vmatpush1.bf16.msra.mxu0 %v10052_v25  ;;  %7919 = vmatpush1.bf16.msra.mxu1 %v10054_v30  ;;  %v10106_v25 = vcombine.low %v7381_v10, %v7385_v18  ;;  %v9533_v30 = vld [vmem:[%s13678_s12] ss:$0 sm:$0xff]  ;;  %v7375_v10 = vld [vmem:[%s13677_s6 + $0x158] sm:$0xff] }
0x14c7   :  { %8265 = vmatprep.subr.bf16.mxu0 %v10057_v46  ;;  %8306 = vmatprep.subr.bf16.mxu1 %v10059_v17  ;;  %v10113_v46 = vcombine.high %v7388_v34, %v7392_v58  ;;  %v10115_v17 = vcombine.high %v7389_v2, %v7393_v23  ;;  %v7379_v18 = vld [vmem:[%s13677_s6 + $0x178] sm:$0xff] }
0x14c9   :  { %7896 = vmatmul.mubr.bf16.vlgmr.msra.gmra.mrb[84].mxu0 %v13359_v32  ;;  %7937 = vmatmul.mubr.bf16.vlgmr.msra.gmra.mrb[84].mxu1 %v13359_v32  ;;  %v10072_v32 = vcombine.low %v7348_v38, %v7352_v6  ;;  %v10063_v38 = vcombine.high %v7335_v5, %v7339_v37  ;;  %v7342_v6 = vld [vmem:[%s13677_s6 + $0x50] sm:$0xff] }
0x14ca   :  { %8266 = vmatpush1.bf16.msra.mxu0 %v10056_v39  ;;  %8307 = vmatpush1.bf16.msra.mxu1 %v10058_v41  ;;  %v10112_v39 = vcombine.low %v7388_v34, %v7392_v58  ;;  %v10114_v41 = vcombine.low %v7389_v2, %v7393_v23  ;;  %v7382_v34 = vld [vmem:[%s13677_s6 + $0x190] sm:$0xff]  ;;  %v7383_v2 = vld [vmem:[%s13677_s6 + $0x198] sm:$0xff] }
0x14cb   :  { %8267 = vmatprep.subr.bf16.mxu0 %v10065_v14  ;;  %8308 = vmatprep.subr.bf16.mxu1 %v10067_v22  ;;  %v2083_v14 = vadd.f32 %v13034_v59, %v9533_v30  ;;  %v10061_v22 = vcombine.high %v7334_v54, %v7338_v35  ;;  %v10069_v59 = vcombine.high %v7342_v6, %v7346_v40  ;;  %v7386_v58 = vld [vmem:[%s13677_s6 + $0x1b0] sm:$0xff]  ;;  %v7387_v23 = vld [vmem:[%s13677_s6 + $0x1b8] sm:$0xff] }
0x14cc   :  { %8297 = vmatprep.mubr.bf16.mxu0 %v12119_v33  ;;  %8338 = vmatprep.mubr.bf16.mxu1 %v12119_v33  ;;  %v10109_v30 = vcombine.high %v7382_v34, %v7386_v58 }
0x14ce   :  { %8268 = vmatpush1.bf16.msra.mxu0 %v10064_v9  ;;  %8309 = vmatpush1.bf16.msra.mxu1 %v10066_v20  ;;  %v7347_v9 = vld [vmem:[%s13677_s6 + $0x78] sm:$0xff]  ;;  %v10060_v20 = vcombine.low %v7334_v54, %v7338_v35  ;;  %v7394_v54 = vld [vmem:[%s13677_s6 + $0x1f0] sm:$0xff] }
0x14cf   :  { %8269 = vmatprep.subr.bf16.mxu0 %v10073_v24  ;;  %8310 = vmatprep.subr.bf16.mxu1 %v10075_v1  ;;  %v10062_v24 = vcombine.low %v7335_v5, %v7339_v37  ;;  %v13435_v1 = vpack.c.bf16 %v2083_v14, %v2083_v14  ;;  %v10071_v44 = vcombine.high %v7343_v43, %v7347_v9  ;;  %v7391_v35 = vld [vmem:[%s13677_s6 + $0x1d8] sm:$0xff] }
0x14d0   :  { %v7395_v5 = vld [vmem:[%s13677_s6 + $0x1f8] sm:$0xff]  ;;  %v10108_v37 = vcombine.low %v7382_v34, %v7386_v58  ;;  %v11914_v34 = vld [vmem:[%s13679_s1 + $0x264] ss:$8 sps:$4 sm:$0xff]   ;;  %v11912_v58 = vld [vmem:[%s13679_s1 + $0x260] ss:$8 sps:$4 sm:$0xff]  }
0x14d1   :  { %v10119_v14 = vcombine.high %v7391_v35, %v7395_v5 }
0x14d2   :  { %8270 = vmatpush1.bf16.msra.mxu0 %v10072_v32  ;;  %8311 = vmatpush1.bf16.msra.mxu1 %v10074_v62  ;;  %v7355_v32 = vld [vmem:[%s13677_s6 + $0xb8] sm:$0xff]  ;;  %v10068_v62 = vcombine.low %v7342_v6, %v7346_v40  ;;  %v11851_v6 = vld [vmem:[%s13679_s1 + $0x4] ss:$8 sps:$4 sm:$0xff]   ;;  %v11849_v40 = vld [vmem:[%s13679_s1] ss:$8 sps:$4 sm:$0xff]  }
0x14d3   :  { %8271 = vmatprep.subr.bf16.mxu0 %v10081_v48  ;;  %8312 = vmatprep.subr.bf16.mxu1 %v10083_v15  ;;  %v10070_v48 = vcombine.low %v7343_v43, %v7347_v9  ;;  %v10077_v15 = vcombine.high %v7350_v45, %v7354_v31  ;;  %v10079_v26 = vcombine.high %v7351_v47, %v7355_v32  ;;  %v11854_v43 = vld [vmem:[%s13679_s1 + $0x14] ss:$8 sps:$4 sm:$0xff]   ;;  %v11852_v9 = vld [vmem:[%s13679_s1 + $0x10] ss:$8 sps:$4 sm:$0xff]  }
0x14d6   :  { %8272 = vmatpush1.bf16.msra.mxu0 %v10080_v51  ;;  %8313 = vmatpush1.bf16.msra.mxu1 %v10082_v19  ;;  %v7363_v51 = vld [vmem:[%s13677_s6 + $0xf8] sm:$0xff]  ;;  %v10076_v19 = vcombine.low %v7350_v45, %v7354_v31  ;;  %v11863_v45 = vld [vmem:[%s13679_s1 + $0x44] ss:$8 sps:$4 sm:$0xff]  }
0x14d7   :  { %8273 = vmatprep.subr.bf16.mxu0 %v10089_v53  ;;  %8314 = vmatprep.subr.bf16.mxu1 %v10091_v16  ;;  %v10078_v53 = vcombine.low %v7351_v47, %v7355_v32  ;;  %v10085_v16 = vcombine.high %v7358_v49, %v7362_v55  ;;  %v10087_v56 = vcombine.high %v7359_v50, %v7363_v51  ;;  %v11866_v31 = vld [vmem:[%s13679_s1 + $0x54] ss:$8 sps:$4 sm:$0xff]   ;;  %v11864_v47 = vld [vmem:[%s13679_s1 + $0x50] ss:$8 sps:$4 sm:$0xff]   ;;  %v11869_v32 = vld [vmem:[%s13679_s1 + $0x64] ss:$8 sps:$4 sm:$0xff]  }
0x14da   :  { %8274 = vmatpush1.bf16.msra.mxu0 %v10088_v61  ;;  %8315 = vmatpush1.bf16.msra.mxu1 %v10090_v42  ;;  %v7371_v61 = vld [vmem:[%s13677_s6 + $0x138] sm:$0xff]  ;;  %v10084_v42 = vcombine.low %v7358_v49, %v7362_v55 }
0x14db   :  { %8275 = vmatprep.subr.bf16.mxu0 %v10097_v0  ;;  %8316 = vmatprep.subr.bf16.mxu1 %v10099_v3  ;;  %v10093_v0 = vcombine.high %v7366_v57, %v7370_v13  ;;  %v10095_v3 = vcombine.high %v7367_v60, %v7371_v61  ;;  %v11870_v49 = vld [vmem:[%s13679_s1 + $0x70] ss:$8 sps:$4 sm:$0xff]   ;;  %v11884_v55 = vld [vmem:[%s13679_s1 + $0x214] ss:$8 sps:$4 sm:$0xff]  }
0x14de   :  { %8276 = vmatpush1.bf16.msra.mxu0 %v10096_v11  ;;  %8317 = vmatpush1.bf16.msra.mxu1 %v10098_v12  ;;  %v10092_v11 = vcombine.low %v7366_v57, %v7370_v13  ;;  %v10094_v12 = vcombine.low %v7367_v60, %v7371_v61  ;;  %v11896_v57 = vld [vmem:[%s13679_s1 + $0x234] ss:$8 sps:$4 sm:$0xff]   ;;  %v11879_v13 = vld [vmem:[%s13679_s1 + $0x90] ss:$8 sps:$4 sm:$0xff]   ;;  %v11887_v60 = vld [vmem:[%s13679_s1 + $0xa4] ss:$8 sps:$4 sm:$0xff]  }
0x14df   :  { %8277 = vmatprep.subr.bf16.mxu0 %v10105_v21  ;;  %8318 = vmatprep.subr.bf16.mxu1 %v10107_v27  ;;  %v10101_v21 = vcombine.high %v7374_v7, %v7378_v8  ;;  %v10103_v27 = vcombine.high %v7375_v10, %v7379_v18  ;;  %v11894_v61 = vld [vmem:[%s13679_s1 + $0x230] ss:$8 sps:$4 sm:$0xff]  }
0x14e2   :  { %8278 = vmatpush1.bf16.msra.mxu0 %v10104_v52  ;;  %8319 = vmatpush1.bf16.msra.mxu1 %v10106_v25  ;;  %v10100_v52 = vcombine.low %v7374_v7, %v7378_v8  ;;  %v10102_v25 = vcombine.low %v7375_v10, %v7379_v18  ;;  %v11908_v7 = vld [vmem:[%s13679_s1 + $0x254] ss:$8 sps:$4 sm:$0xff]   ;;  %v11891_v8 = vld [vmem:[%s13679_s1 + $0xb0] ss:$8 sps:$4 sm:$0xff]   ;;  %v11899_v10 = vld [vmem:[%s13679_s1 + $0xc4] ss:$8 sps:$4 sm:$0xff]  }
0x14e3   :  { %8279 = vmatprep.subr.bf16.mxu0 %v10113_v46  ;;  %8320 = vmatprep.subr.bf16.mxu1 %v10115_v17  ;;  %v10111_v46 = vcombine.high %v7383_v2, %v7387_v23  ;;  %v7390_v17 = vld [vmem:[%s13677_s6 + $0x1d0] sm:$0xff] }
0x14e4   :  { %v11906_v18 = vld [vmem:[%s13679_s1 + $0x250] ss:$8 sps:$4 sm:$0xff]  }
0x14e6   :  { %8280 = vmatpush1.bf16.msra.mxu0 %v10112_v39  ;;  %8321 = vmatpush1.bf16.msra.mxu1 %v10114_v41  ;;  %v10110_v39 = vcombine.low %v7383_v2, %v7387_v23  ;;  %v10117_v41 = vcombine.high %v7390_v17, %v7394_v54  ;;  %v11909_v2 = vld [vmem:[%s13679_s1 + $0xe0] ss:$8 sps:$4 sm:$0xff]   ;;  %v11917_v23 = vld [vmem:[%s13679_s1 + $0xf4] ss:$8 sps:$4 sm:$0xff]  }
0x14e7   :  { %8347 = vmatprep.subr.bf16.mxu0 %v10061_v22  ;;  %8388 = vmatprep.subr.bf16.mxu1 %v10063_v38  ;;  %v10116_v22 = vcombine.low %v7390_v17, %v7394_v54  ;;  %v10118_v38 = vcombine.low %v7391_v35, %v7395_v5  ;;  %v11926_v17 = vld [vmem:[%s13679_s1 + $0x284] ss:$8 sps:$4 sm:$0xff]   ;;  %v11924_v54 = vld [vmem:[%s13679_s1 + $0x280] ss:$8 sps:$4 sm:$0xff]   ;;  %v11930_v35 = vld [vmem:[%s13679_s1 + $0x290] ss:$8 sps:$4 sm:$0xff]  }
0x14e8   :  { %v11932_v5 = vld [vmem:[%s13679_s1 + $0x294] ss:$8 sps:$4 sm:$0xff]  }
0x14e9   :  { %8298 = vmatmul.mubr.bf16.vlgmr.msra.gmra.mrb[88].mxu0 %v13435_v1  ;;  %8339 = vmatmul.mubr.bf16.vlgmr.msra.gmra.mrb[88].mxu1 %v13435_v1 }
0x14ea   :  { %8348 = vmatpush1.bf16.msra.mxu0 %v10060_v20  ;;  %8389 = vmatpush1.bf16.msra.mxu1 %v10062_v24  ;;  %v11857_v20 = vld [vmem:[%s13679_s1 + $0x24] ss:$8 sps:$4 sm:$0xff]   ;;  %v11855_v24 = vld [vmem:[%s13679_s1 + $0x20] ss:$8 sps:$4 sm:$0xff]  }
0x14eb   :  { %8349 = vmatprep.subr.bf16.mxu0 %v10069_v59  ;;  %8390 = vmatprep.subr.bf16.mxu1 %v10071_v44  ;;  %v11860_v59 = vld [vmem:[%s13679_s1 + $0x34] ss:$8 sps:$4 sm:$0xff]   ;;  %v11858_v44 = vld [vmem:[%s13679_s1 + $0x30] ss:$8 sps:$4 sm:$0xff]  }
0x14ec   :  { %8379 = vmatprep.mubr.bf16.mxu0 %v12119_v33  ;;  %8420 = vmatprep.mubr.bf16.mxu1 %v12119_v33  ;;  %v10086_v33 = vcombine.low %v7359_v50, %v7363_v51  ;;  %v11875_v50 = vld [vmem:[%s13679_s1 + $0x84] ss:$8 sps:$4 sm:$0xff]   ;;  %v11882_v51 = vld [vmem:[%s13679_s1 + $0x210] ss:$8 sps:$4 sm:$0xff]  }
0x14ee   :  { %8350 = vmatpush1.bf16.msra.mxu0 %v10068_v62  ;;  %8391 = vmatpush1.bf16.msra.mxu1 %v10070_v48  ;;  %v11867_v62 = vld [vmem:[%s13679_s1 + $0x60] ss:$8 sps:$4 sm:$0xff]   ;;  %v11872_v48 = vld [vmem:[%s13679_s1 + $0x74] ss:$8 sps:$4 sm:$0xff]  }
0x14ef   :  { %8351 = vmatprep.subr.bf16.mxu0 %v10077_v15  ;;  %8392 = vmatprep.subr.bf16.mxu1 %v10079_v26  ;;  %v11876_v15 = vld [vmem:[%s13679_s1 + $0x200] ss:$8 sps:$4 sm:$0xff]   ;;  %v11878_v26 = vld [vmem:[%s13679_s1 + $0x204] ss:$8 sps:$4 sm:$0xff]  }
0x14f2   :  { %8352 = vmatpush1.bf16.msra.mxu0 %v10076_v19  ;;  %8393 = vmatpush1.bf16.msra.mxu1 %v10078_v53  ;;  %v11890_v19 = vld [vmem:[%s13679_s1 + $0x224] ss:$8 sps:$4 sm:$0xff]   ;;  %v11873_v53 = vld [vmem:[%s13679_s1 + $0x80] ss:$8 sps:$4 sm:$0xff]  }
0x14f3   :  { %8353 = vmatprep.subr.bf16.mxu0 %v10085_v16  ;;  %8394 = vmatprep.subr.bf16.mxu1 %v10087_v56  ;;  %v11881_v16 = vld [vmem:[%s13679_s1 + $0x94] ss:$8 sps:$4 sm:$0xff]   ;;  %v11888_v56 = vld [vmem:[%s13679_s1 + $0x220] ss:$8 sps:$4 sm:$0xff]  }
0x14f6   :  { %8354 = vmatpush1.bf16.msra.mxu0 %v10084_v42  ;;  %8395 = vmatpush1.bf16.msra.mxu1 %v10086_v33  ;;  %v11902_v42 = vld [vmem:[%s13679_s1 + $0x244] ss:$8 sps:$4 sm:$0xff]   ;;  %v11885_v33 = vld [vmem:[%s13679_s1 + $0xa0] ss:$8 sps:$4 sm:$0xff]  }
0x14f7   :  { %8355 = vmatprep.subr.bf16.mxu0 %v10093_v0  ;;  %8396 = vmatprep.subr.bf16.mxu1 %v10095_v3  ;;  %v11893_v0 = vld [vmem:[%s13679_s1 + $0xb4] ss:$8 sps:$4 sm:$0xff]   ;;  %v11900_v3 = vld [vmem:[%s13679_s1 + $0x240] ss:$8 sps:$4 sm:$0xff]  }
0x14fa   :  { %8356 = vmatpush1.bf16.msra.mxu0 %v10092_v11  ;;  %8397 = vmatpush1.bf16.msra.mxu1 %v10094_v12  ;;  %v11897_v11 = vld [vmem:[%s13679_s1 + $0xc0] ss:$8 sps:$4 sm:$0xff]   ;;  %v11905_v12 = vld [vmem:[%s13679_s1 + $0xd4] ss:$8 sps:$4 sm:$0xff]  }
0x14fb   :  { %8357 = vmatprep.subr.bf16.mxu0 %v10101_v21  ;;  %8398 = vmatprep.subr.bf16.mxu1 %v10103_v27  ;;  %v11903_v21 = vld [vmem:[%s13679_s1 + $0xd0] ss:$8 sps:$4 sm:$0xff]   ;;  %v11911_v27 = vld [vmem:[%s13679_s1 + $0xe4] ss:$8 sps:$4 sm:$0xff]  }
0x14fe   :  { %8358 = vmatpush1.bf16.msra.mxu0 %v10100_v52  ;;  %8399 = vmatpush1.bf16.msra.mxu1 %v10102_v25  ;;  %v11920_v52 = vld [vmem:[%s13679_s1 + $0x274] ss:$8 sps:$4 sm:$0xff]   ;;  %v11918_v25 = vld [vmem:[%s13679_s1 + $0x270] ss:$8 sps:$4 sm:$0xff]  }
0x14ff   :  { %8359 = vmatprep.subr.bf16.mxu0 %v10109_v30  ;;  %8400 = vmatprep.subr.bf16.mxu1 %v10111_v46  ;;  %v11915_v30 = vld [vmem:[%s13679_s1 + $0xf0] ss:$8 sps:$4 sm:$0xff]   ;;  %v11923_v46 = vld [vmem:[%s13679_s1 + $0x104] ss:$8 sps:$4 sm:$0xff]  }
0x1502   :  { %8360 = vmatpush1.bf16.msra.mxu0 %v10108_v37  ;;  %8401 = vmatpush1.bf16.msra.mxu1 %v10110_v39  ;;  %v11936_v37 = vld [vmem:[%s13679_s1 + $0x2a0] ss:$8 sps:$4 sm:$0xff]   ;;  %v11938_v39 = vld [vmem:[%s13679_s1 + $0x2a4] ss:$8 sps:$4 sm:$0xff]  }
0x1503   :  { %8361 = vmatprep.subr.bf16.mxu0 %v10117_v41  ;;  %8402 = vmatprep.subr.bf16.mxu1 %v10119_v14  ;;  %v11942_v41 = vld [vmem:[%s13679_s1 + $0x2b0] ss:$8 sps:$4 sm:$0xff]   ;;  %v11944_v14 = vld [vmem:[%s13679_s1 + $0x2b4] ss:$8 sps:$4 sm:$0xff]  }
0x1506   :  { %8362 = vmatpush1.bf16.msra.mxu0 %v10116_v22  ;;  %8403 = vmatpush1.bf16.msra.mxu1 %v10118_v38  ;;  %v11948_v22 = vld [vmem:[%s13679_s1 + $0x2c0] ss:$8 sps:$4 sm:$0xff]   ;;  %v11950_v38 = vld [vmem:[%s13679_s1 + $0x2c4] ss:$8 sps:$4 sm:$0xff]  }
0x1507   :  { %9275 = vmatprep.subr.bf16.mxu1 %v11851_v6  ;;  %9357 = vmatprep.subr.bf16.mxu0 %v11878_v26  ;;  %v11954_v6 = vld [vmem:[%s13679_s1 + $0x2d0] ss:$8 sps:$4 sm:$0xff]  }
0x1509   :  { %8380 = vmatmul.mubr.bf16.vlgmr.msra.gmra.mrb[92].mxu0 %v13435_v1  ;;  %8421 = vmatmul.mubr.bf16.vlgmr.msra.gmra.mrb[92].mxu1 %v13435_v1  ;;  %v11861_v1 = vld [vmem:[%s13679_s1 + $0x40] ss:$8 sps:$4 sm:$0xff]  }
0x150a   :  { %9276 = vmatpush1.bf16.msra.mxu1 %v11849_v40  ;;  %9358 = vmatpush1.bf16.msra.mxu0 %v11876_v15  ;;  %v11956_v40 = vld [vmem:[%s13679_s1 + $0x2d4] ss:$8 sps:$4 sm:$0xff]  }
0x150b   :  { %9277 = vmatprep.subr.bf16.mxu1 %v11854_v43  ;;  %9359 = vmatprep.subr.bf16.mxu0 %v11884_v55  ;;  %v11962_v43 = vld [vmem:[%s13679_s1 + $0x2e4] ss:$8 sps:$4 sm:$0xff]  }
0x150e   :  { %9278 = vmatpush1.bf16.msra.mxu1 %v11852_v9  ;;  %9360 = vmatpush1.bf16.msra.mxu0 %v11882_v51  ;;  %v11960_v9 = vld [vmem:[%s13679_s1 + $0x2e0] ss:$8 sps:$4 sm:$0xff]  }
0x150f   :  { %9279 = vmatprep.subr.bf16.mxu1 %v11857_v20  ;;  %9361 = vmatprep.subr.bf16.mxu0 %v11890_v19  ;;  %v11968_v20 = vld [vmem:[%s13679_s1 + $0x2f4] ss:$8 sps:$4 sm:$0xff]  }
0x1512   :  { %9280 = vmatpush1.bf16.msra.mxu1 %v11855_v24  ;;  %9362 = vmatpush1.bf16.msra.mxu0 %v11888_v56  ;;  %v11966_v24 = vld [vmem:[%s13679_s1 + $0x2f0] ss:$8 sps:$4 sm:$0xff]  }
0x1513   :  { %9281 = vmatprep.subr.bf16.mxu1 %v11860_v59  ;;  %9363 = vmatprep.subr.bf16.mxu0 %v11896_v57  ;;  %v11974_v59 = vld [vmem:[%s13679_s1 + $0x304] ss:$8 sps:$4 sm:$0xff]  }
0x1516   :  { %9282 = vmatpush1.bf16.msra.mxu1 %v11858_v44  ;;  %9364 = vmatpush1.bf16.msra.mxu0 %v11894_v61 }
0x1517   :  { %9283 = vmatprep.subr.bf16.mxu1 %v11863_v45  ;;  %9365 = vmatprep.subr.bf16.mxu0 %v11902_v42 }
0x151a   :  { %9284 = vmatpush1.bf16.msra.mxu1 %v11861_v1  ;;  %9366 = vmatpush1.bf16.msra.mxu0 %v11900_v3 }
0x151b   :  { %9285 = vmatprep.subr.bf16.mxu1 %v11866_v31  ;;  %9367 = vmatprep.subr.bf16.mxu0 %v11908_v7 }
0x151e   :  { %9286 = vmatpush1.bf16.msra.mxu1 %v11864_v47  ;;  %9368 = vmatpush1.bf16.msra.mxu0 %v11906_v18 }
0x151f   :  { %9287 = vmatprep.subr.bf16.mxu1 %v11869_v32  ;;  %9369 = vmatprep.subr.bf16.mxu0 %v11914_v34 }
0x1522   :  { %9288 = vmatpush1.bf16.msra.mxu1 %v11867_v62  ;;  %9370 = vmatpush1.bf16.msra.mxu0 %v11912_v58 }
0x1523   :  { %9289 = vmatprep.subr.bf16.mxu1 %v11872_v48  ;;  %9371 = vmatprep.subr.bf16.mxu0 %v11920_v52 }
0x1526   :  { %9290 = vmatpush1.bf16.msra.mxu1 %v11870_v49  ;;  %9372 = vmatpush1.bf16.msra.mxu0 %v11918_v25  ;;  %v11921_v25 = vld [vmem:[%s13679_s1 + $0x100] ss:$8 sps:$4 sm:$0xff]  }
0x1527   :  { %9291 = vmatprep.subr.bf16.mxu1 %v11875_v50  ;;  %9373 = vmatprep.subr.bf16.mxu0 %v11926_v17 }
0x152a   :  { %9292 = vmatpush1.bf16.msra.mxu1 %v11873_v53  ;;  %9374 = vmatpush1.bf16.msra.mxu0 %v11924_v54  ;;  %v11927_v54 = vld [vmem:[%s13679_s1 + $0x110] ss:$8 sps:$4 sm:$0xff]  }
0x152b   :  { %9293 = vmatprep.subr.bf16.mxu1 %v11881_v16  ;;  %9375 = vmatprep.subr.bf16.mxu0 %v11932_v5  ;;  %v8429_v16 = vld [vmem:[%s13680_s2] sm:$0xff] }
0x152c   :  { %v8434_v56 = vrot.slane %v8429_v16, %v12350_v29  ;;  %v8442_v57 = vrot.slane %v8429_v16, %v12364_v63  ;;  %v8438_v61 = vrot.slane %v8429_v16, %v12358_v36  ;;  %v8446_v42 = vrot.slane %v8429_v16, %v12368_v4  ;;  %v11933_v5 = vld [vmem:[%s13679_s1 + $0x120] ss:$8 sps:$4 sm:$0xff]  }
0x152e   :  { %9294 = vmatpush1.bf16.msra.mxu1 %v11879_v13  ;;  %9376 = vmatpush1.bf16.msra.mxu0 %v11930_v35  ;;  %v11935_v35 = vld [vmem:[%s13679_s1 + $0x124] ss:$8 sps:$4 sm:$0xff]  }
0x152f   :  { %9295 = vmatprep.subr.bf16.mxu1 %v11887_v60  ;;  %9377 = vmatprep.subr.bf16.mxu0 %v11938_v39  ;;  %v11939_v39 = vld [vmem:[%s13679_s1 + $0x130] ss:$8 sps:$4 sm:$0xff]  }
0x1532   :  { %9296 = vmatpush1.bf16.msra.mxu1 %v11885_v33  ;;  %9378 = vmatpush1.bf16.msra.mxu0 %v11936_v37  ;;  %v11941_v37 = vld [vmem:[%s13679_s1 + $0x134] ss:$8 sps:$4 sm:$0xff]  }
0x1533   :  { %9297 = vmatprep.subr.bf16.mxu1 %v11893_v0  ;;  %9379 = vmatprep.subr.bf16.mxu0 %v11944_v14  ;;  %v11945_v14 = vld [vmem:[%s13679_s1 + $0x140] ss:$8 sps:$4 sm:$0xff]  }
0x1536   :  { %9298 = vmatpush1.bf16.msra.mxu1 %v11891_v8  ;;  %9380 = vmatpush1.bf16.msra.mxu0 %v11942_v41  ;;  %v11947_v41 = vld [vmem:[%s13679_s1 + $0x144] ss:$8 sps:$4 sm:$0xff]  }
0x1537   :  { %9299 = vmatprep.subr.bf16.mxu1 %v11899_v10  ;;  %9381 = vmatprep.subr.bf16.mxu0 %v11950_v38  ;;  %v8449_v38 = vsub.s32 4, %v12347_v28 }
0x153a   :  { %9300 = vmatpush1.bf16.msra.mxu1 %v11897_v11  ;;  %9382 = vmatpush1.bf16.msra.mxu0 %v11948_v22  ;;  %v11953_v22 = vld [vmem:[%s13679_s1 + $0x154] ss:$8 sps:$4 sm:$0xff]  }
0x153b   :  { %9301 = vmatprep.subr.bf16.mxu1 %v11905_v12  ;;  %9383 = vmatprep.subr.bf16.mxu0 %v11956_v40  ;;  %v11951_v40 = vld [vmem:[%s13679_s1 + $0x150] ss:$8 sps:$4 sm:$0xff]  }
0x153e   :  { %9302 = vmatpush1.bf16.msra.mxu1 %v11903_v21  ;;  %9384 = vmatpush1.bf16.msra.mxu0 %v11954_v6  ;;  %v8457_v6 = vsub.s32 6, %v12347_v28 }
0x153f   :  { %9303 = vmatprep.subr.bf16.mxu1 %v11911_v27  ;;  %9385 = vmatprep.subr.bf16.mxu0 %v11962_v43  ;;  %v8453_v43 = vsub.s32 5, %v12347_v28 }
0x1542   :  { %9304 = vmatpush1.bf16.msra.mxu1 %v11909_v2  ;;  %9386 = vmatpush1.bf16.msra.mxu0 %v11960_v9  ;;  %v8461_v9 = vsub.s32 7, %v12347_v28  ;;  %v11965_v28 = vld [vmem:[%s13679_s1 + $0x174] ss:$8 sps:$4 sm:$0xff]  }
0x1543   :  { %9305 = vmatprep.subr.bf16.mxu1 %v11917_v23  ;;  %9387 = vmatprep.subr.bf16.mxu0 %v11968_v20  ;;  %v11959_v20 = vld [vmem:[%s13679_s1 + $0x164] ss:$8 sps:$4 sm:$0xff]  }
0x1546   :  { %9306 = vmatpush1.bf16.msra.mxu1 %v11915_v30  ;;  %9388 = vmatpush1.bf16.msra.mxu0 %v11966_v24  ;;  %v8450_v24 = vrot.slane %v8429_v16, %v8449_v38  ;;  %v12008_v38 = vld [vmem:[%s13679_s1 + $0x360] ss:$8 sps:$4 sm:$0xff]  }
0x1547   :  { %9316 = vmatprep.subr.bf16.mxu1 %v11923_v46  ;;  %9398 = vmatprep.subr.bf16.mxu0 %v11974_v59  ;;  %v11929_v46 = vld [vmem:[%s13679_s1 + $0x114] ss:$8 sps:$4 sm:$0xff]   ;;  %v8458_v59 = vrot.slane %v8429_v16, %v8457_v6 }
0x1548   :  { %v12013_v6 = vld [vmem:[%s13679_s1 + $0x1f4] ss:$8 sps:$4 sm:$0xff]  }
0x157c   :  { %v7815_v44 = vpop.f32.mrb[80].mxu0  ;;  %v7856_v45 = vpop.f32.mrb[80].mxu1 }
0x157d   :  { %v7817_v1 = vpop.f32.mrb[81].mxu0  ;;  %v7858_v31 = vpop.f32.mrb[81].mxu1 }
0x157e   :  { %v7819_v47 = vpop.f32.mrb[82].mxu0  ;;  %v7860_v32 = vpop.f32.mrb[82].mxu1 }
0x157f   :  { %v7820_v62 = vpop.f32.mrb[83].mxu0  ;;  %v7861_v48 = vpop.f32.mrb[83].mxu1  ;;  %v11957_v47 = vld [vmem:[%s13679_s1 + $0x160] ss:$8 sps:$4 sm:$0xff]  }
0x159c   :  { %v13533_v15 = vpop.f32.mrb[84].mxu0  ;;  %v13535_v26 = vpop.f32.mrb[84].mxu1 }
0x159d   :  { %v13537_v49 = vpop.f32.mrb[85].mxu0  ;;  %v13539_v55 = vpop.f32.mrb[85].mxu1 }
0x159e   :  { %v7901_v50 = vpop.f32.mrb[86].mxu0  ;;  %v7942_v51 = vpop.f32.mrb[86].mxu1 }
0x159f   :  { %v7902_v19 = vpop.f32.mrb[87].mxu0  ;;  %v7943_v53 = vpop.f32.mrb[87].mxu1 }
0x15bc   :  { %v8299_v13 = vpop.f32.mrb[88].mxu0  ;;  %v8340_v60 = vpop.f32.mrb[88].mxu1 }
0x15bd   :  { %v8300_v33 = vadd.f32 %v8299_v13, %v7815_v44  ;;  %v8341_v0 = vadd.f32 %v8340_v60, %v7856_v45  ;;  %v8301_v3 = vpop.f32.mrb[89].mxu0  ;;  %v8342_v7 = vpop.f32.mrb[89].mxu1 }
0x15be   :  { %v8302_v8 = vadd.f32 %v8301_v3, %v7817_v1  ;;  %v8343_v10 = vadd.f32 %v8342_v7, %v7858_v31  ;;  %v8303_v18 = vpop.f32.mrb[90].mxu0  ;;  %v8344_v11 = vpop.f32.mrb[90].mxu1  ;;  %v8454_v1 = vrot.slane %v8429_v16, %v8453_v43  ;;  %v8462_v31 = vrot.slane %v8429_v16, %v8461_v9  ;;  %v11969_v3 = vld [vmem:[%s13679_s1 + $0x180] ss:$8 sps:$4 sm:$0xff]   ;;  %v12011_v43 = vld [vmem:[%s13679_s1 + $0x1f0] ss:$8 sps:$4 sm:$0xff]  }
0x15bf   :  { %v8471_v12 = vadd.f32 %v8434_v56, %v8300_v33  ;;  %v13546_v21 = vadd.f32 %v8442_v57, %v8341_v0  ;;  %v8304_v63 = vpop.f32.mrb[91].mxu0  ;;  %v8345_v27 = vpop.f32.mrb[91].mxu1  ;;  %v11972_v7 = vld [vmem:[%s13679_s1 + $0x300] ss:$8 sps:$4 sm:$0xff]   ;;  %v11980_v18 = vld [vmem:[%s13679_s1 + $0x314] ss:$8 sps:$4 sm:$0xff]  }
0x15c0   :  { %v8472_v34 = vadd.f32 %v8438_v61, %v8302_v8  ;;  %v8474_v58 = vadd.f32 %v8446_v42, %v8343_v10  ;;  %v11963_v61 = vld [vmem:[%s13679_s1 + $0x170] ss:$8 sps:$4 sm:$0xff]   ;;  %v11977_v10 = vld [vmem:[%s13679_s1 + $0x194] ss:$8 sps:$4 sm:$0xff]   ;;  %v11983_v27 = vld [vmem:[%s13679_s1 + $0x1a4] ss:$8 sps:$4 sm:$0xff]  }
0x15c1   :  { %v8479_v4 = vmax.f32 %v8471_v12, 0.0  ;;  %v11975_v12 = vld [vmem:[%s13679_s1 + $0x190] ss:$8 sps:$4 sm:$0xff]  }
0x15c2   :  { %v8480_v2 = vmax.f32 %v8472_v34, 0.0  ;;  %v8482_v23 = vmax.f32 %v8474_v58, 0.0  ;;  %v11978_v63 = vld [vmem:[%s13679_s1 + $0x310] ss:$8 sps:$4 sm:$0xff]   ;;  %v11986_v34 = vld [vmem:[%s13679_s1 + $0x324] ss:$8 sps:$4 sm:$0xff]  }
0x15c3   :  { %v8487_v30 = vpack.c.bf16 %v8479_v4, %v8479_v4  ;;  %v11981_v58 = vld [vmem:[%s13679_s1 + $0x1a0] ss:$8 sps:$4 sm:$0xff]   ;;  %v12014_v9 = vld [vmem:[%s13679_s1 + $0x370] ss:$8 sps:$4 sm:$0xff]  }
0x15c4   :  { %v8488_v52 = vpack.c.bf16 %v8480_v2, %v8480_v2  ;;  %v8490_v17 = vpack.c.bf16 %v8482_v23, %v8482_v23  ;;  %v11984_v4 = vld [vmem:[%s13679_s1 + $0x320] ss:$8 sps:$4 sm:$0xff]   ;;  %v11989_v2 = vld [vmem:[%s13679_s1 + $0x1b4] ss:$8 sps:$4 sm:$0xff]  }
0x15c5   :  { %v11992_v23 = vld [vmem:[%s13679_s1 + $0x334] ss:$8 sps:$4 sm:$0xff]  }
0x15c6   :  { %9307 = vmatprep.mubr.bf16.mxu1 %v8488_v52  ;;  %v11987_v52 = vld [vmem:[%s13679_s1 + $0x1b0] ss:$8 sps:$4 sm:$0xff]  }
0x15c7   :  { %9308 = vmatmul.mubr.bf16.vlgmr.msra.gmra.mrb[96].mxu1 %v8487_v30  ;;  %v11995_v30 = vld [vmem:[%s13679_s1 + $0x1c4] ss:$8 sps:$4 sm:$0xff]  }
0x15c8   :  { %9317 = vmatpush1.bf16.msra.mxu1 %v11921_v25  ;;  %9348 = vmatprep.mubr.bf16.mxu1 %v8490_v17  ;;  %v11990_v25 = vld [vmem:[%s13679_s1 + $0x330] ss:$8 sps:$4 sm:$0xff]   ;;  %v11993_v17 = vld [vmem:[%s13679_s1 + $0x1c0] ss:$8 sps:$4 sm:$0xff]  }
0x15c9   :  { %9318 = vmatprep.subr.bf16.mxu1 %v11929_v46  ;;  %v11998_v46 = vld [vmem:[%s13679_s1 + $0x344] ss:$8 sps:$4 sm:$0xff]  }
0x15cc   :  { %9319 = vmatpush1.bf16.msra.mxu1 %v11927_v54  ;;  %v11996_v54 = vld [vmem:[%s13679_s1 + $0x340] ss:$8 sps:$4 sm:$0xff]  }
0x15cd   :  { %9320 = vmatprep.subr.bf16.mxu1 %v11935_v35  ;;  %v12001_v35 = vld [vmem:[%s13679_s1 + $0x1d4] ss:$8 sps:$4 sm:$0xff]  }
0x15d0   :  { %9321 = vmatpush1.bf16.msra.mxu1 %v11933_v5  ;;  %v12004_v5 = vld [vmem:[%s13679_s1 + $0x354] ss:$8 sps:$4 sm:$0xff]  }
0x15d1   :  { %9322 = vmatprep.subr.bf16.mxu1 %v11941_v37  ;;  %v11999_v37 = vld [vmem:[%s13679_s1 + $0x1d0] ss:$8 sps:$4 sm:$0xff]  }
0x15d4   :  { %9323 = vmatpush1.bf16.msra.mxu1 %v11939_v39  ;;  %v12002_v39 = vld [vmem:[%s13679_s1 + $0x350] ss:$8 sps:$4 sm:$0xff]  }
0x15d5   :  { %9324 = vmatprep.subr.bf16.mxu1 %v11947_v41  ;;  %v12007_v41 = vld [vmem:[%s13679_s1 + $0x1e4] ss:$8 sps:$4 sm:$0xff]  }
0x15d8   :  { %9325 = vmatpush1.bf16.msra.mxu1 %v11945_v14  ;;  %v12010_v14 = vld [vmem:[%s13679_s1 + $0x364] ss:$8 sps:$4 sm:$0xff]  }
0x15d9   :  { %9326 = vmatprep.subr.bf16.mxu1 %v11953_v22  ;;  %v12005_v22 = vld [vmem:[%s13679_s1 + $0x1e0] ss:$8 sps:$4 sm:$0xff]  }
0x15dc   :  { %9327 = vmatpush1.bf16.msra.mxu1 %v11951_v40  ;;  %v8381_v44 = vpop.f32.mrb[92].mxu0  ;;  %v8422_v45 = vpop.f32.mrb[92].mxu1  ;;  %v12016_v40 = vld [vmem:[%s13679_s1 + $0x374] ss:$8 sps:$4 sm:$0xff]  }
0x15dd   :  { %v8382_v32 = vadd.f32 %v8381_v44, %v13533_v15  ;;  %v8423_v62 = vadd.f32 %v8422_v45, %v13535_v26  ;;  %v8383_v48 = vpop.f32.mrb[93].mxu0  ;;  %v8424_v50 = vpop.f32.mrb[93].mxu1  ;;  %9328 = vmatprep.subr.bf16.mxu1 %v11959_v20  ;;  %v8481_v20 = vmax.f32 %v13546_v21, 0.0  ;;  %v12022_v45 = vld [vmem:[%s13679_s1 + $0x394] ss:$8 sps:$4 sm:$0xff]  }
0x15de   :  { %v8384_v51 = vadd.f32 %v8383_v48, %v13537_v49  ;;  %v8425_v19 = vadd.f32 %v8424_v50, %v13539_v55  ;;  %v8385_v53 = vpop.f32.mrb[94].mxu0  ;;  %v8426_v56 = vpop.f32.mrb[94].mxu1  ;;  %v11971_v49 = vld [vmem:[%s13679_s1 + $0x184] ss:$8 sps:$4 sm:$0xff]   ;;  %v12029_v48 = vld [vmem:[%s13679_s1 + $0x3c0] ss:$8 sps:$4 sm:$0xff]  }
0x15df   :  { %v8475_v57 = vadd.f32 %v8450_v24, %v8382_v32  ;;  %v13570_v16 = vadd.f32 %v8458_v59, %v8423_v62  ;;  %v8386_v15 = vpop.f32.mrb[95].mxu0  ;;  %v8427_v13 = vpop.f32.mrb[95].mxu1  ;;  %v12019_v24 = vld [vmem:[%s13679_s1 + $0x384] ss:$8 sps:$4 sm:$0xff]   ;;  %v12017_v59 = vld [vmem:[%s13679_s1 + $0x380] ss:$8 sps:$4 sm:$0xff]   ;;  %v8489_v44 = vpack.c.bf16 %v8481_v20, %v8481_v20 }
0x15e0   :  { %v8476_v26 = vadd.f32 %v8454_v1, %v8384_v51  ;;  %v8478_v60 = vadd.f32 %v8462_v31, %v8425_v19  ;;  %9329 = vmatpush1.bf16.msra.mxu1 %v11957_v47  ;;  %v12020_v1 = vld [vmem:[%s13679_s1 + $0x390] ss:$8 sps:$4 sm:$0xff]   ;;  %v12025_v21 = vld [vmem:[%s13679_s1 + $0x3a4] ss:$8 sps:$4 sm:$0xff]   ;;  %v12023_v31 = vld [vmem:[%s13679_s1 + $0x3a0] ss:$8 sps:$4 sm:$0xff]  }
0x15e1   :  { %v8483_v42 = vmax.f32 %v8475_v57, 0.0  ;;  %9330 = vmatprep.subr.bf16.mxu1 %v11965_v28  ;;  %v12028_v47 = vld [vmem:[%s13679_s1 + $0x3b4] ss:$8 sps:$4 sm:$0xff]   ;;  %v12026_v32 = vld [vmem:[%s13679_s1 + $0x3b0] ss:$8 sps:$4 sm:$0xff]   ;;  %v8485_v57 = vmax.f32 %v13570_v16, 0.0 }
0x15e2   :  { %v8484_v55 = vmax.f32 %v8476_v26, 0.0  ;;  %v8486_v33 = vmax.f32 %v8478_v60, 0.0  ;;  %v12031_v62 = vld [vmem:[%s13679_s1 + $0x3c4] ss:$8 sps:$4 sm:$0xff]   ;;  %v12034_v50 = vld [vmem:[%s13679_s1 + $0x3d4] ss:$8 sps:$4 sm:$0xff]  }
0x15e3   :  { %v8491_v8 = vpack.c.bf16 %v8483_v42, %v8483_v42  ;;  %v12032_v28 = vld [vmem:[%s13679_s1 + $0x3d0] ss:$8 sps:$4 sm:$0xff]   ;;  %v12037_v51 = vld [vmem:[%s13679_s1 + $0x3e4] ss:$8 sps:$4 sm:$0xff]   ;;  %v12035_v19 = vld [vmem:[%s13679_s1 + $0x3e0] ss:$8 sps:$4 sm:$0xff]   ;;  %v8493_v15 = vpack.c.bf16 %v8485_v57, %v8485_v57 }
0x15e4   :  { %v8492_v0 = vpack.c.bf16 %v8484_v55, %v8484_v55  ;;  %9331 = vmatpush1.bf16.msra.mxu1 %v11963_v61  ;;  %v8494_v11 = vpack.c.bf16 %v8486_v33, %v8486_v33  ;;  %v12040_v53 = vld [vmem:[%s13679_s1 + $0x3f4] ss:$8 sps:$4 sm:$0xff]   ;;  %v12038_v56 = vld [vmem:[%s13679_s1 + $0x3f0] ss:$8 sps:$4 sm:$0xff]   ;;  %v8623_v42 = vld [vmem:[%s12288_s27] sm:$0x3] }
0x15e5   :  { %9332 = vmatprep.subr.bf16.mxu1 %v11971_v49  ;;  %v8628_v49 = vrot.slane %v8623_v42, %v12350_v29  ;;  %v8632_v55 = vrot.slane %v8623_v42, %v12358_v36  ;;  %v9441_v33 = vld [vmem:[%s12293_s4] sm:$0x3] }
0x15e6   :  { %9389 = vmatprep.mubr.bf16.mxu0 %v8492_v0  ;;  %v9446_v16 = vrot.slane %v9441_v33, %v12350_v29 }
0x15e7   :  { %9390 = vmatmul.mubr.bf16.vlgmr.msra.gmra.mrb[96].mxu0 %v8491_v8 }
0x15e8   :  { %9333 = vmatpush1.bf16.msra.mxu1 %v11969_v3  ;;  %9399 = vmatpush1.bf16.msra.mxu0 %v11972_v7 }
0x15e9   :  { %9430 = vmatprep.mubr.bf16.mxu0 %v8494_v11  ;;  %9334 = vmatprep.subr.bf16.mxu1 %v11977_v10 }
0x15ea   :  { %9400 = vmatprep.subr.bf16.mxu0 %v11980_v18 }
0x15ec   :  { %9335 = vmatpush1.bf16.msra.mxu1 %v11975_v12  ;;  %9401 = vmatpush1.bf16.msra.mxu0 %v11978_v63  ;;  %v9450_v12 = vrot.slane %v9441_v33, %v12358_v36 }
0x15ed   :  { %9336 = vmatprep.subr.bf16.mxu1 %v11983_v27  ;;  %9402 = vmatprep.subr.bf16.mxu0 %v11986_v34 }
0x15f0   :  { %9337 = vmatpush1.bf16.msra.mxu1 %v11981_v58  ;;  %9403 = vmatpush1.bf16.msra.mxu0 %v11984_v4 }
0x15f1   :  { %9338 = vmatprep.subr.bf16.mxu1 %v11989_v2  ;;  %9404 = vmatprep.subr.bf16.mxu0 %v11992_v23 }
0x15f4   :  { %9339 = vmatpush1.bf16.msra.mxu1 %v11987_v52  ;;  %9405 = vmatpush1.bf16.msra.mxu0 %v11990_v25  ;;  %v10248_v25 = vld [vmem:[#allocation2] ss:$0 sm:$0xff] }
0x15f5   :  { %9340 = vmatprep.subr.bf16.mxu1 %v11995_v30  ;;  %9406 = vmatprep.subr.bf16.mxu0 %v11998_v46 }
0x15f8   :  { %9341 = vmatpush1.bf16.msra.mxu1 %v11993_v17  ;;  %9407 = vmatpush1.bf16.msra.mxu0 %v11996_v54 }
0x15f9   :  { %9342 = vmatprep.subr.bf16.mxu1 %v12001_v35  ;;  %9408 = vmatprep.subr.bf16.mxu0 %v12004_v5 }
0x15fc   :  { %9343 = vmatpush1.bf16.msra.mxu1 %v11999_v37  ;;  %9409 = vmatpush1.bf16.msra.mxu0 %v12002_v39 }
0x15fd   :  { %9344 = vmatprep.subr.bf16.mxu1 %v12007_v41  ;;  %9410 = vmatprep.subr.bf16.mxu0 %v12010_v14 }
0x1600   :  { %9345 = vmatpush1.bf16.msra.mxu1 %v12005_v22  ;;  %9411 = vmatpush1.bf16.msra.mxu0 %v12008_v38 }
0x1601   :  { %9346 = vmatprep.subr.bf16.mxu1 %v12013_v6  ;;  %9412 = vmatprep.subr.bf16.mxu0 %v12016_v40 }
0x1604   :  { %9347 = vmatpush1.bf16.msra.mxu1 %v12011_v43  ;;  %9413 = vmatpush1.bf16.msra.mxu0 %v12014_v9 }
0x1605   :  { %9414 = vmatprep.subr.bf16.mxu0 %v12019_v24 }
0x1607   :  { %9349 = vmatmul.mubr.bf16.vlgmr.msra.gmra.mrb[96].mxu1 %v8489_v44 }
0x1608   :  { %9415 = vmatpush1.bf16.msra.mxu0 %v12017_v59 }
0x1609   :  { %9416 = vmatprep.subr.bf16.mxu0 %v12022_v45 }
0x160c   :  { %9417 = vmatpush1.bf16.msra.mxu0 %v12020_v1 }
0x160d   :  { %9418 = vmatprep.subr.bf16.mxu0 %v12025_v21 }
0x1610   :  { %9419 = vmatpush1.bf16.msra.mxu0 %v12023_v31 }
0x1611   :  { %9420 = vmatprep.subr.bf16.mxu0 %v12028_v47 }
0x1614   :  { %9421 = vmatpush1.bf16.msra.mxu0 %v12026_v32 }
0x1615   :  { %9422 = vmatprep.subr.bf16.mxu0 %v12031_v62 }
0x1618   :  { %9423 = vmatpush1.bf16.msra.mxu0 %v12029_v48 }
0x1619   :  { %9424 = vmatprep.subr.bf16.mxu0 %v12034_v50 }
0x161c   :  { %9425 = vmatpush1.bf16.msra.mxu0 %v12032_v28 }
0x161d   :  { %9426 = vmatprep.subr.bf16.mxu0 %v12037_v51 }
0x1620   :  { %9427 = vmatpush1.bf16.msra.mxu0 %v12035_v19 }
0x1621   :  { %9428 = vmatprep.subr.bf16.mxu0 %v12040_v53 }
0x1624   :  { %9429 = vmatpush1.bf16.msra.mxu0 %v12038_v56 }
0x1627   :  { %9431 = vmatmul.mubr.bf16.vlgmr.msra.gmra.mrb[96].mxu0 %v8493_v15 }
0x16da   :  { %v9350_v13 = vpop.f32.mrb[96].mxu1 }
0x16db   :  { %v9352_v26 = vpop.f32.mrb[97].mxu1  ;;  %v11332_v0 = vadd.f32 %v9350_v13, %v8628_v49 }
0x16dc   :  { %v9354_v60 = vpop.f32.mrb[98].mxu1  ;;  %v11334_v3 = vadd.f32 %v9352_v26, %v8632_v55 }
0x16dd   :  { %v9355_v61 = vpop.f32.mrb[99].mxu1 }
0x16fa   :  { %v9432_v7 = vpop.f32.mrb[96].mxu0 }
0x16fb   :  { %v11333_v8 = vadd.f32 %v11332_v0, %v9432_v7  ;;  %v9434_v10 = vpop.f32.mrb[97].mxu0 }
0x16fc   :  { %v11335_v18 = vadd.f32 %v11334_v3, %v9434_v10  ;;  %v9436_v11 = vpop.f32.mrb[98].mxu0 }
0x16fd   :  { %v9439_v63 = vmax.f32 %v11333_v8, 0.0  ;;  %v9437_v27 = vpop.f32.mrb[99].mxu0 }
0x16fe   :  { %v9440_v34 = vmax.f32 %v11335_v18, 0.0 }
0x16ff   :  { %v9453_v58 = vmul.f32 %v9446_v16, %v9439_v63 }
0x1700   :  { %v9454_v4 = vmul.f32 %v9450_v12, %v9440_v34 }
0x1701   :  { %v9455_v2 = vsel %vm259_vm2, %v9453_v58, 0.0 }
0x1702   :  { %v9456_v23 = vsel %vm259_vm2, %v9454_v4, 0.0 }
0x1703   :  { %v9457_v52 = vadd.f32 %v9456_v23, %v9455_v2 }
0x1705   :  { %9458 = vadd.xlane.f32.xlu0 %v9457_v52 }
0x1792   :  { %v9459_v30 = vpop.xlane.xlu0 %9458 }
0x1793   :  { %v9467_v29 = vadd.f32 %v10248_v25, %v9459_v30 }
0x1795   :  { %9469 = vst.msk [vmem:[%s12301_s20] sm:$0x3] %vm9468_vm9, %v9467_v29 }
0x1796   :  { %9474 = vsyncpa [#allocation4], 1 }

</bundles_post_ra>
